<compile_context>
chip_gen: v7x
topology: tpu7x:2x2x1
jax: 0.10.0
libtpu: 0.0.40
codegen_flags: <defaults>
</compile_context>

<pallas_src>
import functools

import jax
import jax.numpy as jnp
from jax.experimental import pallas as pl
from jax.experimental.pallas import tpu as pltpu


# ----------------------------------------------------------------------------
# Generation detection (tile-policy hints only; defaults are safe everywhere).
# ----------------------------------------------------------------------------
def _device_kind():
    try:
        return jax.devices()[0].device_kind.lower()
    except Exception:
        return ""


_KIND = _device_kind()
_IS_V5 = "v5" in _KIND
_IS_V7 = ("v7" in _KIND) or ("7x" in _KIND)
_VMEM_LIMIT = 32 * 1024 * 1024  # fits v7x's 64 MiB with ample headroom


def _round_up(x, m):
    return ((x + m - 1) // m) * m


def _k_tiling(k):
    """Few, fat K steps: tk <= 1024, K padded to a multiple of tk."""
    kp0 = _round_up(k, 128)
    ksteps = -(-kp0 // 1024)
    tk = _round_up(-(-kp0 // ksteps), 128)
    return tk * ksteps, tk


def _n_tile(np_):
    # v5e MXU is 128-wide; v6e/v7x benefit from 256-wide output tiles.
    return 256 if (np_ % 256 == 0 and not _IS_V5) else 128


# ----------------------------------------------------------------------------
# Kernel 1: generic tiled matmul + bias (+ReLU), f32 VMEM accumulator.
# Used by the 7x7 stem conv, stride-2 3x3 convs and 1x1 downsample convs.
# ----------------------------------------------------------------------------
def _mm_bias_kernel(x_ref, w_ref, b_ref, o_ref, acc_ref, *, relu):
    k = pl.program_id(2)

    @pl.when(k == 0)
    def _():
        acc_ref[...] = jnp.zeros_like(acc_ref)

    acc_ref[...] += jnp.dot(x_ref[...], w_ref[...],
                            preferred_element_type=jnp.float32)

    @pl.when(k == pl.num_programs(2) - 1)
    def _():
        y = acc_ref[...] + b_ref[...]
        if relu:
            y = jnp.maximum(y, 0.0)
        o_ref[...] = y.astype(o_ref.dtype)


def _matmul_bias_act(cols, w, b, relu, out_dtype=jnp.bfloat16):
    """y = relu?(cols @ w + b).  cols:(M,K) bf16, w:(Kp,Np) bf16 pre-padded."""
    m, k = cols.shape
    kp, np_ = w.shape

    # Degenerate sizes: Pallas launch/pipeline overhead exceeds the work.
    if m * np_ < 128 * 128:
        y = jnp.dot(cols, w[:k], preferred_element_type=jnp.float32) + b
        if relu:
            y = jnp.maximum(y, 0.0)
        return y.astype(out_dtype)

    _, tk = _k_tiling(k)
    tn = _n_tile(np_)
    tm_cap = 512 if _IS_V7 else 1024
    tm = min(tm_cap, _round_up(m, 128))
    if _IS_V7:
        # keep >=4 parallel grid iterations so both TensorCores get work
        while tm >= 256 and (-(-m // tm)) * (np_ // tn) < 4:
            tm //= 2
    mp = _round_up(m, tm)

    xb = cols
    if (mp, kp) != (m, k):
        xb = jnp.pad(cols, ((0, mp - m), (0, kp - k)))

    out_bytes = jnp.dtype(out_dtype).itemsize
    cost = pl.CostEstimate(
        flops=2 * mp * np_ * kp,
        transcendentals=0,
        bytes_accessed=mp * kp * 2 + kp * np_ * 2 + np_ * 4 + mp * np_ * out_bytes,
    )

    out = pl.pallas_call(
        functools.partial(_mm_bias_kernel, relu=relu),
        out_shape=jax.ShapeDtypeStruct((mp, np_), out_dtype),
        grid=(mp // tm, np_ // tn, kp // tk),
        in_specs=[
            pl.BlockSpec((tm, tk), lambda i, j, kk: (i, kk)),
            pl.BlockSpec((tk, tn), lambda i, j, kk: (kk, j)),
            pl.BlockSpec((1, tn), lambda i, j, kk: (0, j)),
        ],
        out_specs=pl.BlockSpec((tm, tn), lambda i, j, kk: (i, j)),
        scratch_shapes=[pltpu.VMEM((tm, tn), jnp.float32)],
        compiler_params=pltpu.CompilerParams(
            dimension_semantics=("parallel", "parallel", "arbitrary"),
            vmem_limit_bytes=_VMEM_LIMIT,
        ),
        cost_estimate=cost,
    )(xb, w, b)
    return out[:m] if mp != m else out


# ----------------------------------------------------------------------------
# Kernel 2: stride-1 3x3 conv with in-kernel im2col (tap accumulation),
# fused BN bias + optional residual + ReLU.
#
# The padded image is passed flattened as (1, Hp*Wp, C); for tap (ki, kj) the
# rows [ki*Wp+kj, ki*Wp+kj+Lw) of that flat view are exactly the inputs needed
# by output rows m = oh*Wp+ow (rows with ow >= Wo are junk and cropped later),
# so each tap is one contiguous static slice + one MXU dot.
# ----------------------------------------------------------------------------
def _conv3x3_tap_kernel(*refs, offsets, lw, relu, has_residual):
    if has_residual:
        x_ref, w_ref, b_ref, r_ref, o_ref = refs
    else:
        x_ref, w_ref, b_ref, o_ref = refs
        r_ref = None
    tn = w_ref.shape[-1]
    acc = jnp.zeros((lw, tn), jnp.float32)
    for t, s in enumerate(offsets):                 # 9 static taps
        win = x_ref[0, s:s + lw, :]                 # (Lw, Cin) static slice
        acc = acc + jnp.dot(win, w_ref[t], preferred_element_type=jnp.float32)
    y = acc + b_ref[...]
    if has_residual:
        y = y + r_ref[0].astype(jnp.float32)
    if relu:
        y = jnp.maximum(y, 0.0)
    o_ref[0] = y.astype(o_ref.dtype)


def conv3x3_s1(x, p, relu, residual=None, out_dtype=jnp.bfloat16):
    """3x3 / stride-1 / pad-1 conv with folded BN (+residual/ReLU) in-kernel."""
    n, h, w_, c = x.shape
    taps, cin_p, np_ = p["w"].shape
    assert taps == 9 and c == cin_p
    hp, wp = h + 2, w_ + 2
    ho, wo = h, w_
    lw = (ho - 1) * wp + wo
    offsets = tuple(ki * wp + kj for ki in range(3) for kj in range(3))

    xb = jnp.pad(x.astype(jnp.bfloat16), ((0, 0), (1, 1), (1, 1), (0, 0)))
    xflat = xb.reshape(n, hp * wp, c)

    tn = _n_tile(np_)
    has_res = residual is not None

    args = [xflat, p["w"], p["b"]]
    in_specs = [
        pl.BlockSpec((1, hp * wp, c), lambda b, j: (b, 0, 0)),
        pl.BlockSpec((9, cin_p, tn), lambda b, j: (0, 0, j)),
        pl.BlockSpec((1, tn), lambda b, j: (0, j)),
    ]
    if has_res:
        assert residual.shape == (n, ho, wo, np_)
        rb = jnp.pad(residual.astype(jnp.bfloat16),
                     ((0, 0), (0, 0), (0, wp - wo), (0, 0)))
        rb = rb.reshape(n, ho * wp, np_)[:, :lw, :]
        args.append(rb)
        in_specs.append(pl.BlockSpec((1, lw, tn), lambda b, j: (b, 0, j)))

    cost = pl.CostEstimate(
        flops=2 * n * lw * cin_p * np_ * 9,
        transcendentals=0,
        bytes_accessed=(n * hp * wp * c * 2 + 9 * cin_p * np_ * 2
                        + n * lw * np_ * 2 * (2 if has_res else 1)),
    )

    out = pl.pallas_call(
        functools.partial(_conv3x3_tap_kernel, offsets=offsets, lw=lw,
                          relu=relu, has_residual=has_res),
        out_shape=jax.ShapeDtypeStruct((n, lw, np_), out_dtype),
        grid=(n, np_ // tn),
        in_specs=in_specs,
        out_specs=pl.BlockSpec((1, lw, tn), lambda b, j: (b, 0, j)),
        compiler_params=pltpu.CompilerParams(
            dimension_semantics=("parallel", "parallel"),
            vmem_limit_bytes=_VMEM_LIMIT,
        ),
        cost_estimate=cost,
    )(*args)

    # Un-flatten: (n, Lw, Np) -> (n, Ho, Wo, Np); junk columns ow>=Wo dropped.
    out = jnp.pad(out, ((0, 0), (0, ho * wp - lw), (0, 0)))
    return out.reshape(n, ho, wp, np_)[:, :, :wo, :]


# ----------------------------------------------------------------------------
# Generic conv wrapper (7x7 stem, stride-2 3x3, 1x1 downsample).
# ----------------------------------------------------------------------------
def conv_generic(x, p, kh, kw, stride, padding, relu, out_dtype=jnp.bfloat16):
    n, h, w_, c = x.shape
    xb = x.astype(jnp.bfloat16)
    if kh == 1 and kw == 1 and padding == 0:
        sub = xb[:, ::stride, ::stride, :]
        ho, wo = sub.shape[1], sub.shape[2]
        cols = sub.reshape(n * ho * wo, c)
    else:
        # TODO(synk): stride>1 / 7x7 convs still materialize im2col in JAX.
        xp = jnp.pad(xb, ((0, 0), (padding, padding), (padding, padding), (0, 0)))
        ho = (h + 2 * padding - kh) // stride + 1
        wo = (w_ + 2 * padding - kw) // stride + 1
        taps = [xp[:, i:i + stride * ho:stride, j:j + stride * wo:stride, :]
                for i in range(kh) for j in range(kw)]
        cols = jnp.concatenate(taps, axis=-1).reshape(n * ho * wo, kh * kw * c)
    out = _matmul_bias_act(cols, p["w"], p["b"], relu, out_dtype)
    np_ = p["w"].shape[1]
    return out.reshape(n, ho, wo, np_)


def maxpool2d(x_nhwc, k=3, stride=2, pad=1):
    # Fused 9-tap elementwise max; avoids materializing a (9,M,C) tensor.
    n, h, w_, c = x_nhwc.shape
    xp = jnp.pad(x_nhwc, ((0, 0), (pad, pad), (pad, pad), (0, 0)),
                 constant_values=-jnp.inf)
    ho = (h + 2 * pad - k) // stride + 1
    wo = (w_ + 2 * pad - k) // stride + 1
    out = None
    for i in range(k):
        for j in range(k):
            tap = xp[:, i:i + stride * ho:stride, j:j + stride * wo:stride, :]
            out = tap if out is None else jnp.maximum(out, tap)
    return out


# ----------------------------------------------------------------------------
# One-time parameter preparation (BN fold, transpose, bf16 cast, K/N padding).
# Activations carry channel counts padded to multiples of 128 end to end, so
# the conv outputs never need channel slicing (lane-dense everywhere).
# ----------------------------------------------------------------------------
def _fold_bn_weights(w_oihw, conv_b, bn, eps=1e-5):
    scale = bn["gamma"] * jax.lax.rsqrt(bn["var"] + eps)
    shift = bn["beta"] - bn["mean"] * scale
    if conv_b is not None:
        shift = shift + conv_b * scale
    w = jnp.transpose(w_oihw, (2, 3, 1, 0)) * scale          # (kh,kw,ci,o)
    return w, shift


def _prep_generic(w_oihw, conv_b, bn, in_ch_pad=None):
    w, shift = _fold_bn_weights(w_oihw, conv_b, bn)
    kh, kw, ci, o = w.shape
    cip = ci if in_ch_pad is None else in_ch_pad
    np_ = _round_up(o, 128)
    w = jnp.pad(w, ((0, 0), (0, 0), (0, cip - ci), (0, np_ - o)))
    k = kh * kw * cip
    kp, _ = _k_tiling(k)
    w = jnp.pad(w.reshape(k, np_), ((0, kp - k), (0, 0))).astype(jnp.bfloat16)
    b = jnp.pad(shift.reshape(1, o), ((0, 0), (0, np_ - o))).astype(jnp.float32)
    return {"w": w, "b": b}


def _prep_tap(w_oihw, bn, in_ch_pad):
    w, shift = _fold_bn_weights(w_oihw, None, bn)
    kh, kw, ci, o = w.shape
    np_ = _round_up(o, 128)
    w = jnp.pad(w, ((0, 0), (0, 0), (0, in_ch_pad - ci), (0, np_ - o)))
    w = w.reshape(kh * kw, in_ch_pad, np_).astype(jnp.bfloat16)
    b = jnp.pad(shift.reshape(1, o), ((0, 0), (0, np_ - o))).astype(jnp.float32)
    return {"w": w, "b": b}


def prepare_params(params):
    prep = {
        "conv1": _prep_generic(params["conv1_w"], None, params["bn1"]),
        "fc_w": params["fc_w"].astype(jnp.float32),
        "fc_b": params["fc_b"].astype(jnp.float32),
    }
    cur = _round_up(64, 128)                       # padded channels after stem
    for li, name in enumerate(("layer1", "layer2", "layer3", "layer4")):
        stride0 = 1 if li == 0 else 2
        blocks = []
        for b_i, p in enumerate(params[name]):
            stride = stride0 if b_i == 0 else 1
            planes = p["conv1_w"].shape[0]
            mid = _round_up(planes, 128)
            blk = {}
            if stride == 1:
                blk["conv1"] = _prep_tap(p["conv1_w"], p["bn1"], cur)
            else:
                blk["conv1"] = _prep_generic(p["conv1_w"], None, p["bn1"], cur)
            blk["conv2"] = _prep_tap(p["conv2_w"], p["bn2"], mid)
            if "down" in p:
                blk["down"] = _prep_generic(p["down"]["conv_w"],
                                            p["down"]["conv_b"],
                                            p["down"]["bn"], cur)
            blocks.append(blk)
            cur = mid
        prep[name] = blocks
    return prep


# ----------------------------------------------------------------------------
# ResNet forward (basic block, expansion = 1)
# ----------------------------------------------------------------------------
def resnet_forward(x_nchw, prep):
    x = jnp.transpose(x_nchw, (0, 2, 3, 1)).astype(jnp.bfloat16)  # NCHW->NHWC
    x = conv_generic(x, prep["conv1"], kh=7, kw=7, stride=2, padding=3, relu=True)
    x = maxpool2d(x, k=3, stride=2, pad=1)
    for li, name in enumerate(("layer1", "layer2", "layer3", "layer4")):
        stride0 = 1 if li == 0 else 2
        for b_i, blk in enumerate(prep[name]):
            stride = stride0 if b_i == 0 else 1
            if stride == 1:
                out = conv3x3_s1(x, blk["conv1"], relu=True)
            else:
                out = conv_generic(x, blk["conv1"], kh=3, kw=3, stride=stride,
                                   padding=1, relu=True)
            if "down" in blk:
                identity = conv_generic(x, blk["down"], kh=1, kw=1,
                                        stride=stride, padding=0, relu=False)
            else:
                identity = x
            # conv2 + bn2 + residual + relu fused in one Pallas call.
            x = conv3x3_s1(out, blk["conv2"], relu=True, residual=identity)
    n, h, w_, c = x.shape
    feat = jnp.mean(x.reshape(n, h * w_, c).astype(jnp.float32), axis=1)
    # fc head: tiny matmul -> plain XLA dot (Pallas launch overhead > work).
    return jnp.dot(feat, prep["fc_w"],
                   preferred_element_type=jnp.float32) + prep["fc_b"]


# ----------------------------------------------------------------------------
# Deterministic parameter initialization (mirrors the PyTorch module layout)
# ----------------------------------------------------------------------------
class _KeyGen:
    def __init__(self, key):
        self._key = key

    def next(self):
        self._key, sub = jax.random.split(self._key)
        return sub


def _init_bn(kg, c):
    return {
        "gamma": 0.5 + jax.random.uniform(kg.next(), (c,), jnp.float32),
        "beta": 0.1 * jax.random.normal(kg.next(), (c,), jnp.float32),
        "mean": 0.1 * jax.random.normal(kg.next(), (c,), jnp.float32),
        "var": 0.5 + jax.random.uniform(kg.next(), (c,), jnp.float32),
    }


def _init_conv(kg, cout, cin, kh, kw):
    return 0.05 * jax.random.normal(kg.next(), (cout, cin, kh, kw), jnp.float32)


def init_resnet_params(key, layer_list, num_classes, num_channels=3):
    kg = _KeyGen(key)
    params = {
        "conv1_w": _init_conv(kg, 64, num_channels, 7, 7),
        "bn1": _init_bn(kg, 64),
    }
    expansion = 1
    in_channels = 64
    plan = [(64, layer_list[0], 1), (128, layer_list[1], 2),
            (256, layer_list[2], 2), (512, layer_list[3], 2)]
    for li, (planes, nblocks, stride0) in enumerate(plan, start=1):
        blocks = []
        for b in range(nblocks):
            stride = stride0 if b == 0 else 1
            p = {
                "conv1_w": _init_conv(kg, planes, in_channels, 3, 3),
                "bn1": _init_bn(kg, planes),
                "conv2_w": _init_conv(kg, planes, planes, 3, 3),
                "bn2": _init_bn(kg, planes),
            }
            if stride != 1 or in_channels != planes * expansion:
                p["down"] = {
                    "conv_w": _init_conv(kg, planes * expansion, in_channels, 1, 1),
                    "conv_b": 0.1 * jax.random.normal(
                        kg.next(), (planes * expansion,), jnp.float32),
                    "bn": _init_bn(kg, planes * expansion),
                }
            blocks.append(p)
            in_channels = planes * expansion
        params[f"layer{li}"] = blocks
    params["fc_w"] = 0.05 * jax.random.normal(
        kg.next(), (512 * expansion, num_classes), jnp.float32)
    params["fc_b"] = 0.1 * jax.random.normal(
        kg.next(), (num_classes,), jnp.float32)
    return params


# ----------------------------------------------------------------------------
if __name__ == "__main__":
    key = jax.random.PRNGKey(0)
    pkey, xkey = jax.random.split(key)

    layer_list = [1, 1, 1, 1]
    num_classes = 10
    num_channels = 3
    params = init_resnet_params(pkey, layer_list, num_classes, num_channels)
    prep = prepare_params(params)          # one-time weight prep (review item)

    x = jax.random.normal(xkey, (2, num_channels, 32, 32), jnp.float32)  # NCHW

    fwd = jax.jit(resnet_forward)
    out = jax.block_until_ready(fwd(x, prep))
    assert out.shape == (2, num_classes), out.shape
    assert bool(jnp.all(jnp.isfinite(out)))
    print("KERNEL_OK")
</pallas_src>

<mosaic_0001>
module attributes {stable_mosaic.version = 11 : i64} {
  func.func @_mm_bias_kernel(%arg0: i32, %arg1: i32, %arg2: i32, %arg3: memref<512x256xbf16, #tpu.memory_space<vmem>>, %arg4: memref<256x128xbf16, #tpu.memory_space<vmem>>, %arg5: memref<1x128xf32, #tpu.memory_space<vmem>>, %arg6: memref<512x128xbf16, #tpu.memory_space<vmem>>, %arg7: memref<512x128xf32, #tpu.memory_space<vmem>>) attributes {dimension_semantics = [#tpu.dimension_semantics<parallel>, #tpu.dimension_semantics<parallel>, #tpu.dimension_semantics<arbitrary>], iteration_bounds = array<i64: 1, 1, 1>, scalar_prefetch = 0 : i64, scratch_operands = 1 : i64, tpu.core_type = #tpu.core_type<tc>, window_params = [{transform_indices = @transform_0, window_bounds = array<i64: 512, 256>}, {transform_indices = @transform_1, window_bounds = array<i64: 256, 128>}, {transform_indices = @transform_2, window_bounds = array<i64: 1, 128>}, {transform_indices = @transform_3, window_bounds = array<i64: 512, 128>}]} {
    %c0_i32 = arith.constant 0 : i32
    %0 = arith.cmpi eq, %arg2, %c0_i32 : i32
    %1 = arith.extui %0 : i1 to i32
    %c0_i32_0 = arith.constant 0 : i32
    %2 = arith.cmpi ne, %1, %c0_i32_0 : i32
    scf.if %2 {
      %cst_10 = arith.constant 0.000000e+00 : f32
      %12 = vector.broadcast %cst_10 : f32 to vector<512x128xf32>
      %c0_11 = arith.constant 0 : index
      %c0_12 = arith.constant 0 : index
      %13 = vector.load %arg7[%c0_11, %c0_12] : memref<512x128xf32, #tpu.memory_space<vmem>>, vector<512x128xf32>
      tpu.vector_store %arg7[%c0_11, %c0_12], %12 {strides = array<i32>} : memref<512x128xf32, #tpu.memory_space<vmem>>, vector<512x128xf32>,
    } else {
    }
    %c0 = arith.constant 0 : index
    %c0_1 = arith.constant 0 : index
    %3 = vector.load %arg7[%c0, %c0_1] : memref<512x128xf32, #tpu.memory_space<vmem>>, vector<512x128xf32>
    %c0_2 = arith.constant 0 : index
    %c0_3 = arith.constant 0 : index
    %4 = vector.load %arg3[%c0_2, %c0_3] : memref<512x256xbf16, #tpu.memory_space<vmem>>, vector<512x256xbf16>
    %c0_4 = arith.constant 0 : index
    %c0_5 = arith.constant 0 : index
    %5 = vector.load %arg4[%c0_4, %c0_5] : memref<256x128xbf16, #tpu.memory_space<vmem>>, vector<256x128xbf16>
    %cst = arith.constant dense<0.000000e+00> : vector<512x128xf32>
    %6 = tpu.matmul %4, %5, %cst {dimension_numbers = #tpu.dot_dimension_numbers<[1], [0], [0], [1], [0, 0, 1, 1], [], []>} : vector<512x256xbf16>, vector<256x128xbf16>, vector<512x128xf32> -> vector<512x128xf32>
    %7 = arith.addf %3, %6 : vector<512x128xf32>
    %c0_6 = arith.constant 0 : index
    %c0_7 = arith.constant 0 : index
    %8 = vector.load %arg7[%c0_6, %c0_7] : memref<512x128xf32, #tpu.memory_space<vmem>>, vector<512x128xf32>
    tpu.vector_store %arg7[%c0_6, %c0_7], %7 {strides = array<i32>} : memref<512x128xf32, #tpu.memory_space<vmem>>, vector<512x128xf32>,
    %c0_i32_8 = arith.constant 0 : i32
    %9 = arith.cmpi eq, %arg2, %c0_i32_8 : i32
    %10 = arith.extui %9 : i1 to i32
    %c0_i32_9 = arith.constant 0 : i32
    %11 = arith.cmpi ne, %10, %c0_i32_9 : i32
    scf.if %11 {
      %c0_10 = arith.constant 0 : index
      %c0_11 = arith.constant 0 : index
      %12 = vector.load %arg7[%c0_10, %c0_11] : memref<512x128xf32, #tpu.memory_space<vmem>>, vector<512x128xf32>
      %c0_12 = arith.constant 0 : index
      %c0_13 = arith.constant 0 : index
      %13 = vector.load %arg5[%c0_12, %c0_13] : memref<1x128xf32, #tpu.memory_space<vmem>>, vector<1x128xf32>
      %14 = vector.broadcast %13 : vector<1x128xf32> to vector<512x128xf32>
      %15 = arith.addf %12, %14 : vector<512x128xf32>
      %cst_14 = arith.constant 0.000000e+00 : f32
      %16 = vector.broadcast %cst_14 : f32 to vector<512x128xf32>
      %17 = arith.maximumf %15, %16 : vector<512x128xf32>
      %18 = arith.truncf %17 : vector<512x128xf32> to vector<512x128xbf16>
      %c0_15 = arith.constant 0 : index
      %c0_16 = arith.constant 0 : index
      %19 = vector.load %arg6[%c0_15, %c0_16] : memref<512x128xbf16, #tpu.memory_space<vmem>>, vector<512x128xbf16>
      tpu.vector_store %arg6[%c0_15, %c0_16], %18 {strides = array<i32>} : memref<512x128xbf16, #tpu.memory_space<vmem>>, vector<512x128xbf16>,
    } else {
    }
    return
  }
  func.func @transform_0(%arg0: i32, %arg1: i32, %arg2: i32) -> (i32, i32) {
    %c0_i32 = arith.constant 0 : i32
    return %arg0, %arg2 : i32, i32
  }
  func.func @transform_1(%arg0: i32, %arg1: i32, %arg2: i32) -> (i32, i32) {
    %c0_i32 = arith.constant 0 : i32
    return %arg2, %arg1 : i32, i32
  }
  func.func @transform_2(%arg0: i32, %arg1: i32, %arg2: i32) -> (i32, i32) {
    %c0_i32 = arith.constant 0 : i32
    %c0_i32_0 = arith.constant 0 : i32
    return %c0_i32, %arg1 : i32, i32
  }
  func.func @transform_3(%arg0: i32, %arg1: i32, %arg2: i32) -> (i32, i32) {
    %c0_i32 = arith.constant 0 : i32
    return %arg0, %arg1 : i32, i32
  }
}

module attributes {stable_mosaic.version = 11 : i64} {
  func.func @_conv3x3_tap_kernel(%arg0: i32, %arg1: i32, %arg2: memref<1x100x128xbf16, #tpu.memory_space<vmem>>, %arg3: memref<9x128x128xbf16, #tpu.memory_space<vmem>>, %arg4: memref<1x128xf32, #tpu.memory_space<vmem>>, %arg5: memref<1x78x128xbf16, #tpu.memory_space<vmem>>) attributes {dimension_semantics = [#tpu.dimension_semantics<parallel>, #tpu.dimension_semantics<parallel>], iteration_bounds = array<i64: 2, 1>, scalar_prefetch = 0 : i64, scratch_operands = 0 : i64, tpu.core_type = #tpu.core_type<tc>, window_params = [{transform_indices = @transform_0, window_bounds = array<i64: 1, 100, 128>}, {transform_indices = @transform_1, window_bounds = array<i64: 9, 128, 128>}, {transform_indices = @transform_2, window_bounds = array<i64: 1, 128>}, {transform_indices = @transform_3, window_bounds = array<i64: 1, 78, 128>}]} {
    %cst = arith.constant 0.000000e+00 : f32
    %0 = vector.broadcast %cst : f32 to vector<78x128xf32>
    %c0 = arith.constant 0 : index
    %c0_0 = arith.constant 0 : index
    %c0_1 = arith.constant 0 : index
    %1 = vector.load %arg2[%c0, %c0_0, %c0_1] : memref<1x100x128xbf16, #tpu.memory_space<vmem>>, vector<1x78x128xbf16>
    %2 = vector.shape_cast %1 : vector<1x78x128xbf16> to vector<78x128xbf16>
    %c0_2 = arith.constant 0 : index
    %c0_3 = arith.constant 0 : index
    %c0_4 = arith.constant 0 : index
    %3 = vector.load %arg3[%c0_2, %c0_3, %c0_4] : memref<9x128x128xbf16, #tpu.memory_space<vmem>>, vector<1x128x128xbf16>
    %4 = vector.shape_cast %3 : vector<1x128x128xbf16> to vector<128x128xbf16>
    %cst_5 = arith.constant dense<0.000000e+00> : vector<78x128xf32>
    %5 = tpu.matmul %2, %4, %cst_5 {dimension_numbers = #tpu.dot_dimension_numbers<[1], [0], [0], [1], [0, 0, 1, 1], [], []>} : vector<78x128xbf16>, vector<128x128xbf16>, vector<78x128xf32> -> vector<78x128xf32>
    %6 = arith.addf %0, %5 : vector<78x128xf32>
    %c0_6 = arith.constant 0 : index
    %c1 = arith.constant 1 : index
    %c0_7 = arith.constant 0 : index
    %7 = vector.load %arg2[%c0_6, %c1, %c0_7] : memref<1x100x128xbf16, #tpu.memory_space<vmem>>, vector<1x78x128xbf16>
    %8 = vector.shape_cast %7 : vector<1x78x128xbf16> to vector<78x128xbf16>
    %c1_8 = arith.constant 1 : index
    %c0_9 = arith.constant 0 : index
    %c0_10 = arith.constant 0 : index
    %9 = vector.load %arg3[%c1_8, %c0_9, %c0_10] : memref<9x128x128xbf16, #tpu.memory_space<vmem>>, vector<1x128x128xbf16>
    %10 = vector.shape_cast %9 : vector<1x128x128xbf16> to vector<128x128xbf16>
    %cst_11 = arith.constant dense<0.000000e+00> : vector<78x128xf32>
    %11 = tpu.matmul %8, %10, %cst_11 {dimension_numbers = #tpu.dot_dimension_numbers<[1], [0], [0], [1], [0, 0, 1, 1], [], []>} : vector<78x128xbf16>, vector<128x128xbf16>, vector<78x128xf32> -> vector<78x128xf32>
    %12 = arith.addf %6, %11 : vector<78x128xf32>
    %c0_12 = arith.constant 0 : index
    %c2 = arith.constant 2 : index
    %c0_13 = arith.constant 0 : index
    %13 = vector.load %arg2[%c0_12, %c2, %c0_13] : memref<1x100x128xbf16, #tpu.memory_space<vmem>>, vector<1x78x128xbf16>
    %14 = vector.shape_cast %13 : vector<1x78x128xbf16> to vector<78x128xbf16>
    %c2_14 = arith.constant 2 : index
    %c0_15 = arith.constant 0 : index
    %c0_16 = arith.constant 0 : index
    %15 = vector.load %arg3[%c2_14, %c0_15, %c0_16] : memref<9x128x128xbf16, #tpu.memory_space<vmem>>, vector<1x128x128xbf16>
    %16 = vector.shape_cast %15 : vector<1x128x128xbf16> to vector<128x128xbf16>
    %cst_17 = arith.constant dense<0.000000e+00> : vector<78x128xf32>
    %17 = tpu.matmul %14, %16, %cst_17 {dimension_numbers = #tpu.dot_dimension_numbers<[1], [0], [0], [1], [0, 0, 1, 1], [], []>} : vector<78x128xbf16>, vector<128x128xbf16>, vector<78x128xf32> -> vector<78x128xf32>
    %18 = arith.addf %12, %17 : vector<78x128xf32>
    %c0_18 = arith.constant 0 : index
    %c10 = arith.constant 10 : index
    %c0_19 = arith.constant 0 : index
    %19 = vector.load %arg2[%c0_18, %c10, %c0_19] : memref<1x100x128xbf16, #tpu.memory_space<vmem>>, vector<1x78x128xbf16>
    %20 = vector.shape_cast %19 : vector<1x78x128xbf16> to vector<78x128xbf16>
    %c3 = arith.constant 3 : index
    %c0_20 = arith.constant 0 : index
    %c0_21 = arith.constant 0 : index
    %21 = vector.load %arg3[%c3, %c0_20, %c0_21] : memref<9x128x128xbf16, #tpu.memory_space<vmem>>, vector<1x128x128xbf16>
    %22 = vector.shape_cast %21 : vector<1x128x128xbf16> to vector<128x128xbf16>
    %cst_22 = arith.constant dense<0.000000e+00> : vector<78x128xf32>
    %23 = tpu.matmul %20, %22, %cst_22 {dimension_numbers = #tpu.dot_dimension_numbers<[1], [0], [0], [1], [0, 0, 1, 1], [], []>} : vector<78x128xbf16>, vector<128x128xbf16>, vector<78x128xf32> -> vector<78x128xf32>
    %24 = arith.addf %18, %23 : vector<78x128xf32>
    %c0_23 = arith.constant 0 : index
    %c11 = arith.constant 11 : index
    %c0_24 = arith.constant 0 : index
    %25 = vector.load %arg2[%c0_23, %c11, %c0_24] : memref<1x100x128xbf16, #tpu.memory_space<vmem>>, vector<1x78x128xbf16>
    %26 = vector.shape_cast %25 : vector<1x78x128xbf16> to vector<78x128xbf16>
    %c4 = arith.constant 4 : index
    %c0_25 = arith.constant 0 : index
    %c0_26 = arith.constant 0 : index
    %27 = vector.load %arg3[%c4, %c0_25, %c0_26] : memref<9x128x128xbf16, #tpu.memory_space<vmem>>, vector<1x128x128xbf16>
    %28 = vector.shape_cast %27 : vector<1x128x128xbf16> to vector<128x128xbf16>
    %cst_27 = arith.constant dense<0.000000e+00> : vector<78x128xf32>
    %29 = tpu.matmul %26, %28, %cst_27 {dimension_numbers = #tpu.dot_dimension_numbers<[1], [0], [0], [1], [0, 0, 1, 1], [], []>} : vector<78x128xbf16>, vector<128x128xbf16>, vector<78x128xf32> -> vector<78x128xf32>
    %30 = arith.addf %24, %29 : vector<78x128xf32>
    %c0_28 = arith.constant 0 : index
    %c12 = arith.constant 12 : index
    %c0_29 = arith.constant 0 : index
    %31 = vector.load %arg2[%c0_28, %c12, %c0_29] : memref<1x100x128xbf16, #tpu.memory_space<vmem>>, vector<1x78x128xbf16>
    %32 = vector.shape_cast %31 : vector<1x78x128xbf16> to vector<78x128xbf16>
    %c5 = arith.constant 5 : index
    %c0_30 = arith.constant 0 : index
    %c0_31 = arith.constant 0 : index
    %33 = vector.load %arg3[%c5, %c0_30, %c0_31] : memref<9x128x128xbf16, #tpu.memory_space<vmem>>, vector<1x128x128xbf16>
    %34 = vector.shape_cast %33 : vector<1x128x128xbf16> to vector<128x128xbf16>
    %cst_32 = arith.constant dense<0.000000e+00> : vector<78x128xf32>
    %35 = tpu.matmul %32, %34, %cst_32 {dimension_numbers = #tpu.dot_dimension_numbers<[1], [0], [0], [1], [0, 0, 1, 1], [], []>} : vector<78x128xbf16>, vector<128x128xbf16>, vector<78x128xf32> -> vector<78x128xf32>
    %36 = arith.addf %30, %35 : vector<78x128xf32>
    %c0_33 = arith.constant 0 : index
    %c20 = arith.constant 20 : index
    %c0_34 = arith.constant 0 : index
    %37 = vector.load %arg2[%c0_33, %c20, %c0_34] : memref<1x100x128xbf16, #tpu.memory_space<vmem>>, vector<1x78x128xbf16>
    %38 = vector.shape_cast %37 : vector<1x78x128xbf16> to vector<78x128xbf16>
    %c6 = arith.constant 6 : index
    %c0_35 = arith.constant 0 : index
    %c0_36 = arith.constant 0 : index
    %39 = vector.load %arg3[%c6, %c0_35, %c0_36] : memref<9x128x128xbf16, #tpu.memory_space<vmem>>, vector<1x128x128xbf16>
    %40 = vector.shape_cast %39 : vector<1x128x128xbf16> to vector<128x128xbf16>
    %cst_37 = arith.constant dense<0.000000e+00> : vector<78x128xf32>
    %41 = tpu.matmul %38, %40, %cst_37 {dimension_numbers = #tpu.dot_dimension_numbers<[1], [0], [0], [1], [0, 0, 1, 1], [], []>} : vector<78x128xbf16>, vector<128x128xbf16>, vector<78x128xf32> -> vector<78x128xf32>
    %42 = arith.addf %36, %41 : vector<78x128xf32>
    %c0_38 = arith.constant 0 : index
    %c21 = arith.constant 21 : index
    %c0_39 = arith.constant 0 : index
    %43 = vector.load %arg2[%c0_38, %c21, %c0_39] : memref<1x100x128xbf16, #tpu.memory_space<vmem>>, vector<1x78x128xbf16>
    %44 = vector.shape_cast %43 : vector<1x78x128xbf16> to vector<78x128xbf16>
    %c7 = arith.constant 7 : index
    %c0_40 = arith.constant 0 : index
    %c0_41 = arith.constant 0 : index
    %45 = vector.load %arg3[%c7, %c0_40, %c0_41] : memref<9x128x128xbf16, #tpu.memory_space<vmem>>, vector<1x128x128xbf16>
    %46 = vector.shape_cast %45 : vector<1x128x128xbf16> to vector<128x128xbf16>
    %cst_42 = arith.constant dense<0.000000e+00> : vector<78x128xf32>
    %47 = tpu.matmul %44, %46, %cst_42 {dimension_numbers = #tpu.dot_dimension_numbers<[1], [0], [0], [1], [0, 0, 1, 1], [], []>} : vector<78x128xbf16>, vector<128x128xbf16>, vector<78x128xf32> -> vector<78x128xf32>
    %48 = arith.addf %42, %47 : vector<78x128xf32>
    %c0_43 = arith.constant 0 : index
    %c22 = arith.constant 22 : index
    %c0_44 = arith.constant 0 : index
    %49 = vector.load %arg2[%c0_43, %c22, %c0_44] : memref<1x100x128xbf16, #tpu.memory_space<vmem>>, vector<1x78x128xbf16>
    %50 = vector.shape_cast %49 : vector<1x78x128xbf16> to vector<78x128xbf16>
    %c8 = arith.constant 8 : index
    %c0_45 = arith.constant 0 : index
    %c0_46 = arith.constant 0 : index
    %51 = vector.load %arg3[%c8, %c0_45, %c0_46] : memref<9x128x128xbf16, #tpu.memory_space<vmem>>, vector<1x128x128xbf16>
    %52 = vector.shape_cast %51 : vector<1x128x128xbf16> to vector<128x128xbf16>
    %cst_47 = arith.constant dense<0.000000e+00> : vector<78x128xf32>
    %53 = tpu.matmul %50, %52, %cst_47 {dimension_numbers = #tpu.dot_dimension_numbers<[1], [0], [0], [1], [0, 0, 1, 1], [], []>} : vector<78x128xbf16>, vector<128x128xbf16>, vector<78x128xf32> -> vector<78x128xf32>
    %54 = arith.addf %48, %53 : vector<78x128xf32>
    %c0_48 = arith.constant 0 : index
    %c0_49 = arith.constant 0 : index
    %55 = vector.load %arg4[%c0_48, %c0_49] : memref<1x128xf32, #tpu.memory_space<vmem>>, vector<1x128xf32>
    %56 = vector.broadcast %55 : vector<1x128xf32> to vector<78x128xf32>
    %57 = arith.addf %54, %56 : vector<78x128xf32>
    %cst_50 = arith.constant 0.000000e+00 : f32
    %58 = vector.broadcast %cst_50 : f32 to vector<78x128xf32>
    %59 = arith.maximumf %57, %58 : vector<78x128xf32>
    %60 = arith.truncf %59 : vector<78x128xf32> to vector<78x128xbf16>
    %c0_51 = arith.constant 0 : index
    %c0_52 = arith.constant 0 : index
    %c0_53 = arith.constant 0 : index
    %61 = vector.load %arg5[%c0_51, %c0_52, %c0_53] : memref<1x78x128xbf16, #tpu.memory_space<vmem>>, vector<1x78x128xbf16>
    %62 = vector.shape_cast %61 : vector<1x78x128xbf16> to vector<78x128xbf16>
    %63 = vector.shape_cast %60 : vector<78x128xbf16> to vector<1x78x128xbf16>
    tpu.vector_store %arg5[%c0_51, %c0_52, %c0_53], %63 {strides = array<i32>} : memref<1x78x128xbf16, #tpu.memory_space<vmem>>, vector<1x78x128xbf16>,
    return
  }
  func.func @transform_0(%arg0: i32, %arg1: i32) -> (i32, i32, i32) {
    %c0_i32 = arith.constant 0 : i32
    %c0_i32_0 = arith.constant 0 : i32
    %c0_i32_1 = arith.constant 0 : i32
    return %arg0, %c0_i32, %c0_i32_0 : i32, i32, i32
  }
  func.func @transform_1(%arg0: i32, %arg1: i32) -> (i32, i32, i32) {
    %c0_i32 = arith.constant 0 : i32
    %c0_i32_0 = arith.constant 0 : i32
    %c0_i32_1 = arith.constant 0 : i32
    return %c0_i32, %c0_i32_0, %arg1 : i32, i32, i32
  }
  func.func @transform_2(%arg0: i32, %arg1: i32) -> (i32, i32) {
    %c0_i32 = arith.constant 0 : i32
    %c0_i32_0 = arith.constant 0 : i32
    return %c0_i32, %arg1 : i32, i32
  }
  func.func @transform_3(%arg0: i32, %arg1: i32) -> (i32, i32, i32) {
    %c0_i32 = arith.constant 0 : i32
    %c0_i32_0 = arith.constant 0 : i32
    return %arg0, %c0_i32, %arg1 : i32, i32, i32
  }
}

module attributes {stable_mosaic.version = 11 : i64} {
  func.func @_conv3x3_tap_kernel(%arg0: i32, %arg1: i32, %arg2: memref<1x100x128xbf16, #tpu.memory_space<vmem>>, %arg3: memref<9x128x128xbf16, #tpu.memory_space<vmem>>, %arg4: memref<1x128xf32, #tpu.memory_space<vmem>>, %arg5: memref<1x78x128xbf16, #tpu.memory_space<vmem>>, %arg6: memref<1x78x128xbf16, #tpu.memory_space<vmem>>) attributes {dimension_semantics = [#tpu.dimension_semantics<parallel>, #tpu.dimension_semantics<parallel>], iteration_bounds = array<i64: 2, 1>, scalar_prefetch = 0 : i64, scratch_operands = 0 : i64, tpu.core_type = #tpu.core_type<tc>, window_params = [{transform_indices = @transform_0, window_bounds = array<i64: 1, 100, 128>}, {transform_indices = @transform_1, window_bounds = array<i64: 9, 128, 128>}, {transform_indices = @transform_2, window_bounds = array<i64: 1, 128>}, {transform_indices = @transform_3, window_bounds = array<i64: 1, 78, 128>}, {transform_indices = @transform_4, window_bounds = array<i64: 1, 78, 128>}]} {
    %cst = arith.constant 0.000000e+00 : f32
    %0 = vector.broadcast %cst : f32 to vector<78x128xf32>
    %c0 = arith.constant 0 : index
    %c0_0 = arith.constant 0 : index
    %c0_1 = arith.constant 0 : index
    %1 = vector.load %arg2[%c0, %c0_0, %c0_1] : memref<1x100x128xbf16, #tpu.memory_space<vmem>>, vector<1x78x128xbf16>
    %2 = vector.shape_cast %1 : vector<1x78x128xbf16> to vector<78x128xbf16>
    %c0_2 = arith.constant 0 : index
    %c0_3 = arith.constant 0 : index
    %c0_4 = arith.constant 0 : index
    %3 = vector.load %arg3[%c0_2, %c0_3, %c0_4] : memref<9x128x128xbf16, #tpu.memory_space<vmem>>, vector<1x128x128xbf16>
    %4 = vector.shape_cast %3 : vector<1x128x128xbf16> to vector<128x128xbf16>
    %cst_5 = arith.constant dense<0.000000e+00> : vector<78x128xf32>
    %5 = tpu.matmul %2, %4, %cst_5 {dimension_numbers = #tpu.dot_dimension_numbers<[1], [0], [0], [1], [0, 0, 1, 1], [], []>} : vector<78x128xbf16>, vector<128x128xbf16>, vector<78x128xf32> -> vector<78x128xf32>
    %6 = arith.addf %0, %5 : vector<78x128xf32>
    %c0_6 = arith.constant 0 : index
    %c1 = arith.constant 1 : index
    %c0_7 = arith.constant 0 : index
    %7 = vector.load %arg2[%c0_6, %c1, %c0_7] : memref<1x100x128xbf16, #tpu.memory_space<vmem>>, vector<1x78x128xbf16>
    %8 = vector.shape_cast %7 : vector<1x78x128xbf16> to vector<78x128xbf16>
    %c1_8 = arith.constant 1 : index
    %c0_9 = arith.constant 0 : index
    %c0_10 = arith.constant 0 : index
    %9 = vector.load %arg3[%c1_8, %c0_9, %c0_10] : memref<9x128x128xbf16, #tpu.memory_space<vmem>>, vector<1x128x128xbf16>
    %10 = vector.shape_cast %9 : vector<1x128x128xbf16> to vector<128x128xbf16>
    %cst_11 = arith.constant dense<0.000000e+00> : vector<78x128xf32>
    %11 = tpu.matmul %8, %10, %cst_11 {dimension_numbers = #tpu.dot_dimension_numbers<[1], [0], [0], [1], [0, 0, 1, 1], [], []>} : vector<78x128xbf16>, vector<128x128xbf16>, vector<78x128xf32> -> vector<78x128xf32>
    %12 = arith.addf %6, %11 : vector<78x128xf32>
    %c0_12 = arith.constant 0 : index
    %c2 = arith.constant 2 : index
    %c0_13 = arith.constant 0 : index
    %13 = vector.load %arg2[%c0_12, %c2, %c0_13] : memref<1x100x128xbf16, #tpu.memory_space<vmem>>, vector<1x78x128xbf16>
    %14 = vector.shape_cast %13 : vector<1x78x128xbf16> to vector<78x128xbf16>
    %c2_14 = arith.constant 2 : index
    %c0_15 = arith.constant 0 : index
    %c0_16 = arith.constant 0 : index
    %15 = vector.load %arg3[%c2_14, %c0_15, %c0_16] : memref<9x128x128xbf16, #tpu.memory_space<vmem>>, vector<1x128x128xbf16>
    %16 = vector.shape_cast %15 : vector<1x128x128xbf16> to vector<128x128xbf16>
    %cst_17 = arith.constant dense<0.000000e+00> : vector<78x128xf32>
    %17 = tpu.matmul %14, %16, %cst_17 {dimension_numbers = #tpu.dot_dimension_numbers<[1], [0], [0], [1], [0, 0, 1, 1], [], []>} : vector<78x128xbf16>, vector<128x128xbf16>, vector<78x128xf32> -> vector<78x128xf32>
    %18 = arith.addf %12, %17 : vector<78x128xf32>
    %c0_18 = arith.constant 0 : index
    %c10 = arith.constant 10 : index
    %c0_19 = arith.constant 0 : index
    %19 = vector.load %arg2[%c0_18, %c10, %c0_19] : memref<1x100x128xbf16, #tpu.memory_space<vmem>>, vector<1x78x128xbf16>
    %20 = vector.shape_cast %19 : vector<1x78x128xbf16> to vector<78x128xbf16>
    %c3 = arith.constant 3 : index
    %c0_20 = arith.constant 0 : index
    %c0_21 = arith.constant 0 : index
    %21 = vector.load %arg3[%c3, %c0_20, %c0_21] : memref<9x128x128xbf16, #tpu.memory_space<vmem>>, vector<1x128x128xbf16>
    %22 = vector.shape_cast %21 : vector<1x128x128xbf16> to vector<128x128xbf16>
    %cst_22 = arith.constant dense<0.000000e+00> : vector<78x128xf32>
    %23 = tpu.matmul %20, %22, %cst_22 {dimension_numbers = #tpu.dot_dimension_numbers<[1], [0], [0], [1], [0, 0, 1, 1], [], []>} : vector<78x128xbf16>, vector<128x128xbf16>, vector<78x128xf32> -> vector<78x128xf32>
    %24 = arith.addf %18, %23 : vector<78x128xf32>
    %c0_23 = arith.constant 0 : index
    %c11 = arith.constant 11 : index
    %c0_24 = arith.constant 0 : index
    %25 = vector.load %arg2[%c0_23, %c11, %c0_24] : memref<1x100x128xbf16, #tpu.memory_space<vmem>>, vector<1x78x128xbf16>
    %26 = vector.shape_cast %25 : vector<1x78x128xbf16> to vector<78x128xbf16>
    %c4 = arith.constant 4 : index
    %c0_25 = arith.constant 0 : index
    %c0_26 = arith.constant 0 : index
    %27 = vector.load %arg3[%c4, %c0_25, %c0_26] : memref<9x128x128xbf16, #tpu.memory_space<vmem>>, vector<1x128x128xbf16>
    %28 = vector.shape_cast %27 : vector<1x128x128xbf16> to vector<128x128xbf16>
    %cst_27 = arith.constant dense<0.000000e+00> : vector<78x128xf32>
    %29 = tpu.matmul %26, %28, %cst_27 {dimension_numbers = #tpu.dot_dimension_numbers<[1], [0], [0], [1], [0, 0, 1, 1], [], []>} : vector<78x128xbf16>, vector<128x128xbf16>, vector<78x128xf32> -> vector<78x128xf32>
    %30 = arith.addf %24, %29 : vector<78x128xf32>
    %c0_28 = arith.constant 0 : index
    %c12 = arith.constant 12 : index
    %c0_29 = arith.constant 0 : index
    %31 = vector.load %arg2[%c0_28, %c12, %c0_29] : memref<1x100x128xbf16, #tpu.memory_space<vmem>>, vector<1x78x128xbf16>
    %32 = vector.shape_cast %31 : vector<1x78x128xbf16> to vector<78x128xbf16>
    %c5 = arith.constant 5 : index
    %c0_30 = arith.constant 0 : index
    %c0_31 = arith.constant 0 : index
    %33 = vector.load %arg3[%c5, %c0_30, %c0_31] : memref<9x128x128xbf16, #tpu.memory_space<vmem>>, vector<1x128x128xbf16>
    %34 = vector.shape_cast %33 : vector<1x128x128xbf16> to vector<128x128xbf16>
    %cst_32 = arith.constant dense<0.000000e+00> : vector<78x128xf32>
    %35 = tpu.matmul %32, %34, %cst_32 {dimension_numbers = #tpu.dot_dimension_numbers<[1], [0], [0], [1], [0, 0, 1, 1], [], []>} : vector<78x128xbf16>, vector<128x128xbf16>, vector<78x128xf32> -> vector<78x128xf32>
    %36 = arith.addf %30, %35 : vector<78x128xf32>
    %c0_33 = arith.constant 0 : index
    %c20 = arith.constant 20 : index
    %c0_34 = arith.constant 0 : index
    %37 = vector.load %arg2[%c0_33, %c20, %c0_34] : memref<1x100x128xbf16, #tpu.memory_space<vmem>>, vector<1x78x128xbf16>
    %38 = vector.shape_cast %37 : vector<1x78x128xbf16> to vector<78x128xbf16>
    %c6 = arith.constant 6 : index
    %c0_35 = arith.constant 0 : index
    %c0_36 = arith.constant 0 : index
    %39 = vector.load %arg3[%c6, %c0_35, %c0_36] : memref<9x128x128xbf16, #tpu.memory_space<vmem>>, vector<1x128x128xbf16>
    %40 = vector.shape_cast %39 : vector<1x128x128xbf16> to vector<128x128xbf16>
    %cst_37 = arith.constant dense<0.000000e+00> : vector<78x128xf32>
    %41 = tpu.matmul %38, %40, %cst_37 {dimension_numbers = #tpu.dot_dimension_numbers<[1], [0], [0], [1], [0, 0, 1, 1], [], []>} : vector<78x128xbf16>, vector<128x128xbf16>, vector<78x128xf32> -> vector<78x128xf32>
    %42 = arith.addf %36, %41 : vector<78x128xf32>
    %c0_38 = arith.constant 0 : index
    %c21 = arith.constant 21 : index
    %c0_39 = arith.constant 0 : index
    %43 = vector.load %arg2[%c0_38, %c21, %c0_39] : memref<1x100x128xbf16, #tpu.memory_space<vmem>>, vector<1x78x128xbf16>
    %44 = vector.shape_cast %43 : vector<1x78x128xbf16> to vector<78x128xbf16>
    %c7 = arith.constant 7 : index
    %c0_40 = arith.constant 0 : index
    %c0_41 = arith.constant 0 : index
    %45 = vector.load %arg3[%c7, %c0_40, %c0_41] : memref<9x128x128xbf16, #tpu.memory_space<vmem>>, vector<1x128x128xbf16>
    %46 = vector.shape_cast %45 : vector<1x128x128xbf16> to vector<128x128xbf16>
    %cst_42 = arith.constant dense<0.000000e+00> : vector<78x128xf32>
    %47 = tpu.matmul %44, %46, %cst_42 {dimension_numbers = #tpu.dot_dimension_numbers<[1], [0], [0], [1], [0, 0, 1, 1], [], []>} : vector<78x128xbf16>, vector<128x128xbf16>, vector<78x128xf32> -> vector<78x128xf32>
    %48 = arith.addf %42, %47 : vector<78x128xf32>
    %c0_43 = arith.constant 0 : index
    %c22 = arith.constant 22 : index
    %c0_44 = arith.constant 0 : index
    %49 = vector.load %arg2[%c0_43, %c22, %c0_44] : memref<1x100x128xbf16, #tpu.memory_space<vmem>>, vector<1x78x128xbf16>
    %50 = vector.shape_cast %49 : vector<1x78x128xbf16> to vector<78x128xbf16>
    %c8 = arith.constant 8 : index
    %c0_45 = arith.constant 0 : index
    %c0_46 = arith.constant 0 : index
    %51 = vector.load %arg3[%c8, %c0_45, %c0_46] : memref<9x128x128xbf16, #tpu.memory_space<vmem>>, vector<1x128x128xbf16>
    %52 = vector.shape_cast %51 : vector<1x128x128xbf16> to vector<128x128xbf16>
    %cst_47 = arith.constant dense<0.000000e+00> : vector<78x128xf32>
    %53 = tpu.matmul %50, %52, %cst_47 {dimension_numbers = #tpu.dot_dimension_numbers<[1], [0], [0], [1], [0, 0, 1, 1], [], []>} : vector<78x128xbf16>, vector<128x128xbf16>, vector<78x128xf32> -> vector<78x128xf32>
    %54 = arith.addf %48, %53 : vector<78x128xf32>
    %c0_48 = arith.constant 0 : index
    %c0_49 = arith.constant 0 : index
    %55 = vector.load %arg4[%c0_48, %c0_49] : memref<1x128xf32, #tpu.memory_space<vmem>>, vector<1x128xf32>
    %56 = vector.broadcast %55 : vector<1x128xf32> to vector<78x128xf32>
    %57 = arith.addf %54, %56 : vector<78x128xf32>
    %c0_50 = arith.constant 0 : index
    %c0_51 = arith.constant 0 : index
    %c0_52 = arith.constant 0 : index
    %58 = vector.load %arg5[%c0_50, %c0_51, %c0_52] : memref<1x78x128xbf16, #tpu.memory_space<vmem>>, vector<1x78x128xbf16>
    %59 = vector.shape_cast %58 : vector<1x78x128xbf16> to vector<78x128xbf16>
    %60 = arith.extf %59 : vector<78x128xbf16> to vector<78x128xf32>
    %61 = arith.addf %57, %60 : vector<78x128xf32>
    %cst_53 = arith.constant 0.000000e+00 : f32
    %62 = vector.broadcast %cst_53 : f32 to vector<78x128xf32>
    %63 = arith.maximumf %61, %62 : vector<78x128xf32>
    %64 = arith.truncf %63 : vector<78x128xf32> to vector<78x128xbf16>
    %c0_54 = arith.constant 0 : index
    %c0_55 = arith.constant 0 : index
    %c0_56 = arith.constant 0 : index
    %65 = vector.load %arg6[%c0_54, %c0_55, %c0_56] : memref<1x78x128xbf16, #tpu.memory_space<vmem>>, vector<1x78x128xbf16>
    %66 = vector.shape_cast %65 : vector<1x78x128xbf16> to vector<78x128xbf16>
    %67 = vector.shape_cast %64 : vector<78x128xbf16> to vector<1x78x128xbf16>
    tpu.vector_store %arg6[%c0_54, %c0_55, %c0_56], %67 {strides = array<i32>} : memref<1x78x128xbf16, #tpu.memory_space<vmem>>, vector<1x78x128xbf16>,
    return
  }
  func.func @transform_0(%arg0: i32, %arg1: i32) -> (i32, i32, i32) {
    %c0_i32 = arith.constant 0 : i32
    %c0_i32_0 = arith.constant 0 : i32
    %c0_i32_1 = arith.constant 0 : i32
    return %arg0, %c0_i32, %c0_i32_0 : i32, i32, i32
  }
  func.func @transform_1(%arg0: i32, %arg1: i32) -> (i32, i32, i32) {
    %c0_i32 = arith.constant 0 : i32
    %c0_i32_0 = arith.constant 0 : i32
    %c0_i32_1 = arith.constant 0 : i32
    return %c0_i32, %c0_i32_0, %arg1 : i32, i32, i32
  }
  func.func @transform_2(%arg0: i32, %arg1: i32) -> (i32, i32) {
    %c0_i32 = arith.constant 0 : i32
    %c0_i32_0 = arith.constant 0 : i32
    return %c0_i32, %arg1 : i32, i32
  }
  func.func @transform_3(%arg0: i32, %arg1: i32) -> (i32, i32, i32) {
    %c0_i32 = arith.constant 0 : i32
    %c0_i32_0 = arith.constant 0 : i32
    return %arg0, %c0_i32, %arg1 : i32, i32, i32
  }
  func.func @transform_4(%arg0: i32, %arg1: i32) -> (i32, i32, i32) {
    %c0_i32 = arith.constant 0 : i32
    %c0_i32_0 = arith.constant 0 : i32
    return %arg0, %c0_i32, %arg1 : i32, i32, i32
  }
}

module attributes {stable_mosaic.version = 11 : i64} {
  func.func @_conv3x3_tap_kernel(%arg0: i32, %arg1: i32, %arg2: memref<1x36x128xbf16, #tpu.memory_space<vmem>>, %arg3: memref<9x128x128xbf16, #tpu.memory_space<vmem>>, %arg4: memref<1x128xf32, #tpu.memory_space<vmem>>, %arg5: memref<1x22x128xbf16, #tpu.memory_space<vmem>>, %arg6: memref<1x22x128xbf16, #tpu.memory_space<vmem>>) attributes {dimension_semantics = [#tpu.dimension_semantics<parallel>, #tpu.dimension_semantics<parallel>], iteration_bounds = array<i64: 2, 1>, scalar_prefetch = 0 : i64, scratch_operands = 0 : i64, tpu.core_type = #tpu.core_type<tc>, window_params = [{transform_indices = @transform_0, window_bounds = array<i64: 1, 36, 128>}, {transform_indices = @transform_1, window_bounds = array<i64: 9, 128, 128>}, {transform_indices = @transform_2, window_bounds = array<i64: 1, 128>}, {transform_indices = @transform_3, window_bounds = array<i64: 1, 22, 128>}, {transform_indices = @transform_4, window_bounds = array<i64: 1, 22, 128>}]} {
    %cst = arith.constant 0.000000e+00 : f32
    %0 = vector.broadcast %cst : f32 to vector<22x128xf32>
    %c0 = arith.constant 0 : index
    %c0_0 = arith.constant 0 : index
    %c0_1 = arith.constant 0 : index
    %1 = vector.load %arg2[%c0, %c0_0, %c0_1] : memref<1x36x128xbf16, #tpu.memory_space<vmem>>, vector<1x22x128xbf16>
    %2 = vector.shape_cast %1 : vector<1x22x128xbf16> to vector<22x128xbf16>
    %c0_2 = arith.constant 0 : index
    %c0_3 = arith.constant 0 : index
    %c0_4 = arith.constant 0 : index
    %3 = vector.load %arg3[%c0_2, %c0_3, %c0_4] : memref<9x128x128xbf16, #tpu.memory_space<vmem>>, vector<1x128x128xbf16>
    %4 = vector.shape_cast %3 : vector<1x128x128xbf16> to vector<128x128xbf16>
    %cst_5 = arith.constant dense<0.000000e+00> : vector<22x128xf32>
    %5 = tpu.matmul %2, %4, %cst_5 {dimension_numbers = #tpu.dot_dimension_numbers<[1], [0], [0], [1], [0, 0, 1, 1], [], []>} : vector<22x128xbf16>, vector<128x128xbf16>, vector<22x128xf32> -> vector<22x128xf32>
    %6 = arith.addf %0, %5 : vector<22x128xf32>
    %c0_6 = arith.constant 0 : index
    %c1 = arith.constant 1 : index
    %c0_7 = arith.constant 0 : index
    %7 = vector.load %arg2[%c0_6, %c1, %c0_7] : memref<1x36x128xbf16, #tpu.memory_space<vmem>>, vector<1x22x128xbf16>
    %8 = vector.shape_cast %7 : vector<1x22x128xbf16> to vector<22x128xbf16>
    %c1_8 = arith.constant 1 : index
    %c0_9 = arith.constant 0 : index
    %c0_10 = arith.constant 0 : index
    %9 = vector.load %arg3[%c1_8, %c0_9, %c0_10] : memref<9x128x128xbf16, #tpu.memory_space<vmem>>, vector<1x128x128xbf16>
    %10 = vector.shape_cast %9 : vector<1x128x128xbf16> to vector<128x128xbf16>
    %cst_11 = arith.constant dense<0.000000e+00> : vector<22x128xf32>
    %11 = tpu.matmul %8, %10, %cst_11 {dimension_numbers = #tpu.dot_dimension_numbers<[1], [0], [0], [1], [0, 0, 1, 1], [], []>} : vector<22x128xbf16>, vector<128x128xbf16>, vector<22x128xf32> -> vector<22x128xf32>
    %12 = arith.addf %6, %11 : vector<22x128xf32>
    %c0_12 = arith.constant 0 : index
    %c2 = arith.constant 2 : index
    %c0_13 = arith.constant 0 : index
    %13 = vector.load %arg2[%c0_12, %c2, %c0_13] : memref<1x36x128xbf16, #tpu.memory_space<vmem>>, vector<1x22x128xbf16>
    %14 = vector.shape_cast %13 : vector<1x22x128xbf16> to vector<22x128xbf16>
    %c2_14 = arith.constant 2 : index
    %c0_15 = arith.constant 0 : index
    %c0_16 = arith.constant 0 : index
    %15 = vector.load %arg3[%c2_14, %c0_15, %c0_16] : memref<9x128x128xbf16, #tpu.memory_space<vmem>>, vector<1x128x128xbf16>
    %16 = vector.shape_cast %15 : vector<1x128x128xbf16> to vector<128x128xbf16>
    %cst_17 = arith.constant dense<0.000000e+00> : vector<22x128xf32>
    %17 = tpu.matmul %14, %16, %cst_17 {dimension_numbers = #tpu.dot_dimension_numbers<[1], [0], [0], [1], [0, 0, 1, 1], [], []>} : vector<22x128xbf16>, vector<128x128xbf16>, vector<22x128xf32> -> vector<22x128xf32>
    %18 = arith.addf %12, %17 : vector<22x128xf32>
    %c0_18 = arith.constant 0 : index
    %c6 = arith.constant 6 : index
    %c0_19 = arith.constant 0 : index
    %19 = vector.load %arg2[%c0_18, %c6, %c0_19] : memref<1x36x128xbf16, #tpu.memory_space<vmem>>, vector<1x22x128xbf16>
    %20 = vector.shape_cast %19 : vector<1x22x128xbf16> to vector<22x128xbf16>
    %c3 = arith.constant 3 : index
    %c0_20 = arith.constant 0 : index
    %c0_21 = arith.constant 0 : index
    %21 = vector.load %arg3[%c3, %c0_20, %c0_21] : memref<9x128x128xbf16, #tpu.memory_space<vmem>>, vector<1x128x128xbf16>
    %22 = vector.shape_cast %21 : vector<1x128x128xbf16> to vector<128x128xbf16>
    %cst_22 = arith.constant dense<0.000000e+00> : vector<22x128xf32>
    %23 = tpu.matmul %20, %22, %cst_22 {dimension_numbers = #tpu.dot_dimension_numbers<[1], [0], [0], [1], [0, 0, 1, 1], [], []>} : vector<22x128xbf16>, vector<128x128xbf16>, vector<22x128xf32> -> vector<22x128xf32>
    %24 = arith.addf %18, %23 : vector<22x128xf32>
    %c0_23 = arith.constant 0 : index
    %c7 = arith.constant 7 : index
    %c0_24 = arith.constant 0 : index
    %25 = vector.load %arg2[%c0_23, %c7, %c0_24] : memref<1x36x128xbf16, #tpu.memory_space<vmem>>, vector<1x22x128xbf16>
    %26 = vector.shape_cast %25 : vector<1x22x128xbf16> to vector<22x128xbf16>
    %c4 = arith.constant 4 : index
    %c0_25 = arith.constant 0 : index
    %c0_26 = arith.constant 0 : index
    %27 = vector.load %arg3[%c4, %c0_25, %c0_26] : memref<9x128x128xbf16, #tpu.memory_space<vmem>>, vector<1x128x128xbf16>
    %28 = vector.shape_cast %27 : vector<1x128x128xbf16> to vector<128x128xbf16>
    %cst_27 = arith.constant dense<0.000000e+00> : vector<22x128xf32>
    %29 = tpu.matmul %26, %28, %cst_27 {dimension_numbers = #tpu.dot_dimension_numbers<[1], [0], [0], [1], [0, 0, 1, 1], [], []>} : vector<22x128xbf16>, vector<128x128xbf16>, vector<22x128xf32> -> vector<22x128xf32>
    %30 = arith.addf %24, %29 : vector<22x128xf32>
    %c0_28 = arith.constant 0 : index
    %c8 = arith.constant 8 : index
    %c0_29 = arith.constant 0 : index
    %31 = vector.load %arg2[%c0_28, %c8, %c0_29] : memref<1x36x128xbf16, #tpu.memory_space<vmem>>, vector<1x22x128xbf16>
    %32 = vector.shape_cast %31 : vector<1x22x128xbf16> to vector<22x128xbf16>
    %c5 = arith.constant 5 : index
    %c0_30 = arith.constant 0 : index
    %c0_31 = arith.constant 0 : index
    %33 = vector.load %arg3[%c5, %c0_30, %c0_31] : memref<9x128x128xbf16, #tpu.memory_space<vmem>>, vector<1x128x128xbf16>
    %34 = vector.shape_cast %33 : vector<1x128x128xbf16> to vector<128x128xbf16>
    %cst_32 = arith.constant dense<0.000000e+00> : vector<22x128xf32>
    %35 = tpu.matmul %32, %34, %cst_32 {dimension_numbers = #tpu.dot_dimension_numbers<[1], [0], [0], [1], [0, 0, 1, 1], [], []>} : vector<22x128xbf16>, vector<128x128xbf16>, vector<22x128xf32> -> vector<22x128xf32>
    %36 = arith.addf %30, %35 : vector<22x128xf32>
    %c0_33 = arith.constant 0 : index
    %c12 = arith.constant 12 : index
    %c0_34 = arith.constant 0 : index
    %37 = vector.load %arg2[%c0_33, %c12, %c0_34] : memref<1x36x128xbf16, #tpu.memory_space<vmem>>, vector<1x22x128xbf16>
    %38 = vector.shape_cast %37 : vector<1x22x128xbf16> to vector<22x128xbf16>
    %c6_35 = arith.constant 6 : index
    %c0_36 = arith.constant 0 : index
    %c0_37 = arith.constant 0 : index
    %39 = vector.load %arg3[%c6_35, %c0_36, %c0_37] : memref<9x128x128xbf16, #tpu.memory_space<vmem>>, vector<1x128x128xbf16>
    %40 = vector.shape_cast %39 : vector<1x128x128xbf16> to vector<128x128xbf16>
    %cst_38 = arith.constant dense<0.000000e+00> : vector<22x128xf32>
    %41 = tpu.matmul %38, %40, %cst_38 {dimension_numbers = #tpu.dot_dimension_numbers<[1], [0], [0], [1], [0, 0, 1, 1], [], []>} : vector<22x128xbf16>, vector<128x128xbf16>, vector<22x128xf32> -> vector<22x128xf32>
    %42 = arith.addf %36, %41 : vector<22x128xf32>
    %c0_39 = arith.constant 0 : index
    %c13 = arith.constant 13 : index
    %c0_40 = arith.constant 0 : index
    %43 = vector.load %arg2[%c0_39, %c13, %c0_40] : memref<1x36x128xbf16, #tpu.memory_space<vmem>>, vector<1x22x128xbf16>
    %44 = vector.shape_cast %43 : vector<1x22x128xbf16> to vector<22x128xbf16>
    %c7_41 = arith.constant 7 : index
    %c0_42 = arith.constant 0 : index
    %c0_43 = arith.constant 0 : index
    %45 = vector.load %arg3[%c7_41, %c0_42, %c0_43] : memref<9x128x128xbf16, #tpu.memory_space<vmem>>, vector<1x128x128xbf16>
    %46 = vector.shape_cast %45 : vector<1x128x128xbf16> to vector<128x128xbf16>
    %cst_44 = arith.constant dense<0.000000e+00> : vector<22x128xf32>
    %47 = tpu.matmul %44, %46, %cst_44 {dimension_numbers = #tpu.dot_dimension_numbers<[1], [0], [0], [1], [0, 0, 1, 1], [], []>} : vector<22x128xbf16>, vector<128x128xbf16>, vector<22x128xf32> -> vector<22x128xf32>
    %48 = arith.addf %42, %47 : vector<22x128xf32>
    %c0_45 = arith.constant 0 : index
    %c14 = arith.constant 14 : index
    %c0_46 = arith.constant 0 : index
    %49 = vector.load %arg2[%c0_45, %c14, %c0_46] : memref<1x36x128xbf16, #tpu.memory_space<vmem>>, vector<1x22x128xbf16>
    %50 = vector.shape_cast %49 : vector<1x22x128xbf16> to vector<22x128xbf16>
    %c8_47 = arith.constant 8 : index
    %c0_48 = arith.constant 0 : index
    %c0_49 = arith.constant 0 : index
    %51 = vector.load %arg3[%c8_47, %c0_48, %c0_49] : memref<9x128x128xbf16, #tpu.memory_space<vmem>>, vector<1x128x128xbf16>
    %52 = vector.shape_cast %51 : vector<1x128x128xbf16> to vector<128x128xbf16>
    %cst_50 = arith.constant dense<0.000000e+00> : vector<22x128xf32>
    %53 = tpu.matmul %50, %52, %cst_50 {dimension_numbers = #tpu.dot_dimension_numbers<[1], [0], [0], [1], [0, 0, 1, 1], [], []>} : vector<22x128xbf16>, vector<128x128xbf16>, vector<22x128xf32> -> vector<22x128xf32>
    %54 = arith.addf %48, %53 : vector<22x128xf32>
    %c0_51 = arith.constant 0 : index
    %c0_52 = arith.constant 0 : index
    %55 = vector.load %arg4[%c0_51, %c0_52] : memref<1x128xf32, #tpu.memory_space<vmem>>, vector<1x128xf32>
    %56 = vector.broadcast %55 : vector<1x128xf32> to vector<22x128xf32>
    %57 = arith.addf %54, %56 : vector<22x128xf32>
    %c0_53 = arith.constant 0 : index
    %c0_54 = arith.constant 0 : index
    %c0_55 = arith.constant 0 : index
    %58 = vector.load %arg5[%c0_53, %c0_54, %c0_55] : memref<1x22x128xbf16, #tpu.memory_space<vmem>>, vector<1x22x128xbf16>
    %59 = vector.shape_cast %58 : vector<1x22x128xbf16> to vector<22x128xbf16>
    %60 = arith.extf %59 : vector<22x128xbf16> to vector<22x128xf32>
    %61 = arith.addf %57, %60 : vector<22x128xf32>
    %cst_56 = arith.constant 0.000000e+00 : f32
    %62 = vector.broadcast %cst_56 : f32 to vector<22x128xf32>
    %63 = arith.maximumf %61, %62 : vector<22x128xf32>
    %64 = arith.truncf %63 : vector<22x128xf32> to vector<22x128xbf16>
    %c0_57 = arith.constant 0 : index
    %c0_58 = arith.constant 0 : index
    %c0_59 = arith.constant 0 : index
    %65 = vector.load %arg6[%c0_57, %c0_58, %c0_59] : memref<1x22x128xbf16, #tpu.memory_space<vmem>>, vector<1x22x128xbf16>
    %66 = vector.shape_cast %65 : vector<1x22x128xbf16> to vector<22x128xbf16>
    %67 = vector.shape_cast %64 : vector<22x128xbf16> to vector<1x22x128xbf16>
    tpu.vector_store %arg6[%c0_57, %c0_58, %c0_59], %67 {strides = array<i32>} : memref<1x22x128xbf16, #tpu.memory_space<vmem>>, vector<1x22x128xbf16>,
    return
  }
  func.func @transform_0(%arg0: i32, %arg1: i32) -> (i32, i32, i32) {
    %c0_i32 = arith.constant 0 : i32
    %c0_i32_0 = arith.constant 0 : i32
    %c0_i32_1 = arith.constant 0 : i32
    return %arg0, %c0_i32, %c0_i32_0 : i32, i32, i32
  }
  func.func @transform_1(%arg0: i32, %arg1: i32) -> (i32, i32, i32) {
    %c0_i32 = arith.constant 0 : i32
    %c0_i32_0 = arith.constant 0 : i32
    %c0_i32_1 = arith.constant 0 : i32
    return %c0_i32, %c0_i32_0, %arg1 : i32, i32, i32
  }
  func.func @transform_2(%arg0: i32, %arg1: i32) -> (i32, i32) {
    %c0_i32 = arith.constant 0 : i32
    %c0_i32_0 = arith.constant 0 : i32
    return %c0_i32, %arg1 : i32, i32
  }
  func.func @transform_3(%arg0: i32, %arg1: i32) -> (i32, i32, i32) {
    %c0_i32 = arith.constant 0 : i32
    %c0_i32_0 = arith.constant 0 : i32
    return %arg0, %c0_i32, %arg1 : i32, i32, i32
  }
  func.func @transform_4(%arg0: i32, %arg1: i32) -> (i32, i32, i32) {
    %c0_i32 = arith.constant 0 : i32
    %c0_i32_0 = arith.constant 0 : i32
    return %arg0, %c0_i32, %arg1 : i32, i32, i32
  }
}

module attributes {stable_mosaic.version = 11 : i64} {
  func.func @_conv3x3_tap_kernel(%arg0: i32, %arg1: i32, %arg2: memref<1x16x256xbf16, #tpu.memory_space<vmem>>, %arg3: memref<9x256x256xbf16, #tpu.memory_space<vmem>>, %arg4: memref<1x256xf32, #tpu.memory_space<vmem>>, %arg5: memref<1x6x256xbf16, #tpu.memory_space<vmem>>, %arg6: memref<1x6x256xbf16, #tpu.memory_space<vmem>>) attributes {dimension_semantics = [#tpu.dimension_semantics<parallel>, #tpu.dimension_semantics<parallel>], iteration_bounds = array<i64: 2, 1>, scalar_prefetch = 0 : i64, scratch_operands = 0 : i64, tpu.core_type = #tpu.core_type<tc>, window_params = [{transform_indices = @transform_0, window_bounds = array<i64: 1, 16, 256>}, {transform_indices = @transform_1, window_bounds = array<i64: 9, 256, 256>}, {transform_indices = @transform_2, window_bounds = array<i64: 1, 256>}, {transform_indices = @transform_3, window_bounds = array<i64: 1, 6, 256>}, {transform_indices = @transform_4, window_bounds = array<i64: 1, 6, 256>}]} {
    %cst = arith.constant 0.000000e+00 : f32
    %0 = vector.broadcast %cst : f32 to vector<6x256xf32>
    %c0 = arith.constant 0 : index
    %c0_0 = arith.constant 0 : index
    %c0_1 = arith.constant 0 : index
    %1 = vector.load %arg2[%c0, %c0_0, %c0_1] : memref<1x16x256xbf16, #tpu.memory_space<vmem>>, vector<1x6x256xbf16>
    %2 = vector.shape_cast %1 : vector<1x6x256xbf16> to vector<6x256xbf16>
    %c0_2 = arith.constant 0 : index
    %c0_3 = arith.constant 0 : index
    %c0_4 = arith.constant 0 : index
    %3 = vector.load %arg3[%c0_2, %c0_3, %c0_4] : memref<9x256x256xbf16, #tpu.memory_space<vmem>>, vector<1x256x256xbf16>
    %4 = vector.shape_cast %3 : vector<1x256x256xbf16> to vector<256x256xbf16>
    %cst_5 = arith.constant dense<0.000000e+00> : vector<6x256xf32>
    %5 = tpu.matmul %2, %4, %cst_5 {dimension_numbers = #tpu.dot_dimension_numbers<[1], [0], [0], [1], [0, 0, 1, 1], [], []>} : vector<6x256xbf16>, vector<256x256xbf16>, vector<6x256xf32> -> vector<6x256xf32>
    %6 = arith.addf %0, %5 : vector<6x256xf32>
    %c0_6 = arith.constant 0 : index
    %c1 = arith.constant 1 : index
    %c0_7 = arith.constant 0 : index
    %7 = vector.load %arg2[%c0_6, %c1, %c0_7] : memref<1x16x256xbf16, #tpu.memory_space<vmem>>, vector<1x6x256xbf16>
    %8 = vector.shape_cast %7 : vector<1x6x256xbf16> to vector<6x256xbf16>
    %c1_8 = arith.constant 1 : index
    %c0_9 = arith.constant 0 : index
    %c0_10 = arith.constant 0 : index
    %9 = vector.load %arg3[%c1_8, %c0_9, %c0_10] : memref<9x256x256xbf16, #tpu.memory_space<vmem>>, vector<1x256x256xbf16>
    %10 = vector.shape_cast %9 : vector<1x256x256xbf16> to vector<256x256xbf16>
    %cst_11 = arith.constant dense<0.000000e+00> : vector<6x256xf32>
    %11 = tpu.matmul %8, %10, %cst_11 {dimension_numbers = #tpu.dot_dimension_numbers<[1], [0], [0], [1], [0, 0, 1, 1], [], []>} : vector<6x256xbf16>, vector<256x256xbf16>, vector<6x256xf32> -> vector<6x256xf32>
    %12 = arith.addf %6, %11 : vector<6x256xf32>
    %c0_12 = arith.constant 0 : index
    %c2 = arith.constant 2 : index
    %c0_13 = arith.constant 0 : index
    %13 = vector.load %arg2[%c0_12, %c2, %c0_13] : memref<1x16x256xbf16, #tpu.memory_space<vmem>>, vector<1x6x256xbf16>
    %14 = vector.shape_cast %13 : vector<1x6x256xbf16> to vector<6x256xbf16>
    %c2_14 = arith.constant 2 : index
    %c0_15 = arith.constant 0 : index
    %c0_16 = arith.constant 0 : index
    %15 = vector.load %arg3[%c2_14, %c0_15, %c0_16] : memref<9x256x256xbf16, #tpu.memory_space<vmem>>, vector<1x256x256xbf16>
    %16 = vector.shape_cast %15 : vector<1x256x256xbf16> to vector<256x256xbf16>
    %cst_17 = arith.constant dense<0.000000e+00> : vector<6x256xf32>
    %17 = tpu.matmul %14, %16, %cst_17 {dimension_numbers = #tpu.dot_dimension_numbers<[1], [0], [0], [1], [0, 0, 1, 1], [], []>} : vector<6x256xbf16>, vector<256x256xbf16>, vector<6x256xf32> -> vector<6x256xf32>
    %18 = arith.addf %12, %17 : vector<6x256xf32>
    %c0_18 = arith.constant 0 : index
    %c4 = arith.constant 4 : index
    %c0_19 = arith.constant 0 : index
    %19 = vector.load %arg2[%c0_18, %c4, %c0_19] : memref<1x16x256xbf16, #tpu.memory_space<vmem>>, vector<1x6x256xbf16>
    %20 = vector.shape_cast %19 : vector<1x6x256xbf16> to vector<6x256xbf16>
    %c3 = arith.constant 3 : index
    %c0_20 = arith.constant 0 : index
    %c0_21 = arith.constant 0 : index
    %21 = vector.load %arg3[%c3, %c0_20, %c0_21] : memref<9x256x256xbf16, #tpu.memory_space<vmem>>, vector<1x256x256xbf16>
    %22 = vector.shape_cast %21 : vector<1x256x256xbf16> to vector<256x256xbf16>
    %cst_22 = arith.constant dense<0.000000e+00> : vector<6x256xf32>
    %23 = tpu.matmul %20, %22, %cst_22 {dimension_numbers = #tpu.dot_dimension_numbers<[1], [0], [0], [1], [0, 0, 1, 1], [], []>} : vector<6x256xbf16>, vector<256x256xbf16>, vector<6x256xf32> -> vector<6x256xf32>
    %24 = arith.addf %18, %23 : vector<6x256xf32>
    %c0_23 = arith.constant 0 : index
    %c5 = arith.constant 5 : index
    %c0_24 = arith.constant 0 : index
    %25 = vector.load %arg2[%c0_23, %c5, %c0_24] : memref<1x16x256xbf16, #tpu.memory_space<vmem>>, vector<1x6x256xbf16>
    %26 = vector.shape_cast %25 : vector<1x6x256xbf16> to vector<6x256xbf16>
    %c4_25 = arith.constant 4 : index
    %c0_26 = arith.constant 0 : index
    %c0_27 = arith.constant 0 : index
    %27 = vector.load %arg3[%c4_25, %c0_26, %c0_27] : memref<9x256x256xbf16, #tpu.memory_space<vmem>>, vector<1x256x256xbf16>
    %28 = vector.shape_cast %27 : vector<1x256x256xbf16> to vector<256x256xbf16>
    %cst_28 = arith.constant dense<0.000000e+00> : vector<6x256xf32>
    %29 = tpu.matmul %26, %28, %cst_28 {dimension_numbers = #tpu.dot_dimension_numbers<[1], [0], [0], [1], [0, 0, 1, 1], [], []>} : vector<6x256xbf16>, vector<256x256xbf16>, vector<6x256xf32> -> vector<6x256xf32>
    %30 = arith.addf %24, %29 : vector<6x256xf32>
    %c0_29 = arith.constant 0 : index
    %c6 = arith.constant 6 : index
    %c0_30 = arith.constant 0 : index
    %31 = vector.load %arg2[%c0_29, %c6, %c0_30] : memref<1x16x256xbf16, #tpu.memory_space<vmem>>, vector<1x6x256xbf16>
    %32 = vector.shape_cast %31 : vector<1x6x256xbf16> to vector<6x256xbf16>
    %c5_31 = arith.constant 5 : index
    %c0_32 = arith.constant 0 : index
    %c0_33 = arith.constant 0 : index
    %33 = vector.load %arg3[%c5_31, %c0_32, %c0_33] : memref<9x256x256xbf16, #tpu.memory_space<vmem>>, vector<1x256x256xbf16>
    %34 = vector.shape_cast %33 : vector<1x256x256xbf16> to vector<256x256xbf16>
    %cst_34 = arith.constant dense<0.000000e+00> : vector<6x256xf32>
    %35 = tpu.matmul %32, %34, %cst_34 {dimension_numbers = #tpu.dot_dimension_numbers<[1], [0], [0], [1], [0, 0, 1, 1], [], []>} : vector<6x256xbf16>, vector<256x256xbf16>, vector<6x256xf32> -> vector<6x256xf32>
    %36 = arith.addf %30, %35 : vector<6x256xf32>
    %c0_35 = arith.constant 0 : index
    %c8 = arith.constant 8 : index
    %c0_36 = arith.constant 0 : index
    %37 = vector.load %arg2[%c0_35, %c8, %c0_36] : memref<1x16x256xbf16, #tpu.memory_space<vmem>>, vector<1x6x256xbf16>
    %38 = vector.shape_cast %37 : vector<1x6x256xbf16> to vector<6x256xbf16>
    %c6_37 = arith.constant 6 : index
    %c0_38 = arith.constant 0 : index
    %c0_39 = arith.constant 0 : index
    %39 = vector.load %arg3[%c6_37, %c0_38, %c0_39] : memref<9x256x256xbf16, #tpu.memory_space<vmem>>, vector<1x256x256xbf16>
    %40 = vector.shape_cast %39 : vector<1x256x256xbf16> to vector<256x256xbf16>
    %cst_40 = arith.constant dense<0.000000e+00> : vector<6x256xf32>
    %41 = tpu.matmul %38, %40, %cst_40 {dimension_numbers = #tpu.dot_dimension_numbers<[1], [0], [0], [1], [0, 0, 1, 1], [], []>} : vector<6x256xbf16>, vector<256x256xbf16>, vector<6x256xf32> -> vector<6x256xf32>
    %42 = arith.addf %36, %41 : vector<6x256xf32>
    %c0_41 = arith.constant 0 : index
    %c9 = arith.constant 9 : index
    %c0_42 = arith.constant 0 : index
    %43 = vector.load %arg2[%c0_41, %c9, %c0_42] : memref<1x16x256xbf16, #tpu.memory_space<vmem>>, vector<1x6x256xbf16>
    %44 = vector.shape_cast %43 : vector<1x6x256xbf16> to vector<6x256xbf16>
    %c7 = arith.constant 7 : index
    %c0_43 = arith.constant 0 : index
    %c0_44 = arith.constant 0 : index
    %45 = vector.load %arg3[%c7, %c0_43, %c0_44] : memref<9x256x256xbf16, #tpu.memory_space<vmem>>, vector<1x256x256xbf16>
    %46 = vector.shape_cast %45 : vector<1x256x256xbf16> to vector<256x256xbf16>
    %cst_45 = arith.constant dense<0.000000e+00> : vector<6x256xf32>
    %47 = tpu.matmul %44, %46, %cst_45 {dimension_numbers = #tpu.dot_dimension_numbers<[1], [0], [0], [1], [0, 0, 1, 1], [], []>} : vector<6x256xbf16>, vector<256x256xbf16>, vector<6x256xf32> -> vector<6x256xf32>
    %48 = arith.addf %42, %47 : vector<6x256xf32>
    %c0_46 = arith.constant 0 : index
    %c10 = arith.constant 10 : index
    %c0_47 = arith.constant 0 : index
    %49 = vector.load %arg2[%c0_46, %c10, %c0_47] : memref<1x16x256xbf16, #tpu.memory_space<vmem>>, vector<1x6x256xbf16>
    %50 = vector.shape_cast %49 : vector<1x6x256xbf16> to vector<6x256xbf16>
    %c8_48 = arith.constant 8 : index
    %c0_49 = arith.constant 0 : index
    %c0_50 = arith.constant 0 : index
    %51 = vector.load %arg3[%c8_48, %c0_49, %c0_50] : memref<9x256x256xbf16, #tpu.memory_space<vmem>>, vector<1x256x256xbf16>
    %52 = vector.shape_cast %51 : vector<1x256x256xbf16> to vector<256x256xbf16>
    %cst_51 = arith.constant dense<0.000000e+00> : vector<6x256xf32>
    %53 = tpu.matmul %50, %52, %cst_51 {dimension_numbers = #tpu.dot_dimension_numbers<[1], [0], [0], [1], [0, 0, 1, 1], [], []>} : vector<6x256xbf16>, vector<256x256xbf16>, vector<6x256xf32> -> vector<6x256xf32>
    %54 = arith.addf %48, %53 : vector<6x256xf32>
    %c0_52 = arith.constant 0 : index
    %c0_53 = arith.constant 0 : index
    %55 = vector.load %arg4[%c0_52, %c0_53] : memref<1x256xf32, #tpu.memory_space<vmem>>, vector<1x256xf32>
    %56 = vector.broadcast %55 : vector<1x256xf32> to vector<6x256xf32>
    %57 = arith.addf %54, %56 : vector<6x256xf32>
    %c0_54 = arith.constant 0 : index
    %c0_55 = arith.constant 0 : index
    %c0_56 = arith.constant 0 : index
    %58 = vector.load %arg5[%c0_54, %c0_55, %c0_56] : memref<1x6x256xbf16, #tpu.memory_space<vmem>>, vector<1x6x256xbf16>
    %59 = vector.shape_cast %58 : vector<1x6x256xbf16> to vector<6x256xbf16>
    %60 = arith.extf %59 : vector<6x256xbf16> to vector<6x256xf32>
    %61 = arith.addf %57, %60 : vector<6x256xf32>
    %cst_57 = arith.constant 0.000000e+00 : f32
    %62 = vector.broadcast %cst_57 : f32 to vector<6x256xf32>
    %63 = arith.maximumf %61, %62 : vector<6x256xf32>
    %64 = arith.truncf %63 : vector<6x256xf32> to vector<6x256xbf16>
    %c0_58 = arith.constant 0 : index
    %c0_59 = arith.constant 0 : index
    %c0_60 = arith.constant 0 : index
    %65 = vector.load %arg6[%c0_58, %c0_59, %c0_60] : memref<1x6x256xbf16, #tpu.memory_space<vmem>>, vector<1x6x256xbf16>
    %66 = vector.shape_cast %65 : vector<1x6x256xbf16> to vector<6x256xbf16>
    %67 = vector.shape_cast %64 : vector<6x256xbf16> to vector<1x6x256xbf16>
    tpu.vector_store %arg6[%c0_58, %c0_59, %c0_60], %67 {strides = array<i32>} : memref<1x6x256xbf16, #tpu.memory_space<vmem>>, vector<1x6x256xbf16>,
    return
  }
  func.func @transform_0(%arg0: i32, %arg1: i32) -> (i32, i32, i32) {
    %c0_i32 = arith.constant 0 : i32
    %c0_i32_0 = arith.constant 0 : i32
    %c0_i32_1 = arith.constant 0 : i32
    return %arg0, %c0_i32, %c0_i32_0 : i32, i32, i32
  }
  func.func @transform_1(%arg0: i32, %arg1: i32) -> (i32, i32, i32) {
    %c0_i32 = arith.constant 0 : i32
    %c0_i32_0 = arith.constant 0 : i32
    %c0_i32_1 = arith.constant 0 : i32
    return %c0_i32, %c0_i32_0, %arg1 : i32, i32, i32
  }
  func.func @transform_2(%arg0: i32, %arg1: i32) -> (i32, i32) {
    %c0_i32 = arith.constant 0 : i32
    %c0_i32_0 = arith.constant 0 : i32
    return %c0_i32, %arg1 : i32, i32
  }
  func.func @transform_3(%arg0: i32, %arg1: i32) -> (i32, i32, i32) {
    %c0_i32 = arith.constant 0 : i32
    %c0_i32_0 = arith.constant 0 : i32
    return %arg0, %c0_i32, %arg1 : i32, i32, i32
  }
  func.func @transform_4(%arg0: i32, %arg1: i32) -> (i32, i32, i32) {
    %c0_i32 = arith.constant 0 : i32
    %c0_i32_0 = arith.constant 0 : i32
    return %arg0, %c0_i32, %arg1 : i32, i32, i32
  }
}

module attributes {stable_mosaic.version = 11 : i64} {
  func.func @_conv3x3_tap_kernel(%arg0: i32, %arg1: i32, %arg2: memref<1x9x512xbf16, #tpu.memory_space<vmem>>, %arg3: memref<9x512x256xbf16, #tpu.memory_space<vmem>>, %arg4: memref<1x256xf32, #tpu.memory_space<vmem>>, %arg5: memref<1x1x256xbf16, #tpu.memory_space<vmem>>, %arg6: memref<1x1x256xbf16, #tpu.memory_space<vmem>>) attributes {dimension_semantics = [#tpu.dimension_semantics<parallel>, #tpu.dimension_semantics<parallel>], iteration_bounds = array<i64: 2, 2>, scalar_prefetch = 0 : i64, scratch_operands = 0 : i64, tpu.core_type = #tpu.core_type<tc>, window_params = [{transform_indices = @transform_0, window_bounds = array<i64: 1, 9, 512>}, {transform_indices = @transform_1, window_bounds = array<i64: 9, 512, 256>}, {transform_indices = @transform_2, window_bounds = array<i64: 1, 256>}, {transform_indices = @transform_3, window_bounds = array<i64: 1, 1, 256>}, {transform_indices = @transform_4, window_bounds = array<i64: 1, 1, 256>}]} {
    %cst = arith.constant 0.000000e+00 : f32
    %0 = vector.broadcast %cst : f32 to vector<1x256xf32>
    %c0 = arith.constant 0 : index
    %c0_0 = arith.constant 0 : index
    %c0_1 = arith.constant 0 : index
    %1 = vector.load %arg2[%c0, %c0_0, %c0_1] : memref<1x9x512xbf16, #tpu.memory_space<vmem>>, vector<1x1x512xbf16>
    %2 = vector.shape_cast %1 : vector<1x1x512xbf16> to vector<1x512xbf16>
    %c0_2 = arith.constant 0 : index
    %c0_3 = arith.constant 0 : index
    %c0_4 = arith.constant 0 : index
    %3 = vector.load %arg3[%c0_2, %c0_3, %c0_4] : memref<9x512x256xbf16, #tpu.memory_space<vmem>>, vector<1x512x256xbf16>
    %4 = vector.shape_cast %3 : vector<1x512x256xbf16> to vector<512x256xbf16>
    %cst_5 = arith.constant dense<0.000000e+00> : vector<1x256xf32>
    %5 = tpu.matmul %2, %4, %cst_5 {dimension_numbers = #tpu.dot_dimension_numbers<[1], [0], [0], [1], [0, 0, 1, 1], [], []>} : vector<1x512xbf16>, vector<512x256xbf16>, vector<1x256xf32> -> vector<1x256xf32>
    %6 = arith.addf %0, %5 : vector<1x256xf32>
    %c0_6 = arith.constant 0 : index
    %c1 = arith.constant 1 : index
    %c0_7 = arith.constant 0 : index
    %7 = vector.load %arg2[%c0_6, %c1, %c0_7] : memref<1x9x512xbf16, #tpu.memory_space<vmem>>, vector<1x1x512xbf16>
    %8 = vector.shape_cast %7 : vector<1x1x512xbf16> to vector<1x512xbf16>
    %c1_8 = arith.constant 1 : index
    %c0_9 = arith.constant 0 : index
    %c0_10 = arith.constant 0 : index
    %9 = vector.load %arg3[%c1_8, %c0_9, %c0_10] : memref<9x512x256xbf16, #tpu.memory_space<vmem>>, vector<1x512x256xbf16>
    %10 = vector.shape_cast %9 : vector<1x512x256xbf16> to vector<512x256xbf16>
    %cst_11 = arith.constant dense<0.000000e+00> : vector<1x256xf32>
    %11 = tpu.matmul %8, %10, %cst_11 {dimension_numbers = #tpu.dot_dimension_numbers<[1], [0], [0], [1], [0, 0, 1, 1], [], []>} : vector<1x512xbf16>, vector<512x256xbf16>, vector<1x256xf32> -> vector<1x256xf32>
    %12 = arith.addf %6, %11 : vector<1x256xf32>
    %c0_12 = arith.constant 0 : index
    %c2 = arith.constant 2 : index
    %c0_13 = arith.constant 0 : index
    %13 = vector.load %arg2[%c0_12, %c2, %c0_13] : memref<1x9x512xbf16, #tpu.memory_space<vmem>>, vector<1x1x512xbf16>
    %14 = vector.shape_cast %13 : vector<1x1x512xbf16> to vector<1x512xbf16>
    %c2_14 = arith.constant 2 : index
    %c0_15 = arith.constant 0 : index
    %c0_16 = arith.constant 0 : index
    %15 = vector.load %arg3[%c2_14, %c0_15, %c0_16] : memref<9x512x256xbf16, #tpu.memory_space<vmem>>, vector<1x512x256xbf16>
    %16 = vector.shape_cast %15 : vector<1x512x256xbf16> to vector<512x256xbf16>
    %cst_17 = arith.constant dense<0.000000e+00> : vector<1x256xf32>
    %17 = tpu.matmul %14, %16, %cst_17 {dimension_numbers = #tpu.dot_dimension_numbers<[1], [0], [0], [1], [0, 0, 1, 1], [], []>} : vector<1x512xbf16>, vector<512x256xbf16>, vector<1x256xf32> -> vector<1x256xf32>
    %18 = arith.addf %12, %17 : vector<1x256xf32>
    %c0_18 = arith.constant 0 : index
    %c3 = arith.constant 3 : index
    %c0_19 = arith.constant 0 : index
    %19 = vector.load %arg2[%c0_18, %c3, %c0_19] : memref<1x9x512xbf16, #tpu.memory_space<vmem>>, vector<1x1x512xbf16>
    %20 = vector.shape_cast %19 : vector<1x1x512xbf16> to vector<1x512xbf16>
    %c3_20 = arith.constant 3 : index
    %c0_21 = arith.constant 0 : index
    %c0_22 = arith.constant 0 : index
    %21 = vector.load %arg3[%c3_20, %c0_21, %c0_22] : memref<9x512x256xbf16, #tpu.memory_space<vmem>>, vector<1x512x256xbf16>
    %22 = vector.shape_cast %21 : vector<1x512x256xbf16> to vector<512x256xbf16>
    %cst_23 = arith.constant dense<0.000000e+00> : vector<1x256xf32>
    %23 = tpu.matmul %20, %22, %cst_23 {dimension_numbers = #tpu.dot_dimension_numbers<[1], [0], [0], [1], [0, 0, 1, 1], [], []>} : vector<1x512xbf16>, vector<512x256xbf16>, vector<1x256xf32> -> vector<1x256xf32>
    %24 = arith.addf %18, %23 : vector<1x256xf32>
    %c0_24 = arith.constant 0 : index
    %c4 = arith.constant 4 : index
    %c0_25 = arith.constant 0 : index
    %25 = vector.load %arg2[%c0_24, %c4, %c0_25] : memref<1x9x512xbf16, #tpu.memory_space<vmem>>, vector<1x1x512xbf16>
    %26 = vector.shape_cast %25 : vector<1x1x512xbf16> to vector<1x512xbf16>
    %c4_26 = arith.constant 4 : index
    %c0_27 = arith.constant 0 : index
    %c0_28 = arith.constant 0 : index
    %27 = vector.load %arg3[%c4_26, %c0_27, %c0_28] : memref<9x512x256xbf16, #tpu.memory_space<vmem>>, vector<1x512x256xbf16>
    %28 = vector.shape_cast %27 : vector<1x512x256xbf16> to vector<512x256xbf16>
    %cst_29 = arith.constant dense<0.000000e+00> : vector<1x256xf32>
    %29 = tpu.matmul %26, %28, %cst_29 {dimension_numbers = #tpu.dot_dimension_numbers<[1], [0], [0], [1], [0, 0, 1, 1], [], []>} : vector<1x512xbf16>, vector<512x256xbf16>, vector<1x256xf32> -> vector<1x256xf32>
    %30 = arith.addf %24, %29 : vector<1x256xf32>
    %c0_30 = arith.constant 0 : index
    %c5 = arith.constant 5 : index
    %c0_31 = arith.constant 0 : index
    %31 = vector.load %arg2[%c0_30, %c5, %c0_31] : memref<1x9x512xbf16, #tpu.memory_space<vmem>>, vector<1x1x512xbf16>
    %32 = vector.shape_cast %31 : vector<1x1x512xbf16> to vector<1x512xbf16>
    %c5_32 = arith.constant 5 : index
    %c0_33 = arith.constant 0 : index
    %c0_34 = arith.constant 0 : index
    %33 = vector.load %arg3[%c5_32, %c0_33, %c0_34] : memref<9x512x256xbf16, #tpu.memory_space<vmem>>, vector<1x512x256xbf16>
    %34 = vector.shape_cast %33 : vector<1x512x256xbf16> to vector<512x256xbf16>
    %cst_35 = arith.constant dense<0.000000e+00> : vector<1x256xf32>
    %35 = tpu.matmul %32, %34, %cst_35 {dimension_numbers = #tpu.dot_dimension_numbers<[1], [0], [0], [1], [0, 0, 1, 1], [], []>} : vector<1x512xbf16>, vector<512x256xbf16>, vector<1x256xf32> -> vector<1x256xf32>
    %36 = arith.addf %30, %35 : vector<1x256xf32>
    %c0_36 = arith.constant 0 : index
    %c6 = arith.constant 6 : index
    %c0_37 = arith.constant 0 : index
    %37 = vector.load %arg2[%c0_36, %c6, %c0_37] : memref<1x9x512xbf16, #tpu.memory_space<vmem>>, vector<1x1x512xbf16>
    %38 = vector.shape_cast %37 : vector<1x1x512xbf16> to vector<1x512xbf16>
    %c6_38 = arith.constant 6 : index
    %c0_39 = arith.constant 0 : index
    %c0_40 = arith.constant 0 : index
    %39 = vector.load %arg3[%c6_38, %c0_39, %c0_40] : memref<9x512x256xbf16, #tpu.memory_space<vmem>>, vector<1x512x256xbf16>
    %40 = vector.shape_cast %39 : vector<1x512x256xbf16> to vector<512x256xbf16>
    %cst_41 = arith.constant dense<0.000000e+00> : vector<1x256xf32>
    %41 = tpu.matmul %38, %40, %cst_41 {dimension_numbers = #tpu.dot_dimension_numbers<[1], [0], [0], [1], [0, 0, 1, 1], [], []>} : vector<1x512xbf16>, vector<512x256xbf16>, vector<1x256xf32> -> vector<1x256xf32>
    %42 = arith.addf %36, %41 : vector<1x256xf32>
    %c0_42 = arith.constant 0 : index
    %c7 = arith.constant 7 : index
    %c0_43 = arith.constant 0 : index
    %43 = vector.load %arg2[%c0_42, %c7, %c0_43] : memref<1x9x512xbf16, #tpu.memory_space<vmem>>, vector<1x1x512xbf16>
    %44 = vector.shape_cast %43 : vector<1x1x512xbf16> to vector<1x512xbf16>
    %c7_44 = arith.constant 7 : index
    %c0_45 = arith.constant 0 : index
    %c0_46 = arith.constant 0 : index
    %45 = vector.load %arg3[%c7_44, %c0_45, %c0_46] : memref<9x512x256xbf16, #tpu.memory_space<vmem>>, vector<1x512x256xbf16>
    %46 = vector.shape_cast %45 : vector<1x512x256xbf16> to vector<512x256xbf16>
    %cst_47 = arith.constant dense<0.000000e+00> : vector<1x256xf32>
    %47 = tpu.matmul %44, %46, %cst_47 {dimension_numbers = #tpu.dot_dimension_numbers<[1], [0], [0], [1], [0, 0, 1, 1], [], []>} : vector<1x512xbf16>, vector<512x256xbf16>, vector<1x256xf32> -> vector<1x256xf32>
    %48 = arith.addf %42, %47 : vector<1x256xf32>
    %c0_48 = arith.constant 0 : index
    %c8 = arith.constant 8 : index
    %c0_49 = arith.constant 0 : index
    %49 = vector.load %arg2[%c0_48, %c8, %c0_49] : memref<1x9x512xbf16, #tpu.memory_space<vmem>>, vector<1x1x512xbf16>
    %50 = vector.shape_cast %49 : vector<1x1x512xbf16> to vector<1x512xbf16>
    %c8_50 = arith.constant 8 : index
    %c0_51 = arith.constant 0 : index
    %c0_52 = arith.constant 0 : index
    %51 = vector.load %arg3[%c8_50, %c0_51, %c0_52] : memref<9x512x256xbf16, #tpu.memory_space<vmem>>, vector<1x512x256xbf16>
    %52 = vector.shape_cast %51 : vector<1x512x256xbf16> to vector<512x256xbf16>
    %cst_53 = arith.constant dense<0.000000e+00> : vector<1x256xf32>
    %53 = tpu.matmul %50, %52, %cst_53 {dimension_numbers = #tpu.dot_dimension_numbers<[1], [0], [0], [1], [0, 0, 1, 1], [], []>} : vector<1x512xbf16>, vector<512x256xbf16>, vector<1x256xf32> -> vector<1x256xf32>
    %54 = arith.addf %48, %53 : vector<1x256xf32>
    %c0_54 = arith.constant 0 : index
    %c0_55 = arith.constant 0 : index
    %55 = vector.load %arg4[%c0_54, %c0_55] : memref<1x256xf32, #tpu.memory_space<vmem>>, vector<1x256xf32>
    %56 = arith.addf %54, %55 : vector<1x256xf32>
    %c0_56 = arith.constant 0 : index
    %c0_57 = arith.constant 0 : index
    %c0_58 = arith.constant 0 : index
    %57 = vector.load %arg5[%c0_56, %c0_57, %c0_58] : memref<1x1x256xbf16, #tpu.memory_space<vmem>>, vector<1x1x256xbf16>
    %58 = vector.shape_cast %57 : vector<1x1x256xbf16> to vector<1x256xbf16>
    %59 = arith.extf %58 : vector<1x256xbf16> to vector<1x256xf32>
    %60 = arith.addf %56, %59 : vector<1x256xf32>
    %cst_59 = arith.constant 0.000000e+00 : f32
    %61 = vector.broadcast %cst_59 : f32 to vector<1x256xf32>
    %62 = arith.maximumf %60, %61 : vector<1x256xf32>
    %63 = arith.truncf %62 : vector<1x256xf32> to vector<1x256xbf16>
    %c0_60 = arith.constant 0 : index
    %c0_61 = arith.constant 0 : index
    %c0_62 = arith.constant 0 : index
    %64 = vector.load %arg6[%c0_60, %c0_61, %c0_62] : memref<1x1x256xbf16, #tpu.memory_space<vmem>>, vector<1x1x256xbf16>
    %65 = vector.shape_cast %64 : vector<1x1x256xbf16> to vector<1x256xbf16>
    %66 = vector.shape_cast %63 : vector<1x256xbf16> to vector<1x1x256xbf16>
    tpu.vector_store %arg6[%c0_60, %c0_61, %c0_62], %66 {strides = array<i32>} : memref<1x1x256xbf16, #tpu.memory_space<vmem>>, vector<1x1x256xbf16>,
    return
  }
  func.func @transform_0(%arg0: i32, %arg1: i32) -> (i32, i32, i32) {
    %c0_i32 = arith.constant 0 : i32
    %c0_i32_0 = arith.constant 0 : i32
    %c0_i32_1 = arith.constant 0 : i32
    return %arg0, %c0_i32, %c0_i32_0 : i32, i32, i32
  }
  func.func @transform_1(%arg0: i32, %arg1: i32) -> (i32, i32, i32) {
    %c0_i32 = arith.constant 0 : i32
    %c0_i32_0 = arith.constant 0 : i32
    %c0_i32_1 = arith.constant 0 : i32
    return %c0_i32, %c0_i32_0, %arg1 : i32, i32, i32
  }
  func.func @transform_2(%arg0: i32, %arg1: i32) -> (i32, i32) {
    %c0_i32 = arith.constant 0 : i32
    %c0_i32_0 = arith.constant 0 : i32
    return %c0_i32, %arg1 : i32, i32
  }
  func.func @transform_3(%arg0: i32, %arg1: i32) -> (i32, i32, i32) {
    %c0_i32 = arith.constant 0 : i32
    %c0_i32_0 = arith.constant 0 : i32
    return %arg0, %c0_i32, %arg1 : i32, i32, i32
  }
  func.func @transform_4(%arg0: i32, %arg1: i32) -> (i32, i32, i32) {
    %c0_i32 = arith.constant 0 : i32
    %c0_i32_0 = arith.constant 0 : i32
    return %arg0, %c0_i32, %arg1 : i32, i32, i32
  }
}

</mosaic_0001>

<bundles_post_ra>
// kernel: resnet_forward.7
= control target key start
LH: loop header
LB: loop body
LE: loop exit
PB: predicated region body
PF: predicated region fallthrough
CT: control target
= control target key end

     0   :  { %s3039_s12 = smov 0   ;;  %s3041_s13 = smov 0   ;;  %s3639_s0 = inlined_call_operand.vmem [shape: bf16[2,100,128], index: 0, kind: input, shape index: {}]   ;;  %s3640_s1 = inlined_call_operand.vmem [shape: bf16[9,128,128], index: 1, kind: input, shape index: {}]   ;;  %s3641_s2 = inlined_call_operand.vmem [shape: f32[1,128], index: 2, kind: input, shape index: {}]   ;;  %s3642_s3 = inlined_call_operand.vmem [shape: bf16[2,78,128], index: 3, kind: output, shape index: {}]  }
   0x1   :  { %s3043_s14 = smov 0  }
   0x2 LB: > { %s25_s15 = sadd.s32 1, %s3011_s13  ;;  %p2133_p0 = scmp.ge.s32.totalorder %s3015_s14, 1  ;;  %s3015_s14 = sphi %s3043_s14, %s13_s14   ;;  %s3011_s13 = sphi %s3041_s13, %s3644_s13   ;;  %s3007_s12 = sphi %s3039_s12, %s3643_s12  }
   0x3   : > { %p27_p1 = scmp.ge.s32.totalorder %s25_s15, 2  ;;  %p168_p2 = scmp.lt.s32.totalorder %s3015_s14, 3 }
   0x5   : > { %s3646_s15 = smov (%p27_p1, %s25_s15), 0  ;;  %p169_p3 = pnand %p2133_p0, %p168_p2 }
   0x6   : > { %v2894_v0 = vld [vmem:[%s3640_s1 + $0x40] sm:$0xff] (!%p169_p3)   ;;  %v3017_v1 = vmov (!%p169_p3), 0.0   ;;  %v2896_v3 = vld [vmem:[%s3640_s1 + $0x48] sm:$0xff] (!%p169_p3)   ;;  %vm3018_vm0 = vmmov (!%p169_p3), 0   ;;  %p202_p4 = scmp.lt.s32.totalorder (!%p169_p3), %s3007_s12, 1  ;;  %v2898_v5 = vld [vmem:[%s3640_s1 + $0x50] sm:$0xff] (!%p169_p3)  }
   0x7   : > { %172 = sbr.rel (%p169_p3) target bundleno = 438 (0x1b6), region = 32  ;;  %2526 = vmatprep.subr.bf16.mxu0 (!%p169_p3), %v3017_v1  ;;  %2562 = vmatprep.subr.bf16.mxu1 (!%p169_p3), %v3017_v1  ;;  %v2895_v2 = vld [vmem:[%s3640_s1] sm:$0xff] (!%p169_p3)   ;;  %v2897_v4 = vld [vmem:[%s3640_s1 + $0x8] sm:$0xff] (!%p169_p3)   ;;  %v2899_v6 = vld [vmem:[%s3640_s1 + $0x10] sm:$0xff] (!%p169_p3)   ;;  %vm292_vm1 = vsmask.f32 (!%p169_p3), 7424 }
   0x8   : > { %2527 = vmatpush3.bf16.msra.mxu0 (!%p169_p3), %v2894_v0  ;;  %2542 = vmatprep.mubr.msk.bf16.mxu0 (!%p169_p3), %vm3018_vm0, %v3017_v1  ;;  %v2900_v7 = vld [vmem:[%s3640_s1 + $0x58] sm:$0xff] (!%p169_p3)   ;;  %v2902_v9 = vld [vmem:[%s3640_s1 + $0x60] sm:$0xff] (!%p169_p3)   ;;  %v2904_v13 = vld [vmem:[%s3640_s1 + $0x68] sm:$0xff] (!%p169_p3)   ;;  %vm608_vm2 = vcmask (!%p169_p3), 1046528   ;;  %vm1007_vm3 = vsmask.f32 (!%p169_p3), 6400 }
   0x9   : > { %2563 = vmatpush3.bf16.msra.mxu1 (!%p169_p3), %v2895_v2  ;;  %2528 = vmatprep.subr.bf16.mxu0 (!%p169_p3), %v3017_v1  ;;  %v2901_v8 = vld [vmem:[%s3640_s1 + $0x18] sm:$0xff] (!%p169_p3)   ;;  %v2903_v10 = vld [vmem:[%s3640_s1 + $0x20] sm:$0xff] (!%p169_p3)   ;;  %v2905_v16 = vld [vmem:[%s3640_s1 + $0x28] sm:$0xff] (!%p169_p3)   ;;  %vm1214_vm4 = vcmask (!%p169_p3), 1045504   ;;  %vm1586_vm5 = vsmask.f32 (!%p169_p3), 5376 }
   0xa   : > { %2564 = vmatprep.subr.bf16.mxu1 (!%p169_p3), %v3017_v1  ;;  %2578 = vmatprep.mubr.msk.bf16.mxu1 (!%p169_p3), %vm3018_vm0, %v3017_v1  ;;  %v2906_v18 = vld [vmem:[%s3640_s1 + $0x70] sm:$0xff] (!%p169_p3)   ;;  %v2908_v23 = vld [vmem:[%s3640_s1 + $0x78] sm:$0xff] (!%p169_p3)   ;;  %v2912_v28 = vld [vmem:[%s3640_s1 + $0x80] sm:$0xff] (!%p169_p3)   ;;  %vm1797_vm6 = vcmask (!%p169_p3), 1044480  }
   0xb   : > { %v2907_v22 = vld [vmem:[%s3640_s1 + $0x30] sm:$0xff] (!%p169_p3)   ;;  %v2909_v24 = vld [vmem:[%s3640_s1 + $0x38] sm:$0xff] (!%p169_p3)   ;;  %v2915_v32 = vld [vmem:[%s3640_s1 + $0xc0] sm:$0xff] (!%p169_p3)  }
   0xc   : > { %2529 = vmatpush3.bf16.msra.mxu0 (!%p169_p3), %v2896_v3  ;;  %v2913_v34 = vld [vmem:[%s3640_s1 + $0x88] sm:$0xff] (!%p169_p3)   ;;  %v2916_v38 = vld [vmem:[%s3640_s1 + $0x90] sm:$0xff] (!%p169_p3)   ;;  %v2919_v46 = vld [vmem:[%s3640_s1 + $0x98] sm:$0xff] (!%p169_p3)  }
   0xd   : > { %2565 = vmatpush3.bf16.msra.mxu1 (!%p169_p3), %v2897_v4  ;;  %2530 = vmatprep.subr.bf16.mxu0 (!%p169_p3), %v3017_v1  ;;  %v2917_v37 = vld [vmem:[%s3640_s1 + $0xc8] sm:$0xff] (!%p169_p3)   ;;  %v2920_v44 = vld [vmem:[%s3640_s1 + $0xd0] sm:$0xff] (!%p169_p3)   ;;  %v2922_v49 = vld [vmem:[%s3640_s1 + $0xd8] sm:$0xff] (!%p169_p3)  }
   0xe   : > { %s3648_s12 = smov (!%p202_p4, %s3007_s12), 1  ;;  %2566 = vmatprep.subr.bf16.mxu1 %v3017_v1  ;;  %v2921_v50 = vld [vmem:[%s3640_s1 + $0xa0] sm:$0xff]   ;;  %v2925_v57 = vld [vmem:[%s3640_s1 + $0xa8] sm:$0xff]   ;;  %v2927_v60 = vld [vmem:[%s3640_s1 + $0xb0] sm:$0xff]  }
   0xf   : > { %s2866_s28 = smul.u32 52, %s3648_s12  ;;  %v2924_v54 = vld [vmem:[%s3640_s1 + $0xe0] sm:$0xff]   ;;  %v2926_v58 = vld [vmem:[%s3640_s1 + $0xe8] sm:$0xff]   ;;  %v2929_v61 = vld [vmem:[%s3640_s1 + $0xf0] sm:$0xff]  }
  0x10   : > { %2531 = vmatpush3.bf16.msra.mxu0 %v2898_v5  ;;  %v2930_v2 = vld [vmem:[%s3640_s1 + $0xb8] sm:$0xff]   ;;  %s2867_s5 = smul.u32 40, %s3648_s12 }
  0x11   : > { %2567 = vmatpush3.bf16.msra.mxu1 %v2899_v6  ;;  %2532 = vmatprep.subr.bf16.mxu0 %v3017_v1  ;;  %s3099_s8 = scalar_lea.vmem %s3639_s0, %s2866_s28  ;;  %v2931_v3 = vld [vmem:[%s3640_s1 + $0xf8] sm:$0xff]  }
  0x12   : > { %2568 = vmatprep.subr.bf16.mxu1 %v3017_v1  ;;  %v223_v11 = vld [vmem:[%s3099_s8] sm:$0xf]  ;;  %v3111_v12 = vld [vmem:[%s3099_s8 + $0x4] sm:$0xf]  ;;  %v3118_v15 = vld [vmem:[%s3099_s8 + $0x8] sm:$0xff]   ;;  %s3618_s9 = scalar_lea.vmem %s3642_s3, %s2867_s5 }
  0x13   : > { %v2152_v14 = vcombine.low %v223_v11, %v3111_v12  ;;  %v301_v21 = vshll.u32 %v3118_v15, 16  ;;  %v3141_v27 = vld [vmem:[%s3099_s8 + $0x10] sm:$0xff]   ;;  %v305_v30 = vshrl.u32 %v3118_v15, 16  ;;  %v3157_v33 = vld [vmem:[%s3099_s8 + $0x18] sm:$0xff]   ;;  %v3179_v42 = vld [vmem:[%s3099_s8 + $0x20] sm:$0xf] }
  0x14   : > { %2533 = vmatpush3.bf16.msra.mxu0 %v2900_v7  ;;  %v309_v31 = vshll.u32 %v3141_v27, 16  ;;  %v313_v39 = vshrl.u32 %v3141_v27, 16  ;;  %v317_v40 = vshll.u32 %v3157_v33, 16  ;;  %v249_v43 = vld [vmem:[%s3099_s8 + $0x24] sm:$0xf]  ;;  %v321_v52 = vshrl.u32 %v3157_v33, 16 }
  0x15   : > { %2569 = vmatpush3.bf16.msra.mxu1 %v2901_v8  ;;  %2534 = vmatprep.subr.bf16.mxu0 %v3017_v1  ;;  %v296_v17 = vshll.u32 %v2152_v14, 16  ;;  %v294_v19 = vshrl.u32 %v2152_v14, 16  ;;  %v303_v26 = vrot.slane %v301_v21, 1  ;;  %v3191_v48 = vcombine.low %v3179_v42, %v249_v43  ;;  %v232_v63 = vld [vmem:[%s3099_s8 + $0x24] sm:$0x7]  ;;  %v2934_v8 = vld [vmem:[%s3099_s8 + $0xc] sm:$0xff]  }
  0x16   : > { %2570 = vmatprep.subr.bf16.mxu1 %v3017_v1  ;;  %v311_v36 = vrot.slane %v309_v31, 1  ;;  %v319_v45 = vrot.slane %v317_v40, 1  ;;  %v587_v0 = vld [vmem:[%s3099_s8] sm:$0xe]  ;;  %v2165_v6 = vcombine.low %v3179_v42, %v232_v63  ;;  %v2933_v7 = vld [vmem:[%s3099_s8 + $0x4] sm:$0xfe]  }
  0x17   : > { %v298_v20 = vrot.slane %v296_v17, 1  ;;  %v307_v35 = vor.u32 %v305_v30, %v303_v26  ;;  %v325_v53 = vshll.u32 %v3191_v48, 16  ;;  %v329_v62 = vshrl.u32 %v3191_v48, 16  ;;  %v2938_v17 = vld [vmem:[%s3640_s1 + $0x140] sm:$0xff]   ;;  %v2940_v21 = vld [vmem:[%s3640_s1 + $0x148] sm:$0xff]   ;;  %v2945_v30 = vld [vmem:[%s3640_s1 + $0x158] sm:$0xff]  }
  0x18   : > { %2535 = vmatpush3.bf16.msra.mxu0 %v2902_v9  ;;  %v315_v47 = vor.u32 %v313_v39, %v311_v36  ;;  %v323_v55 = vor.u32 %v321_v52, %v319_v45  ;;  %v2190_v5 = vcombine.low %v587_v0, %v3111_v12  ;;  %v806_v11 = vrot.slane %v2933_v7, 1  ;;  %v2946_v31 = vld [vmem:[%s3099_s8 + $0x24] sm:$0xff]   ;;  %v2952_v52 = vld [vmem:[%s3640_s1 + $0x138] sm:$0xff]  }
  0x19   : > { %2571 = vmatpush3.bf16.msra.mxu1 %v2903_v10  ;;  %2536 = vmatprep.subr.bf16.mxu0 %v3017_v1  ;;  %v299_v25 = vor.u32 %v298_v20, %v294_v19  ;;  %v312_v41 = vsel %vm292_vm1, %v307_v35, %v311_v36  ;;  %v327_v56 = vrot.slane %v325_v53, 1  ;;  %v610_v10 = vrot.slane %v3118_v15, 1  ;;  %v2947_v35 = vld [vmem:[%s3640_s1 + $0x160] sm:$0xff]   ;;  %v952_v40 = vld [vmem:[%s3099_s8 + $0x8] sm:$0xf]  ;;  %v2953_v53 = vld [vmem:[%s3640_s1 + $0x178] sm:$0xff]  }
  0x1a   : > { %2572 = vmatprep.subr.bf16.mxu1 %v3017_v1  ;;  %v320_v51 = vsel %vm292_vm1, %v315_v47, %v319_v45  ;;  %v609_v9 = vrot.slane %v2190_v5, 1  ;;  %v807_v12 = vrot.slane %v2934_v8, 1  ;;  %v612_v19 = vrot.slane %v3141_v27, 1  ;;  %v951_v39 = vld [vmem:[%s3099_s8 + $0x4] sm:$0xe]  ;;  %v2951_v47 = vld [vmem:[%s3640_s1 + $0x170] sm:$0xff]  }
  0x1b   : > { %v304_v29 = vsel %vm292_vm1, %v299_v25, %v303_v26  ;;  %v328_v59 = vsel %vm292_vm1, %v323_v55, %v327_v56  ;;  %v331_v4 = vor.u32 %v329_v62, %v327_v56  ;;  %v2941_v25 = vld [vmem:[%s3099_s8 + $0x1c] sm:$0xff]   ;;  %v2943_v26 = vld [vmem:[%s3640_s1 + $0x150] sm:$0xff]   ;;  %v616_v36 = vrot.slane %v3191_v48, 1 }
  0x1c   : > { %2537 = vmatpush3.bf16.msra.mxu0 %v2904_v13  ;;  %v611_v13 = vsel %vm608_vm2, %v609_v9, %v610_v10  ;;  %v2244_v43 = vcombine.low %v951_v39, %v952_v40  ;;  %v2957_v5 = vld [vmem:[%s3640_s1 + $0x180] sm:$0xff]  }
  0x1d   : > { %2573 = vmatpush3.bf16.msra.mxu1 %v2905_v16  ;;  %2538 = vmatprep.subr.bf16.mxu0 %v3017_v1  ;;  %v2937_v16 = vld [vmem:[%s3099_s8 + $0x14] sm:$0xff]   ;;  %v3379_v8 = vld [vmem:[%s3099_s8 + $0x1c] sm:$0xff]  }
  0x1e   : > { %2574 = vmatprep.subr.bf16.mxu1 %v3017_v1  ;;  %v809_v20 = vrot.slane %v2937_v16, 1  ;;  %v1009_v48 = vshrl.u32 %v2244_v43, 16  ;;  %v2962_v16 = vld [vmem:[%s3640_s1 + $0x1c8] sm:$0xff]  }
  0x20   : > { %2539 = vmatpush3.bf16.msra.mxu0 %v2906_v18  ;;  %v2936_v18 = vld [vmem:[%s3640_s1 + $0x108] sm:$0xff]   ;;  %v1011_v55 = vrot.slane %v1009_v48, 1  ;;  %v3464_v48 = vld [vmem:[%s3099_s8 + $0x10] sm:$0xff]  }
  0x21   : > { %2575 = vmatpush3.bf16.msra.mxu1 %v2907_v22  ;;  %2540 = vmatprep.subr.bf16.mxu0 %v3017_v1  ;;  %v613_v22 = vsel %vm608_vm2, %v610_v10, %v612_v19  ;;  %v2960_v10 = vld [vmem:[%s3640_s1 + $0x1c0] sm:$0xff]  }
  0x22   : > { %2576 = vmatprep.subr.bf16.mxu1 %v3017_v1 }
  0x24   : > { %2541 = vmatpush3.bf16.msra.mxu0 %v2908_v23  ;;  %v2939_v23 = vld [vmem:[%s3640_s1 + $0x110] sm:$0xff]  }
  0x25   : > { %2577 = vmatpush3.bf16.msra.mxu1 %v2909_v24  ;;  %2598 = vmatprep.subr.bf16.mxu0 %v3017_v1  ;;  %v810_v24 = vsel %vm608_vm2, %v807_v12, %v809_v20 }
  0x26   : > { %2634 = vmatprep.subr.bf16.mxu1 %v3017_v1 }
  0x27   : > { %2543 = vmatmul.mubr.bf16.vlgmr.msra.gmra.mrb[0].mxu0 %v304_v29  ;;  %v811_v29 = vrot.slane %v2941_v25, 1  ;;  %v2964_v25 = vld [vmem:[%s3640_s1 + $0x198] sm:$0xff]  }
  0x28   : > { %2579 = vmatmul.mubr.bf16.vlgmr.msra.gmra.mrb[0].mxu1 %v2152_v14  ;;  %2599 = vmatpush3.bf16.msra.mxu0 %v2912_v28  ;;  %v2935_v14 = vld [vmem:[%s3640_s1 + $0x100] sm:$0xff]   ;;  %v2942_v28 = vld [vmem:[%s3640_s1 + $0x118] sm:$0xff]  }
  0x29   : > { %2600 = vmatprep.subr.bf16.mxu0 %v3017_v1  ;;  %2546 = vmatprep.mubr.msk.bf16.mxu0 %vm3018_vm0, %v3017_v1 }
  0x2a   : > { %2582 = vmatprep.mubr.msk.bf16.mxu1 %vm3018_vm0, %v3017_v1  ;;  %2635 = vmatpush3.bf16.msra.mxu1 %v2915_v32 }
  0x2b   : > { %2636 = vmatprep.subr.bf16.mxu1 %v3017_v1 }
  0x2c   : > { %2601 = vmatpush3.bf16.msra.mxu0 %v2913_v34  ;;  %v812_v34 = vsel %vm608_vm2, %v809_v20, %v811_v29 }
  0x2d   : > { %2602 = vmatprep.subr.bf16.mxu0 %v3017_v1 }
  0x2e   : > { %2637 = vmatpush3.bf16.msra.mxu1 %v2917_v37  ;;  %v813_v37 = vrot.slane %v2946_v31, 1  ;;  %v2966_v31 = vld [vmem:[%s3640_s1 + $0x1a0] sm:$0xff]  }
  0x2f   : > { %2547 = vmatmul.mubr.bf16.gmra.mrb[4].mxu0 %v312_v41  ;;  %2638 = vmatprep.subr.bf16.mxu1 %v3017_v1  ;;  %v2949_v41 = vld [vmem:[%s3640_s1 + $0x168] sm:$0xff]  }
  0x30   : > { %2583 = vmatmul.mubr.bf16.gmra.mrb[4].mxu1 %v3118_v15  ;;  %2603 = vmatpush3.bf16.msra.mxu0 %v2916_v38  ;;  %v808_v15 = vsel %vm608_vm2, %v806_v11, %v807_v12  ;;  %v2948_v38 = vld [vmem:[%s3640_s1 + $0x128] sm:$0xff]   ;;  %v814_v45 = vsel %vm608_vm2, %v811_v29, %v813_v37  ;;  %v2967_v29 = vld [vmem:[%s3640_s1 + $0x1d8] sm:$0xff]  }
  0x31   : > { %2550 = vmatprep.mubr.msk.bf16.mxu0 %vm3018_vm0, %v3017_v1  ;;  %2586 = vmatprep.mubr.msk.bf16.mxu1 %vm3018_vm0, %v3017_v1  ;;  %v2958_v11 = vld [vmem:[%s3640_s1 + $0x188] sm:$0xff]  }
  0x32   : > { %2604 = vmatprep.subr.bf16.mxu0 %v3017_v1  ;;  %2639 = vmatpush3.bf16.msra.mxu1 %v2920_v44  ;;  %v3336_v44 = vld [vmem:[%s3099_s8 + $0xc] sm:$0xff]  }
  0x33   : > { %2640 = vmatprep.subr.bf16.mxu1 %v3017_v1 }
  0x34   : > { %2605 = vmatpush3.bf16.msra.mxu0 %v2919_v46  ;;  %v2950_v46 = vld [vmem:[%s3640_s1 + $0x130] sm:$0xff]  }
  0x35   : > { %2606 = vmatprep.subr.bf16.mxu0 %v3017_v1 }
  0x36   : > { %2641 = vmatpush3.bf16.msra.mxu1 %v2922_v49  ;;  %v1012_v49 = vshll.u32 %v2244_v43, 16 }
  0x37   : > { %2551 = vmatmul.mubr.bf16.gmra.mrb[8].mxu0 %v320_v51  ;;  %2642 = vmatprep.subr.bf16.mxu1 %v3017_v1  ;;  %v1020_v51 = vshll.u32 %v3336_v44, 16 }
  0x38   : > { %2587 = vmatmul.mubr.bf16.gmra.mrb[8].mxu1 %v3141_v27  ;;  %2607 = vmatpush3.bf16.msra.mxu0 %v2921_v50  ;;  %v614_v27 = vrot.slane %v3157_v33, 1  ;;  %v1017_v50 = vshrl.u32 %v3336_v44, 16  ;;  %v1014_v56 = vrot.slane %v1012_v49, 2  ;;  %v2974_v49 = vld [vmem:[%s3640_s1 + $0x1f0] sm:$0xff]  }
  0x39   : > { %2554 = vmatprep.mubr.msk.bf16.mxu0 %vm3018_vm0, %v3017_v1  ;;  %2590 = vmatprep.mubr.msk.bf16.mxu1 %vm3018_vm0, %v3017_v1 }
  0x3a   : > { %2608 = vmatprep.subr.bf16.mxu0 %v3017_v1  ;;  %2643 = vmatpush3.bf16.msra.mxu1 %v2924_v54  ;;  %v615_v32 = vsel %vm608_vm2, %v612_v19, %v614_v27  ;;  %v617_v42 = vsel %vm608_vm2, %v614_v27, %v616_v36  ;;  %v1193_v54 = vld [vmem:[%s3099_s8 + $0x4] sm:$0xc] }
  0x3b   : > { %2644 = vmatprep.subr.bf16.mxu1 %v3017_v1 }
  0x3c   : > { %2609 = vmatpush3.bf16.msra.mxu0 %v2925_v57  ;;  %v1019_v57 = vrot.slane %v1017_v50, 1 }
  0x3d   : > { %2610 = vmatprep.subr.bf16.mxu0 %v3017_v1 }
  0x3e   : > { %2645 = vmatpush3.bf16.msra.mxu1 %v2926_v58  ;;  %v1022_v58 = vrot.slane %v1020_v51, 2 }
  0x3f   : > { %2555 = vmatmul.mubr.bf16.gmra.mrb[12].mxu0 %v328_v59  ;;  %2646 = vmatprep.subr.bf16.mxu1 %v3017_v1  ;;  %v3363_v59 = vld [vmem:[%s3099_s8 + $0x14] sm:$0xff]  }
  0x40   : > { %2591 = vmatmul.mubr.bf16.gmra.mrb[12].mxu1 %v3157_v33  ;;  %2558 = vmatprep.mubr.msk.bf16.mxu0 %vm3018_vm0, %v3017_v1  ;;  %v2944_v33 = vld [vmem:[%s3640_s1 + $0x120] sm:$0xff]   ;;  %v1023_v62 = vor.u32 %v1022_v58, %v1019_v57  ;;  %v1026_v63 = vshrl.u32 %v3363_v59, 16  ;;  %v1029_v0 = vshll.u32 %v3363_v59, 16  ;;  %v2976_v57 = vld [vmem:[%s3640_s1 + $0x1f8] sm:$0xff]  }
  0x41   : > { %2594 = vmatprep.mubr.msk.bf16.mxu1 %vm3018_vm0, %v3017_v1  ;;  %2611 = vmatpush3.bf16.msra.mxu0 %v2927_v60  ;;  %v2274_v60 = vcombine.low %v1193_v54, %v952_v40  ;;  %v2971_v40 = vld [vmem:[%s3640_s1 + $0x1e8] sm:$0xff]  }
  0x42   : > { %2647 = vmatpush3.bf16.msra.mxu1 %v2929_v61  ;;  %2612 = vmatprep.subr.bf16.mxu0 %v3017_v1  ;;  %v1015_v61 = vor.u32 %v1014_v56, %v1011_v55  ;;  %v1031_v7 = vrot.slane %v1029_v0, 2  ;;  %v1596_v55 = vshrl.u32 %v3464_v48, 16  ;;  %v1599_v56 = vshll.u32 %v3464_v48, 16  ;;  %v3487_v0 = vld [vmem:[%s3099_s8 + $0x18] sm:$0xff]  }
  0x43   : > { %2648 = vmatprep.subr.bf16.mxu1 %v3017_v1 }
  0x45   : > { %2613 = vmatpush3.bf16.msra.mxu0 %v2930_v2  ;;  %v1215_v2 = vrot.slane %v2274_v60, 2 }
  0x46   : > { %2649 = vmatpush3.bf16.msra.mxu1 %v2931_v3  ;;  %2670 = vmatprep.subr.bf16.mxu0 %v3017_v1  ;;  %v1216_v3 = vrot.slane %v3336_v44, 2 }
  0x47   : > { %2559 = vmatmul.mubr.bf16.gmra.mrb[16].mxu0 %v331_v4  ;;  %2706 = vmatprep.subr.bf16.mxu1 %v3017_v1  ;;  %v1024_v4 = vsel %vm1007_vm3, %v1015_v61, %v1023_v62 }
  0x48   : > { %2595 = vmatmul.mubr.bf16.gmra.mrb[16].mxu1 %v2165_v6  ;;  %2614 = vmatprep.mubr.msk.bf16.mxu0 %vm3018_vm0, %v3017_v1  ;;  %v1028_v6 = vrot.slane %v1026_v63, 1  ;;  %v1217_v9 = vsel %vm1214_vm4, %v1215_v2, %v1216_v3  ;;  %v1601_v63 = vrot.slane %v1599_v56, 3 }
  0x49   : > { %2650 = vmatprep.mubr.msk.bf16.mxu1 %vm3018_vm0, %v3017_v1 }
  0x4a   : > { %v1032_v12 = vor.u32 %v1031_v7, %v1028_v6  ;;  %v1605_v6 = vshrl.u32 %v3487_v0, 16  ;;  %v1608_v7 = vshll.u32 %v3487_v0, 16 }
  0x4f   : > { %2615 = vmatmul.mubr.bf16.vlgmr.msra.gmra.mrb[20].mxu0 %v611_v13  ;;  %v1035_v13 = vshrl.u32 %v3379_v8, 16 }
  0x50   : > { %2651 = vmatmul.mubr.bf16.vlgmr.msra.gmra.mrb[20].mxu1 %v808_v15  ;;  %2671 = vmatpush3.bf16.msra.mxu0 %v2935_v14  ;;  %v1038_v14 = vshll.u32 %v3379_v8, 16  ;;  %v1218_v15 = vrot.slane %v3363_v59, 2 }
  0x51   : > { %2672 = vmatprep.subr.bf16.mxu0 %v3017_v1  ;;  %2618 = vmatprep.mubr.msk.bf16.mxu0 %vm3018_vm0, %v3017_v1  ;;  %v1037_v19 = vrot.slane %v1035_v13, 1  ;;  %v3504_v13 = vld [vmem:[%s3099_s8 + $0x20] sm:$0xff]  }
  0x52   : > { %2654 = vmatprep.mubr.msk.bf16.mxu1 %vm3018_vm0, %v3017_v1  ;;  %2707 = vmatpush3.bf16.msra.mxu1 %v2938_v17  ;;  %v1033_v17 = vsel %vm1007_vm3, %v1023_v62, %v1032_v12  ;;  %v1040_v20 = vrot.slane %v1038_v14, 2  ;;  %v1598_v62 = vrot.slane %v1596_v55, 2  ;;  %v2980_v14 = vld [vmem:[%s3640_s1 + $0x208] sm:$0xff]  }
  0x53   : > { %2708 = vmatprep.subr.bf16.mxu1 %v3017_v1 }
  0x54   : > { %2673 = vmatpush3.bf16.msra.mxu0 %v2936_v18  ;;  %v2961_v18 = vld [vmem:[%s3640_s1 + $0x190] sm:$0xff]  }
  0x55   : > { %2674 = vmatprep.subr.bf16.mxu0 %v3017_v1 }
  0x56   : > { %2709 = vmatpush3.bf16.msra.mxu1 %v2940_v21  ;;  %v3405_v21 = vld [vmem:[%s3099_s8 + $0x24] sm:$0xff]  }
  0x57   : > { %2619 = vmatmul.mubr.bf16.gmra.mrb[24].mxu0 %v613_v22  ;;  %2710 = vmatprep.subr.bf16.mxu1 %v3017_v1  ;;  %v1219_v22 = vsel %vm1214_vm4, %v1216_v3, %v1218_v15  ;;  %v1047_v27 = vshll.u32 %v3405_v21, 16  ;;  %v1222_v39 = vrot.slane %v3405_v21, 2  ;;  %v1419_v3 = vrot.slane %v3464_v48, 2 }
  0x58   : > { %2655 = vmatmul.mubr.bf16.gmra.mrb[24].mxu1 %v810_v24  ;;  %2675 = vmatpush3.bf16.msra.mxu0 %v2939_v23  ;;  %v2965_v23 = vld [vmem:[%s3640_s1 + $0x1d0] sm:$0xff]   ;;  %v1041_v24 = vor.u32 %v1040_v20, %v1037_v19 }
  0x59   : > { %2622 = vmatprep.mubr.msk.bf16.mxu0 %vm3018_vm0, %v3017_v1  ;;  %2658 = vmatprep.mubr.msk.bf16.mxu1 %vm3018_vm0, %v3017_v1  ;;  %v2982_v20 = vld [vmem:[%s3640_s1 + $0x210] sm:$0xff]  }
  0x5a   : > { %2676 = vmatprep.subr.bf16.mxu0 %v3017_v1  ;;  %2711 = vmatpush3.bf16.msra.mxu1 %v2943_v26  ;;  %v1044_v26 = vshrl.u32 %v3405_v21, 16 }
  0x5b   : > { %2712 = vmatprep.subr.bf16.mxu1 %v3017_v1 }
  0x5c   : > { %2677 = vmatpush3.bf16.msra.mxu0 %v2942_v28  ;;  %v1220_v28 = vrot.slane %v3379_v8, 2 }
  0x5d   : > { %2678 = vmatprep.subr.bf16.mxu0 %v3017_v1 }
  0x5e   : > { %2713 = vmatpush3.bf16.msra.mxu1 %v2945_v30  ;;  %v1042_v30 = vsel %vm1007_vm3, %v1032_v12, %v1041_v24  ;;  %v1610_v12 = vrot.slane %v1608_v7, 3 }
  0x5f   : > { %2623 = vmatmul.mubr.bf16.gmra.mrb[28].mxu0 %v615_v32  ;;  %2714 = vmatprep.subr.bf16.mxu1 %v3017_v1  ;;  %v1046_v32 = vrot.slane %v1044_v26, 1  ;;  %v2984_v26 = vld [vmem:[%s3640_s1 + $0x218] sm:$0xff]  }
  0x60   : > { %2659 = vmatmul.mubr.bf16.gmra.mrb[28].mxu1 %v812_v34  ;;  %2679 = vmatpush3.bf16.msra.mxu0 %v2944_v33  ;;  %v1049_v33 = vrot.slane %v1047_v27, 2  ;;  %v1221_v34 = vsel %vm1214_vm4, %v1218_v15, %v1220_v28  ;;  %v1421_v15 = vrot.slane %v3487_v0, 2 }
  0x61   : > { %2626 = vmatprep.mubr.msk.bf16.mxu0 %vm3018_vm0, %v3017_v1  ;;  %2662 = vmatprep.mubr.msk.bf16.mxu1 %vm3018_vm0, %v3017_v1 }
  0x62   : > { %2680 = vmatprep.subr.bf16.mxu0 %v3017_v1  ;;  %2715 = vmatpush3.bf16.msra.mxu1 %v2947_v35  ;;  %v2969_v35 = vld [vmem:[%s3640_s1 + $0x1e0] sm:$0xff]   ;;  %v1422_v19 = vsel %vm1214_vm4, %v1419_v3, %v1421_v15 }
  0x63   : > { %2716 = vmatprep.subr.bf16.mxu1 %v3017_v1 }
  0x64   : > { %2681 = vmatpush3.bf16.msra.mxu0 %v2948_v38  ;;  %v2973_v38 = vld [vmem:[%s3099_s8 + $0x2c] ss:$0 sps:$4 sm:$0x11]  }
  0x65   : > { %2682 = vmatprep.subr.bf16.mxu0 %v3017_v1  ;;  %v1053_v44 = vshll.u32 %v2973_v38, 16  ;;  %v1224_v51 = vrot.slane %v2973_v38, 2 }
  0x66   : > { %2717 = vmatpush3.bf16.msra.mxu1 %v2949_v41  ;;  %v1362_v41 = vld [vmem:[%s3099_s8 + $0x8] sm:$0xc] }
  0x67   : > { %2627 = vmatmul.mubr.bf16.gmra.mrb[32].mxu0 %v617_v42  ;;  %2718 = vmatprep.subr.bf16.mxu1 %v3017_v1  ;;  %v3453_v42 = vld [vmem:[%s3099_s8 + $0xc] sm:$0xf]  ;;  %v1055_v50 = vrot.slane %v1053_v44, 2  ;;  %v1225_v59 = vsel %vm1214_vm4, %v1222_v39, %v1224_v51  ;;  %v2991_v51 = vld [vmem:[%s3640_s1 + $0x238] sm:$0xff]  }
  0x68   : > { %2663 = vmatmul.mubr.bf16.gmra.mrb[32].mxu1 %v814_v45  ;;  %2630 = vmatprep.mubr.msk.bf16.mxu0 %vm3018_vm0, %v3017_v1  ;;  %v1223_v45 = vsel %vm1214_vm4, %v1220_v28, %v1222_v39 }
  0x69   : > { %2666 = vmatprep.mubr.msk.bf16.mxu1 %vm3018_vm0, %v3017_v1  ;;  %2683 = vmatpush3.bf16.msra.mxu0 %v2950_v46  ;;  %v2972_v46 = vld [vmem:[%s3640_s1 + $0x1b0] sm:$0xff]  }
  0x6a   : > { %2719 = vmatpush3.bf16.msra.mxu1 %v2951_v47  ;;  %2684 = vmatprep.subr.bf16.mxu0 %v3017_v1  ;;  %v2299_v47 = vcombine.low %v1362_v41, %v3453_v42 }
  0x6b   : > { %2720 = vmatprep.subr.bf16.mxu1 %v3017_v1 }
  0x6c   : > { %v1591_v54 = vshll.u32 %v2299_v47, 16  ;;  %v1418_v2 = vrot.slane %v2299_v47, 2 }
  0x6d   : > { %2685 = vmatpush3.bf16.msra.mxu0 %v2952_v52  ;;  %v2975_v52 = vld [vmem:[%s3640_s1 + $0x1b8] sm:$0xff]  }
  0x6e   : > { %2721 = vmatpush3.bf16.msra.mxu1 %v2953_v53  ;;  %2742 = vmatprep.subr.bf16.mxu0 %v3017_v1  ;;  %v1588_v53 = vshrl.u32 %v2299_v47, 16  ;;  %v1593_v61 = vrot.slane %v1591_v54, 3  ;;  %v1420_v8 = vsel %vm1214_vm4, %v1418_v2, %v1419_v3 }
  0x6f   : > { %2631 = vmatmul.mubr.bf16.gmra.mrb[36].mxu0 %v616_v36  ;;  %2778 = vmatprep.subr.bf16.mxu1 %v3017_v1  ;;  %v1050_v36 = vor.u32 %v1049_v33, %v1046_v32 }
  0x70   : > { %2667 = vmatmul.mubr.bf16.gmra.mrb[36].mxu1 %v813_v37  ;;  %2686 = vmatprep.mubr.msk.bf16.mxu0 %vm3018_vm0, %v3017_v1  ;;  %v2970_v37 = vld [vmem:[%s3640_s1 + $0x1a8] sm:$0xff]   ;;  %v1590_v60 = vrot.slane %v1588_v53, 2 }
  0x71   : > { %2722 = vmatprep.mubr.msk.bf16.mxu1 %vm3018_vm0, %v3017_v1  ;;  %v1051_v43 = vsel %vm1007_vm3, %v1041_v24, %v1050_v36  ;;  %v1056_v58 = vsel %vm1007_vm3, %v1050_v36, %v1055_v50  ;;  %v3525_v24 = vld [vmem:[%s3099_s8 + $0x28] sm:$0xff]  }
  0x72   : > { %v1623_v28 = vshrl.u32 %v3525_v24, 16  ;;  %v1425_v36 = vrot.slane %v3525_v24, 2 }
  0x74   : > { %v1625_v33 = vrot.slane %v1623_v28, 2 }
  0x77   : > { %2687 = vmatmul.mubr.bf16.vlgmr.msra.gmra.mrb[40].mxu0 %v1024_v4  ;;  %v1594_v4 = vor.u32 %v1593_v61, %v1590_v60  ;;  %v1801_v61 = vrot.slane %v3487_v0, 3 }
  0x78   : > { %2723 = vmatmul.mubr.bf16.vlgmr.msra.gmra.mrb[40].mxu1 %v1217_v9  ;;  %2743 = vmatpush3.bf16.msra.mxu0 %v2957_v5  ;;  %v1602_v5 = vor.u32 %v1601_v63, %v1598_v62  ;;  %v2979_v9 = vld [vmem:[%s3640_s1 + $0x200] sm:$0xff]  }
  0x79   : > { %2744 = vmatprep.subr.bf16.mxu0 %v3017_v1  ;;  %2690 = vmatprep.mubr.msk.bf16.mxu0 %vm3018_vm0, %v3017_v1 }
  0x7a   : > { %2726 = vmatprep.mubr.msk.bf16.mxu1 %vm3018_vm0, %v3017_v1  ;;  %2779 = vmatpush3.bf16.msra.mxu1 %v2960_v10  ;;  %v1603_v10 = vsel %vm1586_vm5, %v1594_v4, %v1602_v5 }
  0x7b   : > { %2780 = vmatprep.subr.bf16.mxu1 %v3017_v1 }
  0x7c   : > { %2745 = vmatpush3.bf16.msra.mxu0 %v2958_v11  ;;  %v1607_v11 = vrot.slane %v1605_v6, 2 }
  0x7d   : > { %2746 = vmatprep.subr.bf16.mxu0 %v3017_v1 }
  0x7e   : > { %2781 = vmatpush3.bf16.msra.mxu1 %v2962_v16  ;;  %v1611_v16 = vor.u32 %v1610_v12, %v1607_v11 }
  0x7f   : > { %2691 = vmatmul.mubr.bf16.gmra.mrb[44].mxu0 %v1033_v17  ;;  %2782 = vmatprep.subr.bf16.mxu1 %v3017_v1  ;;  %v1614_v17 = vshrl.u32 %v3504_v13, 16 }
  0x80   : > { %2727 = vmatmul.mubr.bf16.gmra.mrb[44].mxu1 %v1219_v22  ;;  %2747 = vmatpush3.bf16.msra.mxu0 %v2961_v18  ;;  %v1617_v18 = vshll.u32 %v3504_v13, 16  ;;  %v1612_v21 = vsel %vm1586_vm5, %v1602_v5, %v1611_v16 }
  0x81   : > { %2694 = vmatprep.mubr.msk.bf16.mxu0 %vm3018_vm0, %v3017_v1  ;;  %2730 = vmatprep.mubr.msk.bf16.mxu1 %vm3018_vm0, %v3017_v1  ;;  %v1616_v22 = vrot.slane %v1614_v17, 2 }
  0x82   : > { %2748 = vmatprep.subr.bf16.mxu0 %v3017_v1  ;;  %2783 = vmatpush3.bf16.msra.mxu1 %v2965_v23  ;;  %v1619_v23 = vrot.slane %v1617_v18, 3 }
  0x83   : > { %2784 = vmatprep.subr.bf16.mxu1 %v3017_v1 }
  0x84   : > { %2749 = vmatpush3.bf16.msra.mxu0 %v2964_v25  ;;  %v1423_v25 = vrot.slane %v3504_v13, 2  ;;  %v1620_v27 = vor.u32 %v1619_v23, %v1616_v22 }
  0x85   : > { %2750 = vmatprep.subr.bf16.mxu0 %v3017_v1 }
  0x86   : > { %2785 = vmatpush3.bf16.msra.mxu1 %v2967_v29  ;;  %v1626_v29 = vshll.u32 %v3525_v24, 16  ;;  %v1621_v32 = vsel %vm1586_vm5, %v1611_v16, %v1620_v27  ;;  %v1426_v41 = vsel %vm1214_vm4, %v1423_v25, %v1425_v36 }
  0x87   : > { %2695 = vmatmul.mubr.bf16.gmra.mrb[48].mxu0 %v1042_v30  ;;  %2786 = vmatprep.subr.bf16.mxu1 %v3017_v1  ;;  %v1424_v30 = vsel %vm1214_vm4, %v1421_v15, %v1423_v25 }
  0x88   : > { %2731 = vmatmul.mubr.bf16.gmra.mrb[48].mxu1 %v1221_v34  ;;  %2751 = vmatpush3.bf16.msra.mxu0 %v2966_v31  ;;  %v2985_v31 = vld [vmem:[%s3640_s1 + $0x220] sm:$0xff]   ;;  %v1628_v34 = vrot.slane %v1626_v29, 3 }
  0x89   : > { %2698 = vmatprep.mubr.msk.bf16.mxu0 %vm3018_vm0, %v3017_v1  ;;  %2734 = vmatprep.mubr.msk.bf16.mxu1 %vm3018_vm0, %v3017_v1 }
  0x8a   : > { %2752 = vmatprep.subr.bf16.mxu0 %v3017_v1  ;;  %2787 = vmatpush3.bf16.msra.mxu1 %v2969_v35  ;;  %v3547_v35 = vld [vmem:[%s3099_s8 + $0x30] ss:$0 sps:$4 sm:$0x33]   ;;  %v1629_v38 = vor.u32 %v1628_v34, %v1625_v33 }
  0x8b   : > { %2788 = vmatprep.subr.bf16.mxu1 %v3017_v1  ;;  %v1632_v39 = vshrl.u32 %v3547_v35, 16 }
  0x8c   : > { %2753 = vmatpush3.bf16.msra.mxu0 %v2970_v37  ;;  %v2987_v37 = vld [vmem:[%s3640_s1 + $0x228] sm:$0xff]   ;;  %v1630_v44 = vsel %vm1586_vm5, %v1620_v27, %v1629_v38 }
  0x8d   : > { %2754 = vmatprep.subr.bf16.mxu0 %v3017_v1 }
  0x8e   : > { %2789 = vmatpush3.bf16.msra.mxu1 %v2971_v40  ;;  %v1635_v40 = vshll.u32 %v3547_v35, 16 }
  0x8f   : > { %2699 = vmatmul.mubr.bf16.gmra.mrb[52].mxu0 %v1051_v43  ;;  %2790 = vmatprep.subr.bf16.mxu1 %v3017_v1  ;;  %v2989_v43 = vld [vmem:[%s3099_s8 + $0x30] ss:$0 sps:$4 sm:$0x11]  }
  0x90   : > { %2735 = vmatmul.mubr.bf16.gmra.mrb[52].mxu1 %v1223_v45  ;;  %2702 = vmatprep.mubr.msk.bf16.mxu0 %vm3018_vm0, %v3017_v1  ;;  %v2988_v45 = vld [vmem:[%s3640_s1 + $0x230] sm:$0xff]   ;;  %v1637_v47 = vrot.slane %v1635_v40, 3 }
  0x91   : > { %2738 = vmatprep.mubr.msk.bf16.mxu1 %vm3018_vm0, %v3017_v1  ;;  %2755 = vmatpush3.bf16.msra.mxu0 %v2972_v46  ;;  %v1634_v46 = vrot.slane %v1632_v39, 2 }
  0x92   : > { %2791 = vmatpush3.bf16.msra.mxu1 %v2974_v49  ;;  %2756 = vmatprep.subr.bf16.mxu0 %v3017_v1  ;;  %v1427_v49 = vrot.slane %v2989_v43, 2 }
  0x93   : > { %2792 = vmatprep.subr.bf16.mxu1 %v3017_v1  ;;  %v1638_v50 = vor.u32 %v1637_v47, %v1634_v46 }
  0x94   : > { %v1428_v53 = vsel %vm1214_vm4, %v1425_v36, %v1427_v49 }
  0x95   : > { %2757 = vmatpush3.bf16.msra.mxu0 %v2975_v52  ;;  %v1776_v52 = vld [vmem:[%s3099_s8 + $0x8] sm:$0x8]  ;;  %v1639_v55 = vsel %vm1586_vm5, %v1629_v38, %v1638_v50 }
  0x96   : > { %2793 = vmatpush3.bf16.msra.mxu1 %v2976_v57  ;;  %2814 = vmatprep.subr.bf16.mxu0 %v3017_v1  ;;  %v2354_v54 = vcombine.low %v1776_v52, %v3453_v42  ;;  %v1799_v57 = vrot.slane %v3464_v48, 3  ;;  %v1805_v42 = vrot.slane %v3525_v24, 3  ;;  %v1807_v48 = vrot.slane %v3547_v35, 3 }
  0x97   : > { %2703 = vmatmul.mubr.bf16.gmra.mrb[56].mxu0 %v1056_v58  ;;  %2850 = vmatprep.subr.bf16.mxu1 %v3017_v1  ;;  %v1803_v58 = vrot.slane %v3504_v13, 3 }
  0x98   : > { %2739 = vmatmul.mubr.bf16.gmra.mrb[56].mxu1 %v1225_v59  ;;  %2758 = vmatprep.mubr.msk.bf16.mxu0 %vm3018_vm0, %v3017_v1  ;;  %v1798_v56 = vrot.slane %v2354_v54, 3  ;;  %v1802_v62 = vsel %vm1797_vm6, %v1799_v57, %v1801_v61  ;;  %v1808_v63 = vsel %vm1797_vm6, %v1805_v42, %v1807_v48 }
  0x99   : > { %2794 = vmatprep.mubr.msk.bf16.mxu1 %vm3018_vm0, %v3017_v1  ;;  %v1806_v60 = vsel %vm1797_vm6, %v1803_v58, %v1805_v42  ;;  %v1804_v2 = vsel %vm1797_vm6, %v1801_v61, %v1803_v58 }
  0x9a   : > { %v1800_v59 = vsel %vm1797_vm6, %v1798_v56, %v1799_v57 }
  0x9f   : > { %2759 = vmatmul.mubr.bf16.vlgmr.msra.gmra.mrb[60].mxu0 %v1420_v8 }
  0xa0   : > { %2795 = vmatmul.mubr.bf16.vlgmr.msra.gmra.mrb[60].mxu1 %v1603_v10  ;;  %2815 = vmatpush3.bf16.msra.mxu0 %v2979_v9 }
  0xa1   : > { %2816 = vmatprep.subr.bf16.mxu0 %v3017_v1  ;;  %2762 = vmatprep.mubr.msk.bf16.mxu0 %vm3018_vm0, %v3017_v1 }
  0xa2   : > { %2798 = vmatprep.mubr.msk.bf16.mxu1 %vm3018_vm0, %v3017_v1  ;;  %2858 = vmatpush3.bf16.msra.mxu1 %v2979_v9 }
  0xa3   : > { %2851 = vmatprep.subr.bf16.mxu1 %v3017_v1 }
  0xa4   : > { %2817 = vmatpush3.bf16.msra.mxu0 %v2980_v14 }
  0xa5   : > { %2818 = vmatprep.subr.bf16.mxu0 %v3017_v1 }
  0xa6   : > { %2859 = vmatpush3.bf16.msra.mxu1 %v2980_v14 }
  0xa7   : > { %2763 = vmatmul.mubr.bf16.gmra.mrb[64].mxu0 %v1422_v19  ;;  %2852 = vmatprep.subr.bf16.mxu1 %v3017_v1 }
  0xa8   : > { %2799 = vmatmul.mubr.bf16.gmra.mrb[64].mxu1 %v1612_v21  ;;  %2819 = vmatpush3.bf16.msra.mxu0 %v2982_v20 }
  0xa9   : > { %2766 = vmatprep.mubr.msk.bf16.mxu0 %vm3018_vm0, %v3017_v1  ;;  %2802 = vmatprep.mubr.msk.bf16.mxu1 %vm3018_vm0, %v3017_v1 }
  0xaa   : > { %2820 = vmatprep.subr.bf16.mxu0 %v3017_v1  ;;  %2860 = vmatpush3.bf16.msra.mxu1 %v2982_v20 }
  0xab   : > { %2853 = vmatprep.subr.bf16.mxu1 %v3017_v1 }
  0xac   : > { %2821 = vmatpush3.bf16.msra.mxu0 %v2984_v26 }
  0xad   : > { %2822 = vmatprep.subr.bf16.mxu0 %v3017_v1 }
  0xae   : > { %2861 = vmatpush3.bf16.msra.mxu1 %v2984_v26 }
  0xaf   : > { %2767 = vmatmul.mubr.bf16.gmra.mrb[68].mxu0 %v1424_v30  ;;  %2854 = vmatprep.subr.bf16.mxu1 %v3017_v1 }
  0xb0   : > { %2803 = vmatmul.mubr.bf16.gmra.mrb[68].mxu1 %v1621_v32  ;;  %2823 = vmatpush3.bf16.msra.mxu0 %v2985_v31 }
  0xb1   : > { %2770 = vmatprep.mubr.msk.bf16.mxu0 %vm3018_vm0, %v3017_v1  ;;  %2806 = vmatprep.mubr.msk.bf16.mxu1 %vm3018_vm0, %v3017_v1 }
  0xb2   : > { %2862 = vmatpush3.bf16.msra.mxu1 %v2985_v31  ;;  %2824 = vmatprep.subr.bf16.mxu0 %v3017_v1 }
  0xb3   : > { %2855 = vmatprep.subr.bf16.mxu1 %v3017_v1 }
  0xb4   : > { %2825 = vmatpush3.bf16.msra.mxu0 %v2987_v37 }
  0xb5   : > { %2826 = vmatprep.subr.bf16.mxu0 %v3017_v1 }
  0xb6   : > { %2863 = vmatpush3.bf16.msra.mxu1 %v2987_v37 }
  0xb7   : > { %2771 = vmatmul.mubr.bf16.gmra.mrb[72].mxu0 %v1426_v41  ;;  %2856 = vmatprep.subr.bf16.mxu1 %v3017_v1 }
  0xb8   : > { %2807 = vmatmul.mubr.bf16.gmra.mrb[72].mxu1 %v1630_v44  ;;  %2774 = vmatprep.mubr.msk.bf16.mxu0 %vm3018_vm0, %v3017_v1 }
  0xb9   : > { %2810 = vmatprep.mubr.msk.bf16.mxu1 %vm3018_vm0, %v3017_v1  ;;  %2827 = vmatpush3.bf16.msra.mxu0 %v2988_v45 }
  0xba   : > { %2864 = vmatpush3.bf16.msra.mxu1 %v2988_v45  ;;  %2828 = vmatprep.subr.bf16.mxu0 %v3017_v1 }
  0xbb   : > { %2857 = vmatprep.subr.bf16.mxu1 %v3017_v1 }
  0xbd   : > { %2829 = vmatpush3.bf16.msra.mxu0 %v2991_v51 }
  0xbe   : > { %2865 = vmatpush3.bf16.msra.mxu1 %v2991_v51 }
  0xbf   : > { %2775 = vmatmul.mubr.bf16.gmra.mrb[76].mxu0 %v1428_v53 }
  0xc0   : > { %2811 = vmatmul.mubr.bf16.gmra.mrb[76].mxu1 %v1639_v55  ;;  %2830 = vmatprep.mubr.msk.bf16.mxu0 %vm3018_vm0, %v3017_v1 }
  0xc1   : > { %2842 = vmatprep.mubr.msk.bf16.mxu1 %vm3018_vm0, %v3017_v1 }
  0xc7   : > { %2831 = vmatmul.mubr.bf16.vlgmr.msra.gmra.mrb[80].mxu0 %v1800_v59 }
  0xc8   : > { %2843 = vmatmul.mubr.bf16.vlgmr.msra.gmra.mrb[80].mxu1 %v1806_v60  ;;  %2834 = vmatprep.mubr.msk.bf16.mxu0 %vm3018_vm0, %v3017_v1 }
  0xc9   : > { %2846 = vmatprep.mubr.msk.bf16.mxu1 %vm3018_vm0, %v3017_v1 }
  0xcf   : > { %2835 = vmatmul.mubr.bf16.gmra.mrb[84].mxu0 %v1802_v62 }
  0xd0   : > { %2847 = vmatmul.mubr.bf16.gmra.mrb[84].mxu1 %v1808_v63  ;;  %2838 = vmatprep.mubr.msk.bf16.mxu0 %vm3018_vm0, %v3017_v1 }
  0xd7   : > { %2839 = vmatmul.mubr.bf16.gmra.mrb[88].mxu0 %v1804_v2 }
  0xfa   : > { %v419_v3 = vpop.f32.mrb[0].mxu0 }
  0xfb   : > { %v548_v4 = vpop.f32.mrb[0].mxu1  ;;  %v2544_v0 = vpop.f32.mrb[1].mxu0 }
  0xfc   : > { %v549_v5 = vadd.f32 %v548_v4, %v419_v3  ;;  %v2580_v6 = vpop.f32.mrb[1].mxu1  ;;  %v422_v7 = vpop.f32.mrb[2].mxu0 }
  0xfd   : > { %v551_v8 = vpop.f32.mrb[2].mxu1  ;;  %v2545_v9 = vpop.f32.mrb[3].mxu0 }
  0xfe   : > { %v552_v10 = vadd.f32 %v551_v8, %v422_v7  ;;  %v2581_v11 = vpop.f32.mrb[3].mxu1 }
 0x102   : > { %v427_v12 = vpop.f32.mrb[4].mxu0 }
 0x103   : > { %v556_v13 = vpop.f32.mrb[4].mxu1  ;;  %v2548_v14 = vpop.f32.mrb[5].mxu0 }
 0x104   : > { %v557_v15 = vadd.f32 %v556_v13, %v427_v12  ;;  %v2584_v16 = vpop.f32.mrb[5].mxu1  ;;  %v430_v17 = vpop.f32.mrb[6].mxu0 }
 0x105   : > { %v559_v1 = vpop.f32.mrb[6].mxu1  ;;  %v2549_v18 = vpop.f32.mrb[7].mxu0 }
 0x106   : > { %v560_v19 = vadd.f32 %v559_v1, %v430_v17  ;;  %v2585_v20 = vpop.f32.mrb[7].mxu1 }
 0x10a   : > { %v435_v21 = vpop.f32.mrb[8].mxu0 }
 0x10b   : > { %v564_v22 = vpop.f32.mrb[8].mxu1  ;;  %v2552_v23 = vpop.f32.mrb[9].mxu0 }
 0x10c   : > { %v565_v24 = vadd.f32 %v564_v22, %v435_v21  ;;  %v2588_v25 = vpop.f32.mrb[9].mxu1  ;;  %v438_v26 = vpop.f32.mrb[10].mxu0 }
 0x10d   : > { %v567_v27 = vpop.f32.mrb[10].mxu1  ;;  %v2553_v28 = vpop.f32.mrb[11].mxu0 }
 0x10e   : > { %v568_v29 = vadd.f32 %v567_v27, %v438_v26  ;;  %v2589_v30 = vpop.f32.mrb[11].mxu1 }
 0x112   : > { %v443_v31 = vpop.f32.mrb[12].mxu0 }
 0x113   : > { %v572_v32 = vpop.f32.mrb[12].mxu1  ;;  %v2556_v33 = vpop.f32.mrb[13].mxu0 }
 0x114   : > { %v573_v34 = vadd.f32 %v572_v32, %v443_v31  ;;  %v2592_v35 = vpop.f32.mrb[13].mxu1  ;;  %v446_v36 = vpop.f32.mrb[14].mxu0 }
 0x115   : > { %v575_v37 = vpop.f32.mrb[14].mxu1  ;;  %v2557_v38 = vpop.f32.mrb[15].mxu0 }
 0x116   : > { %v576_v39 = vadd.f32 %v575_v37, %v446_v36  ;;  %v2593_v40 = vpop.f32.mrb[15].mxu1 }
 0x11a   : > { %v451_v41 = vpop.f32.mrb[16].mxu0 }
 0x11b   : > { %v580_v43 = vpop.f32.mrb[16].mxu1  ;;  %v2560_v44 = vpop.f32.mrb[17].mxu0 }
 0x11c   : > { %v581_v45 = vadd.f32 %v580_v43, %v451_v41  ;;  %v2596_v46 = vpop.f32.mrb[17].mxu1  ;;  %v454_v47 = vpop.f32.mrb[18].mxu0 }
 0x11d   : > { %v583_v49 = vpop.f32.mrb[18].mxu1  ;;  %v2561_v50 = vpop.f32.mrb[19].mxu0 }
 0x11e   : > { %v584_v51 = vadd.f32 %v583_v49, %v454_v47  ;;  %v2597_v52 = vpop.f32.mrb[19].mxu1 }
 0x122   : > { %v705_v53 = vpop.f32.mrb[20].mxu0 }
 0x123   : > { %v744_v54 = vadd.f32 %v705_v53, %v549_v5  ;;  %v2616_v55 = vpop.f32.mrb[21].mxu0  ;;  %v902_v56 = vpop.f32.mrb[20].mxu1 }
 0x124   : > { %v708_v57 = vpop.f32.mrb[22].mxu0  ;;  %v2652_v58 = vpop.f32.mrb[21].mxu1 }
 0x125   : > { %v745_v42 = vadd.f32 %v708_v57, %v552_v10  ;;  %v941_v59 = vadd.f32 %v902_v56, %v744_v54  ;;  %v2617_v60 = vpop.f32.mrb[23].mxu0  ;;  %v905_v61 = vpop.f32.mrb[22].mxu1 }
 0x126   : > { %v2653_v48 = vpop.f32.mrb[23].mxu1 }
 0x127   : > { %v942_v62 = vadd.f32 %v905_v61, %v745_v42 }
 0x12a   : > { %v713_v63 = vpop.f32.mrb[24].mxu0 }
 0x12b   : > { %v746_v2 = vadd.f32 %v713_v63, %v557_v15  ;;  %v2620_v3 = vpop.f32.mrb[25].mxu0  ;;  %v910_v4 = vpop.f32.mrb[24].mxu1 }
 0x12c   : > { %v716_v0 = vpop.f32.mrb[26].mxu0  ;;  %v2656_v6 = vpop.f32.mrb[25].mxu1 }
 0x12d   : > { %v747_v7 = vadd.f32 %v716_v0, %v560_v19  ;;  %v943_v8 = vadd.f32 %v910_v4, %v746_v2  ;;  %v2621_v9 = vpop.f32.mrb[27].mxu0  ;;  %v913_v5 = vpop.f32.mrb[26].mxu1 }
 0x12e   : > { %v2657_v11 = vpop.f32.mrb[27].mxu1 }
 0x12f   : > { %v944_v12 = vadd.f32 %v913_v5, %v747_v7 }
 0x132   : > { %v721_v13 = vpop.f32.mrb[28].mxu0 }
 0x133   : > { %v748_v14 = vadd.f32 %v721_v13, %v565_v24  ;;  %v2624_v10 = vpop.f32.mrb[29].mxu0  ;;  %v918_v16 = vpop.f32.mrb[28].mxu1 }
 0x134   : > { %v724_v17 = vpop.f32.mrb[30].mxu0  ;;  %v2660_v1 = vpop.f32.mrb[29].mxu1 }
 0x135   : > { %v749_v18 = vadd.f32 %v724_v17, %v568_v29  ;;  %v945_v20 = vadd.f32 %v918_v16, %v748_v14  ;;  %v2625_v21 = vpop.f32.mrb[31].mxu0  ;;  %v921_v15 = vpop.f32.mrb[30].mxu1 }
 0x136   : > { %v2661_v22 = vpop.f32.mrb[31].mxu1 }
 0x137   : > { %v946_v23 = vadd.f32 %v921_v15, %v749_v18 }
 0x13a   : > { %v729_v25 = vpop.f32.mrb[32].mxu0 }
 0x13b   : > { %v750_v26 = vadd.f32 %v729_v25, %v573_v34  ;;  %v2628_v19 = vpop.f32.mrb[33].mxu0  ;;  %v926_v27 = vpop.f32.mrb[32].mxu1 }
 0x13c   : > { %v732_v28 = vpop.f32.mrb[34].mxu0  ;;  %v2664_v30 = vpop.f32.mrb[33].mxu1 }
 0x13d   : > { %v751_v31 = vadd.f32 %v732_v28, %v576_v39  ;;  %v947_v32 = vadd.f32 %v926_v27, %v750_v26  ;;  %v2629_v33 = vpop.f32.mrb[35].mxu0  ;;  %v929_v24 = vpop.f32.mrb[34].mxu1 }
 0x13e   : > { %v2665_v35 = vpop.f32.mrb[35].mxu1 }
 0x13f   : > { %v948_v36 = vadd.f32 %v929_v24, %v751_v31 }
 0x142   : > { %v737_v37 = vpop.f32.mrb[36].mxu0 }
 0x143   : > { %v752_v38 = vadd.f32 %v737_v37, %v581_v45  ;;  %v2632_v29 = vpop.f32.mrb[37].mxu0  ;;  %v934_v40 = vpop.f32.mrb[36].mxu1 }
 0x144   : > { %v740_v41 = vpop.f32.mrb[38].mxu0  ;;  %v2668_v43 = vpop.f32.mrb[37].mxu1 }
 0x145   : > { %v753_v44 = vadd.f32 %v740_v41, %v584_v51  ;;  %v949_v46 = vadd.f32 %v934_v40, %v752_v38  ;;  %v2633_v47 = vpop.f32.mrb[39].mxu0  ;;  %v937_v34 = vpop.f32.mrb[38].mxu1 }
 0x146   : > { %v2669_v49 = vpop.f32.mrb[39].mxu1 }
 0x147   : > { %v950_v50 = vadd.f32 %v937_v34, %v753_v44 }
 0x14a   : > { %v1144_v52 = vpop.f32.mrb[40].mxu0 }
 0x14b   : > { %v1183_v53 = vadd.f32 %v1144_v52, %v941_v59  ;;  %v2688_v39 = vpop.f32.mrb[41].mxu0  ;;  %v1313_v54 = vpop.f32.mrb[40].mxu1 }
 0x14c   : > { %v1147_v55 = vpop.f32.mrb[42].mxu0  ;;  %v2724_v56 = vpop.f32.mrb[41].mxu1 }
 0x14d   : > { %v1184_v57 = vadd.f32 %v1147_v55, %v942_v62  ;;  %v1352_v58 = vadd.f32 %v1313_v54, %v1183_v53  ;;  %v2689_v42 = vpop.f32.mrb[43].mxu0  ;;  %v1316_v45 = vpop.f32.mrb[42].mxu1 }
 0x14e   : > { %v2725_v60 = vpop.f32.mrb[43].mxu1 }
 0x14f   : > { %v1353_v61 = vadd.f32 %v1316_v45, %v1184_v57 }
 0x152   : > { %v1152_v48 = vpop.f32.mrb[44].mxu0 }
 0x153   : > { %v1185_v63 = vadd.f32 %v1152_v48, %v943_v8  ;;  %v2692_v51 = vpop.f32.mrb[45].mxu0  ;;  %v1321_v2 = vpop.f32.mrb[44].mxu1 }
 0x154   : > { %v1155_v3 = vpop.f32.mrb[46].mxu0  ;;  %v2728_v4 = vpop.f32.mrb[45].mxu1 }
 0x155   : > { %v1186_v0 = vadd.f32 %v1155_v3, %v944_v12  ;;  %v1354_v6 = vadd.f32 %v1321_v2, %v1185_v63  ;;  %v2693_v7 = vpop.f32.mrb[47].mxu0  ;;  %v1324_v59 = vpop.f32.mrb[46].mxu1 }
 0x156   : > { %v2729_v9 = vpop.f32.mrb[47].mxu1 }
 0x157   : > { %v1355_v5 = vadd.f32 %v1324_v59, %v1186_v0 }
 0x15a   : > { %v1160_v11 = vpop.f32.mrb[48].mxu0 }
 0x15b   : > { %v1187_v13 = vadd.f32 %v1160_v11, %v945_v20  ;;  %v2696_v62 = vpop.f32.mrb[49].mxu0  ;;  %v1329_v14 = vpop.f32.mrb[48].mxu1 }
 0x15c   : > { %v1163_v10 = vpop.f32.mrb[50].mxu0  ;;  %v2732_v16 = vpop.f32.mrb[49].mxu1 }
 0x15d   : > { %v1188_v17 = vadd.f32 %v1163_v10, %v946_v23  ;;  %v1356_v1 = vadd.f32 %v1329_v14, %v1187_v13  ;;  %v2697_v18 = vpop.f32.mrb[51].mxu0  ;;  %v1332_v8 = vpop.f32.mrb[50].mxu1 }
 0x15e   : > { %v2733_v21 = vpop.f32.mrb[51].mxu1 }
 0x15f   : > { %v1357_v15 = vadd.f32 %v1332_v8, %v1188_v17 }
 0x162   : > { %v1168_v22 = vpop.f32.mrb[52].mxu0 }
 0x163   : > { %v1189_v25 = vadd.f32 %v1168_v22, %v947_v32  ;;  %v2700_v12 = vpop.f32.mrb[53].mxu0  ;;  %v1337_v26 = vpop.f32.mrb[52].mxu1 }
 0x164   : > { %v1171_v19 = vpop.f32.mrb[54].mxu0  ;;  %v2736_v27 = vpop.f32.mrb[53].mxu1 }
 0x165   : > { %v1190_v28 = vadd.f32 %v1171_v19, %v948_v36  ;;  %v1358_v30 = vadd.f32 %v1337_v26, %v1189_v25  ;;  %v2701_v31 = vpop.f32.mrb[55].mxu0  ;;  %v1340_v20 = vpop.f32.mrb[54].mxu1 }
 0x166   : > { %v2737_v33 = vpop.f32.mrb[55].mxu1 }
 0x167   : > { %v1359_v24 = vadd.f32 %v1340_v20, %v1190_v28 }
 0x16a   : > { %v1176_v35 = vpop.f32.mrb[56].mxu0 }
 0x16b   : > { %v1191_v37 = vadd.f32 %v1176_v35, %v949_v46  ;;  %v2704_v23 = vpop.f32.mrb[57].mxu0  ;;  %v1345_v38 = vpop.f32.mrb[56].mxu1 }
 0x16c   : > { %v1179_v29 = vpop.f32.mrb[58].mxu0  ;;  %v2740_v40 = vpop.f32.mrb[57].mxu1 }
 0x16d   : > { %v1192_v41 = vadd.f32 %v1179_v29, %v950_v50  ;;  %v1360_v43 = vadd.f32 %v1345_v38, %v1191_v37  ;;  %v2705_v44 = vpop.f32.mrb[59].mxu0  ;;  %v1348_v32 = vpop.f32.mrb[58].mxu1 }
 0x16e   : > { %v2741_v47 = vpop.f32.mrb[59].mxu1 }
 0x16f   : > { %v1361_v34 = vadd.f32 %v1348_v32, %v1192_v41 }
 0x172   : > { %v1516_v49 = vpop.f32.mrb[60].mxu0 }
 0x173   : > { %v1555_v52 = vadd.f32 %v1516_v49, %v1352_v58  ;;  %v2760_v36 = vpop.f32.mrb[61].mxu0  ;;  %v1727_v53 = vpop.f32.mrb[60].mxu1 }
 0x174   : > { %v1519_v39 = vpop.f32.mrb[62].mxu0  ;;  %v2796_v54 = vpop.f32.mrb[61].mxu1 }
 0x175   : > { %v1556_v55 = vadd.f32 %v1519_v39, %v1353_v61  ;;  %v1766_v56 = vadd.f32 %v1727_v53, %v1555_v52  ;;  %v2761_v57 = vpop.f32.mrb[63].mxu0  ;;  %v1730_v46 = vpop.f32.mrb[62].mxu1 }
 0x176   : > { %v2797_v42 = vpop.f32.mrb[63].mxu1 }
 0x177   : > { %v1767_v45 = vadd.f32 %v1730_v46, %v1556_v55 }
 0x17a   : > { %v1524_v60 = vpop.f32.mrb[64].mxu0 }
 0x17b   : > { %v1557_v48 = vadd.f32 %v1524_v60, %v1354_v6  ;;  %v2764_v50 = vpop.f32.mrb[65].mxu0  ;;  %v1735_v63 = vpop.f32.mrb[64].mxu1 }
 0x17c   : > { %v1527_v51 = vpop.f32.mrb[66].mxu0  ;;  %v2800_v2 = vpop.f32.mrb[65].mxu1 }
 0x17d   : > { %v1558_v3 = vadd.f32 %v1527_v51, %v1355_v5  ;;  %v3603_v4 = vadd.f32 %v1735_v63, %v1557_v48  ;;  %v2765_v58 = vpop.f32.mrb[67].mxu0  ;;  %v1738_v0 = vpop.f32.mrb[66].mxu1 }
 0x17e   : > { %v2801_v7 = vpop.f32.mrb[67].mxu1 }
 0x17f   : > { %v3605_v59 = vadd.f32 %v1738_v0, %v1558_v3 }
 0x182   : > { %v1532_v61 = vpop.f32.mrb[68].mxu0 }
 0x183   : > { %v1559_v9 = vadd.f32 %v1532_v61, %v1356_v1  ;;  %v2768_v11 = vpop.f32.mrb[69].mxu0  ;;  %v1743_v13 = vpop.f32.mrb[68].mxu1 }
 0x184   : > { %v1535_v62 = vpop.f32.mrb[70].mxu0  ;;  %v2804_v14 = vpop.f32.mrb[69].mxu1 }
 0x185   : > { %v1560_v10 = vadd.f32 %v1535_v62, %v1357_v15  ;;  %v3607_v6 = vadd.f32 %v1743_v13, %v1559_v9  ;;  %v2769_v16 = vpop.f32.mrb[71].mxu0  ;;  %v1746_v17 = vpop.f32.mrb[70].mxu1 }
 0x186   : > { %v2805_v18 = vpop.f32.mrb[71].mxu1 }
 0x187   : > { %v3609_v5 = vadd.f32 %v1746_v17, %v1560_v10 }
 0x18a   : > { %v1540_v8 = vpop.f32.mrb[72].mxu0 }
 0x18b   : > { %v1561_v21 = vadd.f32 %v1540_v8, %v1358_v30  ;;  %v2772_v22 = vpop.f32.mrb[73].mxu0  ;;  %v1751_v25 = vpop.f32.mrb[72].mxu1 }
 0x18c   : > { %v1543_v12 = vpop.f32.mrb[74].mxu0  ;;  %v2808_v26 = vpop.f32.mrb[73].mxu1 }
 0x18d   : > { %v1562_v19 = vadd.f32 %v1543_v12, %v1359_v24  ;;  %v1772_v1 = vadd.f32 %v1751_v25, %v1561_v21  ;;  %v2773_v27 = vpop.f32.mrb[75].mxu0  ;;  %v1754_v28 = vpop.f32.mrb[74].mxu1  ;;  %v2363_v24 = vld [vmem:[%s3641_s2] ss:$0 sm:$0xff] }
 0x18e   : > { %v2809_v31 = vpop.f32.mrb[75].mxu1 }
 0x18f   : > { %v1773_v20 = vadd.f32 %v1754_v28, %v1562_v19 }
 0x192   : > { %v1548_v15 = vpop.f32.mrb[76].mxu0 }
 0x193   : > { %v1563_v33 = vadd.f32 %v1548_v15, %v1360_v43  ;;  %v2776_v35 = vpop.f32.mrb[77].mxu0  ;;  %v1759_v37 = vpop.f32.mrb[76].mxu1 }
 0x194   : > { %v1551_v23 = vpop.f32.mrb[78].mxu0  ;;  %v2812_v38 = vpop.f32.mrb[77].mxu1 }
 0x195   : > { %v1564_v29 = vadd.f32 %v1551_v23, %v1361_v34  ;;  %v1774_v40 = vadd.f32 %v1759_v37, %v1563_v33  ;;  %v2777_v41 = vpop.f32.mrb[79].mxu0  ;;  %v1762_v30 = vpop.f32.mrb[78].mxu1 }
 0x196   : > { %v2813_v44 = vpop.f32.mrb[79].mxu1 }
 0x197   : > { %v1775_v32 = vadd.f32 %v1762_v30, %v1564_v29 }
 0x19a   : > { %v1896_v47 = vpop.f32.mrb[80].mxu0 }
 0x19b   : > { %v1935_v49 = vadd.f32 %v1896_v47, %v1766_v56  ;;  %v1920_v52 = vpop.f32.mrb[80].mxu1  ;;  %v2832_v36 = vpop.f32.mrb[81].mxu0 }
 0x19c   : > { %v1941_v43 = vadd.f32 %v1920_v52, %v1772_v1  ;;  %v2844_v53 = vpop.f32.mrb[81].mxu1  ;;  %v1899_v39 = vpop.f32.mrb[82].mxu0 }
 0x19d   : > { %v1952_v54 = vadd.f32 %v2363_v24, %v1935_v49  ;;  %v1936_v55 = vadd.f32 %v1899_v39, %v1767_v45  ;;  %v1923_v34 = vpop.f32.mrb[82].mxu1  ;;  %v2833_v57 = vpop.f32.mrb[83].mxu0 }
 0x19e   : > { %v1958_v46 = vadd.f32 %v2363_v24, %v1941_v43  ;;  %v1942_v42 = vadd.f32 %v1923_v34, %v1773_v20  ;;  %v2845_v60 = vpop.f32.mrb[83].mxu1 }
 0x19f   : > { %v1953_v48 = vadd.f32 %v2363_v24, %v1936_v55  ;;  %v1962_v63 = vmax.f32 %v1952_v54, 0.0 }
 0x1a0   : > { %v1959_v50 = vadd.f32 %v2363_v24, %v1942_v42  ;;  %v1968_v2 = vmax.f32 %v1958_v46, 0.0 }
 0x1a1   : > { %v1963_v51 = vmax.f32 %v1953_v48, 0.0 }
 0x1a2   : > { %v1969_v56 = vmax.f32 %v1959_v50, 0.0  ;;  %v1904_v45 = vpop.f32.mrb[84].mxu0 }
 0x1a3   : > { %v2389_v3 = vpack.c.bf16 %v1963_v51, %v1962_v63  ;;  %v1937_v58 = vadd.f32 %v1904_v45, %v3603_v4  ;;  %v1928_v0 = vpop.f32.mrb[84].mxu1  ;;  %v2836_v7 = vpop.f32.mrb[85].mxu0 }
 0x1a4   : > { %v2404_v61 = vpack.c.bf16 %v1969_v56, %v1968_v2  ;;  %v1943_v9 = vadd.f32 %v1928_v0, %v1774_v40  ;;  %v2848_v11 = vpop.f32.mrb[85].mxu1  ;;  %v1907_v13 = vpop.f32.mrb[86].mxu0 }
 0x1a5   : > { %2390 = vst [vmem:[%s3618_s9] sm:$0xff] %v2389_v3   ;;  %v1954_v62 = vadd.f32 %v2363_v24, %v1937_v58  ;;  %v1938_v14 = vadd.f32 %v1907_v13, %v3605_v59  ;;  %v1931_v10 = vpop.f32.mrb[86].mxu1  ;;  %v2837_v16 = vpop.f32.mrb[87].mxu0 }
 0x1a6   : > { %2408 = vst [vmem:[%s3618_s9 + $0x18] sm:$0xff] %v2404_v61   ;;  %v1960_v17 = vadd.f32 %v2363_v24, %v1943_v9  ;;  %v1944_v18 = vadd.f32 %v1931_v10, %v1775_v32  ;;  %v2849_v8 = vpop.f32.mrb[87].mxu1 }
 0x1a7   : > { %v1955_v21 = vadd.f32 %v2363_v24, %v1938_v14  ;;  %v1964_v25 = vmax.f32 %v1954_v62, 0.0 }
 0x1a8   : > { %v1970_v4 = vmax.f32 %v1960_v17, 0.0  ;;  %v1961_v22 = vadd.f32 %v2363_v24, %v1944_v18 }
 0x1a9   : > { %v1965_v12 = vmax.f32 %v1955_v21, 0.0 }
 0x1aa   : > { %v2384_v26 = vpack.c.bf16 %v1970_v4, %v1970_v4  ;;  %v1971_v19 = vmax.f32 %v1961_v22, 0.0  ;;  %v1912_v1 = vpop.f32.mrb[88].mxu0 }
 0x1ab   : > { %v2394_v27 = vpack.c.bf16 %v1965_v12, %v1964_v25  ;;  %v1939_v59 = vadd.f32 %v1912_v1, %v3607_v6  ;;  %v2840_v28 = vpop.f32.mrb[89].mxu0 }
 0x1ac   : > { %2020 = vst [vmem:[%s3618_s9 + $0x20] sm:$0xf] %v2384_v26  ;;  %v2385_v31 = vpack.c.bf16 %v1971_v19, %v1971_v19  ;;  %v1915_v20 = vpop.f32.mrb[90].mxu0 }
 0x1ad   : > { %2406 = vst [vmem:[%s3618_s9 + $0x8] sm:$0xff] %v2394_v27   ;;  %v1956_v15 = vadd.f32 %v2363_v24, %v1939_v59  ;;  %v1940_v33 = vadd.f32 %v1915_v20, %v3609_v5  ;;  %v2841_v35 = vpop.f32.mrb[91].mxu0 }
 0x1ae   : > { %2021 = vst [vmem:[%s3618_s9 + $0x24] sm:$0x7] %v2385_v31 }
 0x1af   : > { %v1957_v37 = vadd.f32 %v2363_v24, %v1940_v33  ;;  %v1966_v23 = vmax.f32 %v1956_v15, 0.0 }
 0x1b1   : > { %v1967_v38 = vmax.f32 %v1957_v37, 0.0 }
 0x1b3   : > { %v2399_v29 = vpack.c.bf16 %v1967_v38, %v1966_v23 }
 0x1b5   : > { %2407 = vst [vmem:[%s3618_s9 + $0x10] sm:$0xff] %v2399_v29  }
 0x1b6 PF: > { %s13_s14 = sadd.s32 1, %s3015_s14   ;;  %s3643_s12 = smov %s3011_s13 }
 0x1b7   : > { %p10_p5 = scmp.ge.s32.totalorder %s13_s14, 4   ;;  %s3644_s13 = smov %s3646_s15 }
 0x1b9   :  { %12 = sbr.rel (!%p10_p5) target bundleno = 2 (0x2), region = 76 }

// kernel: resnet_forward.6
= control target key start
LH: loop header
LB: loop body
LE: loop exit
PB: predicated region body
PF: predicated region fallthrough
CT: control target
= control target key end

     0   :  { %v2147_v0 = vmov 0   ;;  %s2605_s1 = inlined_call_operand.vmem [shape: bf16[256,128], index: 1, kind: input, shape index: {}]   ;;  %s2606_s0 = inlined_call_operand.vmem [shape: bf16[512,256], index: 0, kind: input, shape index: {}]   ;;  %s2607_s2 = inlined_call_operand.vmem [shape: f32[1,128], index: 2, kind: input, shape index: {}]   ;;  %s2608_s3 = inlined_call_operand.vmem [shape: bf16[512,128], index: 3, kind: output, shape index: {}]  }
   0x1   :  { %659 = vmatprep.subr.bf16.mxu0 %v2147_v0  ;;  %2002 = vmatprep.subr.bf16.mxu1 %v2147_v0  ;;  %v2035_v1 = vld [vmem:[%s2605_s1] sm:$0xff]   ;;  %v2036_v2 = vld [vmem:[%s2605_s1 + $0x8] sm:$0xff]   ;;  %v2037_v3 = vld [vmem:[%s2605_s1 + $0x10] sm:$0xff]  }
   0x2   :  { %660 = vmatpush1.bf16.msra.mxu0 %v2035_v1  ;;  %2018 = vmatpush1.bf16.msra.mxu1 %v2035_v1  ;;  %v2038_v4 = vld [vmem:[%s2605_s1 + $0x18] sm:$0xff]   ;;  %v2039_v5 = vld [vmem:[%s2605_s1 + $0x20] sm:$0xff]   ;;  %v2040_v7 = vld [vmem:[%s2605_s1 + $0x28] sm:$0xff]  }
   0x3   :  { %661 = vmatprep.subr.bf16.mxu0 %v2147_v0  ;;  %2003 = vmatprep.subr.bf16.mxu1 %v2147_v0  ;;  %v2053_v6 = vld [vmem:[%s2606_s0 + $0x4] ss:$8 sps:$4 sm:$0xff]   ;;  %v2041_v9 = vld [vmem:[%s2605_s1 + $0x30] sm:$0xff]   ;;  %v2042_v10 = vld [vmem:[%s2605_s1 + $0x38] sm:$0xff]  }
   0x4   :  { %v2056_v8 = vld [vmem:[%s2606_s0 + $0x104] ss:$8 sps:$4 sm:$0xff]   ;;  %691 = vmatprep.mubr.bf16.mxu0 %v2053_v6  ;;  %v2045_v13 = vld [vmem:[%s2605_s1 + $0x50] sm:$0xff]   ;;  %v2046_v14 = vld [vmem:[%s2605_s1 + $0x58] sm:$0xff]  }
   0x5   :  { %819 = vmatprep.mubr.bf16.mxu1 %v2056_v8  ;;  %v2043_v11 = vld [vmem:[%s2605_s1 + $0x40] sm:$0xff]   ;;  %v2044_v12 = vld [vmem:[%s2605_s1 + $0x48] sm:$0xff]   ;;  %v2049_v17 = vld [vmem:[%s2605_s1 + $0x70] sm:$0xff]  }
   0x6   :  { %662 = vmatpush1.bf16.msra.mxu0 %v2036_v2  ;;  %2019 = vmatpush1.bf16.msra.mxu1 %v2036_v2  ;;  %v2047_v15 = vld [vmem:[%s2605_s1 + $0x60] sm:$0xff]   ;;  %v2048_v16 = vld [vmem:[%s2605_s1 + $0x68] sm:$0xff]   ;;  %v2050_v18 = vld [vmem:[%s2605_s1 + $0x78] sm:$0xff]  }
   0x7   :  { %663 = vmatprep.subr.bf16.mxu0 %v2147_v0  ;;  %2004 = vmatprep.subr.bf16.mxu1 %v2147_v0  ;;  %v2051_v19 = vld [vmem:[%s2606_s0] ss:$8 sps:$4 sm:$0xff]   ;;  %v2057_v21 = vld [vmem:[%s2606_s0 + $0x14] ss:$8 sps:$4 sm:$0xff]   ;;  %v2061_v23 = vld [vmem:[%s2606_s0 + $0x10] ss:$8 sps:$4 sm:$0xff]  }
   0x8   :  { %v2054_v20 = vld [vmem:[%s2606_s0 + $0x100] ss:$8 sps:$4 sm:$0xff]   ;;  %v2059_v22 = vld [vmem:[%s2606_s0 + $0x114] ss:$8 sps:$4 sm:$0xff]   ;;  %v2062_v24 = vld [vmem:[%s2606_s0 + $0x110] ss:$8 sps:$4 sm:$0xff]  }
   0x9   :  { %v2063_v25 = vld [vmem:[%s2606_s0 + $0x24] ss:$8 sps:$4 sm:$0xff]   ;;  %v2067_v27 = vld [vmem:[%s2606_s0 + $0x20] ss:$8 sps:$4 sm:$0xff]   ;;  %v2069_v29 = vld [vmem:[%s2606_s0 + $0x34] ss:$8 sps:$4 sm:$0xff]  }
   0xa   :  { %664 = vmatpush1.bf16.msra.mxu0 %v2037_v3  ;;  %2020 = vmatpush1.bf16.msra.mxu1 %v2037_v3  ;;  %v2065_v26 = vld [vmem:[%s2606_s0 + $0x124] ss:$8 sps:$4 sm:$0xff]   ;;  %v2068_v28 = vld [vmem:[%s2606_s0 + $0x120] ss:$8 sps:$4 sm:$0xff]   ;;  %v2071_v30 = vld [vmem:[%s2606_s0 + $0x134] ss:$8 sps:$4 sm:$0xff]  }
   0xb   :  { %665 = vmatprep.subr.bf16.mxu0 %v2147_v0  ;;  %2005 = vmatprep.subr.bf16.mxu1 %v2147_v0  ;;  %v2073_v31 = vld [vmem:[%s2606_s0 + $0x30] ss:$8 sps:$4 sm:$0xff]   ;;  %v2075_v33 = vld [vmem:[%s2606_s0 + $0x44] ss:$8 sps:$4 sm:$0xff]   ;;  %v2079_v35 = vld [vmem:[%s2606_s0 + $0x40] ss:$8 sps:$4 sm:$0xff]  }
   0xc   :  { %v2074_v32 = vld [vmem:[%s2606_s0 + $0x130] ss:$8 sps:$4 sm:$0xff]   ;;  %v2077_v34 = vld [vmem:[%s2606_s0 + $0x144] ss:$8 sps:$4 sm:$0xff]   ;;  %v2080_v36 = vld [vmem:[%s2606_s0 + $0x140] ss:$8 sps:$4 sm:$0xff]  }
   0xd   :  { %v2081_v37 = vld [vmem:[%s2606_s0 + $0x54] ss:$8 sps:$4 sm:$0xff]   ;;  %v2085_v39 = vld [vmem:[%s2606_s0 + $0x50] ss:$8 sps:$4 sm:$0xff]   ;;  %v2087_v41 = vld [vmem:[%s2606_s0 + $0x64] ss:$8 sps:$4 sm:$0xff]  }
   0xe   :  { %666 = vmatpush1.bf16.msra.mxu0 %v2038_v4  ;;  %2021 = vmatpush1.bf16.msra.mxu1 %v2038_v4  ;;  %v2083_v38 = vld [vmem:[%s2606_s0 + $0x154] ss:$8 sps:$4 sm:$0xff]   ;;  %v2086_v40 = vld [vmem:[%s2606_s0 + $0x150] ss:$8 sps:$4 sm:$0xff]   ;;  %v2089_v42 = vld [vmem:[%s2606_s0 + $0x164] ss:$8 sps:$4 sm:$0xff]  }
   0xf   :  { %667 = vmatprep.subr.bf16.mxu0 %v2147_v0  ;;  %2006 = vmatprep.subr.bf16.mxu1 %v2147_v0  ;;  %v2091_v43 = vld [vmem:[%s2606_s0 + $0x60] ss:$8 sps:$4 sm:$0xff]   ;;  %v2093_v45 = vld [vmem:[%s2606_s0 + $0x74] ss:$8 sps:$4 sm:$0xff]   ;;  %v2097_v47 = vld [vmem:[%s2606_s0 + $0x70] ss:$8 sps:$4 sm:$0xff]  }
  0x10   :  { %v2092_v44 = vld [vmem:[%s2606_s0 + $0x160] ss:$8 sps:$4 sm:$0xff]   ;;  %v2095_v46 = vld [vmem:[%s2606_s0 + $0x174] ss:$8 sps:$4 sm:$0xff]   ;;  %v2098_v48 = vld [vmem:[%s2606_s0 + $0x170] ss:$8 sps:$4 sm:$0xff]  }
  0x11   :  { %v2099_v49 = vld [vmem:[%s2606_s0 + $0x84] ss:$8 sps:$4 sm:$0xff]   ;;  %v2103_v51 = vld [vmem:[%s2606_s0 + $0x80] ss:$8 sps:$4 sm:$0xff]   ;;  %v2105_v53 = vld [vmem:[%s2606_s0 + $0x94] ss:$8 sps:$4 sm:$0xff]  }
  0x12   :  { %668 = vmatpush1.bf16.msra.mxu0 %v2039_v5  ;;  %2022 = vmatpush1.bf16.msra.mxu1 %v2039_v5  ;;  %v2101_v50 = vld [vmem:[%s2606_s0 + $0x184] ss:$8 sps:$4 sm:$0xff]   ;;  %v2104_v52 = vld [vmem:[%s2606_s0 + $0x180] ss:$8 sps:$4 sm:$0xff]   ;;  %v2107_v54 = vld [vmem:[%s2606_s0 + $0x194] ss:$8 sps:$4 sm:$0xff]  }
  0x13   :  { %669 = vmatprep.subr.bf16.mxu0 %v2147_v0  ;;  %2007 = vmatprep.subr.bf16.mxu1 %v2147_v0  ;;  %v2109_v55 = vld [vmem:[%s2606_s0 + $0x90] ss:$8 sps:$4 sm:$0xff]   ;;  %v2111_v57 = vld [vmem:[%s2606_s0 + $0xa4] ss:$8 sps:$4 sm:$0xff]   ;;  %v2115_v59 = vld [vmem:[%s2606_s0 + $0xa0] ss:$8 sps:$4 sm:$0xff]  }
  0x14   :  { %v2110_v56 = vld [vmem:[%s2606_s0 + $0x190] ss:$8 sps:$4 sm:$0xff]   ;;  %v2113_v58 = vld [vmem:[%s2606_s0 + $0x1a4] ss:$8 sps:$4 sm:$0xff]   ;;  %v2116_v60 = vld [vmem:[%s2606_s0 + $0x1a0] ss:$8 sps:$4 sm:$0xff]  }
  0x15   :  { %v2117_v61 = vld [vmem:[%s2606_s0 + $0xb4] ss:$8 sps:$4 sm:$0xff]   ;;  %v2121_v63 = vld [vmem:[%s2606_s0 + $0xb0] ss:$8 sps:$4 sm:$0xff]   ;;  %v2123_v1 = vld [vmem:[%s2606_s0 + $0xc4] ss:$8 sps:$4 sm:$0xff]  }
  0x16   :  { %670 = vmatpush1.bf16.msra.mxu0 %v2040_v7  ;;  %2023 = vmatpush1.bf16.msra.mxu1 %v2040_v7  ;;  %v2119_v62 = vld [vmem:[%s2606_s0 + $0x1b4] ss:$8 sps:$4 sm:$0xff]   ;;  %v2125_v2 = vld [vmem:[%s2606_s0 + $0x1c4] ss:$8 sps:$4 sm:$0xff]   ;;  %v2127_v3 = vld [vmem:[%s2606_s0 + $0xc0] ss:$8 sps:$4 sm:$0xff]  }
  0x17   :  { %671 = vmatprep.subr.bf16.mxu0 %v2147_v0  ;;  %2008 = vmatprep.subr.bf16.mxu1 %v2147_v0  ;;  %v2128_v4 = vld [vmem:[%s2606_s0 + $0x1c0] ss:$8 sps:$4 sm:$0xff]   ;;  %v2129_v5 = vld [vmem:[%s2606_s0 + $0xd4] ss:$8 sps:$4 sm:$0xff]   ;;  %v2133_v7 = vld [vmem:[%s2606_s0 + $0xd0] ss:$8 sps:$4 sm:$0xff]  }
  0x18   :  { %v2131_v6 = vld [vmem:[%s2606_s0 + $0x1d4] ss:$8 sps:$4 sm:$0xff]   ;;  %v2134_v8 = vld [vmem:[%s2606_s0 + $0x1d0] ss:$8 sps:$4 sm:$0xff]  }
  0x1a   :  { %672 = vmatpush1.bf16.msra.mxu0 %v2041_v9  ;;  %2024 = vmatpush1.bf16.msra.mxu1 %v2041_v9  ;;  %v2135_v9 = vld [vmem:[%s2606_s0 + $0xe4] ss:$8 sps:$4 sm:$0xff]  }
  0x1b   :  { %673 = vmatprep.subr.bf16.mxu0 %v2147_v0  ;;  %2009 = vmatprep.subr.bf16.mxu1 %v2147_v0 }
  0x1e   :  { %674 = vmatpush1.bf16.msra.mxu0 %v2042_v10  ;;  %2025 = vmatpush1.bf16.msra.mxu1 %v2042_v10  ;;  %v2137_v10 = vld [vmem:[%s2606_s0 + $0x1e4] ss:$8 sps:$4 sm:$0xff]  }
  0x1f   :  { %675 = vmatprep.subr.bf16.mxu0 %v2147_v0  ;;  %2010 = vmatprep.subr.bf16.mxu1 %v2147_v0 }
  0x22   :  { %676 = vmatpush1.bf16.msra.mxu0 %v2043_v11  ;;  %2026 = vmatpush1.bf16.msra.mxu1 %v2043_v11  ;;  %v2139_v11 = vld [vmem:[%s2606_s0 + $0xe0] ss:$8 sps:$4 sm:$0xff]  }
  0x23   :  { %677 = vmatprep.subr.bf16.mxu0 %v2147_v0  ;;  %2011 = vmatprep.subr.bf16.mxu1 %v2147_v0 }
  0x26   :  { %678 = vmatpush1.bf16.msra.mxu0 %v2044_v12  ;;  %2027 = vmatpush1.bf16.msra.mxu1 %v2044_v12  ;;  %v2140_v12 = vld [vmem:[%s2606_s0 + $0x1e0] ss:$8 sps:$4 sm:$0xff]  }
  0x27   :  { %679 = vmatprep.subr.bf16.mxu0 %v2147_v0  ;;  %2012 = vmatprep.subr.bf16.mxu1 %v2147_v0 }
  0x2a   :  { %680 = vmatpush1.bf16.msra.mxu0 %v2045_v13  ;;  %2028 = vmatpush1.bf16.msra.mxu1 %v2045_v13  ;;  %v2141_v13 = vld [vmem:[%s2606_s0 + $0xf4] ss:$8 sps:$4 sm:$0xff]  }
  0x2b   :  { %681 = vmatprep.subr.bf16.mxu0 %v2147_v0  ;;  %2013 = vmatprep.subr.bf16.mxu1 %v2147_v0 }
  0x2e   :  { %682 = vmatpush1.bf16.msra.mxu0 %v2046_v14  ;;  %2029 = vmatpush1.bf16.msra.mxu1 %v2046_v14  ;;  %v2143_v14 = vld [vmem:[%s2606_s0 + $0x1f4] ss:$8 sps:$4 sm:$0xff]  }
  0x2f   :  { %683 = vmatprep.subr.bf16.mxu0 %v2147_v0  ;;  %2014 = vmatprep.subr.bf16.mxu1 %v2147_v0 }
  0x32   :  { %684 = vmatpush1.bf16.msra.mxu0 %v2047_v15  ;;  %2030 = vmatpush1.bf16.msra.mxu1 %v2047_v15  ;;  %v2145_v15 = vld [vmem:[%s2606_s0 + $0xf0] ss:$8 sps:$4 sm:$0xff]  }
  0x33   :  { %685 = vmatprep.subr.bf16.mxu0 %v2147_v0  ;;  %2015 = vmatprep.subr.bf16.mxu1 %v2147_v0 }
  0x36   :  { %686 = vmatpush1.bf16.msra.mxu0 %v2048_v16  ;;  %2031 = vmatpush1.bf16.msra.mxu1 %v2048_v16  ;;  %v2146_v16 = vld [vmem:[%s2606_s0 + $0x1f0] ss:$8 sps:$4 sm:$0xff]  }
  0x37   :  { %687 = vmatprep.subr.bf16.mxu0 %v2147_v0  ;;  %2016 = vmatprep.subr.bf16.mxu1 %v2147_v0 }
  0x3a   :  { %688 = vmatpush1.bf16.msra.mxu0 %v2049_v17  ;;  %2032 = vmatpush1.bf16.msra.mxu1 %v2049_v17  ;;  %v2443_v17 = vld [vmem:[%s2607_s2] ss:$0 sm:$0xff] }
  0x3b   :  { %689 = vmatprep.subr.bf16.mxu0 %v2147_v0  ;;  %2017 = vmatprep.subr.bf16.mxu1 %v2147_v0  ;;  %v2122_v0 = vld [vmem:[%s2606_s0 + $0x1b0] ss:$8 sps:$4 sm:$0xff]  }
  0x3e   :  { %690 = vmatpush1.bf16.msra.mxu0 %v2050_v18  ;;  %2033 = vmatpush1.bf16.msra.mxu1 %v2050_v18 }
  0x41   :  { %692 = vmatmul.mubr.bf16.vlgmr.msra.gmra.mrb[0].mxu0 %v2051_v19  ;;  %820 = vmatmul.mubr.bf16.vlgmr.msra.gmra.mrb[0].mxu1 %v2054_v20 }
  0x42   :  { %699 = vmatprep.mubr.bf16.mxu0 %v2057_v21  ;;  %827 = vmatprep.mubr.bf16.mxu1 %v2059_v22 }
  0x49   :  { %700 = vmatmul.mubr.bf16.gmra.mrb[4].mxu0 %v2061_v23  ;;  %828 = vmatmul.mubr.bf16.gmra.mrb[4].mxu1 %v2062_v24 }
  0x4a   :  { %707 = vmatprep.mubr.bf16.mxu0 %v2063_v25  ;;  %835 = vmatprep.mubr.bf16.mxu1 %v2065_v26 }
  0x51   :  { %708 = vmatmul.mubr.bf16.gmra.mrb[8].mxu0 %v2067_v27  ;;  %836 = vmatmul.mubr.bf16.gmra.mrb[8].mxu1 %v2068_v28 }
  0x52   :  { %715 = vmatprep.mubr.bf16.mxu0 %v2069_v29  ;;  %843 = vmatprep.mubr.bf16.mxu1 %v2071_v30 }
  0x59   :  { %716 = vmatmul.mubr.bf16.gmra.mrb[12].mxu0 %v2073_v31  ;;  %844 = vmatmul.mubr.bf16.gmra.mrb[12].mxu1 %v2074_v32 }
  0x5a   :  { %723 = vmatprep.mubr.bf16.mxu0 %v2075_v33  ;;  %851 = vmatprep.mubr.bf16.mxu1 %v2077_v34 }
  0x61   :  { %724 = vmatmul.mubr.bf16.gmra.mrb[16].mxu0 %v2079_v35  ;;  %852 = vmatmul.mubr.bf16.gmra.mrb[16].mxu1 %v2080_v36 }
  0x62   :  { %731 = vmatprep.mubr.bf16.mxu0 %v2081_v37  ;;  %859 = vmatprep.mubr.bf16.mxu1 %v2083_v38 }
  0x69   :  { %732 = vmatmul.mubr.bf16.gmra.mrb[20].mxu0 %v2085_v39  ;;  %860 = vmatmul.mubr.bf16.gmra.mrb[20].mxu1 %v2086_v40 }
  0x6a   :  { %739 = vmatprep.mubr.bf16.mxu0 %v2087_v41  ;;  %867 = vmatprep.mubr.bf16.mxu1 %v2089_v42 }
  0x71   :  { %740 = vmatmul.mubr.bf16.gmra.mrb[24].mxu0 %v2091_v43  ;;  %868 = vmatmul.mubr.bf16.gmra.mrb[24].mxu1 %v2092_v44 }
  0x72   :  { %747 = vmatprep.mubr.bf16.mxu0 %v2093_v45  ;;  %875 = vmatprep.mubr.bf16.mxu1 %v2095_v46 }
  0x79   :  { %748 = vmatmul.mubr.bf16.gmra.mrb[28].mxu0 %v2097_v47  ;;  %876 = vmatmul.mubr.bf16.gmra.mrb[28].mxu1 %v2098_v48 }
  0x7a   :  { %755 = vmatprep.mubr.bf16.mxu0 %v2099_v49  ;;  %883 = vmatprep.mubr.bf16.mxu1 %v2101_v50 }
  0x81   :  { %756 = vmatmul.mubr.bf16.gmra.mrb[32].mxu0 %v2103_v51  ;;  %884 = vmatmul.mubr.bf16.gmra.mrb[32].mxu1 %v2104_v52 }
  0x82   :  { %763 = vmatprep.mubr.bf16.mxu0 %v2105_v53  ;;  %891 = vmatprep.mubr.bf16.mxu1 %v2107_v54 }
  0x89   :  { %764 = vmatmul.mubr.bf16.gmra.mrb[36].mxu0 %v2109_v55  ;;  %892 = vmatmul.mubr.bf16.gmra.mrb[36].mxu1 %v2110_v56 }
  0x8a   :  { %771 = vmatprep.mubr.bf16.mxu0 %v2111_v57  ;;  %899 = vmatprep.mubr.bf16.mxu1 %v2113_v58 }
  0x91   :  { %772 = vmatmul.mubr.bf16.gmra.mrb[40].mxu0 %v2115_v59  ;;  %900 = vmatmul.mubr.bf16.gmra.mrb[40].mxu1 %v2116_v60 }
  0x92   :  { %779 = vmatprep.mubr.bf16.mxu0 %v2117_v61  ;;  %907 = vmatprep.mubr.bf16.mxu1 %v2119_v62 }
  0x99   :  { %780 = vmatmul.mubr.bf16.gmra.mrb[44].mxu0 %v2121_v63  ;;  %908 = vmatmul.mubr.bf16.gmra.mrb[44].mxu1 %v2122_v0 }
  0x9a   :  { %787 = vmatprep.mubr.bf16.mxu0 %v2123_v1  ;;  %915 = vmatprep.mubr.bf16.mxu1 %v2125_v2 }
  0xa1   :  { %788 = vmatmul.mubr.bf16.gmra.mrb[48].mxu0 %v2127_v3  ;;  %916 = vmatmul.mubr.bf16.gmra.mrb[48].mxu1 %v2128_v4 }
  0xa2   :  { %795 = vmatprep.mubr.bf16.mxu0 %v2129_v5  ;;  %923 = vmatprep.mubr.bf16.mxu1 %v2131_v6 }
  0xa9   :  { %796 = vmatmul.mubr.bf16.gmra.mrb[52].mxu0 %v2133_v7  ;;  %924 = vmatmul.mubr.bf16.gmra.mrb[52].mxu1 %v2134_v8 }
  0xaa   :  { %803 = vmatprep.mubr.bf16.mxu0 %v2135_v9  ;;  %931 = vmatprep.mubr.bf16.mxu1 %v2137_v10 }
  0xb1   :  { %804 = vmatmul.mubr.bf16.gmra.mrb[56].mxu0 %v2139_v11  ;;  %932 = vmatmul.mubr.bf16.gmra.mrb[56].mxu1 %v2140_v12 }
  0xb2   :  { %811 = vmatprep.mubr.bf16.mxu0 %v2141_v13  ;;  %939 = vmatprep.mubr.bf16.mxu1 %v2143_v14 }
  0xb9   :  { %812 = vmatmul.mubr.bf16.gmra.mrb[60].mxu0 %v2145_v15  ;;  %940 = vmatmul.mubr.bf16.gmra.mrb[60].mxu1 %v2146_v16 }
 0x114   :  { %v693_v18 = vpop.f32.mrb[0].mxu0  ;;  %v821_v19 = vpop.f32.mrb[0].mxu1 }
 0x115   :  { %v1150_v20 = vadd.f32 %v2443_v17, %v693_v18  ;;  %v1182_v21 = vadd.f32 %v2443_v17, %v821_v19  ;;  %v695_v22 = vpop.f32.mrb[1].mxu0  ;;  %v823_v23 = vpop.f32.mrb[1].mxu1 }
 0x116   :  { %v696_v24 = vpop.f32.mrb[2].mxu0  ;;  %v824_v25 = vpop.f32.mrb[2].mxu1 }
 0x117   :  { %v1151_v26 = vadd.f32 %v2443_v17, %v696_v24  ;;  %v1183_v27 = vadd.f32 %v2443_v17, %v824_v25  ;;  %v698_v28 = vpop.f32.mrb[3].mxu0  ;;  %v826_v29 = vpop.f32.mrb[3].mxu1  ;;  %v1214_v30 = vmax.f32 %v1150_v20, 0.0  ;;  %v1246_v31 = vmax.f32 %v1182_v21, 0.0 }
 0x119   :  { %v1215_v32 = vmax.f32 %v1151_v26, 0.0  ;;  %v1247_v33 = vmax.f32 %v1183_v27, 0.0 }
 0x11b   :  { %v1814_v34 = vpack.c.bf16 %v1215_v32, %v1214_v30  ;;  %v1894_v35 = vpack.c.bf16 %v1247_v33, %v1246_v31 }
 0x11c   :  { %v701_v36 = vpop.f32.mrb[4].mxu0  ;;  %v829_v37 = vpop.f32.mrb[4].mxu1 }
 0x11d   :  { %1815 = vst [vmem:[%s2608_s3] sm:$0xff] %v1814_v34   ;;  %1986 = vst [vmem:[%s2608_s3 + $0x80] sm:$0xff] %v1894_v35   ;;  %v1152_v38 = vadd.f32 %v2443_v17, %v701_v36  ;;  %v1184_v39 = vadd.f32 %v2443_v17, %v829_v37  ;;  %v703_v40 = vpop.f32.mrb[5].mxu0  ;;  %v831_v41 = vpop.f32.mrb[5].mxu1 }
 0x11e   :  { %v704_v42 = vpop.f32.mrb[6].mxu0  ;;  %v832_v43 = vpop.f32.mrb[6].mxu1 }
 0x11f   :  { %v1153_v44 = vadd.f32 %v2443_v17, %v704_v42  ;;  %v1185_v45 = vadd.f32 %v2443_v17, %v832_v43  ;;  %v706_v46 = vpop.f32.mrb[7].mxu0  ;;  %v834_v47 = vpop.f32.mrb[7].mxu1  ;;  %v1216_v48 = vmax.f32 %v1152_v38, 0.0  ;;  %v1248_v49 = vmax.f32 %v1184_v39, 0.0 }
 0x121   :  { %v1217_v50 = vmax.f32 %v1153_v44, 0.0  ;;  %v1249_v51 = vmax.f32 %v1185_v45, 0.0 }
 0x123   :  { %v1819_v52 = vpack.c.bf16 %v1217_v50, %v1216_v48  ;;  %v1899_v53 = vpack.c.bf16 %v1249_v51, %v1248_v49 }
 0x124   :  { %v709_v54 = vpop.f32.mrb[8].mxu0  ;;  %v837_v55 = vpop.f32.mrb[8].mxu1 }
 0x125   :  { %1971 = vst [vmem:[%s2608_s3 + $0x8] sm:$0xff] %v1819_v52   ;;  %1987 = vst [vmem:[%s2608_s3 + $0x88] sm:$0xff] %v1899_v53   ;;  %v1154_v56 = vadd.f32 %v2443_v17, %v709_v54  ;;  %v1186_v57 = vadd.f32 %v2443_v17, %v837_v55  ;;  %v711_v58 = vpop.f32.mrb[9].mxu0  ;;  %v839_v59 = vpop.f32.mrb[9].mxu1 }
 0x126   :  { %v712_v60 = vpop.f32.mrb[10].mxu0  ;;  %v840_v61 = vpop.f32.mrb[10].mxu1 }
 0x127   :  { %v1155_v62 = vadd.f32 %v2443_v17, %v712_v60  ;;  %v1187_v63 = vadd.f32 %v2443_v17, %v840_v61  ;;  %v714_v0 = vpop.f32.mrb[11].mxu0  ;;  %v842_v1 = vpop.f32.mrb[11].mxu1  ;;  %v1218_v2 = vmax.f32 %v1154_v56, 0.0  ;;  %v1250_v3 = vmax.f32 %v1186_v57, 0.0 }
 0x129   :  { %v1219_v4 = vmax.f32 %v1155_v62, 0.0  ;;  %v1251_v5 = vmax.f32 %v1187_v63, 0.0 }
 0x12b   :  { %v1824_v6 = vpack.c.bf16 %v1219_v4, %v1218_v2  ;;  %v1904_v7 = vpack.c.bf16 %v1251_v5, %v1250_v3 }
 0x12c   :  { %v717_v8 = vpop.f32.mrb[12].mxu0  ;;  %v845_v9 = vpop.f32.mrb[12].mxu1 }
 0x12d   :  { %1972 = vst [vmem:[%s2608_s3 + $0x10] sm:$0xff] %v1824_v6   ;;  %1988 = vst [vmem:[%s2608_s3 + $0x90] sm:$0xff] %v1904_v7   ;;  %v1156_v10 = vadd.f32 %v2443_v17, %v717_v8  ;;  %v1188_v11 = vadd.f32 %v2443_v17, %v845_v9  ;;  %v719_v12 = vpop.f32.mrb[13].mxu0  ;;  %v847_v13 = vpop.f32.mrb[13].mxu1 }
 0x12e   :  { %v720_v14 = vpop.f32.mrb[14].mxu0  ;;  %v848_v15 = vpop.f32.mrb[14].mxu1 }
 0x12f   :  { %v1157_v16 = vadd.f32 %v2443_v17, %v720_v14  ;;  %v1189_v18 = vadd.f32 %v2443_v17, %v848_v15  ;;  %v722_v19 = vpop.f32.mrb[15].mxu0  ;;  %v850_v20 = vpop.f32.mrb[15].mxu1  ;;  %v1220_v21 = vmax.f32 %v1156_v10, 0.0  ;;  %v1252_v22 = vmax.f32 %v1188_v11, 0.0 }
 0x131   :  { %v1221_v23 = vmax.f32 %v1157_v16, 0.0  ;;  %v1253_v24 = vmax.f32 %v1189_v18, 0.0 }
 0x133   :  { %v1829_v25 = vpack.c.bf16 %v1221_v23, %v1220_v21  ;;  %v1909_v26 = vpack.c.bf16 %v1253_v24, %v1252_v22 }
 0x134   :  { %v725_v27 = vpop.f32.mrb[16].mxu0  ;;  %v853_v28 = vpop.f32.mrb[16].mxu1 }
 0x135   :  { %1973 = vst [vmem:[%s2608_s3 + $0x18] sm:$0xff] %v1829_v25   ;;  %1989 = vst [vmem:[%s2608_s3 + $0x98] sm:$0xff] %v1909_v26   ;;  %v1158_v29 = vadd.f32 %v2443_v17, %v725_v27  ;;  %v1190_v30 = vadd.f32 %v2443_v17, %v853_v28  ;;  %v727_v31 = vpop.f32.mrb[17].mxu0  ;;  %v855_v32 = vpop.f32.mrb[17].mxu1 }
 0x136   :  { %v728_v33 = vpop.f32.mrb[18].mxu0  ;;  %v856_v34 = vpop.f32.mrb[18].mxu1 }
 0x137   :  { %v1159_v35 = vadd.f32 %v2443_v17, %v728_v33  ;;  %v1191_v36 = vadd.f32 %v2443_v17, %v856_v34  ;;  %v730_v37 = vpop.f32.mrb[19].mxu0  ;;  %v858_v38 = vpop.f32.mrb[19].mxu1  ;;  %v1222_v39 = vmax.f32 %v1158_v29, 0.0  ;;  %v1254_v40 = vmax.f32 %v1190_v30, 0.0 }
 0x139   :  { %v1223_v41 = vmax.f32 %v1159_v35, 0.0  ;;  %v1255_v42 = vmax.f32 %v1191_v36, 0.0 }
 0x13b   :  { %v1834_v43 = vpack.c.bf16 %v1223_v41, %v1222_v39  ;;  %v1914_v44 = vpack.c.bf16 %v1255_v42, %v1254_v40 }
 0x13c   :  { %v733_v45 = vpop.f32.mrb[20].mxu0  ;;  %v861_v46 = vpop.f32.mrb[20].mxu1 }
 0x13d   :  { %1974 = vst [vmem:[%s2608_s3 + $0x20] sm:$0xff] %v1834_v43   ;;  %1990 = vst [vmem:[%s2608_s3 + $0xa0] sm:$0xff] %v1914_v44   ;;  %v1160_v47 = vadd.f32 %v2443_v17, %v733_v45  ;;  %v1192_v48 = vadd.f32 %v2443_v17, %v861_v46  ;;  %v735_v49 = vpop.f32.mrb[21].mxu0  ;;  %v863_v50 = vpop.f32.mrb[21].mxu1 }
 0x13e   :  { %v736_v51 = vpop.f32.mrb[22].mxu0  ;;  %v864_v52 = vpop.f32.mrb[22].mxu1 }
 0x13f   :  { %v1161_v53 = vadd.f32 %v2443_v17, %v736_v51  ;;  %v1193_v54 = vadd.f32 %v2443_v17, %v864_v52  ;;  %v738_v55 = vpop.f32.mrb[23].mxu0  ;;  %v866_v56 = vpop.f32.mrb[23].mxu1  ;;  %v1224_v57 = vmax.f32 %v1160_v47, 0.0  ;;  %v1256_v58 = vmax.f32 %v1192_v48, 0.0 }
 0x141   :  { %v1225_v59 = vmax.f32 %v1161_v53, 0.0  ;;  %v1257_v60 = vmax.f32 %v1193_v54, 0.0 }
 0x143   :  { %v1839_v61 = vpack.c.bf16 %v1225_v59, %v1224_v57  ;;  %v1919_v62 = vpack.c.bf16 %v1257_v60, %v1256_v58 }
 0x144   :  { %v741_v63 = vpop.f32.mrb[24].mxu0  ;;  %v869_v0 = vpop.f32.mrb[24].mxu1 }
 0x145   :  { %1975 = vst [vmem:[%s2608_s3 + $0x28] sm:$0xff] %v1839_v61   ;;  %1991 = vst [vmem:[%s2608_s3 + $0xa8] sm:$0xff] %v1919_v62   ;;  %v1162_v1 = vadd.f32 %v2443_v17, %v741_v63  ;;  %v1194_v2 = vadd.f32 %v2443_v17, %v869_v0  ;;  %v743_v3 = vpop.f32.mrb[25].mxu0  ;;  %v871_v4 = vpop.f32.mrb[25].mxu1 }
 0x146   :  { %v744_v5 = vpop.f32.mrb[26].mxu0  ;;  %v872_v6 = vpop.f32.mrb[26].mxu1 }
 0x147   :  { %v1163_v7 = vadd.f32 %v2443_v17, %v744_v5  ;;  %v1195_v8 = vadd.f32 %v2443_v17, %v872_v6  ;;  %v746_v9 = vpop.f32.mrb[27].mxu0  ;;  %v874_v10 = vpop.f32.mrb[27].mxu1  ;;  %v1226_v11 = vmax.f32 %v1162_v1, 0.0  ;;  %v1258_v12 = vmax.f32 %v1194_v2, 0.0 }
 0x149   :  { %v1227_v13 = vmax.f32 %v1163_v7, 0.0  ;;  %v1259_v14 = vmax.f32 %v1195_v8, 0.0 }
 0x14b   :  { %v1844_v15 = vpack.c.bf16 %v1227_v13, %v1226_v11  ;;  %v1924_v16 = vpack.c.bf16 %v1259_v14, %v1258_v12 }
 0x14c   :  { %v749_v18 = vpop.f32.mrb[28].mxu0  ;;  %v877_v19 = vpop.f32.mrb[28].mxu1 }
 0x14d   :  { %1976 = vst [vmem:[%s2608_s3 + $0x30] sm:$0xff] %v1844_v15   ;;  %1992 = vst [vmem:[%s2608_s3 + $0xb0] sm:$0xff] %v1924_v16   ;;  %v1164_v20 = vadd.f32 %v2443_v17, %v749_v18  ;;  %v1196_v21 = vadd.f32 %v2443_v17, %v877_v19  ;;  %v751_v22 = vpop.f32.mrb[29].mxu0  ;;  %v879_v23 = vpop.f32.mrb[29].mxu1 }
 0x14e   :  { %v752_v24 = vpop.f32.mrb[30].mxu0  ;;  %v880_v25 = vpop.f32.mrb[30].mxu1 }
 0x14f   :  { %v1165_v26 = vadd.f32 %v2443_v17, %v752_v24  ;;  %v1197_v27 = vadd.f32 %v2443_v17, %v880_v25  ;;  %v754_v28 = vpop.f32.mrb[31].mxu0  ;;  %v882_v29 = vpop.f32.mrb[31].mxu1  ;;  %v1228_v30 = vmax.f32 %v1164_v20, 0.0  ;;  %v1260_v31 = vmax.f32 %v1196_v21, 0.0 }
 0x151   :  { %v1229_v32 = vmax.f32 %v1165_v26, 0.0  ;;  %v1261_v33 = vmax.f32 %v1197_v27, 0.0 }
 0x153   :  { %v1849_v34 = vpack.c.bf16 %v1229_v32, %v1228_v30  ;;  %v1929_v35 = vpack.c.bf16 %v1261_v33, %v1260_v31 }
 0x154   :  { %v757_v36 = vpop.f32.mrb[32].mxu0  ;;  %v885_v37 = vpop.f32.mrb[32].mxu1 }
 0x155   :  { %1977 = vst [vmem:[%s2608_s3 + $0x38] sm:$0xff] %v1849_v34   ;;  %1993 = vst [vmem:[%s2608_s3 + $0xb8] sm:$0xff] %v1929_v35   ;;  %v1166_v38 = vadd.f32 %v2443_v17, %v757_v36  ;;  %v1198_v39 = vadd.f32 %v2443_v17, %v885_v37  ;;  %v759_v40 = vpop.f32.mrb[33].mxu0  ;;  %v887_v41 = vpop.f32.mrb[33].mxu1 }
 0x156   :  { %v760_v42 = vpop.f32.mrb[34].mxu0  ;;  %v888_v43 = vpop.f32.mrb[34].mxu1 }
 0x157   :  { %v1167_v44 = vadd.f32 %v2443_v17, %v760_v42  ;;  %v1199_v45 = vadd.f32 %v2443_v17, %v888_v43  ;;  %v762_v46 = vpop.f32.mrb[35].mxu0  ;;  %v890_v47 = vpop.f32.mrb[35].mxu1  ;;  %v1230_v48 = vmax.f32 %v1166_v38, 0.0  ;;  %v1262_v49 = vmax.f32 %v1198_v39, 0.0 }
 0x159   :  { %v1231_v50 = vmax.f32 %v1167_v44, 0.0  ;;  %v1263_v51 = vmax.f32 %v1199_v45, 0.0 }
 0x15b   :  { %v1854_v52 = vpack.c.bf16 %v1231_v50, %v1230_v48  ;;  %v1934_v53 = vpack.c.bf16 %v1263_v51, %v1262_v49 }
 0x15c   :  { %v765_v54 = vpop.f32.mrb[36].mxu0  ;;  %v893_v55 = vpop.f32.mrb[36].mxu1 }
 0x15d   :  { %1978 = vst [vmem:[%s2608_s3 + $0x40] sm:$0xff] %v1854_v52   ;;  %1994 = vst [vmem:[%s2608_s3 + $0xc0] sm:$0xff] %v1934_v53   ;;  %v1168_v56 = vadd.f32 %v2443_v17, %v765_v54  ;;  %v1200_v57 = vadd.f32 %v2443_v17, %v893_v55  ;;  %v767_v58 = vpop.f32.mrb[37].mxu0  ;;  %v895_v59 = vpop.f32.mrb[37].mxu1 }
 0x15e   :  { %v768_v60 = vpop.f32.mrb[38].mxu0  ;;  %v896_v61 = vpop.f32.mrb[38].mxu1 }
 0x15f   :  { %v1169_v62 = vadd.f32 %v2443_v17, %v768_v60  ;;  %v1201_v63 = vadd.f32 %v2443_v17, %v896_v61  ;;  %v770_v0 = vpop.f32.mrb[39].mxu0  ;;  %v898_v1 = vpop.f32.mrb[39].mxu1  ;;  %v1232_v2 = vmax.f32 %v1168_v56, 0.0  ;;  %v1264_v3 = vmax.f32 %v1200_v57, 0.0 }
 0x161   :  { %v1233_v4 = vmax.f32 %v1169_v62, 0.0  ;;  %v1265_v5 = vmax.f32 %v1201_v63, 0.0 }
 0x163   :  { %v1859_v6 = vpack.c.bf16 %v1233_v4, %v1232_v2  ;;  %v1939_v7 = vpack.c.bf16 %v1265_v5, %v1264_v3 }
 0x164   :  { %v773_v8 = vpop.f32.mrb[40].mxu0  ;;  %v901_v9 = vpop.f32.mrb[40].mxu1 }
 0x165   :  { %1979 = vst [vmem:[%s2608_s3 + $0x48] sm:$0xff] %v1859_v6   ;;  %1995 = vst [vmem:[%s2608_s3 + $0xc8] sm:$0xff] %v1939_v7   ;;  %v1170_v10 = vadd.f32 %v2443_v17, %v773_v8  ;;  %v1202_v11 = vadd.f32 %v2443_v17, %v901_v9  ;;  %v775_v12 = vpop.f32.mrb[41].mxu0  ;;  %v903_v13 = vpop.f32.mrb[41].mxu1 }
 0x166   :  { %v776_v14 = vpop.f32.mrb[42].mxu0  ;;  %v904_v15 = vpop.f32.mrb[42].mxu1 }
 0x167   :  { %v1171_v16 = vadd.f32 %v2443_v17, %v776_v14  ;;  %v1203_v18 = vadd.f32 %v2443_v17, %v904_v15  ;;  %v778_v19 = vpop.f32.mrb[43].mxu0  ;;  %v906_v20 = vpop.f32.mrb[43].mxu1  ;;  %v1234_v21 = vmax.f32 %v1170_v10, 0.0  ;;  %v1266_v22 = vmax.f32 %v1202_v11, 0.0 }
 0x169   :  { %v1235_v23 = vmax.f32 %v1171_v16, 0.0  ;;  %v1267_v24 = vmax.f32 %v1203_v18, 0.0 }
 0x16b   :  { %v1864_v25 = vpack.c.bf16 %v1235_v23, %v1234_v21  ;;  %v1944_v26 = vpack.c.bf16 %v1267_v24, %v1266_v22 }
 0x16c   :  { %v781_v27 = vpop.f32.mrb[44].mxu0  ;;  %v909_v28 = vpop.f32.mrb[44].mxu1 }
 0x16d   :  { %1980 = vst [vmem:[%s2608_s3 + $0x50] sm:$0xff] %v1864_v25   ;;  %1996 = vst [vmem:[%s2608_s3 + $0xd0] sm:$0xff] %v1944_v26   ;;  %v1172_v29 = vadd.f32 %v2443_v17, %v781_v27  ;;  %v1204_v30 = vadd.f32 %v2443_v17, %v909_v28  ;;  %v783_v31 = vpop.f32.mrb[45].mxu0  ;;  %v911_v32 = vpop.f32.mrb[45].mxu1 }
 0x16e   :  { %v784_v33 = vpop.f32.mrb[46].mxu0  ;;  %v912_v34 = vpop.f32.mrb[46].mxu1 }
 0x16f   :  { %v1173_v35 = vadd.f32 %v2443_v17, %v784_v33  ;;  %v1205_v36 = vadd.f32 %v2443_v17, %v912_v34  ;;  %v786_v37 = vpop.f32.mrb[47].mxu0  ;;  %v914_v38 = vpop.f32.mrb[47].mxu1  ;;  %v1236_v39 = vmax.f32 %v1172_v29, 0.0  ;;  %v1268_v40 = vmax.f32 %v1204_v30, 0.0 }
 0x171   :  { %v1237_v41 = vmax.f32 %v1173_v35, 0.0  ;;  %v1269_v42 = vmax.f32 %v1205_v36, 0.0 }
 0x173   :  { %v1869_v43 = vpack.c.bf16 %v1237_v41, %v1236_v39  ;;  %v1949_v44 = vpack.c.bf16 %v1269_v42, %v1268_v40 }
 0x174   :  { %v789_v45 = vpop.f32.mrb[48].mxu0  ;;  %v917_v46 = vpop.f32.mrb[48].mxu1 }
 0x175   :  { %1981 = vst [vmem:[%s2608_s3 + $0x58] sm:$0xff] %v1869_v43   ;;  %1997 = vst [vmem:[%s2608_s3 + $0xd8] sm:$0xff] %v1949_v44   ;;  %v1174_v47 = vadd.f32 %v2443_v17, %v789_v45  ;;  %v1206_v48 = vadd.f32 %v2443_v17, %v917_v46  ;;  %v791_v49 = vpop.f32.mrb[49].mxu0  ;;  %v919_v50 = vpop.f32.mrb[49].mxu1 }
 0x176   :  { %v792_v51 = vpop.f32.mrb[50].mxu0  ;;  %v920_v52 = vpop.f32.mrb[50].mxu1 }
 0x177   :  { %v1175_v53 = vadd.f32 %v2443_v17, %v792_v51  ;;  %v1207_v54 = vadd.f32 %v2443_v17, %v920_v52  ;;  %v794_v55 = vpop.f32.mrb[51].mxu0  ;;  %v922_v56 = vpop.f32.mrb[51].mxu1  ;;  %v1238_v57 = vmax.f32 %v1174_v47, 0.0  ;;  %v1270_v58 = vmax.f32 %v1206_v48, 0.0 }
 0x179   :  { %v1239_v59 = vmax.f32 %v1175_v53, 0.0  ;;  %v1271_v60 = vmax.f32 %v1207_v54, 0.0 }
 0x17b   :  { %v1874_v61 = vpack.c.bf16 %v1239_v59, %v1238_v57  ;;  %v1954_v62 = vpack.c.bf16 %v1271_v60, %v1270_v58 }
 0x17c   :  { %v797_v63 = vpop.f32.mrb[52].mxu0  ;;  %v925_v0 = vpop.f32.mrb[52].mxu1 }
 0x17d   :  { %1982 = vst [vmem:[%s2608_s3 + $0x60] sm:$0xff] %v1874_v61   ;;  %1998 = vst [vmem:[%s2608_s3 + $0xe0] sm:$0xff] %v1954_v62   ;;  %v1176_v1 = vadd.f32 %v2443_v17, %v797_v63  ;;  %v1208_v2 = vadd.f32 %v2443_v17, %v925_v0  ;;  %v799_v3 = vpop.f32.mrb[53].mxu0  ;;  %v927_v4 = vpop.f32.mrb[53].mxu1 }
 0x17e   :  { %v800_v5 = vpop.f32.mrb[54].mxu0  ;;  %v928_v6 = vpop.f32.mrb[54].mxu1 }
 0x17f   :  { %v1177_v7 = vadd.f32 %v2443_v17, %v800_v5  ;;  %v1209_v8 = vadd.f32 %v2443_v17, %v928_v6  ;;  %v802_v9 = vpop.f32.mrb[55].mxu0  ;;  %v930_v10 = vpop.f32.mrb[55].mxu1  ;;  %v1240_v11 = vmax.f32 %v1176_v1, 0.0  ;;  %v1272_v12 = vmax.f32 %v1208_v2, 0.0 }
 0x181   :  { %v1241_v13 = vmax.f32 %v1177_v7, 0.0  ;;  %v1273_v14 = vmax.f32 %v1209_v8, 0.0 }
 0x183   :  { %v1879_v15 = vpack.c.bf16 %v1241_v13, %v1240_v11  ;;  %v1959_v16 = vpack.c.bf16 %v1273_v14, %v1272_v12 }
 0x184   :  { %v805_v18 = vpop.f32.mrb[56].mxu0  ;;  %v933_v19 = vpop.f32.mrb[56].mxu1 }
 0x185   :  { %1983 = vst [vmem:[%s2608_s3 + $0x68] sm:$0xff] %v1879_v15   ;;  %1999 = vst [vmem:[%s2608_s3 + $0xe8] sm:$0xff] %v1959_v16   ;;  %v1178_v20 = vadd.f32 %v2443_v17, %v805_v18  ;;  %v1210_v21 = vadd.f32 %v2443_v17, %v933_v19  ;;  %v807_v22 = vpop.f32.mrb[57].mxu0  ;;  %v935_v23 = vpop.f32.mrb[57].mxu1 }
 0x186   :  { %v808_v24 = vpop.f32.mrb[58].mxu0  ;;  %v936_v25 = vpop.f32.mrb[58].mxu1 }
 0x187   :  { %v1179_v26 = vadd.f32 %v2443_v17, %v808_v24  ;;  %v1211_v27 = vadd.f32 %v2443_v17, %v936_v25  ;;  %v810_v28 = vpop.f32.mrb[59].mxu0  ;;  %v938_v29 = vpop.f32.mrb[59].mxu1  ;;  %v1242_v30 = vmax.f32 %v1178_v20, 0.0  ;;  %v1274_v31 = vmax.f32 %v1210_v21, 0.0 }
 0x189   :  { %v1243_v32 = vmax.f32 %v1179_v26, 0.0  ;;  %v1275_v33 = vmax.f32 %v1211_v27, 0.0 }
 0x18b   :  { %v1884_v34 = vpack.c.bf16 %v1243_v32, %v1242_v30  ;;  %v1964_v35 = vpack.c.bf16 %v1275_v33, %v1274_v31 }
 0x18c   :  { %v813_v36 = vpop.f32.mrb[60].mxu0  ;;  %v941_v37 = vpop.f32.mrb[60].mxu1 }
 0x18d   :  { %1984 = vst [vmem:[%s2608_s3 + $0x70] sm:$0xff] %v1884_v34   ;;  %2000 = vst [vmem:[%s2608_s3 + $0xf0] sm:$0xff] %v1964_v35   ;;  %v1180_v38 = vadd.f32 %v2443_v17, %v813_v36  ;;  %v1212_v39 = vadd.f32 %v2443_v17, %v941_v37  ;;  %v815_v40 = vpop.f32.mrb[61].mxu0  ;;  %v943_v41 = vpop.f32.mrb[61].mxu1 }
 0x18e   :  { %v816_v42 = vpop.f32.mrb[62].mxu0  ;;  %v944_v43 = vpop.f32.mrb[62].mxu1 }
 0x18f   :  { %v1181_v44 = vadd.f32 %v2443_v17, %v816_v42  ;;  %v1213_v45 = vadd.f32 %v2443_v17, %v944_v43  ;;  %v818_v46 = vpop.f32.mrb[63].mxu0  ;;  %v946_v47 = vpop.f32.mrb[63].mxu1  ;;  %v1244_v48 = vmax.f32 %v1180_v38, 0.0  ;;  %v1276_v49 = vmax.f32 %v1212_v39, 0.0 }
 0x191   :  { %v1245_v50 = vmax.f32 %v1181_v44, 0.0  ;;  %v1277_v51 = vmax.f32 %v1213_v45, 0.0 }
 0x193   :  { %v1889_v52 = vpack.c.bf16 %v1245_v50, %v1244_v48  ;;  %v1969_v53 = vpack.c.bf16 %v1277_v51, %v1276_v49 }
 0x195   :  { %1985 = vst [vmem:[%s2608_s3 + $0x78] sm:$0xff] %v1889_v52   ;;  %2001 = vst [vmem:[%s2608_s3 + $0xf8] sm:$0xff] %v1969_v53  }

// kernel: resnet_forward.8
= control target key start
LH: loop header
LB: loop body
LE: loop exit
PB: predicated region body
PF: predicated region fallthrough
CT: control target
= control target key end

     0   :  { %s3170_s15 = smov 0   ;;  %s3172_s16 = smov 0   ;;  %s3800_s0 = inlined_call_operand.vmem [shape: bf16[2,100,128], index: 0, kind: input, shape index: {}]   ;;  %s3801_s1 = inlined_call_operand.vmem [shape: bf16[9,128,128], index: 1, kind: input, shape index: {}]   ;;  %s3802_s2 = inlined_call_operand.vmem [shape: f32[1,128], index: 2, kind: input, shape index: {}]   ;;  %s3803_s3 = inlined_call_operand.vmem [shape: bf16[2,78,128], index: 3, kind: input, shape index: {}]   ;;  %s3804_s4 = inlined_call_operand.vmem [shape: bf16[2,78,128], index: 4, kind: output, shape index: {}]  }
   0x1   :  { %s3174_s17 = smov 0  }
   0x2 LB: > { %s26_s18 = sadd.s32 1, %s3137_s16  ;;  %p2239_p0 = scmp.ge.s32.totalorder %s3141_s17, 1  ;;  %s3141_s17 = sphi %s3174_s17, %s14_s17   ;;  %s3137_s16 = sphi %s3172_s16, %s3806_s16   ;;  %s3133_s15 = sphi %s3170_s15, %s3805_s15  }
   0x3   : > { %p28_p1 = scmp.ge.s32.totalorder %s26_s18, 2  ;;  %p208_p2 = scmp.lt.s32.totalorder %s3141_s17, 3 }
   0x5   : > { %s3808_s18 = smov (%p28_p1, %s26_s18), 0  ;;  %p209_p3 = pnand %p2239_p0, %p208_p2 }
   0x6   : > { %v3020_v0 = vld [vmem:[%s3801_s1 + $0x40] sm:$0xff] (!%p209_p3)   ;;  %v3143_v1 = vmov (!%p209_p3), 0.0   ;;  %v3022_v3 = vld [vmem:[%s3801_s1 + $0x48] sm:$0xff] (!%p209_p3)   ;;  %vm3144_vm0 = vmmov (!%p209_p3), 0   ;;  %p252_p4 = scmp.lt.s32.totalorder (!%p209_p3), %s3133_s15, 1  ;;  %v3024_v5 = vld [vmem:[%s3801_s1 + $0x50] sm:$0xff] (!%p209_p3)  }
   0x7   : > { %212 = sbr.rel (%p209_p3) target bundleno = 440 (0x1b8), region = 36  ;;  %2652 = vmatprep.subr.bf16.mxu0 (!%p209_p3), %v3143_v1  ;;  %2688 = vmatprep.subr.bf16.mxu1 (!%p209_p3), %v3143_v1  ;;  %v3021_v2 = vld [vmem:[%s3801_s1] sm:$0xff] (!%p209_p3)   ;;  %v3023_v4 = vld [vmem:[%s3801_s1 + $0x8] sm:$0xff] (!%p209_p3)   ;;  %v3025_v6 = vld [vmem:[%s3801_s1 + $0x10] sm:$0xff] (!%p209_p3)   ;;  %vm350_vm1 = vsmask.f32 (!%p209_p3), 7424 }
   0x8   : > { %2653 = vmatpush3.bf16.msra.mxu0 (!%p209_p3), %v3020_v0  ;;  %2668 = vmatprep.mubr.msk.bf16.mxu0 (!%p209_p3), %vm3144_vm0, %v3143_v1  ;;  %v3026_v7 = vld [vmem:[%s3801_s1 + $0x58] sm:$0xff] (!%p209_p3)   ;;  %v3028_v9 = vld [vmem:[%s3801_s1 + $0x60] sm:$0xff] (!%p209_p3)   ;;  %v3030_v13 = vld [vmem:[%s3801_s1 + $0x68] sm:$0xff] (!%p209_p3)   ;;  %vm666_vm2 = vcmask (!%p209_p3), 1046528   ;;  %vm1065_vm3 = vsmask.f32 (!%p209_p3), 6400 }
   0x9   : > { %2689 = vmatpush3.bf16.msra.mxu1 (!%p209_p3), %v3021_v2  ;;  %2654 = vmatprep.subr.bf16.mxu0 (!%p209_p3), %v3143_v1  ;;  %v3027_v8 = vld [vmem:[%s3801_s1 + $0x18] sm:$0xff] (!%p209_p3)   ;;  %v3029_v10 = vld [vmem:[%s3801_s1 + $0x20] sm:$0xff] (!%p209_p3)   ;;  %v3031_v16 = vld [vmem:[%s3801_s1 + $0x28] sm:$0xff] (!%p209_p3)   ;;  %vm1272_vm4 = vcmask (!%p209_p3), 1045504   ;;  %vm1644_vm5 = vsmask.f32 (!%p209_p3), 5376 }
   0xa   : > { %2690 = vmatprep.subr.bf16.mxu1 (!%p209_p3), %v3143_v1  ;;  %2704 = vmatprep.mubr.msk.bf16.mxu1 (!%p209_p3), %vm3144_vm0, %v3143_v1  ;;  %v3032_v18 = vld [vmem:[%s3801_s1 + $0x70] sm:$0xff] (!%p209_p3)   ;;  %v3034_v23 = vld [vmem:[%s3801_s1 + $0x78] sm:$0xff] (!%p209_p3)   ;;  %v3038_v28 = vld [vmem:[%s3801_s1 + $0x80] sm:$0xff] (!%p209_p3)   ;;  %vm1855_vm6 = vcmask (!%p209_p3), 1044480  }
   0xb   : > { %v3033_v22 = vld [vmem:[%s3801_s1 + $0x30] sm:$0xff] (!%p209_p3)   ;;  %v3035_v24 = vld [vmem:[%s3801_s1 + $0x38] sm:$0xff] (!%p209_p3)   ;;  %v3041_v32 = vld [vmem:[%s3801_s1 + $0xc0] sm:$0xff] (!%p209_p3)  }
   0xc   : > { %2655 = vmatpush3.bf16.msra.mxu0 (!%p209_p3), %v3022_v3  ;;  %v3039_v34 = vld [vmem:[%s3801_s1 + $0x88] sm:$0xff] (!%p209_p3)   ;;  %v3042_v38 = vld [vmem:[%s3801_s1 + $0x90] sm:$0xff] (!%p209_p3)   ;;  %v3045_v46 = vld [vmem:[%s3801_s1 + $0x98] sm:$0xff] (!%p209_p3)  }
   0xd   : > { %2691 = vmatpush3.bf16.msra.mxu1 (!%p209_p3), %v3023_v4  ;;  %2656 = vmatprep.subr.bf16.mxu0 (!%p209_p3), %v3143_v1  ;;  %v3043_v37 = vld [vmem:[%s3801_s1 + $0xc8] sm:$0xff] (!%p209_p3)   ;;  %v3046_v44 = vld [vmem:[%s3801_s1 + $0xd0] sm:$0xff] (!%p209_p3)   ;;  %v3048_v49 = vld [vmem:[%s3801_s1 + $0xd8] sm:$0xff] (!%p209_p3)  }
   0xe   : > { %s3810_s15 = smov (!%p252_p4, %s3133_s15), 1  ;;  %2692 = vmatprep.subr.bf16.mxu1 %v3143_v1  ;;  %v3047_v50 = vld [vmem:[%s3801_s1 + $0xa0] sm:$0xff]   ;;  %v3051_v57 = vld [vmem:[%s3801_s1 + $0xa8] sm:$0xff]   ;;  %v3053_v60 = vld [vmem:[%s3801_s1 + $0xb0] sm:$0xff]  }
   0xf   : > { %s2992_s5 = smul.u32 52, %s3810_s15  ;;  %v3050_v54 = vld [vmem:[%s3801_s1 + $0xe0] sm:$0xff]   ;;  %v3052_v58 = vld [vmem:[%s3801_s1 + $0xe8] sm:$0xff]   ;;  %v3055_v61 = vld [vmem:[%s3801_s1 + $0xf0] sm:$0xff]  }
  0x10   : > { %2657 = vmatpush3.bf16.msra.mxu0 %v3024_v5  ;;  %v3056_v2 = vld [vmem:[%s3801_s1 + $0xb8] sm:$0xff]  }
  0x11   : > { %2693 = vmatpush3.bf16.msra.mxu1 %v3025_v6  ;;  %2658 = vmatprep.subr.bf16.mxu0 %v3143_v1  ;;  %s3230_s12 = scalar_lea.vmem %s3800_s0, %s2992_s5  ;;  %v3057_v3 = vld [vmem:[%s3801_s1 + $0xf8] sm:$0xff]  }
  0x12   : > { %2694 = vmatprep.subr.bf16.mxu1 %v3143_v1  ;;  %v281_v11 = vld [vmem:[%s3230_s12] sm:$0xf]  ;;  %v3242_v12 = vld [vmem:[%s3230_s12 + $0x4] sm:$0xf]  ;;  %v3249_v15 = vld [vmem:[%s3230_s12 + $0x8] sm:$0xff]  }
  0x13   : > { %v2259_v14 = vcombine.low %v281_v11, %v3242_v12  ;;  %v359_v21 = vshll.u32 %v3249_v15, 16  ;;  %v3272_v27 = vld [vmem:[%s3230_s12 + $0x10] sm:$0xff]   ;;  %v363_v30 = vshrl.u32 %v3249_v15, 16  ;;  %v3288_v33 = vld [vmem:[%s3230_s12 + $0x18] sm:$0xff]   ;;  %v3310_v42 = vld [vmem:[%s3230_s12 + $0x20] sm:$0xf] }
  0x14   : > { %2659 = vmatpush3.bf16.msra.mxu0 %v3026_v7  ;;  %v367_v31 = vshll.u32 %v3272_v27, 16  ;;  %v371_v39 = vshrl.u32 %v3272_v27, 16  ;;  %v375_v40 = vshll.u32 %v3288_v33, 16  ;;  %v307_v43 = vld [vmem:[%s3230_s12 + $0x24] sm:$0xf]  ;;  %v379_v52 = vshrl.u32 %v3288_v33, 16 }
  0x15   : > { %2695 = vmatpush3.bf16.msra.mxu1 %v3027_v8  ;;  %2660 = vmatprep.subr.bf16.mxu0 %v3143_v1  ;;  %v354_v17 = vshll.u32 %v2259_v14, 16  ;;  %v352_v19 = vshrl.u32 %v2259_v14, 16  ;;  %v361_v26 = vrot.slane %v359_v21, 1  ;;  %v3322_v48 = vcombine.low %v3310_v42, %v307_v43  ;;  %v290_v63 = vld [vmem:[%s3230_s12 + $0x24] sm:$0x7]  ;;  %v3060_v8 = vld [vmem:[%s3230_s12 + $0xc] sm:$0xff]  }
  0x16   : > { %2696 = vmatprep.subr.bf16.mxu1 %v3143_v1  ;;  %v369_v36 = vrot.slane %v367_v31, 1  ;;  %v377_v45 = vrot.slane %v375_v40, 1  ;;  %v645_v0 = vld [vmem:[%s3230_s12] sm:$0xe]  ;;  %v2272_v6 = vcombine.low %v3310_v42, %v290_v63  ;;  %v3059_v7 = vld [vmem:[%s3230_s12 + $0x4] sm:$0xfe]  }
  0x17   : > { %v356_v20 = vrot.slane %v354_v17, 1  ;;  %v365_v35 = vor.u32 %v363_v30, %v361_v26  ;;  %v383_v53 = vshll.u32 %v3322_v48, 16  ;;  %v387_v62 = vshrl.u32 %v3322_v48, 16  ;;  %v3064_v17 = vld [vmem:[%s3801_s1 + $0x140] sm:$0xff]   ;;  %v3066_v21 = vld [vmem:[%s3801_s1 + $0x148] sm:$0xff]   ;;  %v3071_v30 = vld [vmem:[%s3801_s1 + $0x158] sm:$0xff]  }
  0x18   : > { %2661 = vmatpush3.bf16.msra.mxu0 %v3028_v9  ;;  %v373_v47 = vor.u32 %v371_v39, %v369_v36  ;;  %v381_v55 = vor.u32 %v379_v52, %v377_v45  ;;  %v2297_v5 = vcombine.low %v645_v0, %v3242_v12  ;;  %v864_v11 = vrot.slane %v3059_v7, 1  ;;  %v3072_v31 = vld [vmem:[%s3230_s12 + $0x24] sm:$0xff]   ;;  %v3078_v52 = vld [vmem:[%s3801_s1 + $0x138] sm:$0xff]  }
  0x19   : > { %2697 = vmatpush3.bf16.msra.mxu1 %v3029_v10  ;;  %2662 = vmatprep.subr.bf16.mxu0 %v3143_v1  ;;  %v357_v25 = vor.u32 %v356_v20, %v352_v19  ;;  %v370_v41 = vsel %vm350_vm1, %v365_v35, %v369_v36  ;;  %v385_v56 = vrot.slane %v383_v53, 1  ;;  %v668_v10 = vrot.slane %v3249_v15, 1  ;;  %v3073_v35 = vld [vmem:[%s3801_s1 + $0x160] sm:$0xff]   ;;  %v1010_v40 = vld [vmem:[%s3230_s12 + $0x8] sm:$0xf]  ;;  %v3079_v53 = vld [vmem:[%s3801_s1 + $0x178] sm:$0xff]  }
  0x1a   : > { %2698 = vmatprep.subr.bf16.mxu1 %v3143_v1  ;;  %v378_v51 = vsel %vm350_vm1, %v373_v47, %v377_v45  ;;  %v667_v9 = vrot.slane %v2297_v5, 1  ;;  %v865_v12 = vrot.slane %v3060_v8, 1  ;;  %v670_v19 = vrot.slane %v3272_v27, 1  ;;  %v1009_v39 = vld [vmem:[%s3230_s12 + $0x4] sm:$0xe]  ;;  %v3077_v47 = vld [vmem:[%s3801_s1 + $0x170] sm:$0xff]  }
  0x1b   : > { %v362_v29 = vsel %vm350_vm1, %v357_v25, %v361_v26  ;;  %v386_v59 = vsel %vm350_vm1, %v381_v55, %v385_v56  ;;  %v389_v4 = vor.u32 %v387_v62, %v385_v56  ;;  %v3067_v25 = vld [vmem:[%s3230_s12 + $0x1c] sm:$0xff]   ;;  %v3069_v26 = vld [vmem:[%s3801_s1 + $0x150] sm:$0xff]   ;;  %v674_v36 = vrot.slane %v3322_v48, 1 }
  0x1c   : > { %2663 = vmatpush3.bf16.msra.mxu0 %v3030_v13  ;;  %v669_v13 = vsel %vm666_vm2, %v667_v9, %v668_v10  ;;  %v2351_v43 = vcombine.low %v1009_v39, %v1010_v40  ;;  %v3083_v5 = vld [vmem:[%s3801_s1 + $0x180] sm:$0xff]  }
  0x1d   : > { %2699 = vmatpush3.bf16.msra.mxu1 %v3031_v16  ;;  %2664 = vmatprep.subr.bf16.mxu0 %v3143_v1  ;;  %v3063_v16 = vld [vmem:[%s3230_s12 + $0x14] sm:$0xff]   ;;  %v3510_v8 = vld [vmem:[%s3230_s12 + $0x1c] sm:$0xff]  }
  0x1e   : > { %2700 = vmatprep.subr.bf16.mxu1 %v3143_v1  ;;  %v867_v20 = vrot.slane %v3063_v16, 1  ;;  %v1067_v48 = vshrl.u32 %v2351_v43, 16  ;;  %v3088_v16 = vld [vmem:[%s3801_s1 + $0x1c8] sm:$0xff]  }
  0x20   : > { %2665 = vmatpush3.bf16.msra.mxu0 %v3032_v18  ;;  %v3062_v18 = vld [vmem:[%s3801_s1 + $0x108] sm:$0xff]   ;;  %v1069_v55 = vrot.slane %v1067_v48, 1  ;;  %v3595_v48 = vld [vmem:[%s3230_s12 + $0x10] sm:$0xff]  }
  0x21   : > { %2701 = vmatpush3.bf16.msra.mxu1 %v3033_v22  ;;  %2666 = vmatprep.subr.bf16.mxu0 %v3143_v1  ;;  %v671_v22 = vsel %vm666_vm2, %v668_v10, %v670_v19  ;;  %v3086_v10 = vld [vmem:[%s3801_s1 + $0x1c0] sm:$0xff]  }
  0x22   : > { %2702 = vmatprep.subr.bf16.mxu1 %v3143_v1 }
  0x24   : > { %2667 = vmatpush3.bf16.msra.mxu0 %v3034_v23  ;;  %v3065_v23 = vld [vmem:[%s3801_s1 + $0x110] sm:$0xff]  }
  0x25   : > { %2703 = vmatpush3.bf16.msra.mxu1 %v3035_v24  ;;  %2724 = vmatprep.subr.bf16.mxu0 %v3143_v1  ;;  %v868_v24 = vsel %vm666_vm2, %v865_v12, %v867_v20 }
  0x26   : > { %2760 = vmatprep.subr.bf16.mxu1 %v3143_v1 }
  0x27   : > { %2669 = vmatmul.mubr.bf16.vlgmr.msra.gmra.mrb[0].mxu0 %v362_v29  ;;  %v869_v29 = vrot.slane %v3067_v25, 1  ;;  %v3090_v25 = vld [vmem:[%s3801_s1 + $0x198] sm:$0xff]  }
  0x28   : > { %2705 = vmatmul.mubr.bf16.vlgmr.msra.gmra.mrb[0].mxu1 %v2259_v14  ;;  %2725 = vmatpush3.bf16.msra.mxu0 %v3038_v28  ;;  %v3061_v14 = vld [vmem:[%s3801_s1 + $0x100] sm:$0xff]   ;;  %v3068_v28 = vld [vmem:[%s3801_s1 + $0x118] sm:$0xff]  }
  0x29   : > { %2726 = vmatprep.subr.bf16.mxu0 %v3143_v1  ;;  %2672 = vmatprep.mubr.msk.bf16.mxu0 %vm3144_vm0, %v3143_v1 }
  0x2a   : > { %2708 = vmatprep.mubr.msk.bf16.mxu1 %vm3144_vm0, %v3143_v1  ;;  %2761 = vmatpush3.bf16.msra.mxu1 %v3041_v32 }
  0x2b   : > { %2762 = vmatprep.subr.bf16.mxu1 %v3143_v1 }
  0x2c   : > { %2727 = vmatpush3.bf16.msra.mxu0 %v3039_v34  ;;  %v870_v34 = vsel %vm666_vm2, %v867_v20, %v869_v29 }
  0x2d   : > { %2728 = vmatprep.subr.bf16.mxu0 %v3143_v1 }
  0x2e   : > { %2763 = vmatpush3.bf16.msra.mxu1 %v3043_v37  ;;  %v871_v37 = vrot.slane %v3072_v31, 1  ;;  %v3092_v31 = vld [vmem:[%s3801_s1 + $0x1a0] sm:$0xff]  }
  0x2f   : > { %2673 = vmatmul.mubr.bf16.gmra.mrb[4].mxu0 %v370_v41  ;;  %2764 = vmatprep.subr.bf16.mxu1 %v3143_v1  ;;  %v3075_v41 = vld [vmem:[%s3801_s1 + $0x168] sm:$0xff]  }
  0x30   : > { %2709 = vmatmul.mubr.bf16.gmra.mrb[4].mxu1 %v3249_v15  ;;  %2729 = vmatpush3.bf16.msra.mxu0 %v3042_v38  ;;  %v866_v15 = vsel %vm666_vm2, %v864_v11, %v865_v12  ;;  %v3074_v38 = vld [vmem:[%s3801_s1 + $0x128] sm:$0xff]   ;;  %v872_v45 = vsel %vm666_vm2, %v869_v29, %v871_v37  ;;  %v3093_v29 = vld [vmem:[%s3801_s1 + $0x1d8] sm:$0xff]  }
  0x31   : > { %2676 = vmatprep.mubr.msk.bf16.mxu0 %vm3144_vm0, %v3143_v1  ;;  %2712 = vmatprep.mubr.msk.bf16.mxu1 %vm3144_vm0, %v3143_v1  ;;  %v3084_v11 = vld [vmem:[%s3801_s1 + $0x188] sm:$0xff]  }
  0x32   : > { %2730 = vmatprep.subr.bf16.mxu0 %v3143_v1  ;;  %2765 = vmatpush3.bf16.msra.mxu1 %v3046_v44  ;;  %v3467_v44 = vld [vmem:[%s3230_s12 + $0xc] sm:$0xff]  }
  0x33   : > { %2766 = vmatprep.subr.bf16.mxu1 %v3143_v1 }
  0x34   : > { %2731 = vmatpush3.bf16.msra.mxu0 %v3045_v46  ;;  %v3076_v46 = vld [vmem:[%s3801_s1 + $0x130] sm:$0xff]  }
  0x35   : > { %2732 = vmatprep.subr.bf16.mxu0 %v3143_v1 }
  0x36   : > { %2767 = vmatpush3.bf16.msra.mxu1 %v3048_v49  ;;  %v1070_v49 = vshll.u32 %v2351_v43, 16 }
  0x37   : > { %2677 = vmatmul.mubr.bf16.gmra.mrb[8].mxu0 %v378_v51  ;;  %2768 = vmatprep.subr.bf16.mxu1 %v3143_v1  ;;  %v1078_v51 = vshll.u32 %v3467_v44, 16 }
  0x38   : > { %2713 = vmatmul.mubr.bf16.gmra.mrb[8].mxu1 %v3272_v27  ;;  %2733 = vmatpush3.bf16.msra.mxu0 %v3047_v50  ;;  %v672_v27 = vrot.slane %v3288_v33, 1  ;;  %v1075_v50 = vshrl.u32 %v3467_v44, 16  ;;  %v1072_v56 = vrot.slane %v1070_v49, 2  ;;  %v3100_v49 = vld [vmem:[%s3801_s1 + $0x1f0] sm:$0xff]  }
  0x39   : > { %2680 = vmatprep.mubr.msk.bf16.mxu0 %vm3144_vm0, %v3143_v1  ;;  %2716 = vmatprep.mubr.msk.bf16.mxu1 %vm3144_vm0, %v3143_v1 }
  0x3a   : > { %2734 = vmatprep.subr.bf16.mxu0 %v3143_v1  ;;  %2769 = vmatpush3.bf16.msra.mxu1 %v3050_v54  ;;  %v673_v32 = vsel %vm666_vm2, %v670_v19, %v672_v27  ;;  %v675_v42 = vsel %vm666_vm2, %v672_v27, %v674_v36  ;;  %v1251_v54 = vld [vmem:[%s3230_s12 + $0x4] sm:$0xc] }
  0x3b   : > { %2770 = vmatprep.subr.bf16.mxu1 %v3143_v1 }
  0x3c   : > { %2735 = vmatpush3.bf16.msra.mxu0 %v3051_v57  ;;  %v1077_v57 = vrot.slane %v1075_v50, 1 }
  0x3d   : > { %2736 = vmatprep.subr.bf16.mxu0 %v3143_v1 }
  0x3e   : > { %2771 = vmatpush3.bf16.msra.mxu1 %v3052_v58  ;;  %v1080_v58 = vrot.slane %v1078_v51, 2 }
  0x3f   : > { %2681 = vmatmul.mubr.bf16.gmra.mrb[12].mxu0 %v386_v59  ;;  %2772 = vmatprep.subr.bf16.mxu1 %v3143_v1  ;;  %v3494_v59 = vld [vmem:[%s3230_s12 + $0x14] sm:$0xff]  }
  0x40   : > { %2717 = vmatmul.mubr.bf16.gmra.mrb[12].mxu1 %v3288_v33  ;;  %2684 = vmatprep.mubr.msk.bf16.mxu0 %vm3144_vm0, %v3143_v1  ;;  %v3070_v33 = vld [vmem:[%s3801_s1 + $0x120] sm:$0xff]   ;;  %v1081_v62 = vor.u32 %v1080_v58, %v1077_v57  ;;  %v1084_v63 = vshrl.u32 %v3494_v59, 16  ;;  %v1087_v0 = vshll.u32 %v3494_v59, 16  ;;  %v3102_v57 = vld [vmem:[%s3801_s1 + $0x1f8] sm:$0xff]  }
  0x41   : > { %2720 = vmatprep.mubr.msk.bf16.mxu1 %vm3144_vm0, %v3143_v1  ;;  %2737 = vmatpush3.bf16.msra.mxu0 %v3053_v60  ;;  %v2381_v60 = vcombine.low %v1251_v54, %v1010_v40  ;;  %v3097_v40 = vld [vmem:[%s3801_s1 + $0x1e8] sm:$0xff]  }
  0x42   : > { %2773 = vmatpush3.bf16.msra.mxu1 %v3055_v61  ;;  %2738 = vmatprep.subr.bf16.mxu0 %v3143_v1  ;;  %v1073_v61 = vor.u32 %v1072_v56, %v1069_v55  ;;  %v1089_v7 = vrot.slane %v1087_v0, 2  ;;  %v1654_v55 = vshrl.u32 %v3595_v48, 16  ;;  %v1657_v56 = vshll.u32 %v3595_v48, 16  ;;  %v3618_v0 = vld [vmem:[%s3230_s12 + $0x18] sm:$0xff]  }
  0x43   : > { %2774 = vmatprep.subr.bf16.mxu1 %v3143_v1 }
  0x45   : > { %2739 = vmatpush3.bf16.msra.mxu0 %v3056_v2  ;;  %v1273_v2 = vrot.slane %v2381_v60, 2 }
  0x46   : > { %2775 = vmatpush3.bf16.msra.mxu1 %v3057_v3  ;;  %2796 = vmatprep.subr.bf16.mxu0 %v3143_v1  ;;  %v1274_v3 = vrot.slane %v3467_v44, 2 }
  0x47   : > { %2685 = vmatmul.mubr.bf16.gmra.mrb[16].mxu0 %v389_v4  ;;  %2832 = vmatprep.subr.bf16.mxu1 %v3143_v1  ;;  %v1082_v4 = vsel %vm1065_vm3, %v1073_v61, %v1081_v62 }
  0x48   : > { %2721 = vmatmul.mubr.bf16.gmra.mrb[16].mxu1 %v2272_v6  ;;  %2740 = vmatprep.mubr.msk.bf16.mxu0 %vm3144_vm0, %v3143_v1  ;;  %v1086_v6 = vrot.slane %v1084_v63, 1  ;;  %v1275_v9 = vsel %vm1272_vm4, %v1273_v2, %v1274_v3  ;;  %v1659_v63 = vrot.slane %v1657_v56, 3 }
  0x49   : > { %2776 = vmatprep.mubr.msk.bf16.mxu1 %vm3144_vm0, %v3143_v1 }
  0x4a   : > { %v1090_v12 = vor.u32 %v1089_v7, %v1086_v6  ;;  %v1663_v6 = vshrl.u32 %v3618_v0, 16  ;;  %v1666_v7 = vshll.u32 %v3618_v0, 16 }
  0x4f   : > { %2741 = vmatmul.mubr.bf16.vlgmr.msra.gmra.mrb[20].mxu0 %v669_v13  ;;  %v1093_v13 = vshrl.u32 %v3510_v8, 16 }
  0x50   : > { %2777 = vmatmul.mubr.bf16.vlgmr.msra.gmra.mrb[20].mxu1 %v866_v15  ;;  %2797 = vmatpush3.bf16.msra.mxu0 %v3061_v14  ;;  %v1096_v14 = vshll.u32 %v3510_v8, 16  ;;  %v1276_v15 = vrot.slane %v3494_v59, 2 }
  0x51   : > { %2798 = vmatprep.subr.bf16.mxu0 %v3143_v1  ;;  %2744 = vmatprep.mubr.msk.bf16.mxu0 %vm3144_vm0, %v3143_v1  ;;  %v1095_v19 = vrot.slane %v1093_v13, 1  ;;  %v3635_v13 = vld [vmem:[%s3230_s12 + $0x20] sm:$0xff]  }
  0x52   : > { %2780 = vmatprep.mubr.msk.bf16.mxu1 %vm3144_vm0, %v3143_v1  ;;  %2833 = vmatpush3.bf16.msra.mxu1 %v3064_v17  ;;  %v1091_v17 = vsel %vm1065_vm3, %v1081_v62, %v1090_v12  ;;  %v1098_v20 = vrot.slane %v1096_v14, 2  ;;  %v1656_v62 = vrot.slane %v1654_v55, 2  ;;  %v3106_v14 = vld [vmem:[%s3801_s1 + $0x208] sm:$0xff]  }
  0x53   : > { %2834 = vmatprep.subr.bf16.mxu1 %v3143_v1 }
  0x54   : > { %2799 = vmatpush3.bf16.msra.mxu0 %v3062_v18  ;;  %v3087_v18 = vld [vmem:[%s3801_s1 + $0x190] sm:$0xff]  }
  0x55   : > { %2800 = vmatprep.subr.bf16.mxu0 %v3143_v1 }
  0x56   : > { %2835 = vmatpush3.bf16.msra.mxu1 %v3066_v21  ;;  %v3536_v21 = vld [vmem:[%s3230_s12 + $0x24] sm:$0xff]  }
  0x57   : > { %2745 = vmatmul.mubr.bf16.gmra.mrb[24].mxu0 %v671_v22  ;;  %2836 = vmatprep.subr.bf16.mxu1 %v3143_v1  ;;  %v1277_v22 = vsel %vm1272_vm4, %v1274_v3, %v1276_v15  ;;  %v1105_v27 = vshll.u32 %v3536_v21, 16  ;;  %v1280_v39 = vrot.slane %v3536_v21, 2  ;;  %v1477_v3 = vrot.slane %v3595_v48, 2 }
  0x58   : > { %2781 = vmatmul.mubr.bf16.gmra.mrb[24].mxu1 %v868_v24  ;;  %2801 = vmatpush3.bf16.msra.mxu0 %v3065_v23  ;;  %v3091_v23 = vld [vmem:[%s3801_s1 + $0x1d0] sm:$0xff]   ;;  %v1099_v24 = vor.u32 %v1098_v20, %v1095_v19 }
  0x59   : > { %2748 = vmatprep.mubr.msk.bf16.mxu0 %vm3144_vm0, %v3143_v1  ;;  %2784 = vmatprep.mubr.msk.bf16.mxu1 %vm3144_vm0, %v3143_v1  ;;  %v3108_v20 = vld [vmem:[%s3801_s1 + $0x210] sm:$0xff]  }
  0x5a   : > { %2802 = vmatprep.subr.bf16.mxu0 %v3143_v1  ;;  %2837 = vmatpush3.bf16.msra.mxu1 %v3069_v26  ;;  %v1102_v26 = vshrl.u32 %v3536_v21, 16 }
  0x5b   : > { %2838 = vmatprep.subr.bf16.mxu1 %v3143_v1 }
  0x5c   : > { %2803 = vmatpush3.bf16.msra.mxu0 %v3068_v28  ;;  %v1278_v28 = vrot.slane %v3510_v8, 2 }
  0x5d   : > { %2804 = vmatprep.subr.bf16.mxu0 %v3143_v1 }
  0x5e   : > { %2839 = vmatpush3.bf16.msra.mxu1 %v3071_v30  ;;  %v1100_v30 = vsel %vm1065_vm3, %v1090_v12, %v1099_v24  ;;  %v1668_v12 = vrot.slane %v1666_v7, 3 }
  0x5f   : > { %2749 = vmatmul.mubr.bf16.gmra.mrb[28].mxu0 %v673_v32  ;;  %2840 = vmatprep.subr.bf16.mxu1 %v3143_v1  ;;  %v1104_v32 = vrot.slane %v1102_v26, 1  ;;  %v3110_v26 = vld [vmem:[%s3801_s1 + $0x218] sm:$0xff]  }
  0x60   : > { %2785 = vmatmul.mubr.bf16.gmra.mrb[28].mxu1 %v870_v34  ;;  %2805 = vmatpush3.bf16.msra.mxu0 %v3070_v33  ;;  %v1107_v33 = vrot.slane %v1105_v27, 2  ;;  %v1279_v34 = vsel %vm1272_vm4, %v1276_v15, %v1278_v28  ;;  %v1479_v15 = vrot.slane %v3618_v0, 2 }
  0x61   : > { %2752 = vmatprep.mubr.msk.bf16.mxu0 %vm3144_vm0, %v3143_v1  ;;  %2788 = vmatprep.mubr.msk.bf16.mxu1 %vm3144_vm0, %v3143_v1 }
  0x62   : > { %2806 = vmatprep.subr.bf16.mxu0 %v3143_v1  ;;  %2841 = vmatpush3.bf16.msra.mxu1 %v3073_v35  ;;  %v3095_v35 = vld [vmem:[%s3801_s1 + $0x1e0] sm:$0xff]   ;;  %v1480_v19 = vsel %vm1272_vm4, %v1477_v3, %v1479_v15 }
  0x63   : > { %2842 = vmatprep.subr.bf16.mxu1 %v3143_v1 }
  0x64   : > { %2807 = vmatpush3.bf16.msra.mxu0 %v3074_v38  ;;  %v3099_v38 = vld [vmem:[%s3230_s12 + $0x2c] ss:$0 sps:$4 sm:$0x11]  }
  0x65   : > { %2808 = vmatprep.subr.bf16.mxu0 %v3143_v1  ;;  %v1111_v44 = vshll.u32 %v3099_v38, 16  ;;  %v1282_v51 = vrot.slane %v3099_v38, 2 }
  0x66   : > { %2843 = vmatpush3.bf16.msra.mxu1 %v3075_v41  ;;  %v1420_v41 = vld [vmem:[%s3230_s12 + $0x8] sm:$0xc] }
  0x67   : > { %2753 = vmatmul.mubr.bf16.gmra.mrb[32].mxu0 %v675_v42  ;;  %2844 = vmatprep.subr.bf16.mxu1 %v3143_v1  ;;  %v3584_v42 = vld [vmem:[%s3230_s12 + $0xc] sm:$0xf]  ;;  %v1113_v50 = vrot.slane %v1111_v44, 2  ;;  %v1283_v59 = vsel %vm1272_vm4, %v1280_v39, %v1282_v51  ;;  %v3117_v51 = vld [vmem:[%s3801_s1 + $0x238] sm:$0xff]  }
  0x68   : > { %2789 = vmatmul.mubr.bf16.gmra.mrb[32].mxu1 %v872_v45  ;;  %2756 = vmatprep.mubr.msk.bf16.mxu0 %vm3144_vm0, %v3143_v1  ;;  %v1281_v45 = vsel %vm1272_vm4, %v1278_v28, %v1280_v39 }
  0x69   : > { %2792 = vmatprep.mubr.msk.bf16.mxu1 %vm3144_vm0, %v3143_v1  ;;  %2809 = vmatpush3.bf16.msra.mxu0 %v3076_v46  ;;  %v3098_v46 = vld [vmem:[%s3801_s1 + $0x1b0] sm:$0xff]  }
  0x6a   : > { %2845 = vmatpush3.bf16.msra.mxu1 %v3077_v47  ;;  %2810 = vmatprep.subr.bf16.mxu0 %v3143_v1  ;;  %v2406_v47 = vcombine.low %v1420_v41, %v3584_v42 }
  0x6b   : > { %2846 = vmatprep.subr.bf16.mxu1 %v3143_v1 }
  0x6c   : > { %v1649_v54 = vshll.u32 %v2406_v47, 16  ;;  %v1476_v2 = vrot.slane %v2406_v47, 2 }
  0x6d   : > { %2811 = vmatpush3.bf16.msra.mxu0 %v3078_v52  ;;  %v3101_v52 = vld [vmem:[%s3801_s1 + $0x1b8] sm:$0xff]  }
  0x6e   : > { %2847 = vmatpush3.bf16.msra.mxu1 %v3079_v53  ;;  %2868 = vmatprep.subr.bf16.mxu0 %v3143_v1  ;;  %v1646_v53 = vshrl.u32 %v2406_v47, 16  ;;  %v1651_v61 = vrot.slane %v1649_v54, 3  ;;  %v1478_v8 = vsel %vm1272_vm4, %v1476_v2, %v1477_v3 }
  0x6f   : > { %2757 = vmatmul.mubr.bf16.gmra.mrb[36].mxu0 %v674_v36  ;;  %2904 = vmatprep.subr.bf16.mxu1 %v3143_v1  ;;  %v1108_v36 = vor.u32 %v1107_v33, %v1104_v32 }
  0x70   : > { %2793 = vmatmul.mubr.bf16.gmra.mrb[36].mxu1 %v871_v37  ;;  %2812 = vmatprep.mubr.msk.bf16.mxu0 %vm3144_vm0, %v3143_v1  ;;  %v3096_v37 = vld [vmem:[%s3801_s1 + $0x1a8] sm:$0xff]   ;;  %v1648_v60 = vrot.slane %v1646_v53, 2 }
  0x71   : > { %2848 = vmatprep.mubr.msk.bf16.mxu1 %vm3144_vm0, %v3143_v1  ;;  %v1109_v43 = vsel %vm1065_vm3, %v1099_v24, %v1108_v36  ;;  %v1114_v58 = vsel %vm1065_vm3, %v1108_v36, %v1113_v50  ;;  %v3656_v24 = vld [vmem:[%s3230_s12 + $0x28] sm:$0xff]  }
  0x72   : > { %v1681_v28 = vshrl.u32 %v3656_v24, 16  ;;  %v1483_v36 = vrot.slane %v3656_v24, 2 }
  0x74   : > { %v1683_v33 = vrot.slane %v1681_v28, 2 }
  0x77   : > { %2813 = vmatmul.mubr.bf16.vlgmr.msra.gmra.mrb[40].mxu0 %v1082_v4  ;;  %v1652_v4 = vor.u32 %v1651_v61, %v1648_v60  ;;  %v1859_v61 = vrot.slane %v3618_v0, 3 }
  0x78   : > { %2849 = vmatmul.mubr.bf16.vlgmr.msra.gmra.mrb[40].mxu1 %v1275_v9  ;;  %2869 = vmatpush3.bf16.msra.mxu0 %v3083_v5  ;;  %v1660_v5 = vor.u32 %v1659_v63, %v1656_v62  ;;  %v3105_v9 = vld [vmem:[%s3801_s1 + $0x200] sm:$0xff]  }
  0x79   : > { %2870 = vmatprep.subr.bf16.mxu0 %v3143_v1  ;;  %2816 = vmatprep.mubr.msk.bf16.mxu0 %vm3144_vm0, %v3143_v1 }
  0x7a   : > { %2852 = vmatprep.mubr.msk.bf16.mxu1 %vm3144_vm0, %v3143_v1  ;;  %2905 = vmatpush3.bf16.msra.mxu1 %v3086_v10  ;;  %v1661_v10 = vsel %vm1644_vm5, %v1652_v4, %v1660_v5 }
  0x7b   : > { %2906 = vmatprep.subr.bf16.mxu1 %v3143_v1 }
  0x7c   : > { %2871 = vmatpush3.bf16.msra.mxu0 %v3084_v11  ;;  %v1665_v11 = vrot.slane %v1663_v6, 2 }
  0x7d   : > { %2872 = vmatprep.subr.bf16.mxu0 %v3143_v1 }
  0x7e   : > { %2907 = vmatpush3.bf16.msra.mxu1 %v3088_v16  ;;  %v1669_v16 = vor.u32 %v1668_v12, %v1665_v11 }
  0x7f   : > { %2817 = vmatmul.mubr.bf16.gmra.mrb[44].mxu0 %v1091_v17  ;;  %2908 = vmatprep.subr.bf16.mxu1 %v3143_v1  ;;  %v1672_v17 = vshrl.u32 %v3635_v13, 16 }
  0x80   : > { %2853 = vmatmul.mubr.bf16.gmra.mrb[44].mxu1 %v1277_v22  ;;  %2873 = vmatpush3.bf16.msra.mxu0 %v3087_v18  ;;  %v1675_v18 = vshll.u32 %v3635_v13, 16  ;;  %v1670_v21 = vsel %vm1644_vm5, %v1660_v5, %v1669_v16 }
  0x81   : > { %2820 = vmatprep.mubr.msk.bf16.mxu0 %vm3144_vm0, %v3143_v1  ;;  %2856 = vmatprep.mubr.msk.bf16.mxu1 %vm3144_vm0, %v3143_v1  ;;  %v1674_v22 = vrot.slane %v1672_v17, 2 }
  0x82   : > { %2874 = vmatprep.subr.bf16.mxu0 %v3143_v1  ;;  %2909 = vmatpush3.bf16.msra.mxu1 %v3091_v23  ;;  %v1677_v23 = vrot.slane %v1675_v18, 3 }
  0x83   : > { %2910 = vmatprep.subr.bf16.mxu1 %v3143_v1 }
  0x84   : > { %2875 = vmatpush3.bf16.msra.mxu0 %v3090_v25  ;;  %v1481_v25 = vrot.slane %v3635_v13, 2  ;;  %v1678_v27 = vor.u32 %v1677_v23, %v1674_v22 }
  0x85   : > { %2876 = vmatprep.subr.bf16.mxu0 %v3143_v1 }
  0x86   : > { %2911 = vmatpush3.bf16.msra.mxu1 %v3093_v29  ;;  %v1684_v29 = vshll.u32 %v3656_v24, 16  ;;  %v1679_v32 = vsel %vm1644_vm5, %v1669_v16, %v1678_v27  ;;  %v1484_v41 = vsel %vm1272_vm4, %v1481_v25, %v1483_v36 }
  0x87   : > { %2821 = vmatmul.mubr.bf16.gmra.mrb[48].mxu0 %v1100_v30  ;;  %2912 = vmatprep.subr.bf16.mxu1 %v3143_v1  ;;  %v1482_v30 = vsel %vm1272_vm4, %v1479_v15, %v1481_v25 }
  0x88   : > { %2857 = vmatmul.mubr.bf16.gmra.mrb[48].mxu1 %v1279_v34  ;;  %2877 = vmatpush3.bf16.msra.mxu0 %v3092_v31  ;;  %v3111_v31 = vld [vmem:[%s3801_s1 + $0x220] sm:$0xff]   ;;  %v1686_v34 = vrot.slane %v1684_v29, 3 }
  0x89   : > { %2824 = vmatprep.mubr.msk.bf16.mxu0 %vm3144_vm0, %v3143_v1  ;;  %2860 = vmatprep.mubr.msk.bf16.mxu1 %vm3144_vm0, %v3143_v1 }
  0x8a   : > { %2878 = vmatprep.subr.bf16.mxu0 %v3143_v1  ;;  %2913 = vmatpush3.bf16.msra.mxu1 %v3095_v35  ;;  %v3678_v35 = vld [vmem:[%s3230_s12 + $0x30] ss:$0 sps:$4 sm:$0x33]   ;;  %v1687_v38 = vor.u32 %v1686_v34, %v1683_v33 }
  0x8b   : > { %2914 = vmatprep.subr.bf16.mxu1 %v3143_v1  ;;  %v1690_v39 = vshrl.u32 %v3678_v35, 16 }
  0x8c   : > { %2879 = vmatpush3.bf16.msra.mxu0 %v3096_v37  ;;  %v3113_v37 = vld [vmem:[%s3801_s1 + $0x228] sm:$0xff]   ;;  %v1688_v44 = vsel %vm1644_vm5, %v1678_v27, %v1687_v38 }
  0x8d   : > { %2880 = vmatprep.subr.bf16.mxu0 %v3143_v1 }
  0x8e   : > { %2915 = vmatpush3.bf16.msra.mxu1 %v3097_v40  ;;  %v1693_v40 = vshll.u32 %v3678_v35, 16 }
  0x8f   : > { %2825 = vmatmul.mubr.bf16.gmra.mrb[52].mxu0 %v1109_v43  ;;  %2916 = vmatprep.subr.bf16.mxu1 %v3143_v1  ;;  %v3115_v43 = vld [vmem:[%s3230_s12 + $0x30] ss:$0 sps:$4 sm:$0x11]  }
  0x90   : > { %2861 = vmatmul.mubr.bf16.gmra.mrb[52].mxu1 %v1281_v45  ;;  %2828 = vmatprep.mubr.msk.bf16.mxu0 %vm3144_vm0, %v3143_v1  ;;  %v3114_v45 = vld [vmem:[%s3801_s1 + $0x230] sm:$0xff]   ;;  %v1695_v47 = vrot.slane %v1693_v40, 3 }
  0x91   : > { %2864 = vmatprep.mubr.msk.bf16.mxu1 %vm3144_vm0, %v3143_v1  ;;  %2881 = vmatpush3.bf16.msra.mxu0 %v3098_v46  ;;  %v1692_v46 = vrot.slane %v1690_v39, 2 }
  0x92   : > { %2917 = vmatpush3.bf16.msra.mxu1 %v3100_v49  ;;  %2882 = vmatprep.subr.bf16.mxu0 %v3143_v1  ;;  %v1485_v49 = vrot.slane %v3115_v43, 2 }
  0x93   : > { %2918 = vmatprep.subr.bf16.mxu1 %v3143_v1  ;;  %v1696_v50 = vor.u32 %v1695_v47, %v1692_v46 }
  0x94   : > { %v1486_v53 = vsel %vm1272_vm4, %v1483_v36, %v1485_v49 }
  0x95   : > { %2883 = vmatpush3.bf16.msra.mxu0 %v3101_v52  ;;  %v1834_v52 = vld [vmem:[%s3230_s12 + $0x8] sm:$0x8]  ;;  %v1697_v55 = vsel %vm1644_vm5, %v1687_v38, %v1696_v50  ;;  %s2993_s12 = smul.u32 40, %s3810_s15 }
  0x96   : > { %2919 = vmatpush3.bf16.msra.mxu1 %v3102_v57  ;;  %2940 = vmatprep.subr.bf16.mxu0 %v3143_v1  ;;  %v2461_v54 = vcombine.low %v1834_v52, %v3584_v42  ;;  %v1857_v57 = vrot.slane %v3595_v48, 3  ;;  %v1863_v42 = vrot.slane %v3656_v24, 3  ;;  %v1865_v48 = vrot.slane %v3678_v35, 3 }
  0x97   : > { %2829 = vmatmul.mubr.bf16.gmra.mrb[56].mxu0 %v1114_v58  ;;  %2976 = vmatprep.subr.bf16.mxu1 %v3143_v1  ;;  %v1861_v58 = vrot.slane %v3635_v13, 3  ;;  %s3750_s21 = scalar_lea.vmem %s3803_s3, %s2993_s12  ;;  %s3773_s26 = scalar_lea.vmem %s3804_s4, %s2993_s12 }
  0x98   : > { %2865 = vmatmul.mubr.bf16.gmra.mrb[56].mxu1 %v1283_v59  ;;  %2884 = vmatprep.mubr.msk.bf16.mxu0 %vm3144_vm0, %v3143_v1  ;;  %v1856_v56 = vrot.slane %v2461_v54, 3  ;;  %v1860_v62 = vsel %vm1855_vm6, %v1857_v57, %v1859_v61  ;;  %v1866_v63 = vsel %vm1855_vm6, %v1863_v42, %v1865_v48 }
  0x99   : > { %2920 = vmatprep.mubr.msk.bf16.mxu1 %vm3144_vm0, %v3143_v1  ;;  %v1864_v60 = vsel %vm1855_vm6, %v1861_v58, %v1863_v42  ;;  %v1862_v2 = vsel %vm1855_vm6, %v1859_v61, %v1861_v58 }
  0x9a   : > { %v1858_v59 = vsel %vm1855_vm6, %v1856_v56, %v1857_v57 }
  0x9f   : > { %2885 = vmatmul.mubr.bf16.vlgmr.msra.gmra.mrb[60].mxu0 %v1478_v8 }
  0xa0   : > { %2921 = vmatmul.mubr.bf16.vlgmr.msra.gmra.mrb[60].mxu1 %v1661_v10  ;;  %2941 = vmatpush3.bf16.msra.mxu0 %v3105_v9 }
  0xa1   : > { %2942 = vmatprep.subr.bf16.mxu0 %v3143_v1  ;;  %2888 = vmatprep.mubr.msk.bf16.mxu0 %vm3144_vm0, %v3143_v1 }
  0xa2   : > { %2924 = vmatprep.mubr.msk.bf16.mxu1 %vm3144_vm0, %v3143_v1  ;;  %2984 = vmatpush3.bf16.msra.mxu1 %v3105_v9 }
  0xa3   : > { %2977 = vmatprep.subr.bf16.mxu1 %v3143_v1 }
  0xa4   : > { %2943 = vmatpush3.bf16.msra.mxu0 %v3106_v14 }
  0xa5   : > { %2944 = vmatprep.subr.bf16.mxu0 %v3143_v1 }
  0xa6   : > { %2985 = vmatpush3.bf16.msra.mxu1 %v3106_v14 }
  0xa7   : > { %2889 = vmatmul.mubr.bf16.gmra.mrb[64].mxu0 %v1480_v19  ;;  %2978 = vmatprep.subr.bf16.mxu1 %v3143_v1 }
  0xa8   : > { %2925 = vmatmul.mubr.bf16.gmra.mrb[64].mxu1 %v1670_v21  ;;  %2945 = vmatpush3.bf16.msra.mxu0 %v3108_v20 }
  0xa9   : > { %2892 = vmatprep.mubr.msk.bf16.mxu0 %vm3144_vm0, %v3143_v1  ;;  %2928 = vmatprep.mubr.msk.bf16.mxu1 %vm3144_vm0, %v3143_v1 }
  0xaa   : > { %2946 = vmatprep.subr.bf16.mxu0 %v3143_v1  ;;  %2986 = vmatpush3.bf16.msra.mxu1 %v3108_v20 }
  0xab   : > { %2979 = vmatprep.subr.bf16.mxu1 %v3143_v1 }
  0xac   : > { %2947 = vmatpush3.bf16.msra.mxu0 %v3110_v26 }
  0xad   : > { %2948 = vmatprep.subr.bf16.mxu0 %v3143_v1 }
  0xae   : > { %2987 = vmatpush3.bf16.msra.mxu1 %v3110_v26 }
  0xaf   : > { %2893 = vmatmul.mubr.bf16.gmra.mrb[68].mxu0 %v1482_v30  ;;  %2980 = vmatprep.subr.bf16.mxu1 %v3143_v1 }
  0xb0   : > { %2929 = vmatmul.mubr.bf16.gmra.mrb[68].mxu1 %v1679_v32  ;;  %2949 = vmatpush3.bf16.msra.mxu0 %v3111_v31 }
  0xb1   : > { %2896 = vmatprep.mubr.msk.bf16.mxu0 %vm3144_vm0, %v3143_v1  ;;  %2932 = vmatprep.mubr.msk.bf16.mxu1 %vm3144_vm0, %v3143_v1 }
  0xb2   : > { %2988 = vmatpush3.bf16.msra.mxu1 %v3111_v31  ;;  %2950 = vmatprep.subr.bf16.mxu0 %v3143_v1 }
  0xb3   : > { %2981 = vmatprep.subr.bf16.mxu1 %v3143_v1 }
  0xb4   : > { %2951 = vmatpush3.bf16.msra.mxu0 %v3113_v37 }
  0xb5   : > { %2952 = vmatprep.subr.bf16.mxu0 %v3143_v1 }
  0xb6   : > { %2989 = vmatpush3.bf16.msra.mxu1 %v3113_v37 }
  0xb7   : > { %2897 = vmatmul.mubr.bf16.gmra.mrb[72].mxu0 %v1484_v41  ;;  %2982 = vmatprep.subr.bf16.mxu1 %v3143_v1 }
  0xb8   : > { %2933 = vmatmul.mubr.bf16.gmra.mrb[72].mxu1 %v1688_v44  ;;  %2900 = vmatprep.mubr.msk.bf16.mxu0 %vm3144_vm0, %v3143_v1 }
  0xb9   : > { %2936 = vmatprep.mubr.msk.bf16.mxu1 %vm3144_vm0, %v3143_v1  ;;  %2953 = vmatpush3.bf16.msra.mxu0 %v3114_v45 }
  0xba   : > { %2990 = vmatpush3.bf16.msra.mxu1 %v3114_v45  ;;  %2954 = vmatprep.subr.bf16.mxu0 %v3143_v1 }
  0xbb   : > { %2983 = vmatprep.subr.bf16.mxu1 %v3143_v1 }
  0xbd   : > { %2955 = vmatpush3.bf16.msra.mxu0 %v3117_v51 }
  0xbe   : > { %2991 = vmatpush3.bf16.msra.mxu1 %v3117_v51 }
  0xbf   : > { %2901 = vmatmul.mubr.bf16.gmra.mrb[76].mxu0 %v1486_v53 }
  0xc0   : > { %2937 = vmatmul.mubr.bf16.gmra.mrb[76].mxu1 %v1697_v55  ;;  %2956 = vmatprep.mubr.msk.bf16.mxu0 %vm3144_vm0, %v3143_v1 }
  0xc1   : > { %2968 = vmatprep.mubr.msk.bf16.mxu1 %vm3144_vm0, %v3143_v1 }
  0xc7   : > { %2957 = vmatmul.mubr.bf16.vlgmr.msra.gmra.mrb[80].mxu0 %v1858_v59 }
  0xc8   : > { %2969 = vmatmul.mubr.bf16.vlgmr.msra.gmra.mrb[80].mxu1 %v1864_v60  ;;  %2960 = vmatprep.mubr.msk.bf16.mxu0 %vm3144_vm0, %v3143_v1 }
  0xc9   : > { %2972 = vmatprep.mubr.msk.bf16.mxu1 %vm3144_vm0, %v3143_v1 }
  0xcf   : > { %2961 = vmatmul.mubr.bf16.gmra.mrb[84].mxu0 %v1860_v62 }
  0xd0   : > { %2973 = vmatmul.mubr.bf16.gmra.mrb[84].mxu1 %v1866_v63  ;;  %2964 = vmatprep.mubr.msk.bf16.mxu0 %vm3144_vm0, %v3143_v1 }
  0xd7   : > { %2965 = vmatmul.mubr.bf16.gmra.mrb[88].mxu0 %v1862_v2 }
  0xfa   : > { %v477_v3 = vpop.f32.mrb[0].mxu0 }
  0xfb   : > { %v606_v4 = vpop.f32.mrb[0].mxu1  ;;  %v2670_v0 = vpop.f32.mrb[1].mxu0 }
  0xfc   : > { %v607_v5 = vadd.f32 %v606_v4, %v477_v3  ;;  %v2706_v6 = vpop.f32.mrb[1].mxu1  ;;  %v480_v7 = vpop.f32.mrb[2].mxu0 }
  0xfd   : > { %v609_v8 = vpop.f32.mrb[2].mxu1  ;;  %v2671_v9 = vpop.f32.mrb[3].mxu0 }
  0xfe   : > { %v610_v10 = vadd.f32 %v609_v8, %v480_v7  ;;  %v2707_v11 = vpop.f32.mrb[3].mxu1 }
 0x102   : > { %v485_v12 = vpop.f32.mrb[4].mxu0 }
 0x103   : > { %v614_v13 = vpop.f32.mrb[4].mxu1  ;;  %v2674_v14 = vpop.f32.mrb[5].mxu0 }
 0x104   : > { %v615_v15 = vadd.f32 %v614_v13, %v485_v12  ;;  %v2710_v16 = vpop.f32.mrb[5].mxu1  ;;  %v488_v17 = vpop.f32.mrb[6].mxu0 }
 0x105   : > { %v617_v1 = vpop.f32.mrb[6].mxu1  ;;  %v2675_v18 = vpop.f32.mrb[7].mxu0 }
 0x106   : > { %v618_v19 = vadd.f32 %v617_v1, %v488_v17  ;;  %v2711_v20 = vpop.f32.mrb[7].mxu1 }
 0x10a   : > { %v493_v21 = vpop.f32.mrb[8].mxu0 }
 0x10b   : > { %v622_v22 = vpop.f32.mrb[8].mxu1  ;;  %v2678_v23 = vpop.f32.mrb[9].mxu0 }
 0x10c   : > { %v623_v24 = vadd.f32 %v622_v22, %v493_v21  ;;  %v2714_v25 = vpop.f32.mrb[9].mxu1  ;;  %v496_v26 = vpop.f32.mrb[10].mxu0 }
 0x10d   : > { %v625_v27 = vpop.f32.mrb[10].mxu1  ;;  %v2679_v28 = vpop.f32.mrb[11].mxu0 }
 0x10e   : > { %v626_v29 = vadd.f32 %v625_v27, %v496_v26  ;;  %v2715_v30 = vpop.f32.mrb[11].mxu1 }
 0x112   : > { %v501_v31 = vpop.f32.mrb[12].mxu0 }
 0x113   : > { %v630_v32 = vpop.f32.mrb[12].mxu1  ;;  %v2682_v33 = vpop.f32.mrb[13].mxu0 }
 0x114   : > { %v631_v34 = vadd.f32 %v630_v32, %v501_v31  ;;  %v2718_v35 = vpop.f32.mrb[13].mxu1  ;;  %v504_v36 = vpop.f32.mrb[14].mxu0 }
 0x115   : > { %v633_v37 = vpop.f32.mrb[14].mxu1  ;;  %v2683_v38 = vpop.f32.mrb[15].mxu0 }
 0x116   : > { %v634_v39 = vadd.f32 %v633_v37, %v504_v36  ;;  %v2719_v40 = vpop.f32.mrb[15].mxu1 }
 0x11a   : > { %v509_v41 = vpop.f32.mrb[16].mxu0 }
 0x11b   : > { %v638_v43 = vpop.f32.mrb[16].mxu1  ;;  %v2686_v44 = vpop.f32.mrb[17].mxu0 }
 0x11c   : > { %v639_v45 = vadd.f32 %v638_v43, %v509_v41  ;;  %v2722_v46 = vpop.f32.mrb[17].mxu1  ;;  %v512_v47 = vpop.f32.mrb[18].mxu0 }
 0x11d   : > { %v641_v49 = vpop.f32.mrb[18].mxu1  ;;  %v2687_v50 = vpop.f32.mrb[19].mxu0 }
 0x11e   : > { %v642_v51 = vadd.f32 %v641_v49, %v512_v47  ;;  %v2723_v52 = vpop.f32.mrb[19].mxu1 }
 0x122   : > { %v763_v53 = vpop.f32.mrb[20].mxu0 }
 0x123   : > { %v802_v54 = vadd.f32 %v763_v53, %v607_v5  ;;  %v2742_v55 = vpop.f32.mrb[21].mxu0  ;;  %v960_v56 = vpop.f32.mrb[20].mxu1 }
 0x124   : > { %v766_v57 = vpop.f32.mrb[22].mxu0  ;;  %v2778_v58 = vpop.f32.mrb[21].mxu1 }
 0x125   : > { %v803_v42 = vadd.f32 %v766_v57, %v610_v10  ;;  %v999_v59 = vadd.f32 %v960_v56, %v802_v54  ;;  %v2743_v60 = vpop.f32.mrb[23].mxu0  ;;  %v963_v61 = vpop.f32.mrb[22].mxu1 }
 0x126   : > { %v2779_v48 = vpop.f32.mrb[23].mxu1 }
 0x127   : > { %v1000_v62 = vadd.f32 %v963_v61, %v803_v42 }
 0x12a   : > { %v771_v63 = vpop.f32.mrb[24].mxu0 }
 0x12b   : > { %v804_v2 = vadd.f32 %v771_v63, %v615_v15  ;;  %v2746_v3 = vpop.f32.mrb[25].mxu0  ;;  %v968_v4 = vpop.f32.mrb[24].mxu1 }
 0x12c   : > { %v774_v0 = vpop.f32.mrb[26].mxu0  ;;  %v2782_v6 = vpop.f32.mrb[25].mxu1 }
 0x12d   : > { %v805_v7 = vadd.f32 %v774_v0, %v618_v19  ;;  %v1001_v8 = vadd.f32 %v968_v4, %v804_v2  ;;  %v2747_v9 = vpop.f32.mrb[27].mxu0  ;;  %v971_v5 = vpop.f32.mrb[26].mxu1 }
 0x12e   : > { %v2783_v11 = vpop.f32.mrb[27].mxu1 }
 0x12f   : > { %v1002_v12 = vadd.f32 %v971_v5, %v805_v7 }
 0x132   : > { %v779_v13 = vpop.f32.mrb[28].mxu0 }
 0x133   : > { %v806_v14 = vadd.f32 %v779_v13, %v623_v24  ;;  %v2750_v10 = vpop.f32.mrb[29].mxu0  ;;  %v976_v16 = vpop.f32.mrb[28].mxu1 }
 0x134   : > { %v782_v17 = vpop.f32.mrb[30].mxu0  ;;  %v2786_v1 = vpop.f32.mrb[29].mxu1 }
 0x135   : > { %v807_v18 = vadd.f32 %v782_v17, %v626_v29  ;;  %v1003_v20 = vadd.f32 %v976_v16, %v806_v14  ;;  %v2751_v21 = vpop.f32.mrb[31].mxu0  ;;  %v979_v15 = vpop.f32.mrb[30].mxu1 }
 0x136   : > { %v2787_v22 = vpop.f32.mrb[31].mxu1 }
 0x137   : > { %v1004_v23 = vadd.f32 %v979_v15, %v807_v18 }
 0x13a   : > { %v787_v25 = vpop.f32.mrb[32].mxu0 }
 0x13b   : > { %v808_v26 = vadd.f32 %v787_v25, %v631_v34  ;;  %v2754_v19 = vpop.f32.mrb[33].mxu0  ;;  %v984_v27 = vpop.f32.mrb[32].mxu1 }
 0x13c   : > { %v790_v28 = vpop.f32.mrb[34].mxu0  ;;  %v2790_v30 = vpop.f32.mrb[33].mxu1 }
 0x13d   : > { %v809_v31 = vadd.f32 %v790_v28, %v634_v39  ;;  %v1005_v32 = vadd.f32 %v984_v27, %v808_v26  ;;  %v2755_v33 = vpop.f32.mrb[35].mxu0  ;;  %v987_v24 = vpop.f32.mrb[34].mxu1 }
 0x13e   : > { %v2791_v35 = vpop.f32.mrb[35].mxu1 }
 0x13f   : > { %v1006_v36 = vadd.f32 %v987_v24, %v809_v31 }
 0x142   : > { %v795_v37 = vpop.f32.mrb[36].mxu0 }
 0x143   : > { %v810_v38 = vadd.f32 %v795_v37, %v639_v45  ;;  %v2758_v29 = vpop.f32.mrb[37].mxu0  ;;  %v992_v40 = vpop.f32.mrb[36].mxu1 }
 0x144   : > { %v798_v41 = vpop.f32.mrb[38].mxu0  ;;  %v2794_v43 = vpop.f32.mrb[37].mxu1 }
 0x145   : > { %v811_v44 = vadd.f32 %v798_v41, %v642_v51  ;;  %v1007_v46 = vadd.f32 %v992_v40, %v810_v38  ;;  %v2759_v47 = vpop.f32.mrb[39].mxu0  ;;  %v995_v34 = vpop.f32.mrb[38].mxu1 }
 0x146   : > { %v2795_v49 = vpop.f32.mrb[39].mxu1 }
 0x147   : > { %v1008_v50 = vadd.f32 %v995_v34, %v811_v44 }
 0x14a   : > { %v1202_v52 = vpop.f32.mrb[40].mxu0 }
 0x14b   : > { %v1241_v53 = vadd.f32 %v1202_v52, %v999_v59  ;;  %v2814_v39 = vpop.f32.mrb[41].mxu0  ;;  %v1371_v54 = vpop.f32.mrb[40].mxu1 }
 0x14c   : > { %v1205_v55 = vpop.f32.mrb[42].mxu0  ;;  %v2850_v56 = vpop.f32.mrb[41].mxu1 }
 0x14d   : > { %v1242_v57 = vadd.f32 %v1205_v55, %v1000_v62  ;;  %v1410_v58 = vadd.f32 %v1371_v54, %v1241_v53  ;;  %v2815_v42 = vpop.f32.mrb[43].mxu0  ;;  %v1374_v45 = vpop.f32.mrb[42].mxu1 }
 0x14e   : > { %v2851_v60 = vpop.f32.mrb[43].mxu1 }
 0x14f   : > { %v1411_v61 = vadd.f32 %v1374_v45, %v1242_v57 }
 0x152   : > { %v1210_v48 = vpop.f32.mrb[44].mxu0 }
 0x153   : > { %v1243_v63 = vadd.f32 %v1210_v48, %v1001_v8  ;;  %v2818_v51 = vpop.f32.mrb[45].mxu0  ;;  %v1379_v2 = vpop.f32.mrb[44].mxu1 }
 0x154   : > { %v1213_v3 = vpop.f32.mrb[46].mxu0  ;;  %v2854_v4 = vpop.f32.mrb[45].mxu1 }
 0x155   : > { %v1244_v0 = vadd.f32 %v1213_v3, %v1002_v12  ;;  %v1412_v6 = vadd.f32 %v1379_v2, %v1243_v63  ;;  %v2819_v7 = vpop.f32.mrb[47].mxu0  ;;  %v1382_v59 = vpop.f32.mrb[46].mxu1 }
 0x156   : > { %v2855_v9 = vpop.f32.mrb[47].mxu1 }
 0x157   : > { %v1413_v5 = vadd.f32 %v1382_v59, %v1244_v0 }
 0x15a   : > { %v1218_v11 = vpop.f32.mrb[48].mxu0 }
 0x15b   : > { %v1245_v13 = vadd.f32 %v1218_v11, %v1003_v20  ;;  %v2822_v62 = vpop.f32.mrb[49].mxu0  ;;  %v1387_v14 = vpop.f32.mrb[48].mxu1 }
 0x15c   : > { %v1221_v10 = vpop.f32.mrb[50].mxu0  ;;  %v2858_v16 = vpop.f32.mrb[49].mxu1 }
 0x15d   : > { %v1246_v17 = vadd.f32 %v1221_v10, %v1004_v23  ;;  %v1414_v1 = vadd.f32 %v1387_v14, %v1245_v13  ;;  %v2823_v18 = vpop.f32.mrb[51].mxu0  ;;  %v1390_v8 = vpop.f32.mrb[50].mxu1 }
 0x15e   : > { %v2859_v21 = vpop.f32.mrb[51].mxu1 }
 0x15f   : > { %v1415_v15 = vadd.f32 %v1390_v8, %v1246_v17 }
 0x162   : > { %v1226_v22 = vpop.f32.mrb[52].mxu0 }
 0x163   : > { %v1247_v25 = vadd.f32 %v1226_v22, %v1005_v32  ;;  %v2826_v12 = vpop.f32.mrb[53].mxu0  ;;  %v1395_v26 = vpop.f32.mrb[52].mxu1 }
 0x164   : > { %v1229_v19 = vpop.f32.mrb[54].mxu0  ;;  %v2862_v27 = vpop.f32.mrb[53].mxu1 }
 0x165   : > { %v1248_v28 = vadd.f32 %v1229_v19, %v1006_v36  ;;  %v1416_v30 = vadd.f32 %v1395_v26, %v1247_v25  ;;  %v2827_v31 = vpop.f32.mrb[55].mxu0  ;;  %v1398_v20 = vpop.f32.mrb[54].mxu1 }
 0x166   : > { %v2863_v33 = vpop.f32.mrb[55].mxu1 }
 0x167   : > { %v1417_v24 = vadd.f32 %v1398_v20, %v1248_v28 }
 0x16a   : > { %v1234_v35 = vpop.f32.mrb[56].mxu0 }
 0x16b   : > { %v1249_v37 = vadd.f32 %v1234_v35, %v1007_v46  ;;  %v2830_v23 = vpop.f32.mrb[57].mxu0  ;;  %v1403_v38 = vpop.f32.mrb[56].mxu1 }
 0x16c   : > { %v1237_v29 = vpop.f32.mrb[58].mxu0  ;;  %v2866_v40 = vpop.f32.mrb[57].mxu1 }
 0x16d   : > { %v1250_v41 = vadd.f32 %v1237_v29, %v1008_v50  ;;  %v1418_v43 = vadd.f32 %v1403_v38, %v1249_v37  ;;  %v2831_v44 = vpop.f32.mrb[59].mxu0  ;;  %v1406_v32 = vpop.f32.mrb[58].mxu1 }
 0x16e   : > { %v2867_v47 = vpop.f32.mrb[59].mxu1 }
 0x16f   : > { %v1419_v34 = vadd.f32 %v1406_v32, %v1250_v41  ;;  %v2494_v32 = vld [vmem:[%s3750_s21] sm:$0xff]  }
 0x172   : > { %v1574_v49 = vpop.f32.mrb[60].mxu0 }
 0x173   : > { %v1613_v52 = vadd.f32 %v1574_v49, %v1410_v58  ;;  %v2886_v36 = vpop.f32.mrb[61].mxu0  ;;  %v1785_v53 = vpop.f32.mrb[60].mxu1 }
 0x174   : > { %v1577_v39 = vpop.f32.mrb[62].mxu0  ;;  %v2922_v54 = vpop.f32.mrb[61].mxu1 }
 0x175   : > { %v1614_v55 = vadd.f32 %v1577_v39, %v1411_v61  ;;  %v1824_v56 = vadd.f32 %v1785_v53, %v1613_v52  ;;  %v2887_v57 = vpop.f32.mrb[63].mxu0  ;;  %v1788_v46 = vpop.f32.mrb[62].mxu1  ;;  %v2495_v52 = vunpack.c.l.bf16 %v2494_v32 }
 0x176   : > { %v2923_v42 = vpop.f32.mrb[63].mxu1 }
 0x177   : > { %v3734_v45 = vadd.f32 %v1788_v46, %v1614_v55 }
 0x17a   : > { %v1582_v60 = vpop.f32.mrb[64].mxu0 }
 0x17b   : > { %v1615_v50 = vadd.f32 %v1582_v60, %v1412_v6  ;;  %v2890_v48 = vpop.f32.mrb[65].mxu0  ;;  %v1793_v63 = vpop.f32.mrb[64].mxu1  ;;  %v2496_v60 = vunpack.c.h.bf16 %v2494_v32 }
 0x17c   : > { %v1585_v51 = vpop.f32.mrb[66].mxu0  ;;  %v2926_v2 = vpop.f32.mrb[65].mxu1 }
 0x17d   : > { %v1616_v3 = vadd.f32 %v1585_v51, %v1413_v5  ;;  %v3736_v4 = vadd.f32 %v1793_v63, %v1615_v50  ;;  %v2891_v58 = vpop.f32.mrb[67].mxu0  ;;  %v1796_v0 = vpop.f32.mrb[66].mxu1 }
 0x17e   : > { %v2927_v7 = vpop.f32.mrb[67].mxu1 }
 0x17f   : > { %v3738_v59 = vadd.f32 %v1796_v0, %v1616_v3 }
 0x182   : > { %v1590_v61 = vpop.f32.mrb[68].mxu0 }
 0x183   : > { %v1617_v9 = vadd.f32 %v1590_v61, %v1414_v1  ;;  %v2894_v11 = vpop.f32.mrb[69].mxu0  ;;  %v1801_v13 = vpop.f32.mrb[68].mxu1  ;;  %v2529_v61 = vld [vmem:[%s3750_s21 + $0x8] sm:$0xff]  }
 0x184   : > { %v1593_v62 = vpop.f32.mrb[70].mxu0  ;;  %v2930_v14 = vpop.f32.mrb[69].mxu1  ;;  %v2028_v11 = vld [vmem:[%s3750_s21 + $0x20] sm:$0xf] }
 0x185   : > { %v1618_v10 = vadd.f32 %v1593_v62, %v1415_v15  ;;  %v3740_v6 = vadd.f32 %v1801_v13, %v1617_v9  ;;  %v2895_v16 = vpop.f32.mrb[71].mxu0  ;;  %v1804_v17 = vpop.f32.mrb[70].mxu1 }
 0x186   : > { %v2931_v5 = vpop.f32.mrb[71].mxu1  ;;  %v2499_v16 = vunpack.c.l.bf16 %v2529_v61 }
 0x187   : > { %v3742_v18 = vadd.f32 %v1804_v17, %v1618_v10 }
 0x18a   : > { %v1598_v8 = vpop.f32.mrb[72].mxu0 }
 0x18b   : > { %v1619_v21 = vadd.f32 %v1598_v8, %v1416_v30  ;;  %v2898_v22 = vpop.f32.mrb[73].mxu0  ;;  %v1809_v25 = vpop.f32.mrb[72].mxu1  ;;  %v2029_v8 = vld [vmem:[%s3750_s21 + $0x24] sm:$0x7] }
 0x18c   : > { %v1601_v12 = vpop.f32.mrb[74].mxu0  ;;  %v2934_v26 = vpop.f32.mrb[73].mxu1 }
 0x18d   : > { %v1620_v1 = vadd.f32 %v1601_v12, %v1417_v24  ;;  %v1830_v19 = vadd.f32 %v1809_v25, %v1619_v21  ;;  %v2899_v27 = vpop.f32.mrb[75].mxu0  ;;  %v1812_v28 = vpop.f32.mrb[74].mxu1  ;;  %v2038_v12 = vunpack.c.l.bf16 %v2028_v11 }
 0x18e   : > { %v2935_v15 = vpop.f32.mrb[75].mxu1 }
 0x18f   : > { %v1831_v31 = vadd.f32 %v1812_v28, %v1620_v1  ;;  %v2500_v28 = vunpack.c.h.bf16 %v2529_v61 }
 0x192   : > { %v1606_v20 = vpop.f32.mrb[76].mxu0 }
 0x193   : > { %v1621_v33 = vadd.f32 %v1606_v20, %v1418_v43  ;;  %v2902_v35 = vpop.f32.mrb[77].mxu0  ;;  %v1817_v37 = vpop.f32.mrb[76].mxu1  ;;  %v2531_v43 = vld [vmem:[%s3750_s21 + $0x18] sm:$0xff]  }
 0x194   : > { %v1609_v23 = vpop.f32.mrb[78].mxu0  ;;  %v2938_v38 = vpop.f32.mrb[77].mxu1  ;;  %v2507_v54 = vunpack.c.l.bf16 %v2531_v43 }
 0x195   : > { %v1622_v29 = vadd.f32 %v1609_v23, %v1419_v34  ;;  %v1832_v30 = vadd.f32 %v1817_v37, %v1621_v33  ;;  %v2903_v40 = vpop.f32.mrb[79].mxu0  ;;  %v1820_v41 = vpop.f32.mrb[78].mxu1  ;;  %v3757_v34 = vld [vmem:[%s3802_s2] ss:$0 sm:$0xff]  ;;  %v2039_v37 = vunpack.c.l.bf16 %v2029_v8 }
 0x196   : > { %v2939_v24 = vpop.f32.mrb[79].mxu1 }
 0x197   : > { %v1833_v44 = vadd.f32 %v1820_v41, %v1622_v29  ;;  %v2530_v41 = vld [vmem:[%s3750_s21 + $0x10] sm:$0xff]  }
 0x19a   : > { %v1954_v47 = vpop.f32.mrb[80].mxu0 }
 0x19b   : > { %v1993_v49 = vadd.f32 %v1954_v47, %v1824_v56  ;;  %v1978_v36 = vpop.f32.mrb[80].mxu1  ;;  %v2958_v53 = vpop.f32.mrb[81].mxu0  ;;  %v2508_v56 = vunpack.c.h.bf16 %v2531_v43 }
 0x19c   : > { %v1999_v39 = vadd.f32 %v1978_v36, %v1830_v19  ;;  %v2970_v55 = vpop.f32.mrb[81].mxu1  ;;  %v1957_v57 = vpop.f32.mrb[82].mxu0 }
 0x19d   : > { %v2010_v46 = vadd.f32 %v3757_v34, %v1993_v49  ;;  %v1994_v42 = vadd.f32 %v1957_v57, %v3734_v45  ;;  %v1981_v50 = vpop.f32.mrb[82].mxu1  ;;  %v2959_v48 = vpop.f32.mrb[83].mxu0 }
 0x19e   : > { %v2016_v63 = vadd.f32 %v3757_v34, %v1999_v39  ;;  %v2000_v51 = vadd.f32 %v1981_v50, %v1831_v31  ;;  %v2971_v2 = vpop.f32.mrb[83].mxu1 }
 0x19f   : > { %v2040_v3 = vadd.f32 %v2495_v52, %v2010_v46  ;;  %v2011_v58 = vadd.f32 %v3757_v34, %v1994_v42  ;;  %v2503_v52 = vunpack.c.l.bf16 %v2530_v41  ;;  %v2504_v42 = vunpack.c.h.bf16 %v2530_v41 }
 0x1a0   : > { %v2046_v0 = vadd.f32 %v2507_v54, %v2016_v63  ;;  %v2017_v7 = vadd.f32 %v3757_v34, %v2000_v51 }
 0x1a1   : > { %v2041_v9 = vadd.f32 %v2496_v60, %v2011_v58  ;;  %v2050_v62 = vmax.f32 %v2040_v3, 0.0 }
 0x1a2   : > { %v2047_v45 = vadd.f32 %v2508_v56, %v2017_v7  ;;  %v1962_v13 = vpop.f32.mrb[84].mxu0  ;;  %v2056_v21 = vmax.f32 %v2046_v0, 0.0 }
 0x1a3   : > { %v2051_v14 = vmax.f32 %v2041_v9, 0.0  ;;  %v1995_v10 = vadd.f32 %v1962_v13, %v3736_v4  ;;  %v1986_v17 = vpop.f32.mrb[84].mxu1  ;;  %v2962_v5 = vpop.f32.mrb[85].mxu0 }
 0x1a4   : > { %v2057_v22 = vmax.f32 %v2047_v45, 0.0  ;;  %v2001_v25 = vadd.f32 %v1986_v17, %v1832_v30  ;;  %v2974_v26 = vpop.f32.mrb[85].mxu1  ;;  %v1965_v1 = vpop.f32.mrb[86].mxu0 }
 0x1a5   : > { %v2512_v19 = vpack.c.bf16 %v2051_v14, %v2050_v62  ;;  %v2012_v4 = vadd.f32 %v3757_v34, %v1995_v10  ;;  %v1996_v27 = vadd.f32 %v1965_v1, %v3738_v59  ;;  %v1989_v15 = vpop.f32.mrb[86].mxu1  ;;  %v2963_v31 = vpop.f32.mrb[87].mxu0 }
 0x1a6   : > { %v2527_v20 = vpack.c.bf16 %v2057_v22, %v2056_v21  ;;  %v2018_v33 = vadd.f32 %v3757_v34, %v2001_v25  ;;  %v2002_v35 = vadd.f32 %v1989_v15, %v1833_v44  ;;  %v2975_v23 = vpop.f32.mrb[87].mxu1 }
 0x1a7   : > { %2513 = vst [vmem:[%s3773_s26] sm:$0xff] %v2512_v19   ;;  %v2042_v38 = vadd.f32 %v2499_v16, %v2012_v4  ;;  %v2013_v29 = vadd.f32 %v3757_v34, %v1996_v27 }
 0x1a8   : > { %2534 = vst [vmem:[%s3773_s26 + $0x18] sm:$0xff] %v2527_v20   ;;  %v2048_v30 = vadd.f32 %v2038_v12, %v2018_v33  ;;  %v2019_v40 = vadd.f32 %v3757_v34, %v2002_v35 }
 0x1a9   : > { %v2043_v24 = vadd.f32 %v2500_v28, %v2013_v29  ;;  %v2052_v47 = vmax.f32 %v2042_v38, 0.0 }
 0x1aa   : > { %v2058_v59 = vmax.f32 %v2048_v30, 0.0  ;;  %v2049_v32 = vadd.f32 %v2039_v37, %v2019_v40  ;;  %v1970_v43 = vpop.f32.mrb[88].mxu0 }
 0x1ab   : > { %v2053_v49 = vmax.f32 %v2043_v24, 0.0  ;;  %v1997_v44 = vadd.f32 %v1970_v43, %v3740_v6  ;;  %v2966_v36 = vpop.f32.mrb[89].mxu0 }
 0x1ac   : > { %v2491_v53 = vpack.c.bf16 %v2058_v59, %v2058_v59  ;;  %v2059_v39 = vmax.f32 %v2049_v32, 0.0  ;;  %v1973_v54 = vpop.f32.mrb[90].mxu0 }
 0x1ad   : > { %v2517_v55 = vpack.c.bf16 %v2053_v49, %v2052_v47  ;;  %v2014_v57 = vadd.f32 %v3757_v34, %v1997_v44  ;;  %v1998_v46 = vadd.f32 %v1973_v54, %v3742_v18  ;;  %v2967_v60 = vpop.f32.mrb[91].mxu0 }
 0x1ae   : > { %2108 = vst [vmem:[%s3773_s26 + $0x20] sm:$0xf] %v2491_v53  ;;  %v2492_v50 = vpack.c.bf16 %v2059_v39, %v2059_v39 }
 0x1af   : > { %2532 = vst [vmem:[%s3773_s26 + $0x8] sm:$0xff] %v2517_v55   ;;  %v2044_v48 = vadd.f32 %v2503_v52, %v2014_v57  ;;  %v2015_v6 = vadd.f32 %v3757_v34, %v1998_v46 }
 0x1b0   : > { %2109 = vst [vmem:[%s3773_s26 + $0x24] sm:$0x7] %v2492_v50 }
 0x1b1   : > { %v2045_v63 = vadd.f32 %v2504_v42, %v2015_v6  ;;  %v2054_v51 = vmax.f32 %v2044_v48, 0.0 }
 0x1b3   : > { %v2055_v56 = vmax.f32 %v2045_v63, 0.0 }
 0x1b5   : > { %v2522_v2 = vpack.c.bf16 %v2055_v56, %v2054_v51 }
 0x1b7   : > { %2533 = vst [vmem:[%s3773_s26 + $0x10] sm:$0xff] %v2522_v2  }
 0x1b8 PF: > { %s14_s17 = sadd.s32 1, %s3141_s17   ;;  %s3805_s15 = smov %s3137_s16 }
 0x1b9   : > { %p11_p5 = scmp.ge.s32.totalorder %s14_s17, 4   ;;  %s3806_s16 = smov %s3808_s18 }
 0x1bb   :  { %13 = sbr.rel (!%p11_p5) target bundleno = 2 (0x2), region = 83 }

// kernel: resnet_forward.9
= control target key start
LH: loop header
LB: loop body
LE: loop exit
PB: predicated region body
PF: predicated region fallthrough
CT: control target
= control target key end

     0   :  { %s2296_s15 = smov 0   ;;  %s2298_s16 = smov 0   ;;  %s2615_s0 = inlined_call_operand.vmem [shape: bf16[2,36,128], index: 0, kind: input, shape index: {}]   ;;  %s2616_s1 = inlined_call_operand.vmem [shape: bf16[9,128,128], index: 1, kind: input, shape index: {}]   ;;  %s2617_s2 = inlined_call_operand.vmem [shape: f32[1,128], index: 2, kind: input, shape index: {}]   ;;  %s2618_s3 = inlined_call_operand.vmem [shape: bf16[2,22,128], index: 3, kind: input, shape index: {}]   ;;  %s2619_s4 = inlined_call_operand.vmem [shape: bf16[2,22,128], index: 4, kind: output, shape index: {}]  }
   0x1   :  { %s2300_s17 = smov 0  }
   0x2 LB: > { %s26_s18 = sadd.s32 1, %s2265_s16  ;;  %p1631_p0 = scmp.ge.s32.totalorder %s2269_s17, 1  ;;  %s2269_s17 = sphi %s2300_s17, %s14_s17   ;;  %s2265_s16 = sphi %s2298_s16, %s2621_s16   ;;  %s2261_s15 = sphi %s2296_s15, %s2620_s15  }
   0x3   : > { %p28_p1 = scmp.ge.s32.totalorder %s26_s18, 2  ;;  %p208_p2 = scmp.lt.s32.totalorder %s2269_s17, 3 }
   0x5   : > { %s2623_s18 = smov (%p28_p1, %s26_s18), 0  ;;  %p209_p3 = pnand %p1631_p0, %p208_p2 }
   0x6   : > { %v2162_v0 = vld [vmem:[%s2616_s1 + $0x40] sm:$0xff] (!%p209_p3)   ;;  %p252_p4 = scmp.lt.s32.totalorder (!%p209_p3), %s2261_s15, 1  ;;  %v2164_v2 = vld [vmem:[%s2616_s1 + $0x48] sm:$0xff] (!%p209_p3)   ;;  %v2166_v4 = vld [vmem:[%s2616_s1 + $0x50] sm:$0xff] (!%p209_p3)   ;;  %vm326_vm0 = vsmask.f32 (!%p209_p3), 7424 }
   0x7   : > { %212 = sbr.rel (%p209_p3) target bundleno = 393 (0x189), region = 36  ;;  %v2163_v1 = vld [vmem:[%s2616_s1] sm:$0xff] (!%p209_p3)   ;;  %1956 = vmatprep.subr.bf16.mxu0 (!%p209_p3), %v2162_v0  ;;  %v2165_v3 = vld [vmem:[%s2616_s1 + $0x8] sm:$0xff] (!%p209_p3)   ;;  %v2167_v5 = vld [vmem:[%s2616_s1 + $0x10] sm:$0xff] (!%p209_p3)   ;;  %vm562_vm1 = vcmask (!%p209_p3), 1046528   ;;  %vm698_vm2 = vcmask (!%p209_p3), 1044480  }
   0x8   : > { %1976 = vmatprep.subr.bf16.mxu1 (!%p209_p3), %v2163_v1  ;;  %1957 = vmatpush3.bf16.msra.mxu0 (!%p209_p3), %v2162_v0  ;;  %v2168_v6 = vld [vmem:[%s2616_s1 + $0x58] sm:$0xff] (!%p209_p3)   ;;  %v2170_v8 = vld [vmem:[%s2616_s1 + $0x60] sm:$0xff] (!%p209_p3)   ;;  %v2172_v10 = vld [vmem:[%s2616_s1 + $0x68] sm:$0xff] (!%p209_p3)   ;;  %vm824_vm3 = vsmask.f32 (!%p209_p3), 4352  ;;  %vm1094_vm4 = vcmask (!%p209_p3), 1045504  }
   0x9   : > { %1977 = vmatpush3.bf16.msra.mxu1 (!%p209_p3), %v2163_v1  ;;  %1958 = vmatprep.subr.bf16.mxu0 (!%p209_p3), %v2164_v2  ;;  %v2169_v7 = vld [vmem:[%s2616_s1 + $0x18] sm:$0xff] (!%p209_p3)   ;;  %v2171_v9 = vld [vmem:[%s2616_s1 + $0x20] sm:$0xff] (!%p209_p3)   ;;  %v2173_v13 = vld [vmem:[%s2616_s1 + $0x28] sm:$0xff] (!%p209_p3)   ;;  %vm1220_vm5 = vsmask.f32 (!%p209_p3), 5376 }
   0xa   : > { %1978 = vmatprep.subr.bf16.mxu1 (!%p209_p3), %v2165_v3  ;;  %v2174_v16 = vld [vmem:[%s2616_s1 + $0x70] sm:$0xff] (!%p209_p3)   ;;  %v2176_v24 = vld [vmem:[%s2616_s1 + $0x78] sm:$0xff] (!%p209_p3)   ;;  %v2181_v28 = vld [vmem:[%s2616_s1 + $0x80] sm:$0xff] (!%p209_p3)  }
   0xb   : > { %v2175_v20 = vld [vmem:[%s2616_s1 + $0x30] sm:$0xff] (!%p209_p3)   ;;  %v2177_v25 = vld [vmem:[%s2616_s1 + $0x38] sm:$0xff] (!%p209_p3)   ;;  %v2182_v30 = vld [vmem:[%s2616_s1 + $0xc0] sm:$0xff] (!%p209_p3)  }
   0xc   : > { %1959 = vmatpush3.bf16.msra.mxu0 (!%p209_p3), %v2164_v2  ;;  %v2183_v32 = vld [vmem:[%s2616_s1 + $0x88] sm:$0xff] (!%p209_p3)   ;;  %v2185_v34 = vld [vmem:[%s2616_s1 + $0x90] sm:$0xff] (!%p209_p3)   ;;  %v2187_v46 = vld [vmem:[%s2616_s1 + $0x98] sm:$0xff] (!%p209_p3)  }
   0xd   : > { %1979 = vmatpush3.bf16.msra.mxu1 (!%p209_p3), %v2165_v3  ;;  %1960 = vmatprep.subr.bf16.mxu0 (!%p209_p3), %v2166_v4  ;;  %v2184_v33 = vld [vmem:[%s2616_s1 + $0xc8] sm:$0xff] (!%p209_p3)   ;;  %v2186_v36 = vld [vmem:[%s2616_s1 + $0xd0] sm:$0xff] (!%p209_p3)   ;;  %v2188_v50 = vld [vmem:[%s2616_s1 + $0xd8] sm:$0xff] (!%p209_p3)  }
   0xe   : > { %s2625_s15 = smov (!%p252_p4, %s2261_s15), 1  ;;  %1980 = vmatprep.subr.bf16.mxu1 %v2167_v5  ;;  %v2189_v52 = vld [vmem:[%s2616_s1 + $0xa0] sm:$0xff]   ;;  %v2191_v54 = vld [vmem:[%s2616_s1 + $0xa8] sm:$0xff]   ;;  %v2193_v56 = vld [vmem:[%s2616_s1 + $0xb0] sm:$0xff]  }
   0xf   : > { %s2136_s9 = smul.u32 20, %s2625_s15  ;;  %v2190_v53 = vld [vmem:[%s2616_s1 + $0xe0] sm:$0xff]   ;;  %v2192_v55 = vld [vmem:[%s2616_s1 + $0xe8] sm:$0xff]   ;;  %v2194_v57 = vld [vmem:[%s2616_s1 + $0xf0] sm:$0xff]  }
  0x10   : > { %1961 = vmatpush3.bf16.msra.mxu0 %v2166_v4  ;;  %v2195_v62 = vld [vmem:[%s2616_s1 + $0xb8] sm:$0xff]   ;;  %s2137_s11 = smul.u32 12, %s2625_s15 }
  0x11   : > { %1981 = vmatpush3.bf16.msra.mxu1 %v2167_v5  ;;  %1962 = vmatprep.subr.bf16.mxu0 %v2168_v6  ;;  %s2350_s20 = scalar_lea.vmem %s2615_s0, %s2136_s9  ;;  %v2196_v63 = vld [vmem:[%s2616_s1 + $0xf8] sm:$0xff]  }
  0x12   : > { %1982 = vmatprep.subr.bf16.mxu1 %v2169_v7  ;;  %v281_v11 = vld [vmem:[%s2350_s20] sm:$0xf]  ;;  %v282_v12 = vld [vmem:[%s2350_s20 + $0x4] sm:$0xf]  ;;  %v2361_v15 = vld [vmem:[%s2350_s20 + $0x8] ss:$0 sps:$4 sm:$0xff]   ;;  %s271_s14 = scalar_lea.vmem %s2618_s3, %s2137_s11  ;;  %s279_s23 = scalar_lea.vmem %s2619_s4, %s2137_s11 }
  0x13   : > { %v1651_v14 = vcombine.low %v281_v11, %v282_v12  ;;  %v335_v19 = vshll.u32 %v2361_v15, 16  ;;  %v339_v27 = vshrl.u32 %v2361_v15, 16  ;;  %v2180_v29 = vld [vmem:[%s2350_s20 + $0x8] ss:$0 sps:$4 sm:$0x77]   ;;  %v564_v38 = vrot.slane %v2361_v15, 1 }
  0x14   : > { %1963 = vmatpush3.bf16.msra.mxu0 %v2168_v6  ;;  %v541_v35 = vld [vmem:[%s2350_s20] sm:$0xe]  ;;  %v2400_v40 = vld [vmem:[%s2350_s20 + $0x4] sm:$0xf]  ;;  %v2403_v41 = vld [vmem:[%s2350_s20 + $0x8] sm:$0xf] }
  0x15   : > { %1983 = vmatpush3.bf16.msra.mxu1 %v2169_v7  ;;  %1964 = vmatprep.subr.bf16.mxu0 %v2170_v8  ;;  %v328_v17 = vshrl.u32 %v1651_v14, 16  ;;  %v330_v18 = vshll.u32 %v1651_v14, 16  ;;  %v337_v22 = vrot.slane %v335_v19, 1  ;;  %v1686_v37 = vcombine.low %v541_v35, %v282_v12  ;;  %v667_v39 = vld [vmem:[%s2350_s20] sm:$0x8]  ;;  %v2203_v11 = vld [vmem:[%s2616_s1 + $0x148] sm:$0xff]  }
  0x16   : > { %1984 = vmatprep.subr.bf16.mxu1 %v2171_v9  ;;  %1992 = vmatprep.mubr.bf16.mxu1 %v1651_v14  ;;  %v670_v42 = vld [vmem:[%s2350_s20 + $0xc] sm:$0x3]  ;;  %v1711_v44 = vcombine.low %v667_v39, %v2400_v40  ;;  %v2198_v6 = vld [vmem:[%s2616_s1 + $0x100] sm:$0xff]   ;;  %v2204_v14 = vld [vmem:[%s2616_s1 + $0x110] sm:$0xff]  }
  0x17   : > { %v332_v21 = vrot.slane %v330_v18, 1  ;;  %v341_v31 = vor.u32 %v339_v27, %v337_v22  ;;  %v563_v43 = vrot.slane %v1686_v37, 1  ;;  %v1712_v45 = vcombine.low %v2403_v41, %v670_v42  ;;  %v2437_v58 = vld [vmem:[%s2350_s20 + $0xc] sm:$0x7]  ;;  %v2201_v7 = vld [vmem:[%s2616_s1 + $0x140] sm:$0xff]   ;;  %v2205_v15 = vld [vmem:[%s2616_s1 + $0x150] sm:$0xff]  }
  0x18   : > { %1965 = vmatpush3.bf16.msra.mxu0 %v2170_v8  ;;  %v699_v48 = vrot.slane %v1711_v44, 3  ;;  %v826_v59 = vshrl.u32 %v1711_v44, 16  ;;  %v829_v60 = vshll.u32 %v1711_v44, 16  ;;  %v1737_v61 = vcombine.low %v2403_v41, %v2437_v58  ;;  %v2208_v18 = vld [vmem:[%s2616_s1 + $0x120] sm:$0xff]   ;;  %v1065_v19 = vld [vmem:[%s2350_s20 + $0xc] sm:$0xf] }
  0x19   : > { %1985 = vmatpush3.bf16.msra.mxu1 %v2171_v9  ;;  %1966 = vmatprep.subr.bf16.mxu0 %v2172_v10  ;;  %v333_v23 = vor.u32 %v332_v21, %v328_v17  ;;  %v565_v47 = vsel %vm562_vm1, %v563_v43, %v564_v38  ;;  %v700_v49 = vrot.slane %v1712_v45, 3  ;;  %v2207_v17 = vld [vmem:[%s2616_s1 + $0x158] sm:$0xff]   ;;  %v2209_v21 = vld [vmem:[%s2616_s1 + $0x160] sm:$0xff]   ;;  %v2211_v27 = vld [vmem:[%s2616_s1 + $0x168] sm:$0xff]  }
  0x1a   : > { %1986 = vmatprep.subr.bf16.mxu1 %v2173_v13  ;;  %v834_v0 = vshrl.u32 %v1737_v61, 16  ;;  %v837_v1 = vshll.u32 %v1737_v61, 16  ;;  %v828_v2 = vrot.slane %v826_v59, 3  ;;  %v831_v3 = vrot.slane %v829_v60, 4  ;;  %v1066_v35 = vld [vmem:[%s2350_s20 + $0x10] sm:$0x1] }
  0x1b   : > { %v338_v26 = vsel %vm326_vm0, %v333_v23, %v337_v22  ;;  %v701_v51 = vsel %vm698_vm2, %v699_v48, %v700_v49  ;;  %v2210_v22 = vld [vmem:[%s2616_s1 + $0x128] sm:$0xff]   ;;  %v1063_v23 = vld [vmem:[%s2350_s20 + $0x4] sm:$0xc]  ;;  %v1789_v42 = vcombine.low %v1065_v19, %v1066_v35  ;;  %v2224_v59 = vld [vmem:[%s2616_s1 + $0x1d0] sm:$0xff]  }
  0x1c   : > { %1967 = vmatpush3.bf16.msra.mxu0 %v2172_v10  ;;  %1972 = vmatprep.mubr.bf16.mxu0 %v338_v26  ;;  %v836_v4 = vrot.slane %v834_v0, 3  ;;  %v839_v5 = vrot.slane %v837_v1, 4  ;;  %v832_v8 = vor.u32 %v831_v3, %v828_v2  ;;  %v2202_v10 = vld [vmem:[%s2616_s1 + $0x108] sm:$0xff]   ;;  %v1339_v26 = vld [vmem:[%s2350_s20 + $0x4] sm:$0x8]  ;;  %v2225_v60 = vld [vmem:[%s2616_s1 + $0x198] sm:$0xff]  }
  0x1d   : > { %1987 = vmatpush3.bf16.msra.mxu1 %v2173_v13  ;;  %1968 = vmatprep.subr.bf16.mxu0 %v2174_v16  ;;  %v1762_v13 = vcombine.low %v2400_v40, %v2403_v41  ;;  %v2214_v40 = vld [vmem:[%s2616_s1 + $0x138] sm:$0xff]   ;;  %v2220_v48 = vld [vmem:[%s2616_s1 + $0x1c0] sm:$0xff]   ;;  %v2229_v0 = vld [vmem:[%s2616_s1 + $0x1a8] sm:$0xff]  }
  0x1e   : > { %1988 = vmatprep.subr.bf16.mxu1 %v2175_v20  ;;  %v2453_v9 = vor.u32 %v839_v5, %v836_v4  ;;  %v2215_v41 = vld [vmem:[%s2616_s1 + $0x178] sm:$0xff]   ;;  %v2230_v1 = vld [vmem:[%s2616_s1 + $0x1e8] sm:$0xff]   ;;  %v2231_v2 = vld [vmem:[%s2616_s1 + $0x1b0] sm:$0xff]  }
  0x1f   : > { %v2226_v61 = vld [vmem:[%s2616_s1 + $0x1d8] sm:$0xff]   ;;  %v2232_v3 = vld [vmem:[%s2616_s1 + $0x1f0] sm:$0xff]  }
  0x20   : > { %1969 = vmatpush3.bf16.msra.mxu0 %v2174_v16  ;;  %v841_v12 = vsel %vm824_vm3, %v832_v8, %v2453_v9  ;;  %v2206_v16 = vld [vmem:[%s2616_s1 + $0x118] sm:$0xff]   ;;  %v2240_v8 = vld [vmem:[%s2616_s1 + $0x210] sm:$0xff]  }
  0x21   : > { %1989 = vmatpush3.bf16.msra.mxu1 %v2175_v20  ;;  %1970 = vmatprep.subr.bf16.mxu0 %v2176_v24  ;;  %v1199_v20 = vld [vmem:[%s2350_s20 + $0x10] sm:$0x3]  ;;  %v2233_v4 = vld [vmem:[%s2616_s1 + $0x1b8] sm:$0xff]  }
  0x22   : > { %1990 = vmatprep.subr.bf16.mxu1 %v2177_v25  ;;  %v2234_v5 = vld [vmem:[%s2616_s1 + $0x1f8] sm:$0xff]  }
  0x24   : > { %1971 = vmatpush3.bf16.msra.mxu0 %v2176_v24  ;;  %v2490_v24 = vcombine.low %v1065_v19, %v1199_v20 }
  0x25   : > { %1991 = vmatpush3.bf16.msra.mxu1 %v2177_v25  ;;  %1996 = vmatprep.subr.bf16.mxu0 %v2181_v28  ;;  %v1064_v25 = vld [vmem:[%s2350_s20 + $0x8] sm:$0xf] }
  0x26   : > { %2016 = vmatprep.subr.bf16.mxu1 %v2182_v30  ;;  %v1233_v39 = vshll.u32 %v2490_v24, 16 }
  0x27   : > { %1973 = vmatmul.mubr.bf16.vlgmr.msra.gmra.mrb[0].mxu0 %v341_v31 }
  0x28   : > { %1993 = vmatmul.mubr.bf16.vlgmr.msra.gmra.mrb[0].mxu1 %v2180_v29  ;;  %1997 = vmatpush3.bf16.msra.mxu0 %v2181_v28  ;;  %v1839_v28 = vcombine.low %v1339_v26, %v1064_v25  ;;  %v1361_v29 = vrot.slane %v2490_v24, 3 }
  0x29   : > { %2017 = vmatpush3.bf16.msra.mxu1 %v2182_v30  ;;  %1998 = vmatprep.subr.bf16.mxu0 %v2183_v32  ;;  %v1788_v30 = vcombine.low %v1063_v23, %v1064_v25 }
  0x2a   : > { %2018 = vmatprep.subr.bf16.mxu1 %v2184_v33  ;;  %2012 = vmatprep.mubr.bf16.mxu0 %v565_v47  ;;  %v1360_v31 = vrot.slane %v1839_v28, 3  ;;  %v2217_v47 = vld [vmem:[%s2616_s1 + $0x180] sm:$0xff]  }
  0x2b   : > { %2032 = vmatprep.mubr.bf16.mxu1 %v701_v51  ;;  %v1225_v37 = vshll.u32 %v1788_v30, 16  ;;  %v1763_v51 = vcombine.low %v2437_v58, %v2437_v58  ;;  %v2223_v58 = vld [vmem:[%s2616_s1 + $0x190] sm:$0xff]  }
  0x2c   : > { %1999 = vmatpush3.bf16.msra.mxu0 %v2183_v32  ;;  %v2212_v32 = vld [vmem:[%s2616_s1 + $0x130] sm:$0xff]  }
  0x2d   : > { %2019 = vmatpush3.bf16.msra.mxu1 %v2184_v33  ;;  %2000 = vmatprep.subr.bf16.mxu0 %v2185_v34  ;;  %v2213_v33 = vld [vmem:[%s2616_s1 + $0x170] sm:$0xff]   ;;  %v1227_v44 = vrot.slane %v1225_v37, 3 }
  0x2e   : > { %2020 = vmatprep.subr.bf16.mxu1 %v2186_v36 }
  0x30   : > { %2001 = vmatpush3.bf16.msra.mxu0 %v2185_v34  ;;  %v2507_v34 = vsel %vm698_vm2, %v1360_v31, %v1361_v29 }
  0x31   : > { %2021 = vmatpush3.bf16.msra.mxu1 %v2186_v36  ;;  %2002 = vmatprep.subr.bf16.mxu0 %v2187_v46  ;;  %v1222_v36 = vshrl.u32 %v1788_v30, 16 }
  0x32   : > { %2022 = vmatprep.subr.bf16.mxu1 %v2188_v50 }
  0x33   : > { %v1224_v43 = vrot.slane %v1222_v36, 2 }
  0x34   : > { %2003 = vmatpush3.bf16.msra.mxu0 %v2187_v46  ;;  %v1235_v46 = vrot.slane %v1233_v39, 3 }
  0x35   : > { %2023 = vmatpush3.bf16.msra.mxu1 %v2188_v50  ;;  %2004 = vmatprep.subr.bf16.mxu0 %v2189_v52  ;;  %v1096_v50 = vrot.slane %v1789_v42, 2 }
  0x36   : > { %2024 = vmatprep.subr.bf16.mxu1 %v2190_v53 }
  0x38   : > { %2005 = vmatpush3.bf16.msra.mxu0 %v2189_v52  ;;  %v1228_v52 = vor.u32 %v1227_v44, %v1224_v43 }
  0x39   : > { %2025 = vmatpush3.bf16.msra.mxu1 %v2190_v53  ;;  %2006 = vmatprep.subr.bf16.mxu0 %v2191_v54 }
  0x3a   : > { %2026 = vmatprep.subr.bf16.mxu1 %v2192_v55 }
  0x3c   : > { %2007 = vmatpush3.bf16.msra.mxu0 %v2191_v54  ;;  %v2221_v54 = vld [vmem:[%s2616_s1 + $0x188] sm:$0xff]  }
  0x3d   : > { %2027 = vmatpush3.bf16.msra.mxu1 %v2192_v55  ;;  %2008 = vmatprep.subr.bf16.mxu0 %v2193_v56  ;;  %v2222_v55 = vld [vmem:[%s2616_s1 + $0x1c8] sm:$0xff]  }
  0x3e   : > { %2028 = vmatprep.subr.bf16.mxu1 %v2194_v57 }
  0x40   : > { %2009 = vmatpush3.bf16.msra.mxu0 %v2193_v56 }
  0x41   : > { %2029 = vmatpush3.bf16.msra.mxu1 %v2194_v57  ;;  %2010 = vmatprep.subr.bf16.mxu0 %v2195_v62 }
  0x42   : > { %2030 = vmatprep.subr.bf16.mxu1 %v2196_v63 }
  0x44   : > { %2011 = vmatpush3.bf16.msra.mxu0 %v2195_v62  ;;  %v2227_v62 = vld [vmem:[%s2616_s1 + $0x1a0] sm:$0xff]  }
  0x45   : > { %2031 = vmatpush3.bf16.msra.mxu1 %v2196_v63  ;;  %2036 = vmatprep.subr.bf16.mxu0 %v2198_v6  ;;  %v2228_v63 = vld [vmem:[%s2616_s1 + $0x1e0] sm:$0xff]  }
  0x46   : > { %2056 = vmatprep.subr.bf16.mxu1 %v2201_v7 }
  0x47   : > { %2013 = vmatmul.mubr.bf16.vlgmr.msra.gmra.mrb[4].mxu0 %v564_v38  ;;  %v1230_v38 = vshrl.u32 %v2490_v24, 16 }
  0x48   : > { %2037 = vmatpush3.bf16.msra.mxu0 %v2198_v6  ;;  %2033 = vmatmul.mubr.bf16.vlgmr.msra.gmra.mrb[4].mxu1 %v700_v49  ;;  %v1095_v49 = vrot.slane %v1788_v30, 2  ;;  %v2238_v6 = vld [vmem:[%s2616_s1 + $0x200] sm:$0xff]  }
  0x49   : > { %2057 = vmatpush3.bf16.msra.mxu1 %v2201_v7  ;;  %2038 = vmatprep.subr.bf16.mxu0 %v2202_v10  ;;  %v1232_v45 = vrot.slane %v1230_v38, 2  ;;  %v2239_v7 = vld [vmem:[%s2616_s1 + $0x208] sm:$0xff]  }
  0x4a   : > { %2058 = vmatprep.subr.bf16.mxu1 %v2203_v11  ;;  %2052 = vmatprep.mubr.bf16.mxu0 %v841_v12  ;;  %v1097_v56 = vsel %vm1094_vm4, %v1095_v49, %v1096_v50  ;;  %v2244_v12 = vld [vmem:[%s2616_s1 + $0x230] sm:$0xff]  }
  0x4b   : > { %2072 = vmatprep.mubr.bf16.mxu1 %v1762_v13  ;;  %v1236_v53 = vor.u32 %v1235_v46, %v1232_v45  ;;  %v2245_v13 = vld [vmem:[%s2616_s1 + $0x238] sm:$0xff]  }
  0x4c   : > { %2039 = vmatpush3.bf16.msra.mxu0 %v2202_v10  ;;  %v2242_v10 = vld [vmem:[%s2616_s1 + $0x220] sm:$0xff]  }
  0x4d   : > { %2059 = vmatpush3.bf16.msra.mxu1 %v2203_v11  ;;  %2040 = vmatprep.subr.bf16.mxu0 %v2204_v14  ;;  %v1237_v57 = vsel %vm1220_vm5, %v1228_v52, %v1236_v53  ;;  %v2243_v11 = vld [vmem:[%s2616_s1 + $0x228] sm:$0xff]  }
  0x4e   : > { %2060 = vmatprep.subr.bf16.mxu1 %v2205_v15 }
  0x50   : > { %2041 = vmatpush3.bf16.msra.mxu0 %v2204_v14 }
  0x51   : > { %2061 = vmatpush3.bf16.msra.mxu1 %v2205_v15  ;;  %2042 = vmatprep.subr.bf16.mxu0 %v2206_v16 }
  0x52   : > { %2062 = vmatprep.subr.bf16.mxu1 %v2207_v17 }
  0x54   : > { %2043 = vmatpush3.bf16.msra.mxu0 %v2206_v16 }
  0x55   : > { %2063 = vmatpush3.bf16.msra.mxu1 %v2207_v17  ;;  %2044 = vmatprep.subr.bf16.mxu0 %v2208_v18 }
  0x56   : > { %2064 = vmatprep.subr.bf16.mxu1 %v2209_v21 }
  0x58   : > { %2045 = vmatpush3.bf16.msra.mxu0 %v2208_v18 }
  0x59   : > { %2065 = vmatpush3.bf16.msra.mxu1 %v2209_v21  ;;  %2046 = vmatprep.subr.bf16.mxu0 %v2210_v22 }
  0x5a   : > { %2066 = vmatprep.subr.bf16.mxu1 %v2211_v27 }
  0x5c   : > { %2047 = vmatpush3.bf16.msra.mxu0 %v2210_v22 }
  0x5d   : > { %2067 = vmatpush3.bf16.msra.mxu1 %v2211_v27  ;;  %2048 = vmatprep.subr.bf16.mxu0 %v2212_v32 }
  0x5e   : > { %2068 = vmatprep.subr.bf16.mxu1 %v2213_v33 }
  0x60   : > { %2049 = vmatpush3.bf16.msra.mxu0 %v2212_v32 }
  0x61   : > { %2069 = vmatpush3.bf16.msra.mxu1 %v2213_v33  ;;  %2050 = vmatprep.subr.bf16.mxu0 %v2214_v40 }
  0x62   : > { %2070 = vmatprep.subr.bf16.mxu1 %v2215_v41 }
  0x64   : > { %2051 = vmatpush3.bf16.msra.mxu0 %v2214_v40 }
  0x65   : > { %2071 = vmatpush3.bf16.msra.mxu1 %v2215_v41  ;;  %2076 = vmatprep.subr.bf16.mxu0 %v2217_v47 }
  0x66   : > { %2096 = vmatprep.subr.bf16.mxu1 %v2220_v48 }
  0x67   : > { %2053 = vmatmul.mubr.bf16.vlgmr.msra.gmra.mrb[8].mxu0 %v2453_v9  ;;  %v2241_v9 = vld [vmem:[%s2616_s1 + $0x218] sm:$0xff]  }
  0x68   : > { %2077 = vmatpush3.bf16.msra.mxu0 %v2217_v47  ;;  %2073 = vmatmul.mubr.bf16.vlgmr.msra.gmra.mrb[8].mxu1 %v1763_v51 }
  0x69   : > { %2097 = vmatpush3.bf16.msra.mxu1 %v2220_v48  ;;  %2078 = vmatprep.subr.bf16.mxu0 %v2221_v54 }
  0x6a   : > { %2098 = vmatprep.subr.bf16.mxu1 %v2222_v55  ;;  %2092 = vmatprep.mubr.bf16.mxu0 %v1097_v56 }
  0x6b   : > { %2112 = vmatprep.mubr.bf16.mxu1 %v1237_v57 }
  0x6c   : > { %2079 = vmatpush3.bf16.msra.mxu0 %v2221_v54 }
  0x6d   : > { %2099 = vmatpush3.bf16.msra.mxu1 %v2222_v55  ;;  %2080 = vmatprep.subr.bf16.mxu0 %v2223_v58 }
  0x6e   : > { %2100 = vmatprep.subr.bf16.mxu1 %v2224_v59 }
  0x70   : > { %2081 = vmatpush3.bf16.msra.mxu0 %v2223_v58 }
  0x71   : > { %2101 = vmatpush3.bf16.msra.mxu1 %v2224_v59  ;;  %2082 = vmatprep.subr.bf16.mxu0 %v2225_v60 }
  0x72   : > { %2102 = vmatprep.subr.bf16.mxu1 %v2226_v61 }
  0x74   : > { %2083 = vmatpush3.bf16.msra.mxu0 %v2225_v60 }
  0x75   : > { %2103 = vmatpush3.bf16.msra.mxu1 %v2226_v61  ;;  %2084 = vmatprep.subr.bf16.mxu0 %v2227_v62 }
  0x76   : > { %2104 = vmatprep.subr.bf16.mxu1 %v2228_v63 }
  0x78   : > { %2085 = vmatpush3.bf16.msra.mxu0 %v2227_v62 }
  0x79   : > { %2105 = vmatpush3.bf16.msra.mxu1 %v2228_v63  ;;  %2086 = vmatprep.subr.bf16.mxu0 %v2229_v0 }
  0x7a   : > { %2106 = vmatprep.subr.bf16.mxu1 %v2230_v1 }
  0x7c   : > { %2087 = vmatpush3.bf16.msra.mxu0 %v2229_v0 }
  0x7d   : > { %2107 = vmatpush3.bf16.msra.mxu1 %v2230_v1  ;;  %2088 = vmatprep.subr.bf16.mxu0 %v2231_v2 }
  0x7e   : > { %2108 = vmatprep.subr.bf16.mxu1 %v2232_v3 }
  0x80   : > { %2089 = vmatpush3.bf16.msra.mxu0 %v2231_v2 }
  0x81   : > { %2109 = vmatpush3.bf16.msra.mxu1 %v2232_v3  ;;  %2090 = vmatprep.subr.bf16.mxu0 %v2233_v4  ;;  %v1476_v3 = vld [vmem:[%s271_s14 + $0x8] sm:$0x7] }
  0x82   : > { %2110 = vmatprep.subr.bf16.mxu1 %v2234_v5 }
  0x84   : > { %2091 = vmatpush3.bf16.msra.mxu0 %v2233_v4  ;;  %v1858_v4 = vld [vmem:[%s271_s14] sm:$0xff]  }
  0x85   : > { %2111 = vmatpush3.bf16.msra.mxu1 %v2234_v5  ;;  %2116 = vmatprep.subr.bf16.mxu0 %v2238_v6 }
  0x87   : > { %2093 = vmatmul.mubr.bf16.vlgmr.msra.gmra.mrb[12].mxu0 %v1096_v50 }
  0x88   : > { %2117 = vmatpush3.bf16.msra.mxu0 %v2238_v6  ;;  %2113 = vmatmul.mubr.bf16.vlgmr.msra.gmra.mrb[12].mxu1 %v1236_v53  ;;  %v1848_v6 = vld [vmem:[%s2617_s2] ss:$0 sm:$0xff] }
  0x89   : > { %2118 = vmatprep.subr.bf16.mxu0 %v2239_v7  ;;  %2132 = vmatprep.mubr.bf16.mxu0 %v2507_v34 }
  0x8c   : > { %2119 = vmatpush3.bf16.msra.mxu0 %v2239_v7 }
  0x8d   : > { %2120 = vmatprep.subr.bf16.mxu0 %v2240_v8 }
  0x90   : > { %2121 = vmatpush3.bf16.msra.mxu0 %v2240_v8  ;;  %v1479_v8 = vunpack.c.l.bf16 %v1476_v3 }
  0x91   : > { %2122 = vmatprep.subr.bf16.mxu0 %v2241_v9 }
  0x94   : > { %2123 = vmatpush3.bf16.msra.mxu0 %v2241_v9 }
  0x95   : > { %2124 = vmatprep.subr.bf16.mxu0 %v2242_v10 }
  0x98   : > { %2125 = vmatpush3.bf16.msra.mxu0 %v2242_v10 }
  0x99   : > { %2126 = vmatprep.subr.bf16.mxu0 %v2243_v11 }
  0x9c   : > { %2127 = vmatpush3.bf16.msra.mxu0 %v2243_v11  ;;  %v1859_v11 = vunpack.c.l.bf16 %v1858_v4 }
  0x9d   : > { %2128 = vmatprep.subr.bf16.mxu0 %v2244_v12 }
  0xa0   : > { %2129 = vmatpush3.bf16.msra.mxu0 %v2244_v12 }
  0xa1   : > { %2130 = vmatprep.subr.bf16.mxu0 %v2245_v13 }
  0xa4   : > { %2131 = vmatpush3.bf16.msra.mxu0 %v2245_v13 }
  0xa7   : > { %2133 = vmatmul.mubr.bf16.vlgmr.msra.gmra.mrb[16].mxu0 %v1361_v29 }
  0xfa   : > { %v1974_v14 = vpop.f32.mrb[0].mxu0 }
  0xfb   : > { %v1994_v15 = vpop.f32.mrb[0].mxu1  ;;  %v426_v16 = vpop.f32.mrb[1].mxu0 }
  0xfc   : > { %v536_v17 = vadd.f32 %v1994_v15, %v1974_v14  ;;  %v527_v18 = vpop.f32.mrb[1].mxu1  ;;  %v1975_v19 = vpop.f32.mrb[2].mxu0 }
  0xfd   : > { %v528_v20 = vadd.f32 %v527_v18, %v426_v16  ;;  %v1995_v21 = vpop.f32.mrb[2].mxu1  ;;  %v429_v22 = vpop.f32.mrb[3].mxu0 }
  0xfe   : > { %v530_v23 = vpop.f32.mrb[3].mxu1 }
  0xff   : > { %v531_v25 = vadd.f32 %v530_v23, %v429_v22 }
 0x11a   : > { %v2014_v26 = vpop.f32.mrb[4].mxu0 }
 0x11b   : > { %v666_v27 = vadd.f32 %v2014_v26, %v536_v17  ;;  %v650_v28 = vpop.f32.mrb[5].mxu0  ;;  %v2034_v30 = vpop.f32.mrb[4].mxu1  ;;  %v1860_v17 = vunpack.c.h.bf16 %v1858_v4 }
 0x11c   : > { %v664_v31 = vadd.f32 %v650_v28, %v528_v20  ;;  %v2015_v32 = vpop.f32.mrb[6].mxu0  ;;  %v786_v33 = vpop.f32.mrb[5].mxu1 }
 0x11d   : > { %v802_v24 = vadd.f32 %v2034_v30, %v666_v27  ;;  %v653_v29 = vpop.f32.mrb[7].mxu0  ;;  %v2035_v34 = vpop.f32.mrb[6].mxu1 }
 0x11e   : > { %v665_v35 = vadd.f32 %v653_v29, %v531_v25  ;;  %v800_v36 = vadd.f32 %v786_v33, %v664_v31  ;;  %v789_v37 = vpop.f32.mrb[7].mxu1 }
 0x120   : > { %v801_v38 = vadd.f32 %v789_v37, %v665_v35 }
 0x13a   : > { %v2054_v39 = vpop.f32.mrb[8].mxu0 }
 0x13b   : > { %v942_v40 = vadd.f32 %v2054_v39, %v802_v24  ;;  %v926_v41 = vpop.f32.mrb[9].mxu0  ;;  %v2074_v42 = vpop.f32.mrb[8].mxu1 }
 0x13c   : > { %v940_v43 = vadd.f32 %v926_v41, %v800_v36  ;;  %v2055_v44 = vpop.f32.mrb[10].mxu0  ;;  %v1046_v45 = vpop.f32.mrb[9].mxu1 }
 0x13d   : > { %v1062_v46 = vadd.f32 %v2074_v42, %v942_v40  ;;  %v929_v47 = vpop.f32.mrb[11].mxu0  ;;  %v2075_v48 = vpop.f32.mrb[10].mxu1 }
 0x13e   : > { %v941_v49 = vadd.f32 %v929_v47, %v801_v38  ;;  %v1060_v50 = vadd.f32 %v1046_v45, %v940_v43  ;;  %v1049_v51 = vpop.f32.mrb[11].mxu1 }
 0x140   : > { %v1061_v52 = vadd.f32 %v1049_v51, %v941_v49 }
 0x15a   : > { %v2094_v53 = vpop.f32.mrb[12].mxu0 }
 0x15b   : > { %v1198_v54 = vadd.f32 %v2094_v53, %v1062_v46  ;;  %v1182_v55 = vpop.f32.mrb[13].mxu0  ;;  %v2114_v56 = vpop.f32.mrb[12].mxu1 }
 0x15c   : > { %v1196_v57 = vadd.f32 %v1182_v55, %v1060_v50  ;;  %v2095_v58 = vpop.f32.mrb[14].mxu0  ;;  %v1322_v59 = vpop.f32.mrb[13].mxu1 }
 0x15d   : > { %v1338_v60 = vadd.f32 %v2114_v56, %v1198_v54  ;;  %v1185_v61 = vpop.f32.mrb[15].mxu0  ;;  %v2115_v62 = vpop.f32.mrb[14].mxu1 }
 0x15e   : > { %v1197_v63 = vadd.f32 %v1185_v61, %v1061_v52  ;;  %v1336_v0 = vadd.f32 %v1322_v59, %v1196_v57  ;;  %v1325_v1 = vpop.f32.mrb[15].mxu1 }
 0x160   : > { %v1337_v2 = vadd.f32 %v1325_v1, %v1197_v63 }
 0x17a   : > { %v2134_v5 = vpop.f32.mrb[16].mxu0 }
 0x17b   : > { %v1463_v7 = vadd.f32 %v2134_v5, %v1338_v60  ;;  %v1447_v9 = vpop.f32.mrb[17].mxu0 }
 0x17c   : > { %v1461_v10 = vadd.f32 %v1447_v9, %v1336_v0  ;;  %v2135_v12 = vpop.f32.mrb[18].mxu0 }
 0x17d   : > { %v1473_v13 = vadd.f32 %v1848_v6, %v1463_v7  ;;  %v1450_v14 = vpop.f32.mrb[19].mxu0 }
 0x17e   : > { %v1471_v15 = vadd.f32 %v1848_v6, %v1461_v10  ;;  %v1462_v16 = vadd.f32 %v1450_v14, %v1337_v2 }
 0x17f   : > { %v1482_v18 = vadd.f32 %v1479_v8, %v1473_v13 }
 0x180   : > { %v1480_v19 = vadd.f32 %v1859_v11, %v1471_v15  ;;  %v1472_v20 = vadd.f32 %v1848_v6, %v1462_v16 }
 0x181   : > { %v1485_v21 = vmax.f32 %v1482_v18, 0.0 }
 0x182   : > { %v1481_v22 = vadd.f32 %v1860_v17, %v1472_v20  ;;  %v1483_v25 = vmax.f32 %v1480_v19, 0.0 }
 0x183   : > { %v1856_v23 = vpack.c.bf16 %v1485_v21, %v1485_v21 }
 0x184   : > { %v1484_v26 = vmax.f32 %v1481_v22, 0.0 }
 0x185   : > { %1501 = vst [vmem:[%s279_s23 + $0x8] sm:$0x7] %v1856_v23 }
 0x186   : > { %v1864_v27 = vpack.c.bf16 %v1484_v26, %v1483_v25 }
 0x188   : > { %1865 = vst [vmem:[%s279_s23] sm:$0xff] %v1864_v27  }
 0x189 PF: > { %s14_s17 = sadd.s32 1, %s2269_s17   ;;  %s2620_s15 = smov %s2265_s16 }
 0x18a   : > { %p11_p5 = scmp.ge.s32.totalorder %s14_s17, 4   ;;  %s2621_s16 = smov %s2623_s18 }
 0x18c   :  { %13 = sbr.rel (!%p11_p5) target bundleno = 2 (0x2), region = 83 }

// kernel: resnet_forward.10
= control target key start
LH: loop header
LB: loop body
LE: loop exit
PB: predicated region body
PF: predicated region fallthrough
CT: control target
= control target key end

     0   :  { %s3806_s15 = smov 0   ;;  %s3808_s16 = smov 0   ;;  %s4773_s0 = inlined_call_operand.vmem [shape: bf16[2,16,256], index: 0, kind: input, shape index: {}]   ;;  %s4774_s1 = inlined_call_operand.vmem [shape: bf16[9,256,256], index: 1, kind: input, shape index: {}]   ;;  %s4775_s2 = inlined_call_operand.vmem [shape: f32[1,256], index: 2, kind: input, shape index: {}]   ;;  %s4776_s3 = inlined_call_operand.vmem [shape: bf16[2,6,256], index: 3, kind: input, shape index: {}]   ;;  %s4777_s4 = inlined_call_operand.vmem [shape: bf16[2,6,256], index: 4, kind: output, shape index: {}]  }
   0x1   :  { %s3810_s17 = smov 0  }
   0x2 LB: > { %s26_s18 = sadd.s32 1, %s3775_s16  ;;  %p2707_p0 = scmp.ge.s32.totalorder %s3779_s17, 1  ;;  %s3779_s17 = sphi %s3810_s17, %s14_s17   ;;  %s3775_s16 = sphi %s3808_s16, %s4779_s16   ;;  %s3771_s15 = sphi %s3806_s15, %s4778_s15  }
   0x3   : > { %p28_p1 = scmp.ge.s32.totalorder %s26_s18, 2  ;;  %p214_p2 = scmp.lt.s32.totalorder %s3779_s17, 3 }
   0x5   : > { %s4781_s18 = smov (%p28_p1, %s26_s18), 0  ;;  %p215_p3 = pnand %p2707_p0, %p214_p2 }
   0x6   : > { %v3307_v0 = vld [vmem:[%s4774_s1 + $0x104] ss:$8 sps:$4 sm:$0xff] (!%p215_p3)   ;;  %v3311_v2 = vld [vmem:[%s4774_s1 + $0x100] ss:$8 sps:$4 sm:$0xff] (!%p215_p3)   ;;  %v3313_v4 = vld [vmem:[%s4774_s1 + $0x114] ss:$8 sps:$4 sm:$0xff] (!%p215_p3)  }
   0x7   : > { %218 = sbr.rel (%p215_p3) target bundleno = 551 (0x227), region = 36  ;;  %v3309_v1 = vld [vmem:[%s4774_s1 + $0x4] ss:$8 sps:$4 sm:$0xff] (!%p215_p3)   ;;  %546 = vmatprep.subr.bf16.mxu0 (!%p215_p3), %v3307_v0  ;;  %v3312_v3 = vld [vmem:[%s4774_s1] ss:$8 sps:$4 sm:$0xff] (!%p215_p3)   ;;  %p262_p4 = scmp.lt.s32.totalorder (!%p215_p3), %s3771_s15, 1 }
   0x8   : > { %754 = vmatprep.subr.bf16.mxu1 (!%p215_p3), %v3309_v1  ;;  %547 = vmatpush1.bf16.msra.mxu0 (!%p215_p3), %v3311_v2  ;;  %v3315_v5 = vld [vmem:[%s4774_s1 + $0x14] ss:$8 sps:$4 sm:$0xff] (!%p215_p3)   ;;  %v3317_v6 = vld [vmem:[%s4774_s1 + $0x110] ss:$8 sps:$4 sm:$0xff] (!%p215_p3)   ;;  %v3319_v8 = vld [vmem:[%s4774_s1 + $0x124] ss:$8 sps:$4 sm:$0xff] (!%p215_p3)  }
   0x9   : > { %755 = vmatpush1.bf16.msra.mxu1 (!%p215_p3), %v3312_v3  ;;  %548 = vmatprep.subr.bf16.mxu0 (!%p215_p3), %v3313_v4  ;;  %v3318_v7 = vld [vmem:[%s4774_s1 + $0x10] ss:$8 sps:$4 sm:$0xff] (!%p215_p3)   ;;  %v3321_v9 = vld [vmem:[%s4774_s1 + $0x24] ss:$8 sps:$4 sm:$0xff] (!%p215_p3)   ;;  %v3323_v10 = vld [vmem:[%s4774_s1 + $0x120] ss:$8 sps:$4 sm:$0xff] (!%p215_p3)  }
   0xa   : > { %756 = vmatprep.subr.bf16.mxu1 (!%p215_p3), %v3315_v5  ;;  %v3324_v11 = vld [vmem:[%s4774_s1 + $0x20] ss:$8 sps:$4 sm:$0xff] (!%p215_p3)   ;;  %v3325_v12 = vld [vmem:[%s4774_s1 + $0x134] ss:$8 sps:$4 sm:$0xff] (!%p215_p3)   ;;  %v3329_v14 = vld [vmem:[%s4774_s1 + $0x130] ss:$8 sps:$4 sm:$0xff] (!%p215_p3)  }
   0xb   : > { %v3327_v13 = vld [vmem:[%s4774_s1 + $0x34] ss:$8 sps:$4 sm:$0xff] (!%p215_p3)   ;;  %v3330_v15 = vld [vmem:[%s4774_s1 + $0x30] ss:$8 sps:$4 sm:$0xff] (!%p215_p3)   ;;  %v3331_v16 = vld [vmem:[%s4774_s1 + $0x144] ss:$8 sps:$4 sm:$0xff] (!%p215_p3)  }
   0xc   : > { %549 = vmatpush1.bf16.msra.mxu0 (!%p215_p3), %v3317_v6  ;;  %v3333_v17 = vld [vmem:[%s4774_s1 + $0x44] ss:$8 sps:$4 sm:$0xff] (!%p215_p3)   ;;  %v3335_v18 = vld [vmem:[%s4774_s1 + $0x140] ss:$8 sps:$4 sm:$0xff] (!%p215_p3)   ;;  %v3337_v20 = vld [vmem:[%s4774_s1 + $0x154] ss:$8 sps:$4 sm:$0xff] (!%p215_p3)  }
   0xd   : > { %757 = vmatpush1.bf16.msra.mxu1 (!%p215_p3), %v3318_v7  ;;  %550 = vmatprep.subr.bf16.mxu0 (!%p215_p3), %v3319_v8  ;;  %v3336_v19 = vld [vmem:[%s4774_s1 + $0x40] ss:$8 sps:$4 sm:$0xff] (!%p215_p3)   ;;  %v3339_v21 = vld [vmem:[%s4774_s1 + $0x54] ss:$8 sps:$4 sm:$0xff] (!%p215_p3)   ;;  %v3341_v22 = vld [vmem:[%s4774_s1 + $0x150] ss:$8 sps:$4 sm:$0xff] (!%p215_p3)  }
   0xe   : > { %758 = vmatprep.subr.bf16.mxu1 %v3321_v9  ;;  %v3342_v23 = vld [vmem:[%s4774_s1 + $0x50] ss:$8 sps:$4 sm:$0xff]   ;;  %v3343_v24 = vld [vmem:[%s4774_s1 + $0x164] ss:$8 sps:$4 sm:$0xff]   ;;  %v3347_v26 = vld [vmem:[%s4774_s1 + $0x160] ss:$8 sps:$4 sm:$0xff]  }
   0xf   : > { %v3345_v25 = vld [vmem:[%s4774_s1 + $0x64] ss:$8 sps:$4 sm:$0xff]   ;;  %v3348_v27 = vld [vmem:[%s4774_s1 + $0x60] ss:$8 sps:$4 sm:$0xff]   ;;  %v3349_v28 = vld [vmem:[%s4774_s1 + $0x174] ss:$8 sps:$4 sm:$0xff]  }
  0x10   : > { %551 = vmatpush1.bf16.msra.mxu0 %v3323_v10  ;;  %v3351_v29 = vld [vmem:[%s4774_s1 + $0x74] ss:$8 sps:$4 sm:$0xff]   ;;  %v3353_v30 = vld [vmem:[%s4774_s1 + $0x170] ss:$8 sps:$4 sm:$0xff]   ;;  %v3355_v32 = vld [vmem:[%s4774_s1 + $0x184] ss:$8 sps:$4 sm:$0xff]  }
  0x11   : > { %759 = vmatpush1.bf16.msra.mxu1 %v3324_v11  ;;  %552 = vmatprep.subr.bf16.mxu0 %v3325_v12  ;;  %v3354_v31 = vld [vmem:[%s4774_s1 + $0x70] ss:$8 sps:$4 sm:$0xff]   ;;  %v3357_v33 = vld [vmem:[%s4774_s1 + $0x84] ss:$8 sps:$4 sm:$0xff]   ;;  %v3359_v34 = vld [vmem:[%s4774_s1 + $0x180] ss:$8 sps:$4 sm:$0xff]  }
  0x12   : > { %760 = vmatprep.subr.bf16.mxu1 %v3327_v13  ;;  %v3360_v35 = vld [vmem:[%s4774_s1 + $0x80] ss:$8 sps:$4 sm:$0xff]   ;;  %v3361_v36 = vld [vmem:[%s4774_s1 + $0x194] ss:$8 sps:$4 sm:$0xff]   ;;  %s4783_s15 = smov (!%p262_p4, %s3771_s15), 1 }
  0x13   : > { %v3363_v37 = vld [vmem:[%s4774_s1 + $0x94] ss:$8 sps:$4 sm:$0xff]   ;;  %v3365_v38 = vld [vmem:[%s4774_s1 + $0x190] ss:$8 sps:$4 sm:$0xff]   ;;  %v3367_v40 = vld [vmem:[%s4774_s1 + $0x1a4] ss:$8 sps:$4 sm:$0xff]  }
  0x14   : > { %553 = vmatpush1.bf16.msra.mxu0 %v3329_v14  ;;  %v3366_v39 = vld [vmem:[%s4774_s1 + $0x90] ss:$8 sps:$4 sm:$0xff]   ;;  %s3279_s9 = sshll.u32 %s4783_s15, 4  ;;  %v3369_v41 = vld [vmem:[%s4774_s1 + $0xa4] ss:$8 sps:$4 sm:$0xff]   ;;  %s3280_s25 = sshll.u32 %s4783_s15, 3 }
  0x15   : > { %761 = vmatpush1.bf16.msra.mxu1 %v3330_v15  ;;  %554 = vmatprep.subr.bf16.mxu0 %v3331_v16  ;;  %v3371_v42 = vld [vmem:[%s4774_s1 + $0x1a0] ss:$8 sps:$4 sm:$0xff]   ;;  %s3966_s22 = scalar_lea.vmem %s4773_s0, %s3279_s9  ;;  %v3373_v44 = vld [vmem:[%s4774_s1 + $0x1b4] ss:$8 sps:$4 sm:$0xff]   ;;  %v3377_v46 = vld [vmem:[%s4774_s1 + $0x1b0] ss:$8 sps:$4 sm:$0xff]   ;;  %s296_s5 = scalar_lea.vmem %s4777_s4, %s3280_s25 }
  0x16   : > { %762 = vmatprep.subr.bf16.mxu1 %v3333_v17  ;;  %v3372_v43 = vld [vmem:[%s4774_s1 + $0xa0] ss:$8 sps:$4 sm:$0xff]   ;;  %v3375_v45 = vld [vmem:[%s4774_s1 + $0xb4] ss:$8 sps:$4 sm:$0xff]   ;;  %v3378_v50 = vld [vmem:[%s4774_s1 + $0xb0] ss:$8 sps:$4 sm:$0xff]  }
  0x17   : > { %v331_v47 = vld [vmem:[%s3966_s22] sm:$0xff]  ;;  %v3385_v59 = vld [vmem:[%s4774_s1 + $0x1d4] ss:$8 sps:$4 sm:$0xff]   ;;  %v3389_v62 = vld [vmem:[%s4774_s1 + $0x1d0] ss:$8 sps:$4 sm:$0xff]  }
  0x18   : > { %555 = vmatpush1.bf16.msra.mxu0 %v3335_v18  ;;  %v2747_v48 = vcombine.high %v331_v47, %v331_v47  ;;  %v298_v49 = vld [vmem:[%s3966_s22] sm:$0x77]  ;;  %v3387_v60 = vld [vmem:[%s4774_s1 + $0xd4] ss:$8 sps:$4 sm:$0xff]   ;;  %v3390_v63 = vld [vmem:[%s4774_s1 + $0xd0] ss:$8 sps:$4 sm:$0xff]   ;;  %v2746_v0 = vcombine.low %v331_v47, %v331_v47 }
  0x19   : > { %763 = vmatpush1.bf16.msra.mxu1 %v3336_v19  ;;  %556 = vmatprep.subr.bf16.mxu0 %v3337_v20  ;;  %v3379_v51 = vld [vmem:[%s4774_s1 + $0x1c4] ss:$8 sps:$4 sm:$0xff]   ;;  %v2781_v52 = vcombine.high %v298_v49, %v298_v49  ;;  %v3383_v56 = vld [vmem:[%s4774_s1 + $0x1c0] ss:$8 sps:$4 sm:$0xff]   ;;  %v3397_v6 = vld [vmem:[%s4774_s1 + $0x1f4] ss:$8 sps:$4 sm:$0xff]   ;;  %v2780_v14 = vcombine.low %v298_v49, %v298_v49 }
  0x1a   : > { %764 = vmatprep.subr.bf16.mxu1 %v3339_v21  ;;  %v3381_v53 = vld [vmem:[%s4774_s1 + $0xc4] ss:$8 sps:$4 sm:$0xff]   ;;  %v378_v54 = vshrl.u32 %v2747_v48, 16  ;;  %v380_v55 = vshll.u32 %v2747_v48, 16  ;;  %v3384_v57 = vld [vmem:[%s4774_s1 + $0xc0] ss:$8 sps:$4 sm:$0xff]  }
  0x1b   : > { %786 = vmatprep.mubr.bf16.mxu1 %v2781_v52  ;;  %v3391_v1 = vld [vmem:[%s4774_s1 + $0x1e4] ss:$8 sps:$4 sm:$0xff]   ;;  %v3395_v3 = vld [vmem:[%s4774_s1 + $0x1e0] ss:$8 sps:$4 sm:$0xff]   ;;  %v373_v5 = vshll.u32 %v2746_v0, 16  ;;  %v371_v10 = vshrl.u32 %v2746_v0, 16 }
  0x1c   : > { %557 = vmatpush1.bf16.msra.mxu0 %v3341_v22  ;;  %v382_v58 = vrot.slane %v380_v55, 1  ;;  %v3393_v2 = vld [vmem:[%s4774_s1 + $0xe4] ss:$8 sps:$4 sm:$0xff]   ;;  %v3396_v4 = vld [vmem:[%s4774_s1 + $0xe0] ss:$8 sps:$4 sm:$0xff]  }
  0x1d   : > { %765 = vmatpush1.bf16.msra.mxu1 %v3342_v23  ;;  %558 = vmatprep.subr.bf16.mxu0 %v3343_v24  ;;  %v3399_v7 = vld [vmem:[%s4774_s1 + $0xf4] ss:$8 sps:$4 sm:$0xff]   ;;  %v3401_v8 = vld [vmem:[%s4774_s1 + $0x1f0] ss:$8 sps:$4 sm:$0xff]   ;;  %v375_v11 = vrot.slane %v373_v5, 1 }
  0x1e   : > { %766 = vmatprep.subr.bf16.mxu1 %v3345_v25  ;;  %v383_v61 = vor.u32 %v382_v58, %v378_v54  ;;  %v3402_v9 = vld [vmem:[%s4774_s1 + $0xf0] ss:$8 sps:$4 sm:$0xff]   ;;  %v3409_v12 = vld [vmem:[%s4774_s1 + $0x204] ss:$8 sps:$4 sm:$0xff]   ;;  %v3407_v16 = vld [vmem:[%s4774_s1 + $0x200] ss:$8 sps:$4 sm:$0xff]  }
  0x1f   : > { %v3412_v13 = vld [vmem:[%s4774_s1 + $0x304] ss:$8 sps:$4 sm:$0xff]   ;;  %v376_v15 = vor.u32 %v375_v11, %v371_v10  ;;  %v3410_v17 = vld [vmem:[%s4774_s1 + $0x300] ss:$8 sps:$4 sm:$0xff]   ;;  %v3415_v18 = vld [vmem:[%s4774_s1 + $0x214] ss:$8 sps:$4 sm:$0xff]  }
  0x20   : > { %559 = vmatpush1.bf16.msra.mxu0 %v3347_v26  ;;  %578 = vmatprep.mubr.bf16.mxu0 %v383_v61  ;;  %v3418_v19 = vld [vmem:[%s4774_s1 + $0x314] ss:$8 sps:$4 sm:$0xff]   ;;  %v3413_v20 = vld [vmem:[%s4774_s1 + $0x210] ss:$8 sps:$4 sm:$0xff]   ;;  %v3421_v22 = vld [vmem:[%s4774_s1 + $0x224] ss:$8 sps:$4 sm:$0xff]  }
  0x21   : > { %767 = vmatpush1.bf16.msra.mxu1 %v3348_v27  ;;  %560 = vmatprep.subr.bf16.mxu0 %v3349_v28  ;;  %v3416_v21 = vld [vmem:[%s4774_s1 + $0x310] ss:$8 sps:$4 sm:$0xff]   ;;  %v3424_v23 = vld [vmem:[%s4774_s1 + $0x324] ss:$8 sps:$4 sm:$0xff]   ;;  %v3419_v24 = vld [vmem:[%s4774_s1 + $0x220] ss:$8 sps:$4 sm:$0xff]  }
  0x22   : > { %768 = vmatprep.subr.bf16.mxu1 %v3351_v29  ;;  %v3422_v25 = vld [vmem:[%s4774_s1 + $0x320] ss:$8 sps:$4 sm:$0xff]   ;;  %v3427_v26 = vld [vmem:[%s4774_s1 + $0x234] ss:$8 sps:$4 sm:$0xff]   ;;  %v3425_v28 = vld [vmem:[%s4774_s1 + $0x230] ss:$8 sps:$4 sm:$0xff]  }
  0x23   : > { %v3430_v27 = vld [vmem:[%s4774_s1 + $0x334] ss:$8 sps:$4 sm:$0xff]   ;;  %v3428_v29 = vld [vmem:[%s4774_s1 + $0x330] ss:$8 sps:$4 sm:$0xff]   ;;  %v3460_v54 = vld [vmem:[%s4774_s1 + $0x384] ss:$8 sps:$4 sm:$0xff]  }
  0x24   : > { %561 = vmatpush1.bf16.msra.mxu0 %v3353_v30  ;;  %v3433_v30 = vld [vmem:[%s4774_s1 + $0x244] ss:$8 sps:$4 sm:$0xff]   ;;  %v3454_v47 = vld [vmem:[%s4774_s1 + $0x374] ss:$8 sps:$4 sm:$0xff]   ;;  %v3455_v55 = vld [vmem:[%s4774_s1 + $0x280] ss:$8 sps:$4 sm:$0xff]  }
  0x25   : > { %769 = vmatpush1.bf16.msra.mxu1 %v3354_v31  ;;  %562 = vmatprep.subr.bf16.mxu0 %v3355_v32  ;;  %v3436_v31 = vld [vmem:[%s4774_s1 + $0x344] ss:$8 sps:$4 sm:$0xff]   ;;  %v3431_v32 = vld [vmem:[%s4774_s1 + $0x240] ss:$8 sps:$4 sm:$0xff]   ;;  %v3466_v58 = vld [vmem:[%s4774_s1 + $0x394] ss:$8 sps:$4 sm:$0xff]  }
  0x26   : > { %770 = vmatprep.subr.bf16.mxu1 %v3357_v33  ;;  %v3434_v33 = vld [vmem:[%s4774_s1 + $0x340] ss:$8 sps:$4 sm:$0xff]   ;;  %v3469_v61 = vld [vmem:[%s4774_s1 + $0x2a4] ss:$8 sps:$4 sm:$0xff]   ;;  %v3490_v10 = vld [vmem:[%s4774_s1 + $0x3d4] ss:$8 sps:$4 sm:$0xff]  }
  0x27   : > { %v3470_v0 = vld [vmem:[%s4774_s1 + $0x3a0] ss:$8 sps:$4 sm:$0xff]   ;;  %v3481_v5 = vld [vmem:[%s4774_s1 + $0x2c4] ss:$8 sps:$4 sm:$0xff]   ;;  %v3485_v11 = vld [vmem:[%s4774_s1 + $0x2d0] ss:$8 sps:$4 sm:$0xff]  }
  0x28   : > { %563 = vmatpush1.bf16.msra.mxu0 %v3359_v34  ;;  %v3439_v34 = vld [vmem:[%s4774_s1 + $0x254] ss:$8 sps:$4 sm:$0xff]  }
  0x29   : > { %771 = vmatpush1.bf16.msra.mxu1 %v3360_v35  ;;  %564 = vmatprep.subr.bf16.mxu0 %v3361_v36  ;;  %v3442_v35 = vld [vmem:[%s4774_s1 + $0x354] ss:$8 sps:$4 sm:$0xff]   ;;  %v3437_v36 = vld [vmem:[%s4774_s1 + $0x250] ss:$8 sps:$4 sm:$0xff]  }
  0x2a   : > { %772 = vmatprep.subr.bf16.mxu1 %v3363_v37  ;;  %v3440_v37 = vld [vmem:[%s4774_s1 + $0x350] ss:$8 sps:$4 sm:$0xff]  }
  0x2c   : > { %565 = vmatpush1.bf16.msra.mxu0 %v3365_v38  ;;  %v3445_v38 = vld [vmem:[%s4774_s1 + $0x264] ss:$8 sps:$4 sm:$0xff]  }
  0x2d   : > { %773 = vmatpush1.bf16.msra.mxu1 %v3366_v39  ;;  %566 = vmatprep.subr.bf16.mxu0 %v3367_v40  ;;  %v3448_v39 = vld [vmem:[%s4774_s1 + $0x364] ss:$8 sps:$4 sm:$0xff]   ;;  %v3443_v40 = vld [vmem:[%s4774_s1 + $0x260] ss:$8 sps:$4 sm:$0xff]  }
  0x2e   : > { %774 = vmatprep.subr.bf16.mxu1 %v3369_v41  ;;  %v4112_v41 = vld [vmem:[%s3966_s22] sm:$0xee] }
  0x30   : > { %567 = vmatpush1.bf16.msra.mxu0 %v3371_v42  ;;  %v3446_v42 = vld [vmem:[%s4774_s1 + $0x360] ss:$8 sps:$4 sm:$0xff]  }
  0x31   : > { %775 = vmatpush1.bf16.msra.mxu1 %v3372_v43  ;;  %568 = vmatprep.subr.bf16.mxu0 %v3373_v44  ;;  %v2847_v43 = vcombine.high %v4112_v41, %v4112_v41  ;;  %v3451_v44 = vld [vmem:[%s4774_s1 + $0x274] ss:$8 sps:$4 sm:$0xff]  }
  0x32   : > { %776 = vmatprep.subr.bf16.mxu1 %v3375_v45  ;;  %v4123_v45 = vld [vmem:[%s3966_s22] sm:$0xcc] }
  0x33   : > { %v835_v48 = vrot.slane %v2847_v43, 1 }
  0x34   : > { %569 = vmatpush1.bf16.msra.mxu0 %v3377_v46  ;;  %v4126_v46 = vld [vmem:[%s3966_s22 + $0x8] sm:$0x11] }
  0x35   : > { %777 = vmatpush1.bf16.msra.mxu1 %v3378_v50  ;;  %570 = vmatprep.subr.bf16.mxu0 %v3379_v51  ;;  %v2913_v49 = vcombine.high %v4123_v45, %v4126_v46  ;;  %v3449_v50 = vld [vmem:[%s4774_s1 + $0x270] ss:$8 sps:$4 sm:$0xff]  }
  0x36   : > { %778 = vmatprep.subr.bf16.mxu1 %v3381_v53  ;;  %v3452_v51 = vld [vmem:[%s4774_s1 + $0x370] ss:$8 sps:$4 sm:$0xff]   ;;  %v3457_v53 = vld [vmem:[%s4774_s1 + $0x284] ss:$8 sps:$4 sm:$0xff]  }
  0x37   : > { %v1085_v52 = vrot.slane %v2913_v49, 2 }
  0x38   : > { %571 = vmatpush1.bf16.msra.mxu0 %v3383_v56  ;;  %v3458_v56 = vld [vmem:[%s4774_s1 + $0x380] ss:$8 sps:$4 sm:$0xff]  }
  0x39   : > { %779 = vmatpush1.bf16.msra.mxu1 %v3384_v57  ;;  %572 = vmatprep.subr.bf16.mxu0 %v3385_v59  ;;  %v3463_v57 = vld [vmem:[%s4774_s1 + $0x294] ss:$8 sps:$4 sm:$0xff]   ;;  %v3461_v59 = vld [vmem:[%s4774_s1 + $0x290] ss:$8 sps:$4 sm:$0xff]  }
  0x3a   : > { %780 = vmatprep.subr.bf16.mxu1 %v3387_v60  ;;  %v3464_v60 = vld [vmem:[%s4774_s1 + $0x390] ss:$8 sps:$4 sm:$0xff]  }
  0x3c   : > { %573 = vmatpush1.bf16.msra.mxu0 %v3389_v62  ;;  %v3472_v62 = vld [vmem:[%s4774_s1 + $0x3a4] ss:$8 sps:$4 sm:$0xff]  }
  0x3d   : > { %781 = vmatpush1.bf16.msra.mxu1 %v3390_v63  ;;  %574 = vmatprep.subr.bf16.mxu0 %v3391_v1  ;;  %v3467_v63 = vld [vmem:[%s4774_s1 + $0x2a0] ss:$8 sps:$4 sm:$0xff]   ;;  %v3475_v1 = vld [vmem:[%s4774_s1 + $0x2b4] ss:$8 sps:$4 sm:$0xff]  }
  0x3e   : > { %782 = vmatprep.subr.bf16.mxu1 %v3393_v2  ;;  %v3478_v2 = vld [vmem:[%s4774_s1 + $0x3b4] ss:$8 sps:$4 sm:$0xff]  }
  0x40   : > { %575 = vmatpush1.bf16.msra.mxu0 %v3395_v3  ;;  %v3473_v3 = vld [vmem:[%s4774_s1 + $0x2b0] ss:$8 sps:$4 sm:$0xff]  }
  0x41   : > { %783 = vmatpush1.bf16.msra.mxu1 %v3396_v4  ;;  %576 = vmatprep.subr.bf16.mxu0 %v3397_v6  ;;  %v3476_v4 = vld [vmem:[%s4774_s1 + $0x3b0] ss:$8 sps:$4 sm:$0xff]   ;;  %v3484_v6 = vld [vmem:[%s4774_s1 + $0x3c4] ss:$8 sps:$4 sm:$0xff]  }
  0x42   : > { %784 = vmatprep.subr.bf16.mxu1 %v3399_v7  ;;  %v3479_v7 = vld [vmem:[%s4774_s1 + $0x2c0] ss:$8 sps:$4 sm:$0xff]  }
  0x44   : > { %577 = vmatpush1.bf16.msra.mxu0 %v3401_v8  ;;  %v3482_v8 = vld [vmem:[%s4774_s1 + $0x3c0] ss:$8 sps:$4 sm:$0xff]  }
  0x45   : > { %785 = vmatpush1.bf16.msra.mxu1 %v3402_v9  ;;  %998 = vmatprep.subr.bf16.mxu0 %v3409_v12  ;;  %v3487_v9 = vld [vmem:[%s4774_s1 + $0x2d4] ss:$8 sps:$4 sm:$0xff]   ;;  %v3488_v12 = vld [vmem:[%s4774_s1 + $0x3d0] ss:$8 sps:$4 sm:$0xff]  }
  0x46   : > { %1248 = vmatprep.subr.bf16.mxu1 %v3412_v13  ;;  %v3493_v13 = vld [vmem:[%s4774_s1 + $0x2e4] ss:$8 sps:$4 sm:$0xff]  }
  0x47   : > { %579 = vmatmul.mubr.bf16.vlgmr.msra.gmra.mrb[0].mxu0 %v376_v15  ;;  %v3491_v15 = vld [vmem:[%s4774_s1 + $0x2e0] ss:$8 sps:$4 sm:$0xff]  }
  0x48   : > { %787 = vmatmul.mubr.bf16.vlgmr.msra.gmra.mrb[0].mxu1 %v2780_v14  ;;  %999 = vmatpush1.bf16.msra.mxu0 %v3407_v16  ;;  %v3496_v14 = vld [vmem:[%s4774_s1 + $0x3e4] ss:$8 sps:$4 sm:$0xff]   ;;  %v3494_v16 = vld [vmem:[%s4774_s1 + $0x3e0] ss:$8 sps:$4 sm:$0xff]  }
  0x49   : > { %1249 = vmatpush1.bf16.msra.mxu1 %v3410_v17  ;;  %1000 = vmatprep.subr.bf16.mxu0 %v3415_v18  ;;  %v3499_v17 = vld [vmem:[%s4774_s1 + $0x2f4] ss:$8 sps:$4 sm:$0xff]  }
  0x4a   : > { %1250 = vmatprep.subr.bf16.mxu1 %v3418_v19  ;;  %1030 = vmatprep.mubr.bf16.mxu0 %v835_v48  ;;  %v3502_v18 = vld [vmem:[%s4774_s1 + $0x3f4] ss:$8 sps:$4 sm:$0xff]   ;;  %v3497_v19 = vld [vmem:[%s4774_s1 + $0x2f0] ss:$8 sps:$4 sm:$0xff]  }
  0x4b   : > { %1280 = vmatprep.mubr.bf16.mxu1 %v1085_v52  ;;  %v3530_v48 = vld [vmem:[%s4774_s1 + $0x534] ss:$8 sps:$4 sm:$0xff]   ;;  %v3533_v52 = vld [vmem:[%s4774_s1 + $0x444] ss:$8 sps:$4 sm:$0xff]  }
  0x4c   : > { %1001 = vmatpush1.bf16.msra.mxu0 %v3413_v20  ;;  %v3500_v20 = vld [vmem:[%s4774_s1 + $0x3f0] ss:$8 sps:$4 sm:$0xff]  }
  0x4d   : > { %1251 = vmatpush1.bf16.msra.mxu1 %v3416_v21  ;;  %1002 = vmatprep.subr.bf16.mxu0 %v3421_v22  ;;  %v2846_v21 = vcombine.low %v4112_v41, %v4112_v41  ;;  %v2912_v22 = vcombine.low %v4123_v45, %v4126_v46  ;;  %v3519_v41 = vld [vmem:[%s4774_s1 + $0x420] ss:$8 sps:$4 sm:$0xff]  }
  0x4e   : > { %1252 = vmatprep.subr.bf16.mxu1 %v3424_v23  ;;  %v3507_v23 = vld [vmem:[%s4774_s1 + $0x404] ss:$8 sps:$4 sm:$0xff]  }
  0x50   : > { %1003 = vmatpush1.bf16.msra.mxu0 %v3419_v24  ;;  %v3512_v24 = vld [vmem:[%s4774_s1 + $0x504] ss:$8 sps:$4 sm:$0xff]  }
  0x51   : > { %1253 = vmatpush1.bf16.msra.mxu1 %v3422_v25  ;;  %1004 = vmatprep.subr.bf16.mxu0 %v3427_v26  ;;  %v3505_v25 = vld [vmem:[%s4774_s1 + $0x400] ss:$8 sps:$4 sm:$0xff]   ;;  %v834_v26 = vrot.slane %v2846_v21, 1  ;;  %v3584_v21 = vld [vmem:[%s4774_s1 + $0x5c4] ss:$8 sps:$4 sm:$0xff]  }
  0x52   : > { %1254 = vmatprep.subr.bf16.mxu1 %v3430_v27  ;;  %v1084_v27 = vrot.slane %v2912_v22, 2  ;;  %v3579_v22 = vld [vmem:[%s4774_s1 + $0x4c0] ss:$8 sps:$4 sm:$0xff]  }
  0x54   : > { %1005 = vmatpush1.bf16.msra.mxu0 %v3425_v28  ;;  %v3510_v28 = vld [vmem:[%s4774_s1 + $0x500] ss:$8 sps:$4 sm:$0xff]  }
  0x55   : > { %1255 = vmatpush1.bf16.msra.mxu1 %v3428_v29  ;;  %1006 = vmatprep.subr.bf16.mxu0 %v3433_v30  ;;  %v3515_v29 = vld [vmem:[%s4774_s1 + $0x414] ss:$8 sps:$4 sm:$0xff]  }
  0x56   : > { %1256 = vmatprep.subr.bf16.mxu1 %v3436_v31  ;;  %v3518_v30 = vld [vmem:[%s4774_s1 + $0x514] ss:$8 sps:$4 sm:$0xff]   ;;  %v3513_v31 = vld [vmem:[%s4774_s1 + $0x410] ss:$8 sps:$4 sm:$0xff]  }
  0x58   : > { %1007 = vmatpush1.bf16.msra.mxu0 %v3431_v32  ;;  %v4261_v32 = vld [vmem:[%s3966_s22 + $0x8] sm:$0x33] }
  0x59   : > { %1257 = vmatpush1.bf16.msra.mxu1 %v3434_v33  ;;  %1008 = vmatprep.subr.bf16.mxu0 %v3439_v34  ;;  %v3516_v33 = vld [vmem:[%s4774_s1 + $0x510] ss:$8 sps:$4 sm:$0xff]   ;;  %v2979_v34 = vcombine.high %v4123_v45, %v4261_v32 }
  0x5a   : > { %1258 = vmatprep.subr.bf16.mxu1 %v3442_v35  ;;  %v3521_v35 = vld [vmem:[%s4774_s1 + $0x424] ss:$8 sps:$4 sm:$0xff]  }
  0x5c   : > { %1009 = vmatpush1.bf16.msra.mxu0 %v3437_v36  ;;  %v4272_v36 = vld [vmem:[%s3966_s22] sm:$0x88] }
  0x5d   : > { %1259 = vmatpush1.bf16.msra.mxu1 %v3440_v37  ;;  %1010 = vmatprep.subr.bf16.mxu0 %v3445_v38  ;;  %v3524_v37 = vld [vmem:[%s4774_s1 + $0x524] ss:$8 sps:$4 sm:$0xff]   ;;  %v1339_v38 = vshrl.u32 %v2979_v34, 16 }
  0x5e   : > { %1260 = vmatprep.subr.bf16.mxu1 %v3448_v39  ;;  %v1342_v39 = vshll.u32 %v2979_v34, 16 }
  0x60   : > { %1011 = vmatpush1.bf16.msra.mxu0 %v3443_v40  ;;  %v3045_v40 = vcombine.high %v4272_v36, %v4261_v32  ;;  %v1344_v43 = vrot.slane %v1342_v39, 3  ;;  %v3602_v39 = vld [vmem:[%s4774_s1 + $0x5f4] ss:$8 sps:$4 sm:$0xff]  }
  0x61   : > { %1261 = vmatpush1.bf16.msra.mxu1 %v3446_v42  ;;  %1012 = vmatprep.subr.bf16.mxu0 %v3451_v44  ;;  %v1341_v42 = vrot.slane %v1339_v38, 2  ;;  %v3522_v44 = vld [vmem:[%s4774_s1 + $0x520] ss:$8 sps:$4 sm:$0xff]   ;;  %v3599_v38 = vld [vmem:[%s4774_s1 + $0x4f4] ss:$8 sps:$4 sm:$0xff]  }
  0x62   : > { %1262 = vmatprep.subr.bf16.mxu1 %v3454_v47  ;;  %v1591_v46 = vrot.slane %v3045_v40, 3  ;;  %v3527_v47 = vld [vmem:[%s4774_s1 + $0x434] ss:$8 sps:$4 sm:$0xff]  }
  0x63   : > { %v1345_v49 = vor.u32 %v1344_v43, %v1341_v42  ;;  %v3044_v43 = vcombine.low %v4272_v36, %v4261_v32 }
  0x64   : > { %1013 = vmatpush1.bf16.msra.mxu0 %v3449_v50  ;;  %v3525_v50 = vld [vmem:[%s4774_s1 + $0x430] ss:$8 sps:$4 sm:$0xff]  }
  0x65   : > { %1263 = vmatpush1.bf16.msra.mxu1 %v3452_v51  ;;  %1014 = vmatprep.subr.bf16.mxu0 %v3457_v53  ;;  %v3528_v51 = vld [vmem:[%s4774_s1 + $0x530] ss:$8 sps:$4 sm:$0xff]   ;;  %v3536_v53 = vld [vmem:[%s4774_s1 + $0x544] ss:$8 sps:$4 sm:$0xff]  }
  0x66   : > { %1264 = vmatprep.subr.bf16.mxu1 %v3460_v54  ;;  %v3531_v54 = vld [vmem:[%s4774_s1 + $0x440] ss:$8 sps:$4 sm:$0xff]  }
  0x68   : > { %1015 = vmatpush1.bf16.msra.mxu0 %v3455_v55  ;;  %v3534_v55 = vld [vmem:[%s4774_s1 + $0x540] ss:$8 sps:$4 sm:$0xff]  }
  0x69   : > { %1265 = vmatpush1.bf16.msra.mxu1 %v3458_v56  ;;  %1016 = vmatprep.subr.bf16.mxu0 %v3463_v57  ;;  %v3539_v56 = vld [vmem:[%s4774_s1 + $0x454] ss:$8 sps:$4 sm:$0xff]  }
  0x6a   : > { %1266 = vmatprep.subr.bf16.mxu1 %v3466_v58  ;;  %v3542_v57 = vld [vmem:[%s4774_s1 + $0x554] ss:$8 sps:$4 sm:$0xff]   ;;  %v3537_v58 = vld [vmem:[%s4774_s1 + $0x450] ss:$8 sps:$4 sm:$0xff]  }
  0x6c   : > { %1017 = vmatpush1.bf16.msra.mxu0 %v3461_v59  ;;  %v3540_v59 = vld [vmem:[%s4774_s1 + $0x550] ss:$8 sps:$4 sm:$0xff]  }
  0x6d   : > { %1267 = vmatpush1.bf16.msra.mxu1 %v3464_v60  ;;  %1018 = vmatprep.subr.bf16.mxu0 %v3469_v61  ;;  %v3545_v60 = vld [vmem:[%s4774_s1 + $0x464] ss:$8 sps:$4 sm:$0xff]  }
  0x6e   : > { %1268 = vmatprep.subr.bf16.mxu1 %v3472_v62  ;;  %v3548_v61 = vld [vmem:[%s4774_s1 + $0x564] ss:$8 sps:$4 sm:$0xff]   ;;  %v3543_v62 = vld [vmem:[%s4774_s1 + $0x460] ss:$8 sps:$4 sm:$0xff]  }
  0x70   : > { %1019 = vmatpush1.bf16.msra.mxu0 %v3467_v63  ;;  %v3546_v63 = vld [vmem:[%s4774_s1 + $0x560] ss:$8 sps:$4 sm:$0xff]  }
  0x71   : > { %1269 = vmatpush1.bf16.msra.mxu1 %v3470_v0  ;;  %1020 = vmatprep.subr.bf16.mxu0 %v3475_v1  ;;  %v3551_v0 = vld [vmem:[%s4774_s1 + $0x474] ss:$8 sps:$4 sm:$0xff]  }
  0x72   : > { %1270 = vmatprep.subr.bf16.mxu1 %v3478_v2  ;;  %v3554_v1 = vld [vmem:[%s4774_s1 + $0x574] ss:$8 sps:$4 sm:$0xff]   ;;  %v3549_v2 = vld [vmem:[%s4774_s1 + $0x470] ss:$8 sps:$4 sm:$0xff]  }
  0x74   : > { %1021 = vmatpush1.bf16.msra.mxu0 %v3473_v3  ;;  %v3552_v3 = vld [vmem:[%s4774_s1 + $0x570] ss:$8 sps:$4 sm:$0xff]  }
  0x75   : > { %1271 = vmatpush1.bf16.msra.mxu1 %v3476_v4  ;;  %1022 = vmatprep.subr.bf16.mxu0 %v3481_v5  ;;  %v3557_v4 = vld [vmem:[%s4774_s1 + $0x484] ss:$8 sps:$4 sm:$0xff]  }
  0x76   : > { %1272 = vmatprep.subr.bf16.mxu1 %v3484_v6  ;;  %v3560_v5 = vld [vmem:[%s4774_s1 + $0x584] ss:$8 sps:$4 sm:$0xff]   ;;  %v3555_v6 = vld [vmem:[%s4774_s1 + $0x480] ss:$8 sps:$4 sm:$0xff]  }
  0x78   : > { %1023 = vmatpush1.bf16.msra.mxu0 %v3479_v7  ;;  %v3558_v7 = vld [vmem:[%s4774_s1 + $0x580] ss:$8 sps:$4 sm:$0xff]  }
  0x79   : > { %1273 = vmatpush1.bf16.msra.mxu1 %v3482_v8  ;;  %1024 = vmatprep.subr.bf16.mxu0 %v3487_v9  ;;  %v3563_v8 = vld [vmem:[%s4774_s1 + $0x494] ss:$8 sps:$4 sm:$0xff]  }
  0x7a   : > { %1274 = vmatprep.subr.bf16.mxu1 %v3490_v10  ;;  %v3566_v9 = vld [vmem:[%s4774_s1 + $0x594] ss:$8 sps:$4 sm:$0xff]   ;;  %v3561_v10 = vld [vmem:[%s4774_s1 + $0x490] ss:$8 sps:$4 sm:$0xff]  }
  0x7c   : > { %1025 = vmatpush1.bf16.msra.mxu0 %v3485_v11  ;;  %v3564_v11 = vld [vmem:[%s4774_s1 + $0x590] ss:$8 sps:$4 sm:$0xff]  }
  0x7d   : > { %1275 = vmatpush1.bf16.msra.mxu1 %v3488_v12  ;;  %1026 = vmatprep.subr.bf16.mxu0 %v3493_v13  ;;  %v3569_v12 = vld [vmem:[%s4774_s1 + $0x4a4] ss:$8 sps:$4 sm:$0xff]  }
  0x7e   : > { %1276 = vmatprep.subr.bf16.mxu1 %v3496_v14  ;;  %v3572_v13 = vld [vmem:[%s4774_s1 + $0x5a4] ss:$8 sps:$4 sm:$0xff]   ;;  %v3567_v14 = vld [vmem:[%s4774_s1 + $0x4a0] ss:$8 sps:$4 sm:$0xff]  }
  0x80   : > { %1027 = vmatpush1.bf16.msra.mxu0 %v3491_v15  ;;  %v3570_v15 = vld [vmem:[%s4774_s1 + $0x5a0] ss:$8 sps:$4 sm:$0xff]  }
  0x81   : > { %1277 = vmatpush1.bf16.msra.mxu1 %v3494_v16  ;;  %1028 = vmatprep.subr.bf16.mxu0 %v3499_v17  ;;  %v3575_v16 = vld [vmem:[%s4774_s1 + $0x4b4] ss:$8 sps:$4 sm:$0xff]  }
  0x82   : > { %1278 = vmatprep.subr.bf16.mxu1 %v3502_v18  ;;  %v3578_v17 = vld [vmem:[%s4774_s1 + $0x5b4] ss:$8 sps:$4 sm:$0xff]   ;;  %v3573_v18 = vld [vmem:[%s4774_s1 + $0x4b0] ss:$8 sps:$4 sm:$0xff]  }
  0x84   : > { %1029 = vmatpush1.bf16.msra.mxu0 %v3497_v19  ;;  %v3576_v19 = vld [vmem:[%s4774_s1 + $0x5b0] ss:$8 sps:$4 sm:$0xff]  }
  0x85   : > { %1279 = vmatpush1.bf16.msra.mxu1 %v3500_v20  ;;  %1508 = vmatprep.subr.bf16.mxu0 %v3507_v23  ;;  %v3581_v20 = vld [vmem:[%s4774_s1 + $0x4c4] ss:$8 sps:$4 sm:$0xff]   ;;  %v3582_v23 = vld [vmem:[%s4774_s1 + $0x5c0] ss:$8 sps:$4 sm:$0xff]  }
  0x86   : > { %1754 = vmatprep.subr.bf16.mxu1 %v3512_v24  ;;  %v3587_v24 = vld [vmem:[%s4774_s1 + $0x4d4] ss:$8 sps:$4 sm:$0xff]  }
  0x87   : > { %1031 = vmatmul.mubr.bf16.vlgmr.msra.gmra.mrb[4].mxu0 %v834_v26  ;;  %v3585_v26 = vld [vmem:[%s4774_s1 + $0x4d0] ss:$8 sps:$4 sm:$0xff]  }
  0x88   : > { %1281 = vmatmul.mubr.bf16.vlgmr.msra.gmra.mrb[4].mxu1 %v1084_v27  ;;  %1509 = vmatpush1.bf16.msra.mxu0 %v3505_v25  ;;  %v3590_v25 = vld [vmem:[%s4774_s1 + $0x5d4] ss:$8 sps:$4 sm:$0xff]   ;;  %v2978_v27 = vcombine.low %v4123_v45, %v4261_v32  ;;  %v3612_v32 = vld [vmem:[%s4774_s1 + $0x704] ss:$8 sps:$4 sm:$0xff]  }
  0x89   : > { %1755 = vmatpush1.bf16.msra.mxu1 %v3510_v28  ;;  %1510 = vmatprep.subr.bf16.mxu0 %v3515_v29  ;;  %v4417_v28 = vld [vmem:[%s3966_s22 + $0x8] sm:$0xff]  ;;  %v3588_v29 = vld [vmem:[%s4774_s1 + $0x5d0] ss:$8 sps:$4 sm:$0xff]  }
  0x8a   : > { %1756 = vmatprep.subr.bf16.mxu1 %v3518_v30  ;;  %1786 = vmatprep.mubr.bf16.mxu1 %v1591_v46  ;;  %v3593_v30 = vld [vmem:[%s4774_s1 + $0x4e4] ss:$8 sps:$4 sm:$0xff]   ;;  %v3177_v45 = vcombine.high %v4417_v28, %v4417_v28  ;;  %v1334_v34 = vshll.u32 %v2978_v27, 16  ;;  %v3600_v46 = vld [vmem:[%s4774_s1 + $0x5f0] ss:$8 sps:$4 sm:$0xff]  }
  0x8b   : > { %1540 = vmatprep.mubr.bf16.mxu0 %v1345_v49 }
  0x8c   : > { %1511 = vmatpush1.bf16.msra.mxu0 %v3513_v31  ;;  %v3596_v31 = vld [vmem:[%s4774_s1 + $0x5e4] ss:$8 sps:$4 sm:$0xff]   ;;  %v2090_v40 = vshll.u32 %v3177_v45, 16  ;;  %v1336_v42 = vrot.slane %v1334_v34, 3  ;;  %v2088_v36 = vshrl.u32 %v3177_v45, 16 }
  0x8d   : > { %1757 = vmatpush1.bf16.msra.mxu1 %v3516_v33  ;;  %1512 = vmatprep.subr.bf16.mxu0 %v3521_v35  ;;  %v1331_v33 = vshrl.u32 %v2978_v27, 16  ;;  %v3591_v35 = vld [vmem:[%s4774_s1 + $0x4e0] ss:$8 sps:$4 sm:$0xff]   ;;  %v3664_v27 = vld [vmem:[%s4774_s1 + $0x790] ss:$8 sps:$4 sm:$0xff]  }
  0x8e   : > { %1758 = vmatprep.subr.bf16.mxu1 %v3524_v37  ;;  %v3594_v37 = vld [vmem:[%s4774_s1 + $0x5e0] ss:$8 sps:$4 sm:$0xff]   ;;  %v3678_v34 = vld [vmem:[%s4774_s1 + $0x7b4] ss:$8 sps:$4 sm:$0xff]  }
  0x8f   : > { %v3670_v45 = vld [vmem:[%s4774_s1 + $0x7a0] ss:$8 sps:$4 sm:$0xff]  }
  0x90   : > { %1513 = vmatpush1.bf16.msra.mxu0 %v3519_v41  ;;  %v1333_v41 = vrot.slane %v1331_v33, 2  ;;  %v3675_v33 = vld [vmem:[%s4774_s1 + $0x6b4] ss:$8 sps:$4 sm:$0xff]  }
  0x91   : > { %1759 = vmatpush1.bf16.msra.mxu1 %v3522_v44  ;;  %1514 = vmatprep.subr.bf16.mxu0 %v3527_v47  ;;  %v3597_v44 = vld [vmem:[%s4774_s1 + $0x4f0] ss:$8 sps:$4 sm:$0xff]   ;;  %v3607_v47 = vld [vmem:[%s4774_s1 + $0x604] ss:$8 sps:$4 sm:$0xff]  }
  0x92   : > { %1760 = vmatprep.subr.bf16.mxu1 %v3530_v48  ;;  %v2092_v48 = vrot.slane %v2090_v40, 1  ;;  %v1337_v49 = vor.u32 %v1336_v42, %v1333_v41  ;;  %v3679_v40 = vld [vmem:[%s4774_s1 + $0x6c0] ss:$8 sps:$4 sm:$0xff]   ;;  %v3687_v42 = vld [vmem:[%s4774_s1 + $0x6d4] ss:$8 sps:$4 sm:$0xff]  }
  0x93   : > { %v3682_v41 = vld [vmem:[%s4774_s1 + $0x7c0] ss:$8 sps:$4 sm:$0xff]  }
  0x94   : > { %1515 = vmatpush1.bf16.msra.mxu0 %v3525_v50  ;;  %v1590_v50 = vrot.slane %v3044_v43, 3  ;;  %v3690_v43 = vld [vmem:[%s4774_s1 + $0x7d4] ss:$8 sps:$4 sm:$0xff]  }
  0x95   : > { %1761 = vmatpush1.bf16.msra.mxu1 %v3528_v51  ;;  %1516 = vmatprep.subr.bf16.mxu0 %v3533_v52  ;;  %v4457_v51 = vld [vmem:[%s3966_s22 + $0x8] sm:$0x77] }
  0x96   : > { %1762 = vmatprep.subr.bf16.mxu1 %v3536_v53  ;;  %v3605_v52 = vld [vmem:[%s4774_s1 + $0x600] ss:$8 sps:$4 sm:$0xff]  }
  0x97   : > { %v3610_v53 = vld [vmem:[%s4774_s1 + $0x700] ss:$8 sps:$4 sm:$0xff]  }
  0x98   : > { %1517 = vmatpush1.bf16.msra.mxu0 %v3531_v54  ;;  %v3615_v54 = vld [vmem:[%s4774_s1 + $0x614] ss:$8 sps:$4 sm:$0xff]  }
  0x99   : > { %1763 = vmatpush1.bf16.msra.mxu1 %v3534_v55  ;;  %1518 = vmatprep.subr.bf16.mxu0 %v3539_v56  ;;  %v3618_v55 = vld [vmem:[%s4774_s1 + $0x714] ss:$8 sps:$4 sm:$0xff]   ;;  %v3111_v56 = vcombine.high %v4457_v51, %v4457_v51 }
  0x9a   : > { %1764 = vmatprep.subr.bf16.mxu1 %v3542_v57  ;;  %v2093_v57 = vor.u32 %v2092_v48, %v2088_v36  ;;  %v3691_v48 = vld [vmem:[%s4774_s1 + $0x6e0] ss:$8 sps:$4 sm:$0xff]  }
  0x9c   : > { %1519 = vmatpush1.bf16.msra.mxu0 %v3537_v58  ;;  %v3613_v58 = vld [vmem:[%s4774_s1 + $0x610] ss:$8 sps:$4 sm:$0xff]  }
  0x9d   : > { %1765 = vmatpush1.bf16.msra.mxu1 %v3540_v59  ;;  %1520 = vmatprep.subr.bf16.mxu0 %v3545_v60  ;;  %v3616_v59 = vld [vmem:[%s4774_s1 + $0x710] ss:$8 sps:$4 sm:$0xff]   ;;  %v3621_v60 = vld [vmem:[%s4774_s1 + $0x624] ss:$8 sps:$4 sm:$0xff]  }
  0x9e   : > { %1766 = vmatprep.subr.bf16.mxu1 %v3548_v61  ;;  %v3624_v61 = vld [vmem:[%s4774_s1 + $0x724] ss:$8 sps:$4 sm:$0xff]  }
  0xa0   : > { %1521 = vmatpush1.bf16.msra.mxu0 %v3543_v62  ;;  %v3619_v62 = vld [vmem:[%s4774_s1 + $0x620] ss:$8 sps:$4 sm:$0xff]  }
  0xa1   : > { %1767 = vmatpush1.bf16.msra.mxu1 %v3546_v63  ;;  %1522 = vmatprep.subr.bf16.mxu0 %v3551_v0  ;;  %v3622_v63 = vld [vmem:[%s4774_s1 + $0x720] ss:$8 sps:$4 sm:$0xff]   ;;  %v3627_v0 = vld [vmem:[%s4774_s1 + $0x634] ss:$8 sps:$4 sm:$0xff]  }
  0xa2   : > { %1768 = vmatprep.subr.bf16.mxu1 %v3554_v1  ;;  %v3630_v1 = vld [vmem:[%s4774_s1 + $0x734] ss:$8 sps:$4 sm:$0xff]  }
  0xa4   : > { %1523 = vmatpush1.bf16.msra.mxu0 %v3549_v2  ;;  %v3625_v2 = vld [vmem:[%s4774_s1 + $0x630] ss:$8 sps:$4 sm:$0xff]  }
  0xa5   : > { %1769 = vmatpush1.bf16.msra.mxu1 %v3552_v3  ;;  %1524 = vmatprep.subr.bf16.mxu0 %v3557_v4  ;;  %v3628_v3 = vld [vmem:[%s4774_s1 + $0x730] ss:$8 sps:$4 sm:$0xff]   ;;  %v3633_v4 = vld [vmem:[%s4774_s1 + $0x644] ss:$8 sps:$4 sm:$0xff]  }
  0xa6   : > { %1770 = vmatprep.subr.bf16.mxu1 %v3560_v5  ;;  %v3636_v5 = vld [vmem:[%s4774_s1 + $0x744] ss:$8 sps:$4 sm:$0xff]  }
  0xa8   : > { %1525 = vmatpush1.bf16.msra.mxu0 %v3555_v6  ;;  %v3631_v6 = vld [vmem:[%s4774_s1 + $0x640] ss:$8 sps:$4 sm:$0xff]  }
  0xa9   : > { %1771 = vmatpush1.bf16.msra.mxu1 %v3558_v7  ;;  %1526 = vmatprep.subr.bf16.mxu0 %v3563_v8  ;;  %v3634_v7 = vld [vmem:[%s4774_s1 + $0x740] ss:$8 sps:$4 sm:$0xff]   ;;  %v3639_v8 = vld [vmem:[%s4774_s1 + $0x654] ss:$8 sps:$4 sm:$0xff]  }
  0xaa   : > { %1772 = vmatprep.subr.bf16.mxu1 %v3566_v9  ;;  %v3642_v9 = vld [vmem:[%s4774_s1 + $0x754] ss:$8 sps:$4 sm:$0xff]  }
  0xac   : > { %1527 = vmatpush1.bf16.msra.mxu0 %v3561_v10  ;;  %v3637_v10 = vld [vmem:[%s4774_s1 + $0x650] ss:$8 sps:$4 sm:$0xff]  }
  0xad   : > { %1773 = vmatpush1.bf16.msra.mxu1 %v3564_v11  ;;  %1528 = vmatprep.subr.bf16.mxu0 %v3569_v12  ;;  %v3640_v11 = vld [vmem:[%s4774_s1 + $0x750] ss:$8 sps:$4 sm:$0xff]   ;;  %v3645_v12 = vld [vmem:[%s4774_s1 + $0x664] ss:$8 sps:$4 sm:$0xff]  }
  0xae   : > { %1774 = vmatprep.subr.bf16.mxu1 %v3572_v13  ;;  %v3648_v13 = vld [vmem:[%s4774_s1 + $0x764] ss:$8 sps:$4 sm:$0xff]  }
  0xb0   : > { %1529 = vmatpush1.bf16.msra.mxu0 %v3567_v14  ;;  %v3643_v14 = vld [vmem:[%s4774_s1 + $0x660] ss:$8 sps:$4 sm:$0xff]  }
  0xb1   : > { %1775 = vmatpush1.bf16.msra.mxu1 %v3570_v15  ;;  %1530 = vmatprep.subr.bf16.mxu0 %v3575_v16  ;;  %v3646_v15 = vld [vmem:[%s4774_s1 + $0x760] ss:$8 sps:$4 sm:$0xff]   ;;  %v3651_v16 = vld [vmem:[%s4774_s1 + $0x674] ss:$8 sps:$4 sm:$0xff]  }
  0xb2   : > { %1776 = vmatprep.subr.bf16.mxu1 %v3578_v17  ;;  %v3654_v17 = vld [vmem:[%s4774_s1 + $0x774] ss:$8 sps:$4 sm:$0xff]  }
  0xb4   : > { %1531 = vmatpush1.bf16.msra.mxu0 %v3573_v18  ;;  %v3649_v18 = vld [vmem:[%s4774_s1 + $0x670] ss:$8 sps:$4 sm:$0xff]  }
  0xb5   : > { %1777 = vmatpush1.bf16.msra.mxu1 %v3576_v19  ;;  %1532 = vmatprep.subr.bf16.mxu0 %v3581_v20  ;;  %v3652_v19 = vld [vmem:[%s4774_s1 + $0x770] ss:$8 sps:$4 sm:$0xff]   ;;  %v3657_v20 = vld [vmem:[%s4774_s1 + $0x684] ss:$8 sps:$4 sm:$0xff]  }
  0xb6   : > { %1778 = vmatprep.subr.bf16.mxu1 %v3584_v21  ;;  %v3660_v21 = vld [vmem:[%s4774_s1 + $0x784] ss:$8 sps:$4 sm:$0xff]  }
  0xb8   : > { %1533 = vmatpush1.bf16.msra.mxu0 %v3579_v22  ;;  %v3655_v22 = vld [vmem:[%s4774_s1 + $0x680] ss:$8 sps:$4 sm:$0xff]  }
  0xb9   : > { %1779 = vmatpush1.bf16.msra.mxu1 %v3582_v23  ;;  %1534 = vmatprep.subr.bf16.mxu0 %v3587_v24  ;;  %v3658_v23 = vld [vmem:[%s4774_s1 + $0x780] ss:$8 sps:$4 sm:$0xff]   ;;  %v3663_v24 = vld [vmem:[%s4774_s1 + $0x694] ss:$8 sps:$4 sm:$0xff]  }
  0xba   : > { %1780 = vmatprep.subr.bf16.mxu1 %v3590_v25  ;;  %v3666_v25 = vld [vmem:[%s4774_s1 + $0x794] ss:$8 sps:$4 sm:$0xff]  }
  0xbc   : > { %1535 = vmatpush1.bf16.msra.mxu0 %v3585_v26  ;;  %v3661_v26 = vld [vmem:[%s4774_s1 + $0x690] ss:$8 sps:$4 sm:$0xff]  }
  0xbd   : > { %1781 = vmatpush1.bf16.msra.mxu1 %v3588_v29  ;;  %1536 = vmatprep.subr.bf16.mxu0 %v3593_v30  ;;  %v3669_v29 = vld [vmem:[%s4774_s1 + $0x6a4] ss:$8 sps:$4 sm:$0xff]  }
  0xbe   : > { %1782 = vmatprep.subr.bf16.mxu1 %v3596_v31  ;;  %v3672_v30 = vld [vmem:[%s4774_s1 + $0x7a4] ss:$8 sps:$4 sm:$0xff]   ;;  %v3667_v31 = vld [vmem:[%s4774_s1 + $0x6a0] ss:$8 sps:$4 sm:$0xff]  }
  0xc0   : > { %1537 = vmatpush1.bf16.msra.mxu0 %v3591_v35  ;;  %v3673_v35 = vld [vmem:[%s4774_s1 + $0x6b0] ss:$8 sps:$4 sm:$0xff]  }
  0xc1   : > { %1783 = vmatpush1.bf16.msra.mxu1 %v3594_v37  ;;  %1538 = vmatprep.subr.bf16.mxu0 %v3599_v38  ;;  %v3676_v37 = vld [vmem:[%s4774_s1 + $0x7b0] ss:$8 sps:$4 sm:$0xff]   ;;  %v3681_v38 = vld [vmem:[%s4774_s1 + $0x6c4] ss:$8 sps:$4 sm:$0xff]  }
  0xc2   : > { %1784 = vmatprep.subr.bf16.mxu1 %v3602_v39  ;;  %v3684_v39 = vld [vmem:[%s4774_s1 + $0x7c4] ss:$8 sps:$4 sm:$0xff]  }
  0xc4   : > { %1539 = vmatpush1.bf16.msra.mxu0 %v3597_v44  ;;  %v3176_v44 = vcombine.low %v4417_v28, %v4417_v28  ;;  %v3696_v28 = vld [vmem:[%s4774_s1 + $0x7e4] ss:$8 sps:$4 sm:$0xff]  }
  0xc5   : > { %1785 = vmatpush1.bf16.msra.mxu1 %v3600_v46  ;;  %1998 = vmatprep.subr.bf16.mxu0 %v3607_v47  ;;  %v3685_v46 = vld [vmem:[%s4774_s1 + $0x6d0] ss:$8 sps:$4 sm:$0xff]  }
  0xc6   : > { %2256 = vmatprep.subr.bf16.mxu1 %v3612_v32  ;;  %v3688_v47 = vld [vmem:[%s4774_s1 + $0x7d0] ss:$8 sps:$4 sm:$0xff]   ;;  %v3693_v32 = vld [vmem:[%s4774_s1 + $0x6e4] ss:$8 sps:$4 sm:$0xff]   ;;  %v2083_v36 = vshll.u32 %v3176_v44, 16 }
  0xc7   : > { %1541 = vmatmul.mubr.bf16.vlgmr.msra.gmra.mrb[8].mxu0 %v1337_v49  ;;  %v3694_v49 = vld [vmem:[%s4774_s1 + $0x7e0] ss:$8 sps:$4 sm:$0xff]  }
  0xc8   : > { %1787 = vmatmul.mubr.bf16.vlgmr.msra.gmra.mrb[8].mxu1 %v1590_v50  ;;  %1999 = vmatpush1.bf16.msra.mxu0 %v3605_v52  ;;  %v3699_v50 = vld [vmem:[%s4774_s1 + $0x6f4] ss:$8 sps:$4 sm:$0xff]  }
  0xc9   : > { %2257 = vmatpush1.bf16.msra.mxu1 %v3610_v53  ;;  %2000 = vmatprep.subr.bf16.mxu0 %v3615_v54  ;;  %v3702_v52 = vld [vmem:[%s4774_s1 + $0x7f4] ss:$8 sps:$4 sm:$0xff]   ;;  %v4644_v53 = vld [vmem:[%s3966_s22 + $0x8] sm:$0xee]  ;;  %v2081_v54 = vshrl.u32 %v3176_v44, 16  ;;  %s286_s22 = scalar_lea.vmem %s4776_s3, %s3280_s25 }
  0xca   : > { %2258 = vmatprep.subr.bf16.mxu1 %v3618_v55  ;;  %2030 = vmatprep.mubr.bf16.mxu0 %v3111_v56  ;;  %v2085_v55 = vrot.slane %v2083_v36, 1  ;;  %v3697_v56 = vld [vmem:[%s4774_s1 + $0x6f0] ss:$8 sps:$4 sm:$0xff]  }
  0xcb   : > { %2288 = vmatprep.mubr.bf16.mxu1 %v2093_v57  ;;  %v3700_v57 = vld [vmem:[%s4774_s1 + $0x7f0] ss:$8 sps:$4 sm:$0xff]  }
  0xcc   : > { %2001 = vmatpush1.bf16.msra.mxu0 %v3613_v58  ;;  %v3243_v58 = vcombine.high %v4644_v53, %v4644_v53 }
  0xcd   : > { %2259 = vmatpush1.bf16.msra.mxu1 %v3616_v59  ;;  %2002 = vmatprep.subr.bf16.mxu0 %v3621_v60  ;;  %v3707_v59 = vld [vmem:[%s4774_s1 + $0x804] ss:$8 sps:$4 sm:$0xff]   ;;  %v3110_v60 = vcombine.low %v4457_v51, %v4457_v51  ;;  %v3710_v51 = vld [vmem:[%s4774_s1 + $0x810] ss:$8 sps:$4 sm:$0xff]  }
  0xce   : > { %2260 = vmatprep.subr.bf16.mxu1 %v3624_v61  ;;  %v2086_v61 = vor.u32 %v2085_v55, %v2081_v54 }
  0xd0   : > { %2003 = vmatpush1.bf16.msra.mxu0 %v3619_v62  ;;  %v3705_v62 = vld [vmem:[%s4774_s1 + $0x800] ss:$8 sps:$4 sm:$0xff]  }
  0xd1   : > { %2261 = vmatpush1.bf16.msra.mxu1 %v3622_v63  ;;  %2004 = vmatprep.subr.bf16.mxu0 %v3627_v0  ;;  %v2339_v63 = vrot.slane %v3243_v58, 1  ;;  %v3712_v0 = vld [vmem:[%s4774_s1 + $0x814] ss:$8 sps:$4 sm:$0xff]  }
  0xd2   : > { %2262 = vmatprep.subr.bf16.mxu1 %v3630_v1  ;;  %v3715_v1 = vld [vmem:[%s4774_s1 + $0x824] ss:$8 sps:$4 sm:$0xff]  }
  0xd4   : > { %2005 = vmatpush1.bf16.msra.mxu0 %v3625_v2  ;;  %v3713_v2 = vld [vmem:[%s4774_s1 + $0x820] ss:$8 sps:$4 sm:$0xff]  }
  0xd5   : > { %2263 = vmatpush1.bf16.msra.mxu1 %v3628_v3  ;;  %2006 = vmatprep.subr.bf16.mxu0 %v3633_v4  ;;  %v3718_v3 = vld [vmem:[%s4774_s1 + $0x834] ss:$8 sps:$4 sm:$0xff]   ;;  %v3716_v4 = vld [vmem:[%s4774_s1 + $0x830] ss:$8 sps:$4 sm:$0xff]  }
  0xd6   : > { %2264 = vmatprep.subr.bf16.mxu1 %v3636_v5  ;;  %v3721_v5 = vld [vmem:[%s4774_s1 + $0x844] ss:$8 sps:$4 sm:$0xff]  }
  0xd8   : > { %2007 = vmatpush1.bf16.msra.mxu0 %v3631_v6  ;;  %v3719_v6 = vld [vmem:[%s4774_s1 + $0x840] ss:$8 sps:$4 sm:$0xff]  }
  0xd9   : > { %2265 = vmatpush1.bf16.msra.mxu1 %v3634_v7  ;;  %2008 = vmatprep.subr.bf16.mxu0 %v3639_v8  ;;  %v3724_v7 = vld [vmem:[%s4774_s1 + $0x854] ss:$8 sps:$4 sm:$0xff]   ;;  %v3722_v8 = vld [vmem:[%s4774_s1 + $0x850] ss:$8 sps:$4 sm:$0xff]  }
  0xda   : > { %2266 = vmatprep.subr.bf16.mxu1 %v3642_v9  ;;  %v3727_v9 = vld [vmem:[%s4774_s1 + $0x864] ss:$8 sps:$4 sm:$0xff]  }
  0xdc   : > { %2009 = vmatpush1.bf16.msra.mxu0 %v3637_v10 }
  0xdd   : > { %2267 = vmatpush1.bf16.msra.mxu1 %v3640_v11  ;;  %2010 = vmatprep.subr.bf16.mxu0 %v3645_v12 }
  0xde   : > { %2268 = vmatprep.subr.bf16.mxu1 %v3648_v13 }
  0xe0   : > { %2011 = vmatpush1.bf16.msra.mxu0 %v3643_v14 }
  0xe1   : > { %2269 = vmatpush1.bf16.msra.mxu1 %v3646_v15  ;;  %2012 = vmatprep.subr.bf16.mxu0 %v3651_v16 }
  0xe2   : > { %2270 = vmatprep.subr.bf16.mxu1 %v3654_v17  ;;  %v3725_v17 = vld [vmem:[%s4774_s1 + $0x860] ss:$8 sps:$4 sm:$0xff]  }
  0xe4   : > { %2013 = vmatpush1.bf16.msra.mxu0 %v3649_v18 }
  0xe5   : > { %2271 = vmatpush1.bf16.msra.mxu1 %v3652_v19  ;;  %2014 = vmatprep.subr.bf16.mxu0 %v3657_v20  ;;  %v3730_v20 = vld [vmem:[%s4774_s1 + $0x874] ss:$8 sps:$4 sm:$0xff]  }
  0xe6   : > { %2272 = vmatprep.subr.bf16.mxu1 %v3660_v21 }
  0xe8   : > { %2015 = vmatpush1.bf16.msra.mxu0 %v3655_v22  ;;  %v3728_v22 = vld [vmem:[%s4774_s1 + $0x870] ss:$8 sps:$4 sm:$0xff]  }
  0xe9   : > { %2273 = vmatpush1.bf16.msra.mxu1 %v3658_v23  ;;  %2016 = vmatprep.subr.bf16.mxu0 %v3663_v24  ;;  %v3733_v23 = vld [vmem:[%s4774_s1 + $0x884] ss:$8 sps:$4 sm:$0xff]   ;;  %v3731_v24 = vld [vmem:[%s4774_s1 + $0x880] ss:$8 sps:$4 sm:$0xff]  }
  0xea   : > { %2274 = vmatprep.subr.bf16.mxu1 %v3666_v25  ;;  %v3736_v25 = vld [vmem:[%s4774_s1 + $0x894] ss:$8 sps:$4 sm:$0xff]  }
  0xec   : > { %2017 = vmatpush1.bf16.msra.mxu0 %v3661_v26  ;;  %v3734_v26 = vld [vmem:[%s4774_s1 + $0x890] ss:$8 sps:$4 sm:$0xff]  }
  0xed   : > { %2275 = vmatpush1.bf16.msra.mxu1 %v3664_v27  ;;  %2018 = vmatprep.subr.bf16.mxu0 %v3669_v29  ;;  %v3739_v27 = vld [vmem:[%s4774_s1 + $0x8a4] ss:$8 sps:$4 sm:$0xff]   ;;  %v3737_v29 = vld [vmem:[%s4774_s1 + $0x8a0] ss:$8 sps:$4 sm:$0xff]  }
  0xee   : > { %2276 = vmatprep.subr.bf16.mxu1 %v3672_v30  ;;  %v3742_v30 = vld [vmem:[%s4774_s1 + $0x8b4] ss:$8 sps:$4 sm:$0xff]  }
  0xf0   : > { %2019 = vmatpush1.bf16.msra.mxu0 %v3667_v31  ;;  %v3740_v31 = vld [vmem:[%s4774_s1 + $0x8b0] ss:$8 sps:$4 sm:$0xff]  }
  0xf1   : > { %2277 = vmatpush1.bf16.msra.mxu1 %v3670_v45  ;;  %2020 = vmatprep.subr.bf16.mxu0 %v3675_v33  ;;  %v3745_v45 = vld [vmem:[%s4774_s1 + $0x8c4] ss:$8 sps:$4 sm:$0xff]   ;;  %v3743_v33 = vld [vmem:[%s4774_s1 + $0x8c0] ss:$8 sps:$4 sm:$0xff]  }
  0xf2   : > { %2278 = vmatprep.subr.bf16.mxu1 %v3678_v34  ;;  %v3748_v34 = vld [vmem:[%s4774_s1 + $0x8d4] ss:$8 sps:$4 sm:$0xff]  }
  0xf4   : > { %2021 = vmatpush1.bf16.msra.mxu0 %v3673_v35  ;;  %v3746_v35 = vld [vmem:[%s4774_s1 + $0x8d0] ss:$8 sps:$4 sm:$0xff]  }
  0xf5   : > { %2279 = vmatpush1.bf16.msra.mxu1 %v3676_v37  ;;  %2022 = vmatprep.subr.bf16.mxu0 %v3681_v38  ;;  %v3751_v37 = vld [vmem:[%s4774_s1 + $0x8e4] ss:$8 sps:$4 sm:$0xff]   ;;  %v3749_v38 = vld [vmem:[%s4774_s1 + $0x8e0] ss:$8 sps:$4 sm:$0xff]  }
  0xf6   : > { %2280 = vmatprep.subr.bf16.mxu1 %v3684_v39  ;;  %v3754_v39 = vld [vmem:[%s4774_s1 + $0x8f4] ss:$8 sps:$4 sm:$0xff]  }
  0xf8   : > { %2023 = vmatpush1.bf16.msra.mxu0 %v3679_v40  ;;  %v3242_v40 = vcombine.low %v4644_v53, %v4644_v53 }
  0xf9   : > { %2281 = vmatpush1.bf16.msra.mxu1 %v3682_v41  ;;  %2024 = vmatprep.subr.bf16.mxu0 %v3687_v42  ;;  %v3752_v41 = vld [vmem:[%s4774_s1 + $0x8f0] ss:$8 sps:$4 sm:$0xff]  }
  0xfa   : > { %2282 = vmatprep.subr.bf16.mxu1 %v3690_v43  ;;  %v2338_v42 = vrot.slane %v3242_v40, 1 }
  0xfc   : > { %2025 = vmatpush1.bf16.msra.mxu0 %v3685_v46 }
  0xfd   : > { %2283 = vmatpush1.bf16.msra.mxu1 %v3688_v47  ;;  %2026 = vmatprep.subr.bf16.mxu0 %v3693_v32 }
  0xfe   : > { %2284 = vmatprep.subr.bf16.mxu1 %v3696_v28 }
 0x100   : > { %2027 = vmatpush1.bf16.msra.mxu0 %v3691_v48 }
 0x101   : > { %2285 = vmatpush1.bf16.msra.mxu1 %v3694_v49  ;;  %2028 = vmatprep.subr.bf16.mxu0 %v3699_v50 }
 0x102   : > { %2286 = vmatprep.subr.bf16.mxu1 %v3702_v52 }
 0x104   : > { %2029 = vmatpush1.bf16.msra.mxu0 %v3697_v56 }
 0x105   : > { %2287 = vmatpush1.bf16.msra.mxu1 %v3700_v57  ;;  %2502 = vmatprep.subr.bf16.mxu0 %v3707_v59 }
 0x107   : > { %2031 = vmatmul.mubr.bf16.vlgmr.msra.gmra.mrb[12].mxu0 %v3110_v60 }
 0x108   : > { %2289 = vmatmul.mubr.bf16.vlgmr.msra.gmra.mrb[12].mxu1 %v2086_v61  ;;  %2503 = vmatpush1.bf16.msra.mxu0 %v3705_v62 }
 0x109   : > { %2534 = vmatprep.mubr.bf16.mxu0 %v2339_v63  ;;  %2504 = vmatprep.subr.bf16.mxu0 %v3712_v0 }
 0x10c   : > { %2505 = vmatpush1.bf16.msra.mxu0 %v3710_v51 }
 0x10d   : > { %2506 = vmatprep.subr.bf16.mxu0 %v3715_v1 }
 0x110   : > { %2507 = vmatpush1.bf16.msra.mxu0 %v3713_v2 }
 0x111   : > { %2508 = vmatprep.subr.bf16.mxu0 %v3718_v3 }
 0x114   : > { %2509 = vmatpush1.bf16.msra.mxu0 %v3716_v4 }
 0x115   : > { %2510 = vmatprep.subr.bf16.mxu0 %v3721_v5 }
 0x118   : > { %2511 = vmatpush1.bf16.msra.mxu0 %v3719_v6 }
 0x119   : > { %2512 = vmatprep.subr.bf16.mxu0 %v3724_v7 }
 0x11a   : > { %v580_v10 = vpop.f32.mrb[0].mxu0 }
 0x11b   : > { %v788_v11 = vpop.f32.mrb[0].mxu1  ;;  %v582_v13 = vpop.f32.mrb[1].mxu0 }
 0x11c   : > { %v789_v12 = vadd.f32 %v788_v11, %v580_v10  ;;  %v790_v14 = vpop.f32.mrb[1].mxu1  ;;  %v584_v16 = vpop.f32.mrb[2].mxu0  ;;  %2513 = vmatpush1.bf16.msra.mxu0 %v3722_v8 }
 0x11d   : > { %v791_v15 = vadd.f32 %v790_v14, %v582_v13  ;;  %v792_v18 = vpop.f32.mrb[2].mxu1  ;;  %v585_v19 = vpop.f32.mrb[3].mxu0  ;;  %2514 = vmatprep.subr.bf16.mxu0 %v3727_v9  ;;  %v2547_v13 = vlaneseq  ;;  %v2545_v16 = vld [vmem:[%s4775_s2] sm:$0x3] }
 0x11e   : > { %v793_v21 = vpop.f32.mrb[3].mxu1  ;;  %v2559_v18 = vld [vmem:[%s286_s22] sm:$0x77] }
 0x11f   : > { %v2548_v14 = vshrl.u32 %v2547_v13, 7 }
 0x120   : > { %2515 = vmatpush1.bf16.msra.mxu0 %v3725_v17 }
 0x121   : > { %2516 = vmatprep.subr.bf16.mxu0 %v3730_v20  ;;  %v2553_v17 = vsub.s32 1, %v2548_v14 }
 0x123   : > { %v2554_v21 = vrot.slane %v2545_v16, %v2553_v17 }
 0x124   : > { %2517 = vmatpush1.bf16.msra.mxu0 %v3728_v22 }
 0x125   : > { %2518 = vmatprep.subr.bf16.mxu0 %v3733_v23  ;;  %v2560_v23 = vunpack.c.l.bf16 %v2559_v18 }
 0x128   : > { %2519 = vmatpush1.bf16.msra.mxu0 %v3731_v24 }
 0x129   : > { %2520 = vmatprep.subr.bf16.mxu0 %v3736_v25 }
 0x12c   : > { %2521 = vmatpush1.bf16.msra.mxu0 %v3734_v26  ;;  %v2561_v26 = vunpack.c.h.bf16 %v2559_v18 }
 0x12d   : > { %2522 = vmatprep.subr.bf16.mxu0 %v3739_v27 }
 0x130   : > { %2523 = vmatpush1.bf16.msra.mxu0 %v3737_v29 }
 0x131   : > { %2524 = vmatprep.subr.bf16.mxu0 %v3742_v30 }
 0x134   : > { %2525 = vmatpush1.bf16.msra.mxu0 %v3740_v31 }
 0x135   : > { %2526 = vmatprep.subr.bf16.mxu0 %v3745_v45 }
 0x138   : > { %2527 = vmatpush1.bf16.msra.mxu0 %v3743_v33 }
 0x139   : > { %2528 = vmatprep.subr.bf16.mxu0 %v3748_v34 }
 0x13c   : > { %2529 = vmatpush1.bf16.msra.mxu0 %v3746_v35 }
 0x13d   : > { %2530 = vmatprep.subr.bf16.mxu0 %v3751_v37 }
 0x140   : > { %2531 = vmatpush1.bf16.msra.mxu0 %v3749_v38 }
 0x141   : > { %2532 = vmatprep.subr.bf16.mxu0 %v3754_v39 }
 0x144   : > { %2533 = vmatpush1.bf16.msra.mxu0 %v3752_v41 }
 0x147   : > { %2535 = vmatmul.mubr.bf16.vlgmr.msra.gmra.mrb[16].mxu0 %v2338_v42 }
 0x15a   : > { %v1032_v43 = vpop.f32.mrb[4].mxu0 }
 0x15b   : > { %v1282_v44 = vpop.f32.mrb[4].mxu1  ;;  %v1039_v46 = vadd.f32 %v1032_v43, %v789_v12  ;;  %v1034_v47 = vpop.f32.mrb[5].mxu0 }
 0x15c   : > { %v1284_v32 = vpop.f32.mrb[5].mxu1  ;;  %v1040_v28 = vadd.f32 %v1034_v47, %v791_v15  ;;  %v1036_v36 = vpop.f32.mrb[6].mxu0  ;;  %v2549_v15 = vsub.s32 0, %v2548_v14 }
 0x15d   : > { %v1286_v48 = vpop.f32.mrb[6].mxu1  ;;  %v1289_v49 = vadd.f32 %v1282_v44, %v1039_v46  ;;  %v1037_v50 = vpop.f32.mrb[7].mxu0 }
 0x15e   : > { %v1287_v52 = vpop.f32.mrb[7].mxu1  ;;  %v1290_v53 = vadd.f32 %v1284_v32, %v1040_v28  ;;  %v2550_v19 = vrot.slane %v2545_v16, %v2549_v15 }
 0x19a   : > { %v1542_v54 = vpop.f32.mrb[8].mxu0 }
 0x19b   : > { %v1788_v55 = vpop.f32.mrb[8].mxu1  ;;  %v1549_v56 = vadd.f32 %v1542_v54, %v1289_v49  ;;  %v1544_v57 = vpop.f32.mrb[9].mxu0 }
 0x19c   : > { %v1790_v58 = vpop.f32.mrb[9].mxu1  ;;  %v1550_v59 = vadd.f32 %v1544_v57, %v1290_v53  ;;  %v1546_v60 = vpop.f32.mrb[10].mxu0 }
 0x19d   : > { %v1792_v61 = vpop.f32.mrb[10].mxu1  ;;  %v1795_v62 = vadd.f32 %v1788_v55, %v1549_v56  ;;  %v1547_v63 = vpop.f32.mrb[11].mxu0 }
 0x19e   : > { %v1793_v0 = vpop.f32.mrb[11].mxu1  ;;  %v1796_v51 = vadd.f32 %v1790_v58, %v1550_v59 }
 0x1da   : > { %v2032_v1 = vpop.f32.mrb[12].mxu0 }
 0x1db   : > { %v2290_v2 = vpop.f32.mrb[12].mxu1  ;;  %v2039_v3 = vadd.f32 %v2032_v1, %v1795_v62  ;;  %v2034_v4 = vpop.f32.mrb[13].mxu0 }
 0x1dc   : > { %v2292_v5 = vpop.f32.mrb[13].mxu1  ;;  %v2040_v6 = vadd.f32 %v2034_v4, %v1796_v51  ;;  %v2036_v7 = vpop.f32.mrb[14].mxu0 }
 0x1dd   : > { %v2294_v8 = vpop.f32.mrb[14].mxu1  ;;  %v2297_v9 = vadd.f32 %v2290_v2, %v2039_v3  ;;  %v2037_v10 = vpop.f32.mrb[15].mxu0 }
 0x1de   : > { %v2295_v11 = vpop.f32.mrb[15].mxu1  ;;  %v2298_v12 = vadd.f32 %v2292_v5, %v2040_v6 }
 0x21a   : > { %v2536_v20 = vpop.f32.mrb[16].mxu0 }
 0x21b   : > { %v2543_v22 = vadd.f32 %v2536_v20, %v2297_v9  ;;  %v2538_v24 = vpop.f32.mrb[17].mxu0 }
 0x21c   : > { %v2544_v25 = vadd.f32 %v2538_v24, %v2298_v12  ;;  %v2540_v27 = vpop.f32.mrb[18].mxu0 }
 0x21d   : > { %v2557_v29 = vadd.f32 %v2550_v19, %v2543_v22  ;;  %v2541_v30 = vpop.f32.mrb[19].mxu0 }
 0x21e   : > { %v2558_v31 = vadd.f32 %v2554_v21, %v2544_v25 }
 0x21f   : > { %v2562_v45 = vadd.f32 %v2560_v23, %v2557_v29 }
 0x220   : > { %v2563_v33 = vadd.f32 %v2561_v26, %v2558_v31 }
 0x221   : > { %v2564_v34 = vmax.f32 %v2562_v45, 0.0 }
 0x222   : > { %v2565_v35 = vmax.f32 %v2563_v33, 0.0 }
 0x224   : > { %v3282_v37 = vpack.c.bf16 %v2565_v35, %v2564_v34 }
 0x226   : > { %2574 = vst [vmem:[%s296_s5] sm:$0x77] %v3282_v37 }
 0x227 PF: > { %s14_s17 = sadd.s32 1, %s3779_s17   ;;  %s4778_s15 = smov %s3775_s16 }
 0x228   : > { %p11_p5 = scmp.ge.s32.totalorder %s14_s17, 4   ;;  %s4779_s16 = smov %s4781_s18 }
 0x22a   :  { %13 = sbr.rel (!%p11_p5) target bundleno = 2 (0x2), region = 83 }

// kernel: resnet_forward.11
= control target key start
LH: loop header
LB: loop body
LE: loop exit
PB: predicated region body
PF: predicated region fallthrough
CT: control target
= control target key end

     0   :  { %s11696_s15 = smov 0   ;;  %s11698_s16 = smov 0   ;;  %s13684_s0 = inlined_call_operand.vmem [shape: bf16[2,9,512], index: 0, kind: input, shape index: {}]   ;;  %s13685_s1 = inlined_call_operand.vmem [shape: bf16[9,512,512], index: 1, kind: input, shape index: {}]   ;;  %s13686_s2 = inlined_call_operand.vmem [shape: f32[1,512], index: 2, kind: input, shape index: {}]   ;;  %s13687_s3 = inlined_call_operand.vmem [shape: bf16[2,1,512], index: 3, kind: input, shape index: {}]   ;;  %s13688_s4 = inlined_call_operand.vmem [shape: bf16[2,1,512], index: 4, kind: output, shape index: {}]  }
   0x1   :  { %s11700_s17 = smov 0   ;;  %s11702_s18 = smov 0  }
   0x2   :  { %s11704_s19 = smov 0   ;;  %s11706_s20 = smov 0  }
   0x3   :  { %s11708_s21 = smov 0  }
   0x4 LB: > { %s23_s22 = sadd.s32 1, %s11660_s19  ;;  %s26_s23 = sadd.s32 1, %s11664_s20  ;;  %s11668_s21 = sphi %s11708_s21, %s14_s21   ;;  %s11664_s20 = sphi %s11706_s20, %s13694_s20   ;;  %s11660_s19 = sphi %s11704_s19, %s13693_s19   ;;  %s11656_s18 = sphi %s11702_s18, %s13692_s18   ;;  %s11652_s17 = sphi %s11700_s17, %s13691_s17   ;;  %s11648_s16 = sphi %s11698_s16, %s13690_s16   ;;  %s11644_s15 = sphi %s11696_s15, %s13689_s15  }
   0x5   : > { %p24_p0 = scmp.ge.s32.totalorder %s23_s22, 2  ;;  %s59_s24 = sadd.s32 1, %s11648_s16 }
   0x6   : > { %p66_p1 = scmp.ne.s32.totalorder %s11648_s16, %s11644_s15  ;;  %p67_p2 = scmp.eq.s32.totalorder %s11668_s21, 0 }
   0x7   : > { %s13696_s22 = smov (%p24_p0, %s23_s22), 0  ;;  %s13698_s23 = smov (!%p24_p0, %s26_s23), %s11664_s20 }
   0x8   : > { %s56_s25 = ssub.s32 %s11660_s19, %s13696_s22  ;;  %p68_p3 = por %p67_p2, %p66_p1 }
   0x9   : > { %p28_p4 = scmp.ge.s32.totalorder %s13698_s23, 2  ;;  %p57_p5 = scmp.eq.s32.totalorder %s56_s25, 0 }
   0xa   : > { %p9547_p6 = scmp.ge.s32.totalorder %s11668_s21, 4 }
   0xb   : > { %s13700_s23 = smov (%p28_p4, %s13698_s23), 0 }
   0xc   : > { %s11745_s26 = scalar_select %p57_p5, %s11648_s16, %s59_s24  }
   0xd   : > { %174 = sbr.rel (%p9547_p6) target bundleno = 312 (0x138), region = 16 }
  0x14   : > { %185 = sbr.rel (!%p68_p3) target bundleno = 312 (0x138), region = 24  ;;  %s187_s27 = sand.u32 (%p68_p3), 1, %s11648_s16  }
  0x15   : > { %s10669_s28 = sshll.u32 (%p68_p3), %s11660_s19, 3  ;;  %s10671_s29 = smul.u32 (%p68_p3), 4608, %s187_s27 }
  0x16   : > { %s11753_s6 = scalar_lea.vmem (%p68_p3), %s13685_s1, %s10669_s28 }
  0x17   : > { %v1373_v0 = vld [vmem:[%s11753_s6] sm:$0xff] (%p68_p3)  ;;  %v1375_v1 = vld [vmem:[%s11753_s6 + $0x10] sm:$0xff] (%p68_p3)  ;;  %s11761_s7 = scalar_lea.vmem (%p68_p3), [#allocation2], %s10671_s29 }
  0x18   : > { %v1377_v2 = vld [vmem:[%s11753_s6 + $0x20] sm:$0xff] (%p68_p3)  ;;  %v1379_v3 = vld [vmem:[%s11753_s6 + $0x30] sm:$0xff] (%p68_p3)  ;;  %1374 = vst [vmem:[%s11761_s7] sm:$0xff] (%p68_p3), %v1373_v0  ;;  %1376 = vst [vmem:[%s11761_s7 + $0x8] sm:$0xff] (%p68_p3), %v1375_v1 }
  0x19   : > { %v1381_v4 = vld [vmem:[%s11753_s6 + $0x40] sm:$0xff] (%p68_p3)  ;;  %v1383_v5 = vld [vmem:[%s11753_s6 + $0x50] sm:$0xff] (%p68_p3)  ;;  %1378 = vst [vmem:[%s11761_s7 + $0x10] sm:$0xff] (%p68_p3), %v1377_v2  ;;  %1380 = vst [vmem:[%s11761_s7 + $0x18] sm:$0xff] (%p68_p3), %v1379_v3 }
  0x1a   : > { %1382 = vst [vmem:[%s11761_s7 + $0x20] sm:$0xff] (%p68_p3), %v1381_v4  ;;  %1384 = vst [vmem:[%s11761_s7 + $0x28] sm:$0xff] (%p68_p3), %v1383_v5  ;;  %v1385_v6 = vld [vmem:[%s11753_s6 + $0x60] sm:$0xff] (%p68_p3)  ;;  %v1387_v7 = vld [vmem:[%s11753_s6 + $0x70] sm:$0xff] (%p68_p3) }
  0x1b   : > { %v1389_v8 = vld [vmem:[%s11753_s6 + $0x80] sm:$0xff]  ;;  %1386 = vst [vmem:[%s11761_s7 + $0x30] sm:$0xff] %v1385_v6  ;;  %1388 = vst [vmem:[%s11761_s7 + $0x38] sm:$0xff] %v1387_v7  ;;  %v1391_v9 = vld [vmem:[%s11753_s6 + $0x90] sm:$0xff] }
  0x1c   : > { %1390 = vst [vmem:[%s11761_s7 + $0x40] sm:$0xff] %v1389_v8  ;;  %v1393_v10 = vld [vmem:[%s11753_s6 + $0xa0] sm:$0xff]  ;;  %v1395_v11 = vld [vmem:[%s11753_s6 + $0xb0] sm:$0xff]  ;;  %1392 = vst [vmem:[%s11761_s7 + $0x48] sm:$0xff] %v1391_v9 }
  0x1d   : > { %1394 = vst [vmem:[%s11761_s7 + $0x50] sm:$0xff] %v1393_v10  ;;  %1396 = vst [vmem:[%s11761_s7 + $0x58] sm:$0xff] %v1395_v11  ;;  %v1397_v12 = vld [vmem:[%s11753_s6 + $0xc0] sm:$0xff]  ;;  %v1399_v13 = vld [vmem:[%s11753_s6 + $0xd0] sm:$0xff] }
  0x1e   : > { %v1401_v14 = vld [vmem:[%s11753_s6 + $0xe0] sm:$0xff]  ;;  %1398 = vst [vmem:[%s11761_s7 + $0x60] sm:$0xff] %v1397_v12  ;;  %1400 = vst [vmem:[%s11761_s7 + $0x68] sm:$0xff] %v1399_v13  ;;  %v1403_v15 = vld [vmem:[%s11753_s6 + $0xf0] sm:$0xff] }
  0x1f   : > { %1402 = vst [vmem:[%s11761_s7 + $0x70] sm:$0xff] %v1401_v14  ;;  %v1405_v16 = vld [vmem:[%s11753_s6 + $0x100] sm:$0xff]  ;;  %v1407_v17 = vld [vmem:[%s11753_s6 + $0x110] sm:$0xff]  ;;  %1404 = vst [vmem:[%s11761_s7 + $0x78] sm:$0xff] %v1403_v15 }
  0x20   : > { %1406 = vst [vmem:[%s11761_s7 + $0x80] sm:$0xff] %v1405_v16  ;;  %1408 = vst [vmem:[%s11761_s7 + $0x88] sm:$0xff] %v1407_v17  ;;  %v1409_v18 = vld [vmem:[%s11753_s6 + $0x120] sm:$0xff]  ;;  %v1411_v19 = vld [vmem:[%s11753_s6 + $0x130] sm:$0xff] }
  0x21   : > { %v1413_v20 = vld [vmem:[%s11753_s6 + $0x140] sm:$0xff]  ;;  %1410 = vst [vmem:[%s11761_s7 + $0x90] sm:$0xff] %v1409_v18  ;;  %1412 = vst [vmem:[%s11761_s7 + $0x98] sm:$0xff] %v1411_v19  ;;  %v1415_v21 = vld [vmem:[%s11753_s6 + $0x150] sm:$0xff] }
  0x22   : > { %1414 = vst [vmem:[%s11761_s7 + $0xa0] sm:$0xff] %v1413_v20  ;;  %v1417_v22 = vld [vmem:[%s11753_s6 + $0x160] sm:$0xff]  ;;  %v1419_v23 = vld [vmem:[%s11753_s6 + $0x170] sm:$0xff]  ;;  %1416 = vst [vmem:[%s11761_s7 + $0xa8] sm:$0xff] %v1415_v21 }
  0x23   : > { %1418 = vst [vmem:[%s11761_s7 + $0xb0] sm:$0xff] %v1417_v22  ;;  %1420 = vst [vmem:[%s11761_s7 + $0xb8] sm:$0xff] %v1419_v23  ;;  %v1421_v24 = vld [vmem:[%s11753_s6 + $0x180] sm:$0xff]  ;;  %v1423_v25 = vld [vmem:[%s11753_s6 + $0x190] sm:$0xff] }
  0x24   : > { %v1425_v26 = vld [vmem:[%s11753_s6 + $0x1a0] sm:$0xff]  ;;  %1422 = vst [vmem:[%s11761_s7 + $0xc0] sm:$0xff] %v1421_v24  ;;  %1424 = vst [vmem:[%s11761_s7 + $0xc8] sm:$0xff] %v1423_v25  ;;  %v1427_v27 = vld [vmem:[%s11753_s6 + $0x1b0] sm:$0xff] }
  0x25   : > { %1426 = vst [vmem:[%s11761_s7 + $0xd0] sm:$0xff] %v1425_v26  ;;  %v1429_v28 = vld [vmem:[%s11753_s6 + $0x1c0] sm:$0xff]  ;;  %v1431_v29 = vld [vmem:[%s11753_s6 + $0x1d0] sm:$0xff]  ;;  %1428 = vst [vmem:[%s11761_s7 + $0xd8] sm:$0xff] %v1427_v27 }
  0x26   : > { %1430 = vst [vmem:[%s11761_s7 + $0xe0] sm:$0xff] %v1429_v28  ;;  %1432 = vst [vmem:[%s11761_s7 + $0xe8] sm:$0xff] %v1431_v29  ;;  %v1433_v30 = vld [vmem:[%s11753_s6 + $0x1e0] sm:$0xff]  ;;  %v1435_v31 = vld [vmem:[%s11753_s6 + $0x1f0] sm:$0xff] }
  0x27   : > { %v1437_v32 = vld [vmem:[%s11753_s6 + $0x200] sm:$0xff]  ;;  %1434 = vst [vmem:[%s11761_s7 + $0xf0] sm:$0xff] %v1433_v30  ;;  %1436 = vst [vmem:[%s11761_s7 + $0xf8] sm:$0xff] %v1435_v31  ;;  %v1439_v33 = vld [vmem:[%s11753_s6 + $0x210] sm:$0xff] }
  0x28   : > { %1438 = vst [vmem:[%s11761_s7 + $0x100] sm:$0xff] %v1437_v32  ;;  %v1441_v34 = vld [vmem:[%s11753_s6 + $0x220] sm:$0xff]  ;;  %v1443_v35 = vld [vmem:[%s11753_s6 + $0x230] sm:$0xff]  ;;  %1440 = vst [vmem:[%s11761_s7 + $0x108] sm:$0xff] %v1439_v33 }
  0x29   : > { %1442 = vst [vmem:[%s11761_s7 + $0x110] sm:$0xff] %v1441_v34  ;;  %1444 = vst [vmem:[%s11761_s7 + $0x118] sm:$0xff] %v1443_v35  ;;  %v1445_v36 = vld [vmem:[%s11753_s6 + $0x240] sm:$0xff]  ;;  %v1447_v37 = vld [vmem:[%s11753_s6 + $0x250] sm:$0xff] }
  0x2a   : > { %v1449_v38 = vld [vmem:[%s11753_s6 + $0x260] sm:$0xff]  ;;  %1446 = vst [vmem:[%s11761_s7 + $0x120] sm:$0xff] %v1445_v36  ;;  %1448 = vst [vmem:[%s11761_s7 + $0x128] sm:$0xff] %v1447_v37  ;;  %v1451_v39 = vld [vmem:[%s11753_s6 + $0x270] sm:$0xff] }
  0x2b   : > { %1450 = vst [vmem:[%s11761_s7 + $0x130] sm:$0xff] %v1449_v38  ;;  %v1453_v40 = vld [vmem:[%s11753_s6 + $0x280] sm:$0xff]  ;;  %v1455_v41 = vld [vmem:[%s11753_s6 + $0x290] sm:$0xff]  ;;  %1452 = vst [vmem:[%s11761_s7 + $0x138] sm:$0xff] %v1451_v39 }
  0x2c   : > { %1454 = vst [vmem:[%s11761_s7 + $0x140] sm:$0xff] %v1453_v40  ;;  %1456 = vst [vmem:[%s11761_s7 + $0x148] sm:$0xff] %v1455_v41  ;;  %v1457_v42 = vld [vmem:[%s11753_s6 + $0x2a0] sm:$0xff]  ;;  %v1459_v43 = vld [vmem:[%s11753_s6 + $0x2b0] sm:$0xff] }
  0x2d   : > { %v1461_v44 = vld [vmem:[%s11753_s6 + $0x2c0] sm:$0xff]  ;;  %1458 = vst [vmem:[%s11761_s7 + $0x150] sm:$0xff] %v1457_v42  ;;  %1460 = vst [vmem:[%s11761_s7 + $0x158] sm:$0xff] %v1459_v43  ;;  %v1463_v45 = vld [vmem:[%s11753_s6 + $0x2d0] sm:$0xff] }
  0x2e   : > { %1462 = vst [vmem:[%s11761_s7 + $0x160] sm:$0xff] %v1461_v44  ;;  %v1465_v46 = vld [vmem:[%s11753_s6 + $0x2e0] sm:$0xff]  ;;  %v1467_v47 = vld [vmem:[%s11753_s6 + $0x2f0] sm:$0xff]  ;;  %1464 = vst [vmem:[%s11761_s7 + $0x168] sm:$0xff] %v1463_v45 }
  0x2f   : > { %1466 = vst [vmem:[%s11761_s7 + $0x170] sm:$0xff] %v1465_v46  ;;  %1468 = vst [vmem:[%s11761_s7 + $0x178] sm:$0xff] %v1467_v47  ;;  %v1469_v48 = vld [vmem:[%s11753_s6 + $0x300] sm:$0xff]  ;;  %v1471_v49 = vld [vmem:[%s11753_s6 + $0x310] sm:$0xff] }
  0x30   : > { %v1473_v50 = vld [vmem:[%s11753_s6 + $0x320] sm:$0xff]  ;;  %1470 = vst [vmem:[%s11761_s7 + $0x180] sm:$0xff] %v1469_v48  ;;  %1472 = vst [vmem:[%s11761_s7 + $0x188] sm:$0xff] %v1471_v49  ;;  %v1475_v51 = vld [vmem:[%s11753_s6 + $0x330] sm:$0xff] }
  0x31   : > { %1474 = vst [vmem:[%s11761_s7 + $0x190] sm:$0xff] %v1473_v50  ;;  %v1477_v52 = vld [vmem:[%s11753_s6 + $0x340] sm:$0xff]  ;;  %v1479_v53 = vld [vmem:[%s11753_s6 + $0x350] sm:$0xff]  ;;  %1476 = vst [vmem:[%s11761_s7 + $0x198] sm:$0xff] %v1475_v51 }
  0x32   : > { %1478 = vst [vmem:[%s11761_s7 + $0x1a0] sm:$0xff] %v1477_v52  ;;  %1480 = vst [vmem:[%s11761_s7 + $0x1a8] sm:$0xff] %v1479_v53  ;;  %v1481_v54 = vld [vmem:[%s11753_s6 + $0x360] sm:$0xff]  ;;  %v1483_v55 = vld [vmem:[%s11753_s6 + $0x370] sm:$0xff] }
  0x33   : > { %v1485_v56 = vld [vmem:[%s11753_s6 + $0x380] sm:$0xff]  ;;  %1482 = vst [vmem:[%s11761_s7 + $0x1b0] sm:$0xff] %v1481_v54  ;;  %1484 = vst [vmem:[%s11761_s7 + $0x1b8] sm:$0xff] %v1483_v55  ;;  %v1487_v57 = vld [vmem:[%s11753_s6 + $0x390] sm:$0xff] }
  0x34   : > { %1486 = vst [vmem:[%s11761_s7 + $0x1c0] sm:$0xff] %v1485_v56  ;;  %v1489_v58 = vld [vmem:[%s11753_s6 + $0x3a0] sm:$0xff]  ;;  %v1491_v59 = vld [vmem:[%s11753_s6 + $0x3b0] sm:$0xff]  ;;  %1488 = vst [vmem:[%s11761_s7 + $0x1c8] sm:$0xff] %v1487_v57 }
  0x35   : > { %1490 = vst [vmem:[%s11761_s7 + $0x1d0] sm:$0xff] %v1489_v58  ;;  %1492 = vst [vmem:[%s11761_s7 + $0x1d8] sm:$0xff] %v1491_v59  ;;  %v1493_v60 = vld [vmem:[%s11753_s6 + $0x3c0] sm:$0xff]  ;;  %v1495_v61 = vld [vmem:[%s11753_s6 + $0x3d0] sm:$0xff] }
  0x36   : > { %v1497_v62 = vld [vmem:[%s11753_s6 + $0x3e0] sm:$0xff]  ;;  %1494 = vst [vmem:[%s11761_s7 + $0x1e0] sm:$0xff] %v1493_v60  ;;  %1496 = vst [vmem:[%s11761_s7 + $0x1e8] sm:$0xff] %v1495_v61  ;;  %v1499_v63 = vld [vmem:[%s11753_s6 + $0x3f0] sm:$0xff] }
  0x37   : > { %1498 = vst [vmem:[%s11761_s7 + $0x1f0] sm:$0xff] %v1497_v62  ;;  %v1501_v0 = vld [vmem:[%s11753_s6 + $0x400] sm:$0xff]  ;;  %v1503_v1 = vld [vmem:[%s11753_s6 + $0x410] sm:$0xff]  ;;  %1500 = vst [vmem:[%s11761_s7 + $0x1f8] sm:$0xff] %v1499_v63 }
  0x38   : > { %1502 = vst [vmem:[%s11761_s7 + $0x200] sm:$0xff] %v1501_v0  ;;  %1504 = vst [vmem:[%s11761_s7 + $0x208] sm:$0xff] %v1503_v1  ;;  %v1505_v2 = vld [vmem:[%s11753_s6 + $0x420] sm:$0xff]  ;;  %v1507_v3 = vld [vmem:[%s11753_s6 + $0x430] sm:$0xff] }
  0x39   : > { %v1509_v4 = vld [vmem:[%s11753_s6 + $0x440] sm:$0xff]  ;;  %1506 = vst [vmem:[%s11761_s7 + $0x210] sm:$0xff] %v1505_v2  ;;  %1508 = vst [vmem:[%s11761_s7 + $0x218] sm:$0xff] %v1507_v3  ;;  %v1511_v5 = vld [vmem:[%s11753_s6 + $0x450] sm:$0xff] }
  0x3a   : > { %1510 = vst [vmem:[%s11761_s7 + $0x220] sm:$0xff] %v1509_v4  ;;  %v1513_v6 = vld [vmem:[%s11753_s6 + $0x460] sm:$0xff]  ;;  %v1515_v7 = vld [vmem:[%s11753_s6 + $0x470] sm:$0xff]  ;;  %1512 = vst [vmem:[%s11761_s7 + $0x228] sm:$0xff] %v1511_v5 }
  0x3b   : > { %1514 = vst [vmem:[%s11761_s7 + $0x230] sm:$0xff] %v1513_v6  ;;  %1516 = vst [vmem:[%s11761_s7 + $0x238] sm:$0xff] %v1515_v7  ;;  %v1517_v8 = vld [vmem:[%s11753_s6 + $0x480] sm:$0xff]  ;;  %v1519_v9 = vld [vmem:[%s11753_s6 + $0x490] sm:$0xff] }
  0x3c   : > { %v1521_v10 = vld [vmem:[%s11753_s6 + $0x4a0] sm:$0xff]  ;;  %1518 = vst [vmem:[%s11761_s7 + $0x240] sm:$0xff] %v1517_v8  ;;  %1520 = vst [vmem:[%s11761_s7 + $0x248] sm:$0xff] %v1519_v9  ;;  %v1523_v11 = vld [vmem:[%s11753_s6 + $0x4b0] sm:$0xff] }
  0x3d   : > { %1522 = vst [vmem:[%s11761_s7 + $0x250] sm:$0xff] %v1521_v10  ;;  %v1525_v12 = vld [vmem:[%s11753_s6 + $0x4c0] sm:$0xff]  ;;  %v1527_v13 = vld [vmem:[%s11753_s6 + $0x4d0] sm:$0xff]  ;;  %1524 = vst [vmem:[%s11761_s7 + $0x258] sm:$0xff] %v1523_v11 }
  0x3e   : > { %1526 = vst [vmem:[%s11761_s7 + $0x260] sm:$0xff] %v1525_v12  ;;  %1528 = vst [vmem:[%s11761_s7 + $0x268] sm:$0xff] %v1527_v13  ;;  %v1529_v14 = vld [vmem:[%s11753_s6 + $0x4e0] sm:$0xff]  ;;  %v1531_v15 = vld [vmem:[%s11753_s6 + $0x4f0] sm:$0xff] }
  0x3f   : > { %v1533_v16 = vld [vmem:[%s11753_s6 + $0x500] sm:$0xff]  ;;  %1530 = vst [vmem:[%s11761_s7 + $0x270] sm:$0xff] %v1529_v14  ;;  %1532 = vst [vmem:[%s11761_s7 + $0x278] sm:$0xff] %v1531_v15  ;;  %v1535_v17 = vld [vmem:[%s11753_s6 + $0x510] sm:$0xff] }
  0x40   : > { %1534 = vst [vmem:[%s11761_s7 + $0x280] sm:$0xff] %v1533_v16  ;;  %v1537_v18 = vld [vmem:[%s11753_s6 + $0x520] sm:$0xff]  ;;  %v1539_v19 = vld [vmem:[%s11753_s6 + $0x530] sm:$0xff]  ;;  %1536 = vst [vmem:[%s11761_s7 + $0x288] sm:$0xff] %v1535_v17 }
  0x41   : > { %1538 = vst [vmem:[%s11761_s7 + $0x290] sm:$0xff] %v1537_v18  ;;  %1540 = vst [vmem:[%s11761_s7 + $0x298] sm:$0xff] %v1539_v19  ;;  %v1541_v20 = vld [vmem:[%s11753_s6 + $0x540] sm:$0xff]  ;;  %v1543_v21 = vld [vmem:[%s11753_s6 + $0x550] sm:$0xff] }
  0x42   : > { %v1545_v22 = vld [vmem:[%s11753_s6 + $0x560] sm:$0xff]  ;;  %1542 = vst [vmem:[%s11761_s7 + $0x2a0] sm:$0xff] %v1541_v20  ;;  %1544 = vst [vmem:[%s11761_s7 + $0x2a8] sm:$0xff] %v1543_v21  ;;  %v1547_v23 = vld [vmem:[%s11753_s6 + $0x570] sm:$0xff] }
  0x43   : > { %1546 = vst [vmem:[%s11761_s7 + $0x2b0] sm:$0xff] %v1545_v22  ;;  %v1549_v24 = vld [vmem:[%s11753_s6 + $0x580] sm:$0xff]  ;;  %v1551_v25 = vld [vmem:[%s11753_s6 + $0x590] sm:$0xff]  ;;  %1548 = vst [vmem:[%s11761_s7 + $0x2b8] sm:$0xff] %v1547_v23 }
  0x44   : > { %1550 = vst [vmem:[%s11761_s7 + $0x2c0] sm:$0xff] %v1549_v24  ;;  %1552 = vst [vmem:[%s11761_s7 + $0x2c8] sm:$0xff] %v1551_v25  ;;  %v1553_v26 = vld [vmem:[%s11753_s6 + $0x5a0] sm:$0xff]  ;;  %v1555_v27 = vld [vmem:[%s11753_s6 + $0x5b0] sm:$0xff] }
  0x45   : > { %v1557_v28 = vld [vmem:[%s11753_s6 + $0x5c0] sm:$0xff]  ;;  %1554 = vst [vmem:[%s11761_s7 + $0x2d0] sm:$0xff] %v1553_v26  ;;  %1556 = vst [vmem:[%s11761_s7 + $0x2d8] sm:$0xff] %v1555_v27  ;;  %v1559_v29 = vld [vmem:[%s11753_s6 + $0x5d0] sm:$0xff] }
  0x46   : > { %1558 = vst [vmem:[%s11761_s7 + $0x2e0] sm:$0xff] %v1557_v28  ;;  %v1561_v30 = vld [vmem:[%s11753_s6 + $0x5e0] sm:$0xff]  ;;  %v1563_v31 = vld [vmem:[%s11753_s6 + $0x5f0] sm:$0xff]  ;;  %1560 = vst [vmem:[%s11761_s7 + $0x2e8] sm:$0xff] %v1559_v29 }
  0x47   : > { %1562 = vst [vmem:[%s11761_s7 + $0x2f0] sm:$0xff] %v1561_v30  ;;  %1564 = vst [vmem:[%s11761_s7 + $0x2f8] sm:$0xff] %v1563_v31  ;;  %v1565_v32 = vld [vmem:[%s11753_s6 + $0x600] sm:$0xff]  ;;  %v1567_v33 = vld [vmem:[%s11753_s6 + $0x610] sm:$0xff] }
  0x48   : > { %v1569_v34 = vld [vmem:[%s11753_s6 + $0x620] sm:$0xff]  ;;  %1566 = vst [vmem:[%s11761_s7 + $0x300] sm:$0xff] %v1565_v32  ;;  %1568 = vst [vmem:[%s11761_s7 + $0x308] sm:$0xff] %v1567_v33  ;;  %v1571_v35 = vld [vmem:[%s11753_s6 + $0x630] sm:$0xff] }
  0x49   : > { %1570 = vst [vmem:[%s11761_s7 + $0x310] sm:$0xff] %v1569_v34  ;;  %v1573_v36 = vld [vmem:[%s11753_s6 + $0x640] sm:$0xff]  ;;  %v1575_v37 = vld [vmem:[%s11753_s6 + $0x650] sm:$0xff]  ;;  %1572 = vst [vmem:[%s11761_s7 + $0x318] sm:$0xff] %v1571_v35 }
  0x4a   : > { %1574 = vst [vmem:[%s11761_s7 + $0x320] sm:$0xff] %v1573_v36  ;;  %1576 = vst [vmem:[%s11761_s7 + $0x328] sm:$0xff] %v1575_v37  ;;  %v1577_v38 = vld [vmem:[%s11753_s6 + $0x660] sm:$0xff]  ;;  %v1579_v39 = vld [vmem:[%s11753_s6 + $0x670] sm:$0xff] }
  0x4b   : > { %v1581_v40 = vld [vmem:[%s11753_s6 + $0x680] sm:$0xff]  ;;  %1578 = vst [vmem:[%s11761_s7 + $0x330] sm:$0xff] %v1577_v38  ;;  %1580 = vst [vmem:[%s11761_s7 + $0x338] sm:$0xff] %v1579_v39  ;;  %v1583_v41 = vld [vmem:[%s11753_s6 + $0x690] sm:$0xff] }
  0x4c   : > { %1582 = vst [vmem:[%s11761_s7 + $0x340] sm:$0xff] %v1581_v40  ;;  %v1585_v42 = vld [vmem:[%s11753_s6 + $0x6a0] sm:$0xff]  ;;  %v1587_v43 = vld [vmem:[%s11753_s6 + $0x6b0] sm:$0xff]  ;;  %1584 = vst [vmem:[%s11761_s7 + $0x348] sm:$0xff] %v1583_v41 }
  0x4d   : > { %1586 = vst [vmem:[%s11761_s7 + $0x350] sm:$0xff] %v1585_v42  ;;  %1588 = vst [vmem:[%s11761_s7 + $0x358] sm:$0xff] %v1587_v43  ;;  %v1589_v44 = vld [vmem:[%s11753_s6 + $0x6c0] sm:$0xff]  ;;  %v1591_v45 = vld [vmem:[%s11753_s6 + $0x6d0] sm:$0xff] }
  0x4e   : > { %v1593_v46 = vld [vmem:[%s11753_s6 + $0x6e0] sm:$0xff]  ;;  %1590 = vst [vmem:[%s11761_s7 + $0x360] sm:$0xff] %v1589_v44  ;;  %1592 = vst [vmem:[%s11761_s7 + $0x368] sm:$0xff] %v1591_v45  ;;  %v1595_v47 = vld [vmem:[%s11753_s6 + $0x6f0] sm:$0xff] }
  0x4f   : > { %1594 = vst [vmem:[%s11761_s7 + $0x370] sm:$0xff] %v1593_v46  ;;  %v1597_v48 = vld [vmem:[%s11753_s6 + $0x700] sm:$0xff]  ;;  %v1599_v49 = vld [vmem:[%s11753_s6 + $0x710] sm:$0xff]  ;;  %1596 = vst [vmem:[%s11761_s7 + $0x378] sm:$0xff] %v1595_v47 }
  0x50   : > { %1598 = vst [vmem:[%s11761_s7 + $0x380] sm:$0xff] %v1597_v48  ;;  %1600 = vst [vmem:[%s11761_s7 + $0x388] sm:$0xff] %v1599_v49  ;;  %v1601_v50 = vld [vmem:[%s11753_s6 + $0x720] sm:$0xff]  ;;  %v1603_v51 = vld [vmem:[%s11753_s6 + $0x730] sm:$0xff] }
  0x51   : > { %v1605_v52 = vld [vmem:[%s11753_s6 + $0x740] sm:$0xff]  ;;  %1602 = vst [vmem:[%s11761_s7 + $0x390] sm:$0xff] %v1601_v50  ;;  %1604 = vst [vmem:[%s11761_s7 + $0x398] sm:$0xff] %v1603_v51  ;;  %v1607_v53 = vld [vmem:[%s11753_s6 + $0x750] sm:$0xff] }
  0x52   : > { %1606 = vst [vmem:[%s11761_s7 + $0x3a0] sm:$0xff] %v1605_v52  ;;  %v1609_v54 = vld [vmem:[%s11753_s6 + $0x760] sm:$0xff]  ;;  %v1611_v55 = vld [vmem:[%s11753_s6 + $0x770] sm:$0xff]  ;;  %1608 = vst [vmem:[%s11761_s7 + $0x3a8] sm:$0xff] %v1607_v53 }
  0x53   : > { %1610 = vst [vmem:[%s11761_s7 + $0x3b0] sm:$0xff] %v1609_v54  ;;  %1612 = vst [vmem:[%s11761_s7 + $0x3b8] sm:$0xff] %v1611_v55  ;;  %v1613_v56 = vld [vmem:[%s11753_s6 + $0x780] sm:$0xff]  ;;  %v1615_v57 = vld [vmem:[%s11753_s6 + $0x790] sm:$0xff] }
  0x54   : > { %v1617_v58 = vld [vmem:[%s11753_s6 + $0x7a0] sm:$0xff]  ;;  %1614 = vst [vmem:[%s11761_s7 + $0x3c0] sm:$0xff] %v1613_v56  ;;  %1616 = vst [vmem:[%s11761_s7 + $0x3c8] sm:$0xff] %v1615_v57  ;;  %v1619_v59 = vld [vmem:[%s11753_s6 + $0x7b0] sm:$0xff] }
  0x55   : > { %1618 = vst [vmem:[%s11761_s7 + $0x3d0] sm:$0xff] %v1617_v58  ;;  %v1621_v60 = vld [vmem:[%s11753_s6 + $0x7c0] sm:$0xff]  ;;  %v1623_v61 = vld [vmem:[%s11753_s6 + $0x7d0] sm:$0xff]  ;;  %1620 = vst [vmem:[%s11761_s7 + $0x3d8] sm:$0xff] %v1619_v59 }
  0x56   : > { %1622 = vst [vmem:[%s11761_s7 + $0x3e0] sm:$0xff] %v1621_v60  ;;  %1624 = vst [vmem:[%s11761_s7 + $0x3e8] sm:$0xff] %v1623_v61  ;;  %v1625_v62 = vld [vmem:[%s11753_s6 + $0x7e0] sm:$0xff]  ;;  %v1627_v63 = vld [vmem:[%s11753_s6 + $0x7f0] sm:$0xff] }
  0x57   : > { %v1629_v0 = vld [vmem:[%s11753_s6 + $0x800] sm:$0xff]  ;;  %1626 = vst [vmem:[%s11761_s7 + $0x3f0] sm:$0xff] %v1625_v62  ;;  %1628 = vst [vmem:[%s11761_s7 + $0x3f8] sm:$0xff] %v1627_v63  ;;  %v1631_v1 = vld [vmem:[%s11753_s6 + $0x810] sm:$0xff] }
  0x58   : > { %1630 = vst [vmem:[%s11761_s7 + $0x400] sm:$0xff] %v1629_v0  ;;  %v1633_v2 = vld [vmem:[%s11753_s6 + $0x820] sm:$0xff]  ;;  %v1635_v3 = vld [vmem:[%s11753_s6 + $0x830] sm:$0xff]  ;;  %1632 = vst [vmem:[%s11761_s7 + $0x408] sm:$0xff] %v1631_v1 }
  0x59   : > { %1634 = vst [vmem:[%s11761_s7 + $0x410] sm:$0xff] %v1633_v2  ;;  %1636 = vst [vmem:[%s11761_s7 + $0x418] sm:$0xff] %v1635_v3  ;;  %v1637_v4 = vld [vmem:[%s11753_s6 + $0x840] sm:$0xff]  ;;  %v1639_v5 = vld [vmem:[%s11753_s6 + $0x850] sm:$0xff] }
  0x5a   : > { %v1641_v6 = vld [vmem:[%s11753_s6 + $0x860] sm:$0xff]  ;;  %1638 = vst [vmem:[%s11761_s7 + $0x420] sm:$0xff] %v1637_v4  ;;  %1640 = vst [vmem:[%s11761_s7 + $0x428] sm:$0xff] %v1639_v5  ;;  %v1643_v7 = vld [vmem:[%s11753_s6 + $0x870] sm:$0xff] }
  0x5b   : > { %1642 = vst [vmem:[%s11761_s7 + $0x430] sm:$0xff] %v1641_v6  ;;  %v1645_v8 = vld [vmem:[%s11753_s6 + $0x880] sm:$0xff]  ;;  %v1647_v9 = vld [vmem:[%s11753_s6 + $0x890] sm:$0xff]  ;;  %1644 = vst [vmem:[%s11761_s7 + $0x438] sm:$0xff] %v1643_v7 }
  0x5c   : > { %1646 = vst [vmem:[%s11761_s7 + $0x440] sm:$0xff] %v1645_v8  ;;  %1648 = vst [vmem:[%s11761_s7 + $0x448] sm:$0xff] %v1647_v9  ;;  %v1649_v10 = vld [vmem:[%s11753_s6 + $0x8a0] sm:$0xff]  ;;  %v1651_v11 = vld [vmem:[%s11753_s6 + $0x8b0] sm:$0xff] }
  0x5d   : > { %v1653_v12 = vld [vmem:[%s11753_s6 + $0x8c0] sm:$0xff]  ;;  %1650 = vst [vmem:[%s11761_s7 + $0x450] sm:$0xff] %v1649_v10  ;;  %1652 = vst [vmem:[%s11761_s7 + $0x458] sm:$0xff] %v1651_v11  ;;  %v1655_v13 = vld [vmem:[%s11753_s6 + $0x8d0] sm:$0xff] }
  0x5e   : > { %1654 = vst [vmem:[%s11761_s7 + $0x460] sm:$0xff] %v1653_v12  ;;  %v1657_v14 = vld [vmem:[%s11753_s6 + $0x8e0] sm:$0xff]  ;;  %v1659_v15 = vld [vmem:[%s11753_s6 + $0x8f0] sm:$0xff]  ;;  %1656 = vst [vmem:[%s11761_s7 + $0x468] sm:$0xff] %v1655_v13 }
  0x5f   : > { %1658 = vst [vmem:[%s11761_s7 + $0x470] sm:$0xff] %v1657_v14  ;;  %1660 = vst [vmem:[%s11761_s7 + $0x478] sm:$0xff] %v1659_v15  ;;  %v1661_v16 = vld [vmem:[%s11753_s6 + $0x900] sm:$0xff]  ;;  %v1663_v17 = vld [vmem:[%s11753_s6 + $0x910] sm:$0xff] }
  0x60   : > { %v1665_v18 = vld [vmem:[%s11753_s6 + $0x920] sm:$0xff]  ;;  %1662 = vst [vmem:[%s11761_s7 + $0x480] sm:$0xff] %v1661_v16  ;;  %1664 = vst [vmem:[%s11761_s7 + $0x488] sm:$0xff] %v1663_v17  ;;  %v1667_v19 = vld [vmem:[%s11753_s6 + $0x930] sm:$0xff] }
  0x61   : > { %1666 = vst [vmem:[%s11761_s7 + $0x490] sm:$0xff] %v1665_v18  ;;  %v1669_v20 = vld [vmem:[%s11753_s6 + $0x940] sm:$0xff]  ;;  %v1671_v21 = vld [vmem:[%s11753_s6 + $0x950] sm:$0xff]  ;;  %1668 = vst [vmem:[%s11761_s7 + $0x498] sm:$0xff] %v1667_v19 }
  0x62   : > { %1670 = vst [vmem:[%s11761_s7 + $0x4a0] sm:$0xff] %v1669_v20  ;;  %1672 = vst [vmem:[%s11761_s7 + $0x4a8] sm:$0xff] %v1671_v21  ;;  %v1673_v22 = vld [vmem:[%s11753_s6 + $0x960] sm:$0xff]  ;;  %v1675_v23 = vld [vmem:[%s11753_s6 + $0x970] sm:$0xff] }
  0x63   : > { %v1677_v24 = vld [vmem:[%s11753_s6 + $0x980] sm:$0xff]  ;;  %1674 = vst [vmem:[%s11761_s7 + $0x4b0] sm:$0xff] %v1673_v22  ;;  %1676 = vst [vmem:[%s11761_s7 + $0x4b8] sm:$0xff] %v1675_v23  ;;  %v1679_v25 = vld [vmem:[%s11753_s6 + $0x990] sm:$0xff] }
  0x64   : > { %1678 = vst [vmem:[%s11761_s7 + $0x4c0] sm:$0xff] %v1677_v24  ;;  %v1681_v26 = vld [vmem:[%s11753_s6 + $0x9a0] sm:$0xff]  ;;  %v1683_v27 = vld [vmem:[%s11753_s6 + $0x9b0] sm:$0xff]  ;;  %1680 = vst [vmem:[%s11761_s7 + $0x4c8] sm:$0xff] %v1679_v25 }
  0x65   : > { %1682 = vst [vmem:[%s11761_s7 + $0x4d0] sm:$0xff] %v1681_v26  ;;  %1684 = vst [vmem:[%s11761_s7 + $0x4d8] sm:$0xff] %v1683_v27  ;;  %v1685_v28 = vld [vmem:[%s11753_s6 + $0x9c0] sm:$0xff]  ;;  %v1687_v29 = vld [vmem:[%s11753_s6 + $0x9d0] sm:$0xff] }
  0x66   : > { %v1689_v30 = vld [vmem:[%s11753_s6 + $0x9e0] sm:$0xff]  ;;  %1686 = vst [vmem:[%s11761_s7 + $0x4e0] sm:$0xff] %v1685_v28  ;;  %1688 = vst [vmem:[%s11761_s7 + $0x4e8] sm:$0xff] %v1687_v29  ;;  %v1691_v31 = vld [vmem:[%s11753_s6 + $0x9f0] sm:$0xff] }
  0x67   : > { %1690 = vst [vmem:[%s11761_s7 + $0x4f0] sm:$0xff] %v1689_v30  ;;  %v1693_v32 = vld [vmem:[%s11753_s6 + $0xa00] sm:$0xff]  ;;  %v1695_v33 = vld [vmem:[%s11753_s6 + $0xa10] sm:$0xff]  ;;  %1692 = vst [vmem:[%s11761_s7 + $0x4f8] sm:$0xff] %v1691_v31 }
  0x68   : > { %1694 = vst [vmem:[%s11761_s7 + $0x500] sm:$0xff] %v1693_v32  ;;  %1696 = vst [vmem:[%s11761_s7 + $0x508] sm:$0xff] %v1695_v33  ;;  %v1697_v34 = vld [vmem:[%s11753_s6 + $0xa20] sm:$0xff]  ;;  %v1699_v35 = vld [vmem:[%s11753_s6 + $0xa30] sm:$0xff] }
  0x69   : > { %v1701_v36 = vld [vmem:[%s11753_s6 + $0xa40] sm:$0xff]  ;;  %1698 = vst [vmem:[%s11761_s7 + $0x510] sm:$0xff] %v1697_v34  ;;  %1700 = vst [vmem:[%s11761_s7 + $0x518] sm:$0xff] %v1699_v35  ;;  %v1703_v37 = vld [vmem:[%s11753_s6 + $0xa50] sm:$0xff] }
  0x6a   : > { %1702 = vst [vmem:[%s11761_s7 + $0x520] sm:$0xff] %v1701_v36  ;;  %v1705_v38 = vld [vmem:[%s11753_s6 + $0xa60] sm:$0xff]  ;;  %v1707_v39 = vld [vmem:[%s11753_s6 + $0xa70] sm:$0xff]  ;;  %1704 = vst [vmem:[%s11761_s7 + $0x528] sm:$0xff] %v1703_v37 }
  0x6b   : > { %1706 = vst [vmem:[%s11761_s7 + $0x530] sm:$0xff] %v1705_v38  ;;  %1708 = vst [vmem:[%s11761_s7 + $0x538] sm:$0xff] %v1707_v39  ;;  %v1709_v40 = vld [vmem:[%s11753_s6 + $0xa80] sm:$0xff]  ;;  %v1711_v41 = vld [vmem:[%s11753_s6 + $0xa90] sm:$0xff] }
  0x6c   : > { %v1713_v42 = vld [vmem:[%s11753_s6 + $0xaa0] sm:$0xff]  ;;  %1710 = vst [vmem:[%s11761_s7 + $0x540] sm:$0xff] %v1709_v40  ;;  %1712 = vst [vmem:[%s11761_s7 + $0x548] sm:$0xff] %v1711_v41  ;;  %v1715_v43 = vld [vmem:[%s11753_s6 + $0xab0] sm:$0xff] }
  0x6d   : > { %1714 = vst [vmem:[%s11761_s7 + $0x550] sm:$0xff] %v1713_v42  ;;  %v1717_v44 = vld [vmem:[%s11753_s6 + $0xac0] sm:$0xff]  ;;  %v1719_v45 = vld [vmem:[%s11753_s6 + $0xad0] sm:$0xff]  ;;  %1716 = vst [vmem:[%s11761_s7 + $0x558] sm:$0xff] %v1715_v43 }
  0x6e   : > { %1718 = vst [vmem:[%s11761_s7 + $0x560] sm:$0xff] %v1717_v44  ;;  %1720 = vst [vmem:[%s11761_s7 + $0x568] sm:$0xff] %v1719_v45  ;;  %v1721_v46 = vld [vmem:[%s11753_s6 + $0xae0] sm:$0xff]  ;;  %v1723_v47 = vld [vmem:[%s11753_s6 + $0xaf0] sm:$0xff] }
  0x6f   : > { %v1725_v48 = vld [vmem:[%s11753_s6 + $0xb00] sm:$0xff]  ;;  %1722 = vst [vmem:[%s11761_s7 + $0x570] sm:$0xff] %v1721_v46  ;;  %1724 = vst [vmem:[%s11761_s7 + $0x578] sm:$0xff] %v1723_v47  ;;  %v1727_v49 = vld [vmem:[%s11753_s6 + $0xb10] sm:$0xff] }
  0x70   : > { %1726 = vst [vmem:[%s11761_s7 + $0x580] sm:$0xff] %v1725_v48  ;;  %v1729_v50 = vld [vmem:[%s11753_s6 + $0xb20] sm:$0xff]  ;;  %v1731_v51 = vld [vmem:[%s11753_s6 + $0xb30] sm:$0xff]  ;;  %1728 = vst [vmem:[%s11761_s7 + $0x588] sm:$0xff] %v1727_v49 }
  0x71   : > { %1730 = vst [vmem:[%s11761_s7 + $0x590] sm:$0xff] %v1729_v50  ;;  %1732 = vst [vmem:[%s11761_s7 + $0x598] sm:$0xff] %v1731_v51  ;;  %v1733_v52 = vld [vmem:[%s11753_s6 + $0xb40] sm:$0xff]  ;;  %v1735_v53 = vld [vmem:[%s11753_s6 + $0xb50] sm:$0xff] }
  0x72   : > { %v1737_v54 = vld [vmem:[%s11753_s6 + $0xb60] sm:$0xff]  ;;  %1734 = vst [vmem:[%s11761_s7 + $0x5a0] sm:$0xff] %v1733_v52  ;;  %1736 = vst [vmem:[%s11761_s7 + $0x5a8] sm:$0xff] %v1735_v53  ;;  %v1739_v55 = vld [vmem:[%s11753_s6 + $0xb70] sm:$0xff] }
  0x73   : > { %1738 = vst [vmem:[%s11761_s7 + $0x5b0] sm:$0xff] %v1737_v54  ;;  %v1741_v56 = vld [vmem:[%s11753_s6 + $0xb80] sm:$0xff]  ;;  %v1743_v57 = vld [vmem:[%s11753_s6 + $0xb90] sm:$0xff]  ;;  %1740 = vst [vmem:[%s11761_s7 + $0x5b8] sm:$0xff] %v1739_v55 }
  0x74   : > { %1742 = vst [vmem:[%s11761_s7 + $0x5c0] sm:$0xff] %v1741_v56  ;;  %1744 = vst [vmem:[%s11761_s7 + $0x5c8] sm:$0xff] %v1743_v57  ;;  %v1745_v58 = vld [vmem:[%s11753_s6 + $0xba0] sm:$0xff]  ;;  %v1747_v59 = vld [vmem:[%s11753_s6 + $0xbb0] sm:$0xff] }
  0x75   : > { %v1749_v60 = vld [vmem:[%s11753_s6 + $0xbc0] sm:$0xff]  ;;  %1746 = vst [vmem:[%s11761_s7 + $0x5d0] sm:$0xff] %v1745_v58  ;;  %1748 = vst [vmem:[%s11761_s7 + $0x5d8] sm:$0xff] %v1747_v59  ;;  %v1751_v61 = vld [vmem:[%s11753_s6 + $0xbd0] sm:$0xff] }
  0x76   : > { %1750 = vst [vmem:[%s11761_s7 + $0x5e0] sm:$0xff] %v1749_v60  ;;  %v1753_v62 = vld [vmem:[%s11753_s6 + $0xbe0] sm:$0xff]  ;;  %v1755_v63 = vld [vmem:[%s11753_s6 + $0xbf0] sm:$0xff]  ;;  %1752 = vst [vmem:[%s11761_s7 + $0x5e8] sm:$0xff] %v1751_v61 }
  0x77   : > { %1754 = vst [vmem:[%s11761_s7 + $0x5f0] sm:$0xff] %v1753_v62  ;;  %1756 = vst [vmem:[%s11761_s7 + $0x5f8] sm:$0xff] %v1755_v63  ;;  %v1757_v0 = vld [vmem:[%s11753_s6 + $0xc00] sm:$0xff]  ;;  %v1759_v1 = vld [vmem:[%s11753_s6 + $0xc10] sm:$0xff] }
  0x78   : > { %v1761_v2 = vld [vmem:[%s11753_s6 + $0xc20] sm:$0xff]  ;;  %1758 = vst [vmem:[%s11761_s7 + $0x600] sm:$0xff] %v1757_v0  ;;  %1760 = vst [vmem:[%s11761_s7 + $0x608] sm:$0xff] %v1759_v1  ;;  %v1763_v3 = vld [vmem:[%s11753_s6 + $0xc30] sm:$0xff] }
  0x79   : > { %1762 = vst [vmem:[%s11761_s7 + $0x610] sm:$0xff] %v1761_v2  ;;  %v1765_v4 = vld [vmem:[%s11753_s6 + $0xc40] sm:$0xff]  ;;  %v1767_v5 = vld [vmem:[%s11753_s6 + $0xc50] sm:$0xff]  ;;  %1764 = vst [vmem:[%s11761_s7 + $0x618] sm:$0xff] %v1763_v3 }
  0x7a   : > { %1766 = vst [vmem:[%s11761_s7 + $0x620] sm:$0xff] %v1765_v4  ;;  %1768 = vst [vmem:[%s11761_s7 + $0x628] sm:$0xff] %v1767_v5  ;;  %v1769_v6 = vld [vmem:[%s11753_s6 + $0xc60] sm:$0xff]  ;;  %v1771_v7 = vld [vmem:[%s11753_s6 + $0xc70] sm:$0xff] }
  0x7b   : > { %v1773_v8 = vld [vmem:[%s11753_s6 + $0xc80] sm:$0xff]  ;;  %1770 = vst [vmem:[%s11761_s7 + $0x630] sm:$0xff] %v1769_v6  ;;  %1772 = vst [vmem:[%s11761_s7 + $0x638] sm:$0xff] %v1771_v7  ;;  %v1775_v9 = vld [vmem:[%s11753_s6 + $0xc90] sm:$0xff] }
  0x7c   : > { %1774 = vst [vmem:[%s11761_s7 + $0x640] sm:$0xff] %v1773_v8  ;;  %v1777_v10 = vld [vmem:[%s11753_s6 + $0xca0] sm:$0xff]  ;;  %v1779_v11 = vld [vmem:[%s11753_s6 + $0xcb0] sm:$0xff]  ;;  %1776 = vst [vmem:[%s11761_s7 + $0x648] sm:$0xff] %v1775_v9 }
  0x7d   : > { %1778 = vst [vmem:[%s11761_s7 + $0x650] sm:$0xff] %v1777_v10  ;;  %1780 = vst [vmem:[%s11761_s7 + $0x658] sm:$0xff] %v1779_v11  ;;  %v1781_v12 = vld [vmem:[%s11753_s6 + $0xcc0] sm:$0xff]  ;;  %v1783_v13 = vld [vmem:[%s11753_s6 + $0xcd0] sm:$0xff] }
  0x7e   : > { %v1785_v14 = vld [vmem:[%s11753_s6 + $0xce0] sm:$0xff]  ;;  %1782 = vst [vmem:[%s11761_s7 + $0x660] sm:$0xff] %v1781_v12  ;;  %1784 = vst [vmem:[%s11761_s7 + $0x668] sm:$0xff] %v1783_v13  ;;  %v1787_v15 = vld [vmem:[%s11753_s6 + $0xcf0] sm:$0xff] }
  0x7f   : > { %1786 = vst [vmem:[%s11761_s7 + $0x670] sm:$0xff] %v1785_v14  ;;  %v1789_v16 = vld [vmem:[%s11753_s6 + $0xd00] sm:$0xff]  ;;  %v1791_v17 = vld [vmem:[%s11753_s6 + $0xd10] sm:$0xff]  ;;  %1788 = vst [vmem:[%s11761_s7 + $0x678] sm:$0xff] %v1787_v15 }
  0x80   : > { %1790 = vst [vmem:[%s11761_s7 + $0x680] sm:$0xff] %v1789_v16  ;;  %1792 = vst [vmem:[%s11761_s7 + $0x688] sm:$0xff] %v1791_v17  ;;  %v1793_v18 = vld [vmem:[%s11753_s6 + $0xd20] sm:$0xff]  ;;  %v1795_v19 = vld [vmem:[%s11753_s6 + $0xd30] sm:$0xff] }
  0x81   : > { %v1797_v20 = vld [vmem:[%s11753_s6 + $0xd40] sm:$0xff]  ;;  %1794 = vst [vmem:[%s11761_s7 + $0x690] sm:$0xff] %v1793_v18  ;;  %1796 = vst [vmem:[%s11761_s7 + $0x698] sm:$0xff] %v1795_v19  ;;  %v1799_v21 = vld [vmem:[%s11753_s6 + $0xd50] sm:$0xff] }
  0x82   : > { %1798 = vst [vmem:[%s11761_s7 + $0x6a0] sm:$0xff] %v1797_v20  ;;  %v1801_v22 = vld [vmem:[%s11753_s6 + $0xd60] sm:$0xff]  ;;  %v1803_v23 = vld [vmem:[%s11753_s6 + $0xd70] sm:$0xff]  ;;  %1800 = vst [vmem:[%s11761_s7 + $0x6a8] sm:$0xff] %v1799_v21 }
  0x83   : > { %1802 = vst [vmem:[%s11761_s7 + $0x6b0] sm:$0xff] %v1801_v22  ;;  %1804 = vst [vmem:[%s11761_s7 + $0x6b8] sm:$0xff] %v1803_v23  ;;  %v1805_v24 = vld [vmem:[%s11753_s6 + $0xd80] sm:$0xff]  ;;  %v1807_v25 = vld [vmem:[%s11753_s6 + $0xd90] sm:$0xff] }
  0x84   : > { %v1809_v26 = vld [vmem:[%s11753_s6 + $0xda0] sm:$0xff]  ;;  %1806 = vst [vmem:[%s11761_s7 + $0x6c0] sm:$0xff] %v1805_v24  ;;  %1808 = vst [vmem:[%s11761_s7 + $0x6c8] sm:$0xff] %v1807_v25  ;;  %v1811_v27 = vld [vmem:[%s11753_s6 + $0xdb0] sm:$0xff] }
  0x85   : > { %1810 = vst [vmem:[%s11761_s7 + $0x6d0] sm:$0xff] %v1809_v26  ;;  %v1813_v28 = vld [vmem:[%s11753_s6 + $0xdc0] sm:$0xff]  ;;  %v1815_v29 = vld [vmem:[%s11753_s6 + $0xdd0] sm:$0xff]  ;;  %1812 = vst [vmem:[%s11761_s7 + $0x6d8] sm:$0xff] %v1811_v27 }
  0x86   : > { %1814 = vst [vmem:[%s11761_s7 + $0x6e0] sm:$0xff] %v1813_v28  ;;  %1816 = vst [vmem:[%s11761_s7 + $0x6e8] sm:$0xff] %v1815_v29  ;;  %v1817_v30 = vld [vmem:[%s11753_s6 + $0xde0] sm:$0xff]  ;;  %v1819_v31 = vld [vmem:[%s11753_s6 + $0xdf0] sm:$0xff] }
  0x87   : > { %v1821_v32 = vld [vmem:[%s11753_s6 + $0xe00] sm:$0xff]  ;;  %1818 = vst [vmem:[%s11761_s7 + $0x6f0] sm:$0xff] %v1817_v30  ;;  %1820 = vst [vmem:[%s11761_s7 + $0x6f8] sm:$0xff] %v1819_v31  ;;  %v1823_v33 = vld [vmem:[%s11753_s6 + $0xe10] sm:$0xff] }
  0x88   : > { %1822 = vst [vmem:[%s11761_s7 + $0x700] sm:$0xff] %v1821_v32  ;;  %v1825_v34 = vld [vmem:[%s11753_s6 + $0xe20] sm:$0xff]  ;;  %v1827_v35 = vld [vmem:[%s11753_s6 + $0xe30] sm:$0xff]  ;;  %1824 = vst [vmem:[%s11761_s7 + $0x708] sm:$0xff] %v1823_v33 }
  0x89   : > { %1826 = vst [vmem:[%s11761_s7 + $0x710] sm:$0xff] %v1825_v34  ;;  %1828 = vst [vmem:[%s11761_s7 + $0x718] sm:$0xff] %v1827_v35  ;;  %v1829_v36 = vld [vmem:[%s11753_s6 + $0xe40] sm:$0xff]  ;;  %v1831_v37 = vld [vmem:[%s11753_s6 + $0xe50] sm:$0xff] }
  0x8a   : > { %v1833_v38 = vld [vmem:[%s11753_s6 + $0xe60] sm:$0xff]  ;;  %1830 = vst [vmem:[%s11761_s7 + $0x720] sm:$0xff] %v1829_v36  ;;  %1832 = vst [vmem:[%s11761_s7 + $0x728] sm:$0xff] %v1831_v37  ;;  %v1835_v39 = vld [vmem:[%s11753_s6 + $0xe70] sm:$0xff] }
  0x8b   : > { %1834 = vst [vmem:[%s11761_s7 + $0x730] sm:$0xff] %v1833_v38  ;;  %v1837_v40 = vld [vmem:[%s11753_s6 + $0xe80] sm:$0xff]  ;;  %v1839_v41 = vld [vmem:[%s11753_s6 + $0xe90] sm:$0xff]  ;;  %1836 = vst [vmem:[%s11761_s7 + $0x738] sm:$0xff] %v1835_v39 }
  0x8c   : > { %1838 = vst [vmem:[%s11761_s7 + $0x740] sm:$0xff] %v1837_v40  ;;  %1840 = vst [vmem:[%s11761_s7 + $0x748] sm:$0xff] %v1839_v41  ;;  %v1841_v42 = vld [vmem:[%s11753_s6 + $0xea0] sm:$0xff]  ;;  %v1843_v43 = vld [vmem:[%s11753_s6 + $0xeb0] sm:$0xff] }
  0x8d   : > { %v1845_v44 = vld [vmem:[%s11753_s6 + $0xec0] sm:$0xff]  ;;  %1842 = vst [vmem:[%s11761_s7 + $0x750] sm:$0xff] %v1841_v42  ;;  %1844 = vst [vmem:[%s11761_s7 + $0x758] sm:$0xff] %v1843_v43  ;;  %v1847_v45 = vld [vmem:[%s11753_s6 + $0xed0] sm:$0xff] }
  0x8e   : > { %1846 = vst [vmem:[%s11761_s7 + $0x760] sm:$0xff] %v1845_v44  ;;  %v1849_v46 = vld [vmem:[%s11753_s6 + $0xee0] sm:$0xff]  ;;  %v1851_v47 = vld [vmem:[%s11753_s6 + $0xef0] sm:$0xff]  ;;  %1848 = vst [vmem:[%s11761_s7 + $0x768] sm:$0xff] %v1847_v45 }
  0x8f   : > { %1850 = vst [vmem:[%s11761_s7 + $0x770] sm:$0xff] %v1849_v46  ;;  %1852 = vst [vmem:[%s11761_s7 + $0x778] sm:$0xff] %v1851_v47  ;;  %v1853_v48 = vld [vmem:[%s11753_s6 + $0xf00] sm:$0xff]  ;;  %v1855_v49 = vld [vmem:[%s11753_s6 + $0xf10] sm:$0xff] }
  0x90   : > { %v1857_v50 = vld [vmem:[%s11753_s6 + $0xf20] sm:$0xff]  ;;  %1854 = vst [vmem:[%s11761_s7 + $0x780] sm:$0xff] %v1853_v48  ;;  %1856 = vst [vmem:[%s11761_s7 + $0x788] sm:$0xff] %v1855_v49  ;;  %v1859_v51 = vld [vmem:[%s11753_s6 + $0xf30] sm:$0xff] }
  0x91   : > { %1858 = vst [vmem:[%s11761_s7 + $0x790] sm:$0xff] %v1857_v50  ;;  %v1861_v52 = vld [vmem:[%s11753_s6 + $0xf40] sm:$0xff]  ;;  %v1863_v53 = vld [vmem:[%s11753_s6 + $0xf50] sm:$0xff]  ;;  %1860 = vst [vmem:[%s11761_s7 + $0x798] sm:$0xff] %v1859_v51 }
  0x92   : > { %1862 = vst [vmem:[%s11761_s7 + $0x7a0] sm:$0xff] %v1861_v52  ;;  %1864 = vst [vmem:[%s11761_s7 + $0x7a8] sm:$0xff] %v1863_v53  ;;  %v1865_v54 = vld [vmem:[%s11753_s6 + $0xf60] sm:$0xff]  ;;  %v1867_v55 = vld [vmem:[%s11753_s6 + $0xf70] sm:$0xff] }
  0x93   : > { %v1869_v56 = vld [vmem:[%s11753_s6 + $0xf80] sm:$0xff]  ;;  %1866 = vst [vmem:[%s11761_s7 + $0x7b0] sm:$0xff] %v1865_v54  ;;  %1868 = vst [vmem:[%s11761_s7 + $0x7b8] sm:$0xff] %v1867_v55  ;;  %v1871_v57 = vld [vmem:[%s11753_s6 + $0xf90] sm:$0xff] }
  0x94   : > { %1870 = vst [vmem:[%s11761_s7 + $0x7c0] sm:$0xff] %v1869_v56  ;;  %v1873_v58 = vld [vmem:[%s11753_s6 + $0xfa0] sm:$0xff]  ;;  %v1875_v59 = vld [vmem:[%s11753_s6 + $0xfb0] sm:$0xff]  ;;  %1872 = vst [vmem:[%s11761_s7 + $0x7c8] sm:$0xff] %v1871_v57 }
  0x95   : > { %1874 = vst [vmem:[%s11761_s7 + $0x7d0] sm:$0xff] %v1873_v58  ;;  %1876 = vst [vmem:[%s11761_s7 + $0x7d8] sm:$0xff] %v1875_v59  ;;  %v1877_v60 = vld [vmem:[%s11753_s6 + $0xfc0] sm:$0xff]  ;;  %v1879_v61 = vld [vmem:[%s11753_s6 + $0xfd0] sm:$0xff] }
  0x96   : > { %v1881_v62 = vld [vmem:[%s11753_s6 + $0xfe0] sm:$0xff]  ;;  %1878 = vst [vmem:[%s11761_s7 + $0x7e0] sm:$0xff] %v1877_v60  ;;  %1880 = vst [vmem:[%s11761_s7 + $0x7e8] sm:$0xff] %v1879_v61  ;;  %v1883_v63 = vld [vmem:[%s11753_s6 + $0xff0] sm:$0xff] }
  0x97   : > { %1882 = vst [vmem:[%s11761_s7 + $0x7f0] sm:$0xff] %v1881_v62  ;;  %v1885_v0 = vld [vmem:[%s11753_s6 + $0x1000] sm:$0xff]  ;;  %v1887_v1 = vld [vmem:[%s11753_s6 + $0x1010] sm:$0xff]  ;;  %1884 = vst [vmem:[%s11761_s7 + $0x7f8] sm:$0xff] %v1883_v63 }
  0x98   : > { %1886 = vst [vmem:[%s11761_s7 + $0x800] sm:$0xff] %v1885_v0  ;;  %1888 = vst [vmem:[%s11761_s7 + $0x808] sm:$0xff] %v1887_v1  ;;  %v1889_v2 = vld [vmem:[%s11753_s6 + $0x1020] sm:$0xff]  ;;  %v1891_v3 = vld [vmem:[%s11753_s6 + $0x1030] sm:$0xff] }
  0x99   : > { %v1893_v4 = vld [vmem:[%s11753_s6 + $0x1040] sm:$0xff]  ;;  %1890 = vst [vmem:[%s11761_s7 + $0x810] sm:$0xff] %v1889_v2  ;;  %1892 = vst [vmem:[%s11761_s7 + $0x818] sm:$0xff] %v1891_v3  ;;  %v1895_v5 = vld [vmem:[%s11753_s6 + $0x1050] sm:$0xff] }
  0x9a   : > { %1894 = vst [vmem:[%s11761_s7 + $0x820] sm:$0xff] %v1893_v4  ;;  %v1897_v6 = vld [vmem:[%s11753_s6 + $0x1060] sm:$0xff]  ;;  %v1899_v7 = vld [vmem:[%s11753_s6 + $0x1070] sm:$0xff]  ;;  %1896 = vst [vmem:[%s11761_s7 + $0x828] sm:$0xff] %v1895_v5 }
  0x9b   : > { %1898 = vst [vmem:[%s11761_s7 + $0x830] sm:$0xff] %v1897_v6  ;;  %1900 = vst [vmem:[%s11761_s7 + $0x838] sm:$0xff] %v1899_v7  ;;  %v1901_v8 = vld [vmem:[%s11753_s6 + $0x1080] sm:$0xff]  ;;  %v1903_v9 = vld [vmem:[%s11753_s6 + $0x1090] sm:$0xff] }
  0x9c   : > { %v1905_v10 = vld [vmem:[%s11753_s6 + $0x10a0] sm:$0xff]  ;;  %1902 = vst [vmem:[%s11761_s7 + $0x840] sm:$0xff] %v1901_v8  ;;  %1904 = vst [vmem:[%s11761_s7 + $0x848] sm:$0xff] %v1903_v9  ;;  %v1907_v11 = vld [vmem:[%s11753_s6 + $0x10b0] sm:$0xff] }
  0x9d   : > { %1906 = vst [vmem:[%s11761_s7 + $0x850] sm:$0xff] %v1905_v10  ;;  %v1909_v12 = vld [vmem:[%s11753_s6 + $0x10c0] sm:$0xff]  ;;  %v1911_v13 = vld [vmem:[%s11753_s6 + $0x10d0] sm:$0xff]  ;;  %1908 = vst [vmem:[%s11761_s7 + $0x858] sm:$0xff] %v1907_v11 }
  0x9e   : > { %1910 = vst [vmem:[%s11761_s7 + $0x860] sm:$0xff] %v1909_v12  ;;  %1912 = vst [vmem:[%s11761_s7 + $0x868] sm:$0xff] %v1911_v13  ;;  %v1913_v14 = vld [vmem:[%s11753_s6 + $0x10e0] sm:$0xff]  ;;  %v1915_v15 = vld [vmem:[%s11753_s6 + $0x10f0] sm:$0xff] }
  0x9f   : > { %v1917_v16 = vld [vmem:[%s11753_s6 + $0x1100] sm:$0xff]  ;;  %1914 = vst [vmem:[%s11761_s7 + $0x870] sm:$0xff] %v1913_v14  ;;  %1916 = vst [vmem:[%s11761_s7 + $0x878] sm:$0xff] %v1915_v15  ;;  %v1919_v17 = vld [vmem:[%s11753_s6 + $0x1110] sm:$0xff] }
  0xa0   : > { %1918 = vst [vmem:[%s11761_s7 + $0x880] sm:$0xff] %v1917_v16  ;;  %v1921_v18 = vld [vmem:[%s11753_s6 + $0x1120] sm:$0xff]  ;;  %v1923_v19 = vld [vmem:[%s11753_s6 + $0x1130] sm:$0xff]  ;;  %1920 = vst [vmem:[%s11761_s7 + $0x888] sm:$0xff] %v1919_v17 }
  0xa1   : > { %1922 = vst [vmem:[%s11761_s7 + $0x890] sm:$0xff] %v1921_v18  ;;  %1924 = vst [vmem:[%s11761_s7 + $0x898] sm:$0xff] %v1923_v19  ;;  %v1925_v20 = vld [vmem:[%s11753_s6 + $0x1140] sm:$0xff]  ;;  %v1927_v21 = vld [vmem:[%s11753_s6 + $0x1150] sm:$0xff] }
  0xa2   : > { %v1929_v22 = vld [vmem:[%s11753_s6 + $0x1160] sm:$0xff]  ;;  %1926 = vst [vmem:[%s11761_s7 + $0x8a0] sm:$0xff] %v1925_v20  ;;  %1928 = vst [vmem:[%s11761_s7 + $0x8a8] sm:$0xff] %v1927_v21  ;;  %v1931_v23 = vld [vmem:[%s11753_s6 + $0x1170] sm:$0xff] }
  0xa3   : > { %1930 = vst [vmem:[%s11761_s7 + $0x8b0] sm:$0xff] %v1929_v22  ;;  %v1933_v24 = vld [vmem:[%s11753_s6 + $0x1180] sm:$0xff]  ;;  %v1935_v25 = vld [vmem:[%s11753_s6 + $0x1190] sm:$0xff]  ;;  %1932 = vst [vmem:[%s11761_s7 + $0x8b8] sm:$0xff] %v1931_v23 }
  0xa4   : > { %1934 = vst [vmem:[%s11761_s7 + $0x8c0] sm:$0xff] %v1933_v24  ;;  %1936 = vst [vmem:[%s11761_s7 + $0x8c8] sm:$0xff] %v1935_v25  ;;  %v1937_v26 = vld [vmem:[%s11753_s6 + $0x11a0] sm:$0xff]  ;;  %v1939_v27 = vld [vmem:[%s11753_s6 + $0x11b0] sm:$0xff] }
  0xa5   : > { %v1941_v28 = vld [vmem:[%s11753_s6 + $0x11c0] sm:$0xff]  ;;  %1938 = vst [vmem:[%s11761_s7 + $0x8d0] sm:$0xff] %v1937_v26  ;;  %1940 = vst [vmem:[%s11761_s7 + $0x8d8] sm:$0xff] %v1939_v27  ;;  %v1943_v29 = vld [vmem:[%s11753_s6 + $0x11d0] sm:$0xff] }
  0xa6   : > { %1942 = vst [vmem:[%s11761_s7 + $0x8e0] sm:$0xff] %v1941_v28  ;;  %v1945_v30 = vld [vmem:[%s11753_s6 + $0x11e0] sm:$0xff]  ;;  %v1947_v31 = vld [vmem:[%s11753_s6 + $0x11f0] sm:$0xff]  ;;  %1944 = vst [vmem:[%s11761_s7 + $0x8e8] sm:$0xff] %v1943_v29 }
  0xa7   : > { %1946 = vst [vmem:[%s11761_s7 + $0x8f0] sm:$0xff] %v1945_v30  ;;  %1948 = vst [vmem:[%s11761_s7 + $0x8f8] sm:$0xff] %v1947_v31  ;;  %v1949_v32 = vld [vmem:[%s11753_s6 + $0x1200] sm:$0xff]  ;;  %v1951_v33 = vld [vmem:[%s11753_s6 + $0x1210] sm:$0xff] }
  0xa8   : > { %v1953_v34 = vld [vmem:[%s11753_s6 + $0x1220] sm:$0xff]  ;;  %1950 = vst [vmem:[%s11761_s7 + $0x900] sm:$0xff] %v1949_v32  ;;  %1952 = vst [vmem:[%s11761_s7 + $0x908] sm:$0xff] %v1951_v33  ;;  %v1955_v35 = vld [vmem:[%s11753_s6 + $0x1230] sm:$0xff] }
  0xa9   : > { %1954 = vst [vmem:[%s11761_s7 + $0x910] sm:$0xff] %v1953_v34  ;;  %v1957_v36 = vld [vmem:[%s11753_s6 + $0x1240] sm:$0xff]  ;;  %v1959_v37 = vld [vmem:[%s11753_s6 + $0x1250] sm:$0xff]  ;;  %1956 = vst [vmem:[%s11761_s7 + $0x918] sm:$0xff] %v1955_v35 }
  0xaa   : > { %1958 = vst [vmem:[%s11761_s7 + $0x920] sm:$0xff] %v1957_v36  ;;  %1960 = vst [vmem:[%s11761_s7 + $0x928] sm:$0xff] %v1959_v37  ;;  %v1961_v38 = vld [vmem:[%s11753_s6 + $0x1260] sm:$0xff]  ;;  %v1963_v39 = vld [vmem:[%s11753_s6 + $0x1270] sm:$0xff] }
  0xab   : > { %v1965_v40 = vld [vmem:[%s11753_s6 + $0x1280] sm:$0xff]  ;;  %1962 = vst [vmem:[%s11761_s7 + $0x930] sm:$0xff] %v1961_v38  ;;  %1964 = vst [vmem:[%s11761_s7 + $0x938] sm:$0xff] %v1963_v39  ;;  %v1967_v41 = vld [vmem:[%s11753_s6 + $0x1290] sm:$0xff] }
  0xac   : > { %1966 = vst [vmem:[%s11761_s7 + $0x940] sm:$0xff] %v1965_v40  ;;  %v1969_v42 = vld [vmem:[%s11753_s6 + $0x12a0] sm:$0xff]  ;;  %v1971_v43 = vld [vmem:[%s11753_s6 + $0x12b0] sm:$0xff]  ;;  %1968 = vst [vmem:[%s11761_s7 + $0x948] sm:$0xff] %v1967_v41 }
  0xad   : > { %1970 = vst [vmem:[%s11761_s7 + $0x950] sm:$0xff] %v1969_v42  ;;  %1972 = vst [vmem:[%s11761_s7 + $0x958] sm:$0xff] %v1971_v43  ;;  %v1973_v44 = vld [vmem:[%s11753_s6 + $0x12c0] sm:$0xff]  ;;  %v1975_v45 = vld [vmem:[%s11753_s6 + $0x12d0] sm:$0xff] }
  0xae   : > { %v1977_v46 = vld [vmem:[%s11753_s6 + $0x12e0] sm:$0xff]  ;;  %1974 = vst [vmem:[%s11761_s7 + $0x960] sm:$0xff] %v1973_v44  ;;  %1976 = vst [vmem:[%s11761_s7 + $0x968] sm:$0xff] %v1975_v45  ;;  %v1979_v47 = vld [vmem:[%s11753_s6 + $0x12f0] sm:$0xff] }
  0xaf   : > { %1978 = vst [vmem:[%s11761_s7 + $0x970] sm:$0xff] %v1977_v46  ;;  %v1981_v48 = vld [vmem:[%s11753_s6 + $0x1300] sm:$0xff]  ;;  %v1983_v49 = vld [vmem:[%s11753_s6 + $0x1310] sm:$0xff]  ;;  %1980 = vst [vmem:[%s11761_s7 + $0x978] sm:$0xff] %v1979_v47 }
  0xb0   : > { %1982 = vst [vmem:[%s11761_s7 + $0x980] sm:$0xff] %v1981_v48  ;;  %1984 = vst [vmem:[%s11761_s7 + $0x988] sm:$0xff] %v1983_v49  ;;  %v1985_v50 = vld [vmem:[%s11753_s6 + $0x1320] sm:$0xff]  ;;  %v1987_v51 = vld [vmem:[%s11753_s6 + $0x1330] sm:$0xff] }
  0xb1   : > { %v1989_v52 = vld [vmem:[%s11753_s6 + $0x1340] sm:$0xff]  ;;  %1986 = vst [vmem:[%s11761_s7 + $0x990] sm:$0xff] %v1985_v50  ;;  %1988 = vst [vmem:[%s11761_s7 + $0x998] sm:$0xff] %v1987_v51  ;;  %v1991_v53 = vld [vmem:[%s11753_s6 + $0x1350] sm:$0xff] }
  0xb2   : > { %1990 = vst [vmem:[%s11761_s7 + $0x9a0] sm:$0xff] %v1989_v52  ;;  %v1993_v54 = vld [vmem:[%s11753_s6 + $0x1360] sm:$0xff]  ;;  %v1995_v55 = vld [vmem:[%s11753_s6 + $0x1370] sm:$0xff]  ;;  %1992 = vst [vmem:[%s11761_s7 + $0x9a8] sm:$0xff] %v1991_v53 }
  0xb3   : > { %1994 = vst [vmem:[%s11761_s7 + $0x9b0] sm:$0xff] %v1993_v54  ;;  %1996 = vst [vmem:[%s11761_s7 + $0x9b8] sm:$0xff] %v1995_v55  ;;  %v1997_v56 = vld [vmem:[%s11753_s6 + $0x1380] sm:$0xff]  ;;  %v1999_v57 = vld [vmem:[%s11753_s6 + $0x1390] sm:$0xff] }
  0xb4   : > { %v2001_v58 = vld [vmem:[%s11753_s6 + $0x13a0] sm:$0xff]  ;;  %1998 = vst [vmem:[%s11761_s7 + $0x9c0] sm:$0xff] %v1997_v56  ;;  %2000 = vst [vmem:[%s11761_s7 + $0x9c8] sm:$0xff] %v1999_v57  ;;  %v2003_v59 = vld [vmem:[%s11753_s6 + $0x13b0] sm:$0xff] }
  0xb5   : > { %2002 = vst [vmem:[%s11761_s7 + $0x9d0] sm:$0xff] %v2001_v58  ;;  %v2005_v60 = vld [vmem:[%s11753_s6 + $0x13c0] sm:$0xff]  ;;  %v2007_v61 = vld [vmem:[%s11753_s6 + $0x13d0] sm:$0xff]  ;;  %2004 = vst [vmem:[%s11761_s7 + $0x9d8] sm:$0xff] %v2003_v59 }
  0xb6   : > { %2006 = vst [vmem:[%s11761_s7 + $0x9e0] sm:$0xff] %v2005_v60  ;;  %2008 = vst [vmem:[%s11761_s7 + $0x9e8] sm:$0xff] %v2007_v61  ;;  %v2009_v62 = vld [vmem:[%s11753_s6 + $0x13e0] sm:$0xff]  ;;  %v2011_v63 = vld [vmem:[%s11753_s6 + $0x13f0] sm:$0xff] }
  0xb7   : > { %v2013_v0 = vld [vmem:[%s11753_s6 + $0x1400] sm:$0xff]  ;;  %2010 = vst [vmem:[%s11761_s7 + $0x9f0] sm:$0xff] %v2009_v62  ;;  %2012 = vst [vmem:[%s11761_s7 + $0x9f8] sm:$0xff] %v2011_v63  ;;  %v2015_v1 = vld [vmem:[%s11753_s6 + $0x1410] sm:$0xff] }
  0xb8   : > { %2014 = vst [vmem:[%s11761_s7 + $0xa00] sm:$0xff] %v2013_v0  ;;  %v2017_v2 = vld [vmem:[%s11753_s6 + $0x1420] sm:$0xff]  ;;  %v2019_v3 = vld [vmem:[%s11753_s6 + $0x1430] sm:$0xff]  ;;  %2016 = vst [vmem:[%s11761_s7 + $0xa08] sm:$0xff] %v2015_v1 }
  0xb9   : > { %2018 = vst [vmem:[%s11761_s7 + $0xa10] sm:$0xff] %v2017_v2  ;;  %2020 = vst [vmem:[%s11761_s7 + $0xa18] sm:$0xff] %v2019_v3  ;;  %v2021_v4 = vld [vmem:[%s11753_s6 + $0x1440] sm:$0xff]  ;;  %v2023_v5 = vld [vmem:[%s11753_s6 + $0x1450] sm:$0xff] }
  0xba   : > { %v2025_v6 = vld [vmem:[%s11753_s6 + $0x1460] sm:$0xff]  ;;  %2022 = vst [vmem:[%s11761_s7 + $0xa20] sm:$0xff] %v2021_v4  ;;  %2024 = vst [vmem:[%s11761_s7 + $0xa28] sm:$0xff] %v2023_v5  ;;  %v2027_v7 = vld [vmem:[%s11753_s6 + $0x1470] sm:$0xff] }
  0xbb   : > { %2026 = vst [vmem:[%s11761_s7 + $0xa30] sm:$0xff] %v2025_v6  ;;  %v2029_v8 = vld [vmem:[%s11753_s6 + $0x1480] sm:$0xff]  ;;  %v2031_v9 = vld [vmem:[%s11753_s6 + $0x1490] sm:$0xff]  ;;  %2028 = vst [vmem:[%s11761_s7 + $0xa38] sm:$0xff] %v2027_v7 }
  0xbc   : > { %2030 = vst [vmem:[%s11761_s7 + $0xa40] sm:$0xff] %v2029_v8  ;;  %2032 = vst [vmem:[%s11761_s7 + $0xa48] sm:$0xff] %v2031_v9  ;;  %v2033_v10 = vld [vmem:[%s11753_s6 + $0x14a0] sm:$0xff]  ;;  %v2035_v11 = vld [vmem:[%s11753_s6 + $0x14b0] sm:$0xff] }
  0xbd   : > { %v2037_v12 = vld [vmem:[%s11753_s6 + $0x14c0] sm:$0xff]  ;;  %2034 = vst [vmem:[%s11761_s7 + $0xa50] sm:$0xff] %v2033_v10  ;;  %2036 = vst [vmem:[%s11761_s7 + $0xa58] sm:$0xff] %v2035_v11  ;;  %v2039_v13 = vld [vmem:[%s11753_s6 + $0x14d0] sm:$0xff] }
  0xbe   : > { %2038 = vst [vmem:[%s11761_s7 + $0xa60] sm:$0xff] %v2037_v12  ;;  %v2041_v14 = vld [vmem:[%s11753_s6 + $0x14e0] sm:$0xff]  ;;  %v2043_v15 = vld [vmem:[%s11753_s6 + $0x14f0] sm:$0xff]  ;;  %2040 = vst [vmem:[%s11761_s7 + $0xa68] sm:$0xff] %v2039_v13 }
  0xbf   : > { %2042 = vst [vmem:[%s11761_s7 + $0xa70] sm:$0xff] %v2041_v14  ;;  %2044 = vst [vmem:[%s11761_s7 + $0xa78] sm:$0xff] %v2043_v15  ;;  %v2045_v16 = vld [vmem:[%s11753_s6 + $0x1500] sm:$0xff]  ;;  %v2047_v17 = vld [vmem:[%s11753_s6 + $0x1510] sm:$0xff] }
  0xc0   : > { %v2049_v18 = vld [vmem:[%s11753_s6 + $0x1520] sm:$0xff]  ;;  %2046 = vst [vmem:[%s11761_s7 + $0xa80] sm:$0xff] %v2045_v16  ;;  %2048 = vst [vmem:[%s11761_s7 + $0xa88] sm:$0xff] %v2047_v17  ;;  %v2051_v19 = vld [vmem:[%s11753_s6 + $0x1530] sm:$0xff] }
  0xc1   : > { %2050 = vst [vmem:[%s11761_s7 + $0xa90] sm:$0xff] %v2049_v18  ;;  %v2053_v20 = vld [vmem:[%s11753_s6 + $0x1540] sm:$0xff]  ;;  %v2055_v21 = vld [vmem:[%s11753_s6 + $0x1550] sm:$0xff]  ;;  %2052 = vst [vmem:[%s11761_s7 + $0xa98] sm:$0xff] %v2051_v19 }
  0xc2   : > { %2054 = vst [vmem:[%s11761_s7 + $0xaa0] sm:$0xff] %v2053_v20  ;;  %2056 = vst [vmem:[%s11761_s7 + $0xaa8] sm:$0xff] %v2055_v21  ;;  %v2057_v22 = vld [vmem:[%s11753_s6 + $0x1560] sm:$0xff]  ;;  %v2059_v23 = vld [vmem:[%s11753_s6 + $0x1570] sm:$0xff] }
  0xc3   : > { %v2061_v24 = vld [vmem:[%s11753_s6 + $0x1580] sm:$0xff]  ;;  %2058 = vst [vmem:[%s11761_s7 + $0xab0] sm:$0xff] %v2057_v22  ;;  %2060 = vst [vmem:[%s11761_s7 + $0xab8] sm:$0xff] %v2059_v23  ;;  %v2063_v25 = vld [vmem:[%s11753_s6 + $0x1590] sm:$0xff] }
  0xc4   : > { %2062 = vst [vmem:[%s11761_s7 + $0xac0] sm:$0xff] %v2061_v24  ;;  %v2065_v26 = vld [vmem:[%s11753_s6 + $0x15a0] sm:$0xff]  ;;  %v2067_v27 = vld [vmem:[%s11753_s6 + $0x15b0] sm:$0xff]  ;;  %2064 = vst [vmem:[%s11761_s7 + $0xac8] sm:$0xff] %v2063_v25 }
  0xc5   : > { %2066 = vst [vmem:[%s11761_s7 + $0xad0] sm:$0xff] %v2065_v26  ;;  %2068 = vst [vmem:[%s11761_s7 + $0xad8] sm:$0xff] %v2067_v27  ;;  %v2069_v28 = vld [vmem:[%s11753_s6 + $0x15c0] sm:$0xff]  ;;  %v2071_v29 = vld [vmem:[%s11753_s6 + $0x15d0] sm:$0xff] }
  0xc6   : > { %v2073_v30 = vld [vmem:[%s11753_s6 + $0x15e0] sm:$0xff]  ;;  %2070 = vst [vmem:[%s11761_s7 + $0xae0] sm:$0xff] %v2069_v28  ;;  %2072 = vst [vmem:[%s11761_s7 + $0xae8] sm:$0xff] %v2071_v29  ;;  %v2075_v31 = vld [vmem:[%s11753_s6 + $0x15f0] sm:$0xff] }
  0xc7   : > { %2074 = vst [vmem:[%s11761_s7 + $0xaf0] sm:$0xff] %v2073_v30  ;;  %v2077_v32 = vld [vmem:[%s11753_s6 + $0x1600] sm:$0xff]  ;;  %v2079_v33 = vld [vmem:[%s11753_s6 + $0x1610] sm:$0xff]  ;;  %2076 = vst [vmem:[%s11761_s7 + $0xaf8] sm:$0xff] %v2075_v31 }
  0xc8   : > { %2078 = vst [vmem:[%s11761_s7 + $0xb00] sm:$0xff] %v2077_v32  ;;  %2080 = vst [vmem:[%s11761_s7 + $0xb08] sm:$0xff] %v2079_v33  ;;  %v2081_v34 = vld [vmem:[%s11753_s6 + $0x1620] sm:$0xff]  ;;  %v2083_v35 = vld [vmem:[%s11753_s6 + $0x1630] sm:$0xff] }
  0xc9   : > { %v2085_v36 = vld [vmem:[%s11753_s6 + $0x1640] sm:$0xff]  ;;  %2082 = vst [vmem:[%s11761_s7 + $0xb10] sm:$0xff] %v2081_v34  ;;  %2084 = vst [vmem:[%s11761_s7 + $0xb18] sm:$0xff] %v2083_v35  ;;  %v2087_v37 = vld [vmem:[%s11753_s6 + $0x1650] sm:$0xff] }
  0xca   : > { %2086 = vst [vmem:[%s11761_s7 + $0xb20] sm:$0xff] %v2085_v36  ;;  %v2089_v38 = vld [vmem:[%s11753_s6 + $0x1660] sm:$0xff]  ;;  %v2091_v39 = vld [vmem:[%s11753_s6 + $0x1670] sm:$0xff]  ;;  %2088 = vst [vmem:[%s11761_s7 + $0xb28] sm:$0xff] %v2087_v37 }
  0xcb   : > { %2090 = vst [vmem:[%s11761_s7 + $0xb30] sm:$0xff] %v2089_v38  ;;  %2092 = vst [vmem:[%s11761_s7 + $0xb38] sm:$0xff] %v2091_v39  ;;  %v2093_v40 = vld [vmem:[%s11753_s6 + $0x1680] sm:$0xff]  ;;  %v2095_v41 = vld [vmem:[%s11753_s6 + $0x1690] sm:$0xff] }
  0xcc   : > { %v2097_v42 = vld [vmem:[%s11753_s6 + $0x16a0] sm:$0xff]  ;;  %2094 = vst [vmem:[%s11761_s7 + $0xb40] sm:$0xff] %v2093_v40  ;;  %2096 = vst [vmem:[%s11761_s7 + $0xb48] sm:$0xff] %v2095_v41  ;;  %v2099_v43 = vld [vmem:[%s11753_s6 + $0x16b0] sm:$0xff] }
  0xcd   : > { %2098 = vst [vmem:[%s11761_s7 + $0xb50] sm:$0xff] %v2097_v42  ;;  %v2101_v44 = vld [vmem:[%s11753_s6 + $0x16c0] sm:$0xff]  ;;  %v2103_v45 = vld [vmem:[%s11753_s6 + $0x16d0] sm:$0xff]  ;;  %2100 = vst [vmem:[%s11761_s7 + $0xb58] sm:$0xff] %v2099_v43 }
  0xce   : > { %2102 = vst [vmem:[%s11761_s7 + $0xb60] sm:$0xff] %v2101_v44  ;;  %2104 = vst [vmem:[%s11761_s7 + $0xb68] sm:$0xff] %v2103_v45  ;;  %v2105_v46 = vld [vmem:[%s11753_s6 + $0x16e0] sm:$0xff]  ;;  %v2107_v47 = vld [vmem:[%s11753_s6 + $0x16f0] sm:$0xff] }
  0xcf   : > { %v2109_v48 = vld [vmem:[%s11753_s6 + $0x1700] sm:$0xff]  ;;  %2106 = vst [vmem:[%s11761_s7 + $0xb70] sm:$0xff] %v2105_v46  ;;  %2108 = vst [vmem:[%s11761_s7 + $0xb78] sm:$0xff] %v2107_v47  ;;  %v2111_v49 = vld [vmem:[%s11753_s6 + $0x1710] sm:$0xff] }
  0xd0   : > { %2110 = vst [vmem:[%s11761_s7 + $0xb80] sm:$0xff] %v2109_v48  ;;  %v2113_v50 = vld [vmem:[%s11753_s6 + $0x1720] sm:$0xff]  ;;  %v2115_v51 = vld [vmem:[%s11753_s6 + $0x1730] sm:$0xff]  ;;  %2112 = vst [vmem:[%s11761_s7 + $0xb88] sm:$0xff] %v2111_v49 }
  0xd1   : > { %2114 = vst [vmem:[%s11761_s7 + $0xb90] sm:$0xff] %v2113_v50  ;;  %2116 = vst [vmem:[%s11761_s7 + $0xb98] sm:$0xff] %v2115_v51  ;;  %v2117_v52 = vld [vmem:[%s11753_s6 + $0x1740] sm:$0xff]  ;;  %v2119_v53 = vld [vmem:[%s11753_s6 + $0x1750] sm:$0xff] }
  0xd2   : > { %v2121_v54 = vld [vmem:[%s11753_s6 + $0x1760] sm:$0xff]  ;;  %2118 = vst [vmem:[%s11761_s7 + $0xba0] sm:$0xff] %v2117_v52  ;;  %2120 = vst [vmem:[%s11761_s7 + $0xba8] sm:$0xff] %v2119_v53  ;;  %v2123_v55 = vld [vmem:[%s11753_s6 + $0x1770] sm:$0xff] }
  0xd3   : > { %2122 = vst [vmem:[%s11761_s7 + $0xbb0] sm:$0xff] %v2121_v54  ;;  %v2125_v56 = vld [vmem:[%s11753_s6 + $0x1780] sm:$0xff]  ;;  %v2127_v57 = vld [vmem:[%s11753_s6 + $0x1790] sm:$0xff]  ;;  %2124 = vst [vmem:[%s11761_s7 + $0xbb8] sm:$0xff] %v2123_v55 }
  0xd4   : > { %2126 = vst [vmem:[%s11761_s7 + $0xbc0] sm:$0xff] %v2125_v56  ;;  %2128 = vst [vmem:[%s11761_s7 + $0xbc8] sm:$0xff] %v2127_v57  ;;  %v2129_v58 = vld [vmem:[%s11753_s6 + $0x17a0] sm:$0xff]  ;;  %v2131_v59 = vld [vmem:[%s11753_s6 + $0x17b0] sm:$0xff] }
  0xd5   : > { %v2133_v60 = vld [vmem:[%s11753_s6 + $0x17c0] sm:$0xff]  ;;  %2130 = vst [vmem:[%s11761_s7 + $0xbd0] sm:$0xff] %v2129_v58  ;;  %2132 = vst [vmem:[%s11761_s7 + $0xbd8] sm:$0xff] %v2131_v59  ;;  %v2135_v61 = vld [vmem:[%s11753_s6 + $0x17d0] sm:$0xff] }
  0xd6   : > { %2134 = vst [vmem:[%s11761_s7 + $0xbe0] sm:$0xff] %v2133_v60  ;;  %v2137_v62 = vld [vmem:[%s11753_s6 + $0x17e0] sm:$0xff]  ;;  %v2139_v63 = vld [vmem:[%s11753_s6 + $0x17f0] sm:$0xff]  ;;  %2136 = vst [vmem:[%s11761_s7 + $0xbe8] sm:$0xff] %v2135_v61 }
  0xd7   : > { %2138 = vst [vmem:[%s11761_s7 + $0xbf0] sm:$0xff] %v2137_v62  ;;  %2140 = vst [vmem:[%s11761_s7 + $0xbf8] sm:$0xff] %v2139_v63  ;;  %v2141_v0 = vld [vmem:[%s11753_s6 + $0x1800] sm:$0xff]  ;;  %v2143_v1 = vld [vmem:[%s11753_s6 + $0x1810] sm:$0xff] }
  0xd8   : > { %v2145_v2 = vld [vmem:[%s11753_s6 + $0x1820] sm:$0xff]  ;;  %2142 = vst [vmem:[%s11761_s7 + $0xc00] sm:$0xff] %v2141_v0  ;;  %2144 = vst [vmem:[%s11761_s7 + $0xc08] sm:$0xff] %v2143_v1  ;;  %v2147_v3 = vld [vmem:[%s11753_s6 + $0x1830] sm:$0xff] }
  0xd9   : > { %2146 = vst [vmem:[%s11761_s7 + $0xc10] sm:$0xff] %v2145_v2  ;;  %v2149_v4 = vld [vmem:[%s11753_s6 + $0x1840] sm:$0xff]  ;;  %v2151_v5 = vld [vmem:[%s11753_s6 + $0x1850] sm:$0xff]  ;;  %2148 = vst [vmem:[%s11761_s7 + $0xc18] sm:$0xff] %v2147_v3 }
  0xda   : > { %2150 = vst [vmem:[%s11761_s7 + $0xc20] sm:$0xff] %v2149_v4  ;;  %2152 = vst [vmem:[%s11761_s7 + $0xc28] sm:$0xff] %v2151_v5  ;;  %v2153_v6 = vld [vmem:[%s11753_s6 + $0x1860] sm:$0xff]  ;;  %v2155_v7 = vld [vmem:[%s11753_s6 + $0x1870] sm:$0xff] }
  0xdb   : > { %v2157_v8 = vld [vmem:[%s11753_s6 + $0x1880] sm:$0xff]  ;;  %2154 = vst [vmem:[%s11761_s7 + $0xc30] sm:$0xff] %v2153_v6  ;;  %2156 = vst [vmem:[%s11761_s7 + $0xc38] sm:$0xff] %v2155_v7  ;;  %v2159_v9 = vld [vmem:[%s11753_s6 + $0x1890] sm:$0xff] }
  0xdc   : > { %2158 = vst [vmem:[%s11761_s7 + $0xc40] sm:$0xff] %v2157_v8  ;;  %v2161_v10 = vld [vmem:[%s11753_s6 + $0x18a0] sm:$0xff]  ;;  %v2163_v11 = vld [vmem:[%s11753_s6 + $0x18b0] sm:$0xff]  ;;  %2160 = vst [vmem:[%s11761_s7 + $0xc48] sm:$0xff] %v2159_v9 }
  0xdd   : > { %2162 = vst [vmem:[%s11761_s7 + $0xc50] sm:$0xff] %v2161_v10  ;;  %2164 = vst [vmem:[%s11761_s7 + $0xc58] sm:$0xff] %v2163_v11  ;;  %v2165_v12 = vld [vmem:[%s11753_s6 + $0x18c0] sm:$0xff]  ;;  %v2167_v13 = vld [vmem:[%s11753_s6 + $0x18d0] sm:$0xff] }
  0xde   : > { %v2169_v14 = vld [vmem:[%s11753_s6 + $0x18e0] sm:$0xff]  ;;  %2166 = vst [vmem:[%s11761_s7 + $0xc60] sm:$0xff] %v2165_v12  ;;  %2168 = vst [vmem:[%s11761_s7 + $0xc68] sm:$0xff] %v2167_v13  ;;  %v2171_v15 = vld [vmem:[%s11753_s6 + $0x18f0] sm:$0xff] }
  0xdf   : > { %2170 = vst [vmem:[%s11761_s7 + $0xc70] sm:$0xff] %v2169_v14  ;;  %v2173_v16 = vld [vmem:[%s11753_s6 + $0x1900] sm:$0xff]  ;;  %v2175_v17 = vld [vmem:[%s11753_s6 + $0x1910] sm:$0xff]  ;;  %2172 = vst [vmem:[%s11761_s7 + $0xc78] sm:$0xff] %v2171_v15 }
  0xe0   : > { %2174 = vst [vmem:[%s11761_s7 + $0xc80] sm:$0xff] %v2173_v16  ;;  %2176 = vst [vmem:[%s11761_s7 + $0xc88] sm:$0xff] %v2175_v17  ;;  %v2177_v18 = vld [vmem:[%s11753_s6 + $0x1920] sm:$0xff]  ;;  %v2179_v19 = vld [vmem:[%s11753_s6 + $0x1930] sm:$0xff] }
  0xe1   : > { %v2181_v20 = vld [vmem:[%s11753_s6 + $0x1940] sm:$0xff]  ;;  %2178 = vst [vmem:[%s11761_s7 + $0xc90] sm:$0xff] %v2177_v18  ;;  %2180 = vst [vmem:[%s11761_s7 + $0xc98] sm:$0xff] %v2179_v19  ;;  %v2183_v21 = vld [vmem:[%s11753_s6 + $0x1950] sm:$0xff] }
  0xe2   : > { %2182 = vst [vmem:[%s11761_s7 + $0xca0] sm:$0xff] %v2181_v20  ;;  %v2185_v22 = vld [vmem:[%s11753_s6 + $0x1960] sm:$0xff]  ;;  %v2187_v23 = vld [vmem:[%s11753_s6 + $0x1970] sm:$0xff]  ;;  %2184 = vst [vmem:[%s11761_s7 + $0xca8] sm:$0xff] %v2183_v21 }
  0xe3   : > { %2186 = vst [vmem:[%s11761_s7 + $0xcb0] sm:$0xff] %v2185_v22  ;;  %2188 = vst [vmem:[%s11761_s7 + $0xcb8] sm:$0xff] %v2187_v23  ;;  %v2189_v24 = vld [vmem:[%s11753_s6 + $0x1980] sm:$0xff]  ;;  %v2191_v25 = vld [vmem:[%s11753_s6 + $0x1990] sm:$0xff] }
  0xe4   : > { %v2193_v26 = vld [vmem:[%s11753_s6 + $0x19a0] sm:$0xff]  ;;  %2190 = vst [vmem:[%s11761_s7 + $0xcc0] sm:$0xff] %v2189_v24  ;;  %2192 = vst [vmem:[%s11761_s7 + $0xcc8] sm:$0xff] %v2191_v25  ;;  %v2195_v27 = vld [vmem:[%s11753_s6 + $0x19b0] sm:$0xff] }
  0xe5   : > { %2194 = vst [vmem:[%s11761_s7 + $0xcd0] sm:$0xff] %v2193_v26  ;;  %v2197_v28 = vld [vmem:[%s11753_s6 + $0x19c0] sm:$0xff]  ;;  %v2199_v29 = vld [vmem:[%s11753_s6 + $0x19d0] sm:$0xff]  ;;  %2196 = vst [vmem:[%s11761_s7 + $0xcd8] sm:$0xff] %v2195_v27 }
  0xe6   : > { %2198 = vst [vmem:[%s11761_s7 + $0xce0] sm:$0xff] %v2197_v28  ;;  %2200 = vst [vmem:[%s11761_s7 + $0xce8] sm:$0xff] %v2199_v29  ;;  %v2201_v30 = vld [vmem:[%s11753_s6 + $0x19e0] sm:$0xff]  ;;  %v2203_v31 = vld [vmem:[%s11753_s6 + $0x19f0] sm:$0xff] }
  0xe7   : > { %v2205_v32 = vld [vmem:[%s11753_s6 + $0x1a00] sm:$0xff]  ;;  %2202 = vst [vmem:[%s11761_s7 + $0xcf0] sm:$0xff] %v2201_v30  ;;  %2204 = vst [vmem:[%s11761_s7 + $0xcf8] sm:$0xff] %v2203_v31  ;;  %v2207_v33 = vld [vmem:[%s11753_s6 + $0x1a10] sm:$0xff] }
  0xe8   : > { %2206 = vst [vmem:[%s11761_s7 + $0xd00] sm:$0xff] %v2205_v32  ;;  %v2209_v34 = vld [vmem:[%s11753_s6 + $0x1a20] sm:$0xff]  ;;  %v2211_v35 = vld [vmem:[%s11753_s6 + $0x1a30] sm:$0xff]  ;;  %2208 = vst [vmem:[%s11761_s7 + $0xd08] sm:$0xff] %v2207_v33 }
  0xe9   : > { %2210 = vst [vmem:[%s11761_s7 + $0xd10] sm:$0xff] %v2209_v34  ;;  %2212 = vst [vmem:[%s11761_s7 + $0xd18] sm:$0xff] %v2211_v35  ;;  %v2213_v36 = vld [vmem:[%s11753_s6 + $0x1a40] sm:$0xff]  ;;  %v2215_v37 = vld [vmem:[%s11753_s6 + $0x1a50] sm:$0xff] }
  0xea   : > { %v2217_v38 = vld [vmem:[%s11753_s6 + $0x1a60] sm:$0xff]  ;;  %2214 = vst [vmem:[%s11761_s7 + $0xd20] sm:$0xff] %v2213_v36  ;;  %2216 = vst [vmem:[%s11761_s7 + $0xd28] sm:$0xff] %v2215_v37  ;;  %v2219_v39 = vld [vmem:[%s11753_s6 + $0x1a70] sm:$0xff] }
  0xeb   : > { %2218 = vst [vmem:[%s11761_s7 + $0xd30] sm:$0xff] %v2217_v38  ;;  %v2221_v40 = vld [vmem:[%s11753_s6 + $0x1a80] sm:$0xff]  ;;  %v2223_v41 = vld [vmem:[%s11753_s6 + $0x1a90] sm:$0xff]  ;;  %2220 = vst [vmem:[%s11761_s7 + $0xd38] sm:$0xff] %v2219_v39 }
  0xec   : > { %2222 = vst [vmem:[%s11761_s7 + $0xd40] sm:$0xff] %v2221_v40  ;;  %2224 = vst [vmem:[%s11761_s7 + $0xd48] sm:$0xff] %v2223_v41  ;;  %v2225_v42 = vld [vmem:[%s11753_s6 + $0x1aa0] sm:$0xff]  ;;  %v2227_v43 = vld [vmem:[%s11753_s6 + $0x1ab0] sm:$0xff] }
  0xed   : > { %v2229_v44 = vld [vmem:[%s11753_s6 + $0x1ac0] sm:$0xff]  ;;  %2226 = vst [vmem:[%s11761_s7 + $0xd50] sm:$0xff] %v2225_v42  ;;  %2228 = vst [vmem:[%s11761_s7 + $0xd58] sm:$0xff] %v2227_v43  ;;  %v2231_v45 = vld [vmem:[%s11753_s6 + $0x1ad0] sm:$0xff] }
  0xee   : > { %2230 = vst [vmem:[%s11761_s7 + $0xd60] sm:$0xff] %v2229_v44  ;;  %v2233_v46 = vld [vmem:[%s11753_s6 + $0x1ae0] sm:$0xff]  ;;  %v2235_v47 = vld [vmem:[%s11753_s6 + $0x1af0] sm:$0xff]  ;;  %2232 = vst [vmem:[%s11761_s7 + $0xd68] sm:$0xff] %v2231_v45 }
  0xef   : > { %2234 = vst [vmem:[%s11761_s7 + $0xd70] sm:$0xff] %v2233_v46  ;;  %2236 = vst [vmem:[%s11761_s7 + $0xd78] sm:$0xff] %v2235_v47  ;;  %v2237_v48 = vld [vmem:[%s11753_s6 + $0x1b00] sm:$0xff]  ;;  %v2239_v49 = vld [vmem:[%s11753_s6 + $0x1b10] sm:$0xff] }
  0xf0   : > { %v2241_v50 = vld [vmem:[%s11753_s6 + $0x1b20] sm:$0xff]  ;;  %2238 = vst [vmem:[%s11761_s7 + $0xd80] sm:$0xff] %v2237_v48  ;;  %2240 = vst [vmem:[%s11761_s7 + $0xd88] sm:$0xff] %v2239_v49  ;;  %v2243_v51 = vld [vmem:[%s11753_s6 + $0x1b30] sm:$0xff] }
  0xf1   : > { %2242 = vst [vmem:[%s11761_s7 + $0xd90] sm:$0xff] %v2241_v50  ;;  %v2245_v52 = vld [vmem:[%s11753_s6 + $0x1b40] sm:$0xff]  ;;  %v2247_v53 = vld [vmem:[%s11753_s6 + $0x1b50] sm:$0xff]  ;;  %2244 = vst [vmem:[%s11761_s7 + $0xd98] sm:$0xff] %v2243_v51 }
  0xf2   : > { %2246 = vst [vmem:[%s11761_s7 + $0xda0] sm:$0xff] %v2245_v52  ;;  %2248 = vst [vmem:[%s11761_s7 + $0xda8] sm:$0xff] %v2247_v53  ;;  %v2249_v54 = vld [vmem:[%s11753_s6 + $0x1b60] sm:$0xff]  ;;  %v2251_v55 = vld [vmem:[%s11753_s6 + $0x1b70] sm:$0xff] }
  0xf3   : > { %v2253_v56 = vld [vmem:[%s11753_s6 + $0x1b80] sm:$0xff]  ;;  %2250 = vst [vmem:[%s11761_s7 + $0xdb0] sm:$0xff] %v2249_v54  ;;  %2252 = vst [vmem:[%s11761_s7 + $0xdb8] sm:$0xff] %v2251_v55  ;;  %v2255_v57 = vld [vmem:[%s11753_s6 + $0x1b90] sm:$0xff] }
  0xf4   : > { %2254 = vst [vmem:[%s11761_s7 + $0xdc0] sm:$0xff] %v2253_v56  ;;  %v2257_v58 = vld [vmem:[%s11753_s6 + $0x1ba0] sm:$0xff]  ;;  %v2259_v59 = vld [vmem:[%s11753_s6 + $0x1bb0] sm:$0xff]  ;;  %2256 = vst [vmem:[%s11761_s7 + $0xdc8] sm:$0xff] %v2255_v57 }
  0xf5   : > { %2258 = vst [vmem:[%s11761_s7 + $0xdd0] sm:$0xff] %v2257_v58  ;;  %2260 = vst [vmem:[%s11761_s7 + $0xdd8] sm:$0xff] %v2259_v59  ;;  %v2261_v60 = vld [vmem:[%s11753_s6 + $0x1bc0] sm:$0xff]  ;;  %v2263_v61 = vld [vmem:[%s11753_s6 + $0x1bd0] sm:$0xff] }
  0xf6   : > { %v2265_v62 = vld [vmem:[%s11753_s6 + $0x1be0] sm:$0xff]  ;;  %2262 = vst [vmem:[%s11761_s7 + $0xde0] sm:$0xff] %v2261_v60  ;;  %2264 = vst [vmem:[%s11761_s7 + $0xde8] sm:$0xff] %v2263_v61  ;;  %v2267_v63 = vld [vmem:[%s11753_s6 + $0x1bf0] sm:$0xff] }
  0xf7   : > { %2266 = vst [vmem:[%s11761_s7 + $0xdf0] sm:$0xff] %v2265_v62  ;;  %v2269_v0 = vld [vmem:[%s11753_s6 + $0x1c00] sm:$0xff]  ;;  %v2271_v1 = vld [vmem:[%s11753_s6 + $0x1c10] sm:$0xff]  ;;  %2268 = vst [vmem:[%s11761_s7 + $0xdf8] sm:$0xff] %v2267_v63 }
  0xf8   : > { %2270 = vst [vmem:[%s11761_s7 + $0xe00] sm:$0xff] %v2269_v0  ;;  %2272 = vst [vmem:[%s11761_s7 + $0xe08] sm:$0xff] %v2271_v1  ;;  %v2273_v2 = vld [vmem:[%s11753_s6 + $0x1c20] sm:$0xff]  ;;  %v2275_v3 = vld [vmem:[%s11753_s6 + $0x1c30] sm:$0xff] }
  0xf9   : > { %v2277_v4 = vld [vmem:[%s11753_s6 + $0x1c40] sm:$0xff]  ;;  %2274 = vst [vmem:[%s11761_s7 + $0xe10] sm:$0xff] %v2273_v2  ;;  %2276 = vst [vmem:[%s11761_s7 + $0xe18] sm:$0xff] %v2275_v3  ;;  %v2279_v5 = vld [vmem:[%s11753_s6 + $0x1c50] sm:$0xff] }
  0xfa   : > { %2278 = vst [vmem:[%s11761_s7 + $0xe20] sm:$0xff] %v2277_v4  ;;  %v2281_v6 = vld [vmem:[%s11753_s6 + $0x1c60] sm:$0xff]  ;;  %v2283_v7 = vld [vmem:[%s11753_s6 + $0x1c70] sm:$0xff]  ;;  %2280 = vst [vmem:[%s11761_s7 + $0xe28] sm:$0xff] %v2279_v5 }
  0xfb   : > { %2282 = vst [vmem:[%s11761_s7 + $0xe30] sm:$0xff] %v2281_v6  ;;  %2284 = vst [vmem:[%s11761_s7 + $0xe38] sm:$0xff] %v2283_v7  ;;  %v2285_v8 = vld [vmem:[%s11753_s6 + $0x1c80] sm:$0xff]  ;;  %v2287_v9 = vld [vmem:[%s11753_s6 + $0x1c90] sm:$0xff] }
  0xfc   : > { %v2289_v10 = vld [vmem:[%s11753_s6 + $0x1ca0] sm:$0xff]  ;;  %2286 = vst [vmem:[%s11761_s7 + $0xe40] sm:$0xff] %v2285_v8  ;;  %2288 = vst [vmem:[%s11761_s7 + $0xe48] sm:$0xff] %v2287_v9  ;;  %v2291_v11 = vld [vmem:[%s11753_s6 + $0x1cb0] sm:$0xff] }
  0xfd   : > { %2290 = vst [vmem:[%s11761_s7 + $0xe50] sm:$0xff] %v2289_v10  ;;  %v2293_v12 = vld [vmem:[%s11753_s6 + $0x1cc0] sm:$0xff]  ;;  %v2295_v13 = vld [vmem:[%s11753_s6 + $0x1cd0] sm:$0xff]  ;;  %2292 = vst [vmem:[%s11761_s7 + $0xe58] sm:$0xff] %v2291_v11 }
  0xfe   : > { %2294 = vst [vmem:[%s11761_s7 + $0xe60] sm:$0xff] %v2293_v12  ;;  %2296 = vst [vmem:[%s11761_s7 + $0xe68] sm:$0xff] %v2295_v13  ;;  %v2297_v14 = vld [vmem:[%s11753_s6 + $0x1ce0] sm:$0xff]  ;;  %v2299_v15 = vld [vmem:[%s11753_s6 + $0x1cf0] sm:$0xff] }
  0xff   : > { %v2301_v16 = vld [vmem:[%s11753_s6 + $0x1d00] sm:$0xff]  ;;  %2298 = vst [vmem:[%s11761_s7 + $0xe70] sm:$0xff] %v2297_v14  ;;  %2300 = vst [vmem:[%s11761_s7 + $0xe78] sm:$0xff] %v2299_v15  ;;  %v2303_v17 = vld [vmem:[%s11753_s6 + $0x1d10] sm:$0xff] }
 0x100   : > { %2302 = vst [vmem:[%s11761_s7 + $0xe80] sm:$0xff] %v2301_v16  ;;  %v2305_v18 = vld [vmem:[%s11753_s6 + $0x1d20] sm:$0xff]  ;;  %v2307_v19 = vld [vmem:[%s11753_s6 + $0x1d30] sm:$0xff]  ;;  %2304 = vst [vmem:[%s11761_s7 + $0xe88] sm:$0xff] %v2303_v17 }
 0x101   : > { %2306 = vst [vmem:[%s11761_s7 + $0xe90] sm:$0xff] %v2305_v18  ;;  %2308 = vst [vmem:[%s11761_s7 + $0xe98] sm:$0xff] %v2307_v19  ;;  %v2309_v20 = vld [vmem:[%s11753_s6 + $0x1d40] sm:$0xff]  ;;  %v2311_v21 = vld [vmem:[%s11753_s6 + $0x1d50] sm:$0xff] }
 0x102   : > { %v2313_v22 = vld [vmem:[%s11753_s6 + $0x1d60] sm:$0xff]  ;;  %2310 = vst [vmem:[%s11761_s7 + $0xea0] sm:$0xff] %v2309_v20  ;;  %2312 = vst [vmem:[%s11761_s7 + $0xea8] sm:$0xff] %v2311_v21  ;;  %v2315_v23 = vld [vmem:[%s11753_s6 + $0x1d70] sm:$0xff] }
 0x103   : > { %2314 = vst [vmem:[%s11761_s7 + $0xeb0] sm:$0xff] %v2313_v22  ;;  %v2317_v24 = vld [vmem:[%s11753_s6 + $0x1d80] sm:$0xff]  ;;  %v2319_v25 = vld [vmem:[%s11753_s6 + $0x1d90] sm:$0xff]  ;;  %2316 = vst [vmem:[%s11761_s7 + $0xeb8] sm:$0xff] %v2315_v23 }
 0x104   : > { %2318 = vst [vmem:[%s11761_s7 + $0xec0] sm:$0xff] %v2317_v24  ;;  %2320 = vst [vmem:[%s11761_s7 + $0xec8] sm:$0xff] %v2319_v25  ;;  %v2321_v26 = vld [vmem:[%s11753_s6 + $0x1da0] sm:$0xff]  ;;  %v2323_v27 = vld [vmem:[%s11753_s6 + $0x1db0] sm:$0xff] }
 0x105   : > { %v2325_v28 = vld [vmem:[%s11753_s6 + $0x1dc0] sm:$0xff]  ;;  %2322 = vst [vmem:[%s11761_s7 + $0xed0] sm:$0xff] %v2321_v26  ;;  %2324 = vst [vmem:[%s11761_s7 + $0xed8] sm:$0xff] %v2323_v27  ;;  %v2327_v29 = vld [vmem:[%s11753_s6 + $0x1dd0] sm:$0xff] }
 0x106   : > { %2326 = vst [vmem:[%s11761_s7 + $0xee0] sm:$0xff] %v2325_v28  ;;  %v2329_v30 = vld [vmem:[%s11753_s6 + $0x1de0] sm:$0xff]  ;;  %v2331_v31 = vld [vmem:[%s11753_s6 + $0x1df0] sm:$0xff]  ;;  %2328 = vst [vmem:[%s11761_s7 + $0xee8] sm:$0xff] %v2327_v29 }
 0x107   : > { %2330 = vst [vmem:[%s11761_s7 + $0xef0] sm:$0xff] %v2329_v30  ;;  %2332 = vst [vmem:[%s11761_s7 + $0xef8] sm:$0xff] %v2331_v31  ;;  %v2333_v32 = vld [vmem:[%s11753_s6 + $0x1e00] sm:$0xff]  ;;  %v2335_v33 = vld [vmem:[%s11753_s6 + $0x1e10] sm:$0xff] }
 0x108   : > { %v2337_v34 = vld [vmem:[%s11753_s6 + $0x1e20] sm:$0xff]  ;;  %2334 = vst [vmem:[%s11761_s7 + $0xf00] sm:$0xff] %v2333_v32  ;;  %2336 = vst [vmem:[%s11761_s7 + $0xf08] sm:$0xff] %v2335_v33  ;;  %v2339_v35 = vld [vmem:[%s11753_s6 + $0x1e30] sm:$0xff] }
 0x109   : > { %2338 = vst [vmem:[%s11761_s7 + $0xf10] sm:$0xff] %v2337_v34  ;;  %v2341_v36 = vld [vmem:[%s11753_s6 + $0x1e40] sm:$0xff]  ;;  %v2343_v37 = vld [vmem:[%s11753_s6 + $0x1e50] sm:$0xff]  ;;  %2340 = vst [vmem:[%s11761_s7 + $0xf18] sm:$0xff] %v2339_v35 }
 0x10a   : > { %2342 = vst [vmem:[%s11761_s7 + $0xf20] sm:$0xff] %v2341_v36  ;;  %2344 = vst [vmem:[%s11761_s7 + $0xf28] sm:$0xff] %v2343_v37  ;;  %v2345_v38 = vld [vmem:[%s11753_s6 + $0x1e60] sm:$0xff]  ;;  %v2347_v39 = vld [vmem:[%s11753_s6 + $0x1e70] sm:$0xff] }
 0x10b   : > { %v2349_v40 = vld [vmem:[%s11753_s6 + $0x1e80] sm:$0xff]  ;;  %2346 = vst [vmem:[%s11761_s7 + $0xf30] sm:$0xff] %v2345_v38  ;;  %2348 = vst [vmem:[%s11761_s7 + $0xf38] sm:$0xff] %v2347_v39  ;;  %v2351_v41 = vld [vmem:[%s11753_s6 + $0x1e90] sm:$0xff] }
 0x10c   : > { %2350 = vst [vmem:[%s11761_s7 + $0xf40] sm:$0xff] %v2349_v40  ;;  %v2353_v42 = vld [vmem:[%s11753_s6 + $0x1ea0] sm:$0xff]  ;;  %v2355_v43 = vld [vmem:[%s11753_s6 + $0x1eb0] sm:$0xff]  ;;  %2352 = vst [vmem:[%s11761_s7 + $0xf48] sm:$0xff] %v2351_v41 }
 0x10d   : > { %2354 = vst [vmem:[%s11761_s7 + $0xf50] sm:$0xff] %v2353_v42  ;;  %2356 = vst [vmem:[%s11761_s7 + $0xf58] sm:$0xff] %v2355_v43  ;;  %v2357_v44 = vld [vmem:[%s11753_s6 + $0x1ec0] sm:$0xff]  ;;  %v2359_v45 = vld [vmem:[%s11753_s6 + $0x1ed0] sm:$0xff] }
 0x10e   : > { %v2361_v46 = vld [vmem:[%s11753_s6 + $0x1ee0] sm:$0xff]  ;;  %2358 = vst [vmem:[%s11761_s7 + $0xf60] sm:$0xff] %v2357_v44  ;;  %2360 = vst [vmem:[%s11761_s7 + $0xf68] sm:$0xff] %v2359_v45  ;;  %v2363_v47 = vld [vmem:[%s11753_s6 + $0x1ef0] sm:$0xff] }
 0x10f   : > { %2362 = vst [vmem:[%s11761_s7 + $0xf70] sm:$0xff] %v2361_v46  ;;  %v2365_v48 = vld [vmem:[%s11753_s6 + $0x1f00] sm:$0xff]  ;;  %v2367_v49 = vld [vmem:[%s11753_s6 + $0x1f10] sm:$0xff]  ;;  %2364 = vst [vmem:[%s11761_s7 + $0xf78] sm:$0xff] %v2363_v47 }
 0x110   : > { %2366 = vst [vmem:[%s11761_s7 + $0xf80] sm:$0xff] %v2365_v48  ;;  %2368 = vst [vmem:[%s11761_s7 + $0xf88] sm:$0xff] %v2367_v49  ;;  %v2369_v50 = vld [vmem:[%s11753_s6 + $0x1f20] sm:$0xff]  ;;  %v2371_v51 = vld [vmem:[%s11753_s6 + $0x1f30] sm:$0xff] }
 0x111   : > { %v2373_v52 = vld [vmem:[%s11753_s6 + $0x1f40] sm:$0xff]  ;;  %2370 = vst [vmem:[%s11761_s7 + $0xf90] sm:$0xff] %v2369_v50  ;;  %2372 = vst [vmem:[%s11761_s7 + $0xf98] sm:$0xff] %v2371_v51  ;;  %v2375_v53 = vld [vmem:[%s11753_s6 + $0x1f50] sm:$0xff] }
 0x112   : > { %2374 = vst [vmem:[%s11761_s7 + $0xfa0] sm:$0xff] %v2373_v52  ;;  %v2377_v54 = vld [vmem:[%s11753_s6 + $0x1f60] sm:$0xff]  ;;  %v2379_v55 = vld [vmem:[%s11753_s6 + $0x1f70] sm:$0xff]  ;;  %2376 = vst [vmem:[%s11761_s7 + $0xfa8] sm:$0xff] %v2375_v53 }
 0x113   : > { %2378 = vst [vmem:[%s11761_s7 + $0xfb0] sm:$0xff] %v2377_v54  ;;  %2380 = vst [vmem:[%s11761_s7 + $0xfb8] sm:$0xff] %v2379_v55  ;;  %v2381_v56 = vld [vmem:[%s11753_s6 + $0x1f80] sm:$0xff]  ;;  %v2383_v57 = vld [vmem:[%s11753_s6 + $0x1f90] sm:$0xff] }
 0x114   : > { %v2385_v58 = vld [vmem:[%s11753_s6 + $0x1fa0] sm:$0xff]  ;;  %2382 = vst [vmem:[%s11761_s7 + $0xfc0] sm:$0xff] %v2381_v56  ;;  %2384 = vst [vmem:[%s11761_s7 + $0xfc8] sm:$0xff] %v2383_v57  ;;  %v2387_v59 = vld [vmem:[%s11753_s6 + $0x1fb0] sm:$0xff] }
 0x115   : > { %2386 = vst [vmem:[%s11761_s7 + $0xfd0] sm:$0xff] %v2385_v58  ;;  %v2389_v60 = vld [vmem:[%s11753_s6 + $0x1fc0] sm:$0xff]  ;;  %v2391_v61 = vld [vmem:[%s11753_s6 + $0x1fd0] sm:$0xff]  ;;  %2388 = vst [vmem:[%s11761_s7 + $0xfd8] sm:$0xff] %v2387_v59 }
 0x116   : > { %2390 = vst [vmem:[%s11761_s7 + $0xfe0] sm:$0xff] %v2389_v60  ;;  %2392 = vst [vmem:[%s11761_s7 + $0xfe8] sm:$0xff] %v2391_v61  ;;  %v2393_v62 = vld [vmem:[%s11753_s6 + $0x1fe0] sm:$0xff]  ;;  %v2395_v63 = vld [vmem:[%s11753_s6 + $0x1ff0] sm:$0xff] }
 0x117   : > { %v2397_v0 = vld [vmem:[%s11753_s6 + $0x2000] sm:$0xff]  ;;  %2394 = vst [vmem:[%s11761_s7 + $0xff0] sm:$0xff] %v2393_v62  ;;  %2396 = vst [vmem:[%s11761_s7 + $0xff8] sm:$0xff] %v2395_v63  ;;  %v2399_v1 = vld [vmem:[%s11753_s6 + $0x2010] sm:$0xff] }
 0x118   : > { %2398 = vst [vmem:[%s11761_s7 + $0x1000] sm:$0xff] %v2397_v0  ;;  %v2401_v2 = vld [vmem:[%s11753_s6 + $0x2020] sm:$0xff]  ;;  %v2403_v3 = vld [vmem:[%s11753_s6 + $0x2030] sm:$0xff]  ;;  %2400 = vst [vmem:[%s11761_s7 + $0x1008] sm:$0xff] %v2399_v1 }
 0x119   : > { %2402 = vst [vmem:[%s11761_s7 + $0x1010] sm:$0xff] %v2401_v2  ;;  %2404 = vst [vmem:[%s11761_s7 + $0x1018] sm:$0xff] %v2403_v3  ;;  %v2405_v4 = vld [vmem:[%s11753_s6 + $0x2040] sm:$0xff]  ;;  %v2407_v5 = vld [vmem:[%s11753_s6 + $0x2050] sm:$0xff] }
 0x11a   : > { %v2409_v6 = vld [vmem:[%s11753_s6 + $0x2060] sm:$0xff]  ;;  %2406 = vst [vmem:[%s11761_s7 + $0x1020] sm:$0xff] %v2405_v4  ;;  %2408 = vst [vmem:[%s11761_s7 + $0x1028] sm:$0xff] %v2407_v5  ;;  %v2411_v7 = vld [vmem:[%s11753_s6 + $0x2070] sm:$0xff] }
 0x11b   : > { %2410 = vst [vmem:[%s11761_s7 + $0x1030] sm:$0xff] %v2409_v6  ;;  %v2413_v8 = vld [vmem:[%s11753_s6 + $0x2080] sm:$0xff]  ;;  %v2415_v9 = vld [vmem:[%s11753_s6 + $0x2090] sm:$0xff]  ;;  %2412 = vst [vmem:[%s11761_s7 + $0x1038] sm:$0xff] %v2411_v7 }
 0x11c   : > { %2414 = vst [vmem:[%s11761_s7 + $0x1040] sm:$0xff] %v2413_v8  ;;  %2416 = vst [vmem:[%s11761_s7 + $0x1048] sm:$0xff] %v2415_v9  ;;  %v2417_v10 = vld [vmem:[%s11753_s6 + $0x20a0] sm:$0xff]  ;;  %v2419_v11 = vld [vmem:[%s11753_s6 + $0x20b0] sm:$0xff] }
 0x11d   : > { %v2421_v12 = vld [vmem:[%s11753_s6 + $0x20c0] sm:$0xff]  ;;  %2418 = vst [vmem:[%s11761_s7 + $0x1050] sm:$0xff] %v2417_v10  ;;  %2420 = vst [vmem:[%s11761_s7 + $0x1058] sm:$0xff] %v2419_v11  ;;  %v2423_v13 = vld [vmem:[%s11753_s6 + $0x20d0] sm:$0xff] }
 0x11e   : > { %2422 = vst [vmem:[%s11761_s7 + $0x1060] sm:$0xff] %v2421_v12  ;;  %v2425_v14 = vld [vmem:[%s11753_s6 + $0x20e0] sm:$0xff]  ;;  %v2427_v15 = vld [vmem:[%s11753_s6 + $0x20f0] sm:$0xff]  ;;  %2424 = vst [vmem:[%s11761_s7 + $0x1068] sm:$0xff] %v2423_v13 }
 0x11f   : > { %2426 = vst [vmem:[%s11761_s7 + $0x1070] sm:$0xff] %v2425_v14  ;;  %2428 = vst [vmem:[%s11761_s7 + $0x1078] sm:$0xff] %v2427_v15  ;;  %v2429_v16 = vld [vmem:[%s11753_s6 + $0x2100] sm:$0xff]  ;;  %v2431_v17 = vld [vmem:[%s11753_s6 + $0x2110] sm:$0xff] }
 0x120   : > { %v2433_v18 = vld [vmem:[%s11753_s6 + $0x2120] sm:$0xff]  ;;  %2430 = vst [vmem:[%s11761_s7 + $0x1080] sm:$0xff] %v2429_v16  ;;  %2432 = vst [vmem:[%s11761_s7 + $0x1088] sm:$0xff] %v2431_v17  ;;  %v2435_v19 = vld [vmem:[%s11753_s6 + $0x2130] sm:$0xff] }
 0x121   : > { %2434 = vst [vmem:[%s11761_s7 + $0x1090] sm:$0xff] %v2433_v18  ;;  %v2437_v20 = vld [vmem:[%s11753_s6 + $0x2140] sm:$0xff]  ;;  %v2439_v21 = vld [vmem:[%s11753_s6 + $0x2150] sm:$0xff]  ;;  %2436 = vst [vmem:[%s11761_s7 + $0x1098] sm:$0xff] %v2435_v19 }
 0x122   : > { %2438 = vst [vmem:[%s11761_s7 + $0x10a0] sm:$0xff] %v2437_v20  ;;  %2440 = vst [vmem:[%s11761_s7 + $0x10a8] sm:$0xff] %v2439_v21  ;;  %v2441_v22 = vld [vmem:[%s11753_s6 + $0x2160] sm:$0xff]  ;;  %v2443_v23 = vld [vmem:[%s11753_s6 + $0x2170] sm:$0xff] }
 0x123   : > { %v2445_v24 = vld [vmem:[%s11753_s6 + $0x2180] sm:$0xff]  ;;  %2442 = vst [vmem:[%s11761_s7 + $0x10b0] sm:$0xff] %v2441_v22  ;;  %2444 = vst [vmem:[%s11761_s7 + $0x10b8] sm:$0xff] %v2443_v23  ;;  %v2447_v25 = vld [vmem:[%s11753_s6 + $0x2190] sm:$0xff] }
 0x124   : > { %2446 = vst [vmem:[%s11761_s7 + $0x10c0] sm:$0xff] %v2445_v24  ;;  %v2449_v26 = vld [vmem:[%s11753_s6 + $0x21a0] sm:$0xff]  ;;  %v2451_v27 = vld [vmem:[%s11753_s6 + $0x21b0] sm:$0xff]  ;;  %2448 = vst [vmem:[%s11761_s7 + $0x10c8] sm:$0xff] %v2447_v25 }
 0x125   : > { %2450 = vst [vmem:[%s11761_s7 + $0x10d0] sm:$0xff] %v2449_v26  ;;  %2452 = vst [vmem:[%s11761_s7 + $0x10d8] sm:$0xff] %v2451_v27  ;;  %v2453_v28 = vld [vmem:[%s11753_s6 + $0x21c0] sm:$0xff]  ;;  %v2455_v29 = vld [vmem:[%s11753_s6 + $0x21d0] sm:$0xff] }
 0x126   : > { %v2457_v30 = vld [vmem:[%s11753_s6 + $0x21e0] sm:$0xff]  ;;  %2454 = vst [vmem:[%s11761_s7 + $0x10e0] sm:$0xff] %v2453_v28  ;;  %2456 = vst [vmem:[%s11761_s7 + $0x10e8] sm:$0xff] %v2455_v29  ;;  %v2459_v31 = vld [vmem:[%s11753_s6 + $0x21f0] sm:$0xff] }
 0x127   : > { %2458 = vst [vmem:[%s11761_s7 + $0x10f0] sm:$0xff] %v2457_v30  ;;  %v2461_v32 = vld [vmem:[%s11753_s6 + $0x2200] sm:$0xff]  ;;  %v2463_v33 = vld [vmem:[%s11753_s6 + $0x2210] sm:$0xff]  ;;  %2460 = vst [vmem:[%s11761_s7 + $0x10f8] sm:$0xff] %v2459_v31 }
 0x128   : > { %2462 = vst [vmem:[%s11761_s7 + $0x1100] sm:$0xff] %v2461_v32  ;;  %2464 = vst [vmem:[%s11761_s7 + $0x1108] sm:$0xff] %v2463_v33  ;;  %v2465_v34 = vld [vmem:[%s11753_s6 + $0x2220] sm:$0xff]  ;;  %v2467_v35 = vld [vmem:[%s11753_s6 + $0x2230] sm:$0xff] }
 0x129   : > { %v2469_v36 = vld [vmem:[%s11753_s6 + $0x2240] sm:$0xff]  ;;  %2466 = vst [vmem:[%s11761_s7 + $0x1110] sm:$0xff] %v2465_v34  ;;  %2468 = vst [vmem:[%s11761_s7 + $0x1118] sm:$0xff] %v2467_v35  ;;  %v2471_v37 = vld [vmem:[%s11753_s6 + $0x2250] sm:$0xff] }
 0x12a   : > { %2470 = vst [vmem:[%s11761_s7 + $0x1120] sm:$0xff] %v2469_v36  ;;  %v2473_v38 = vld [vmem:[%s11753_s6 + $0x2260] sm:$0xff]  ;;  %v2475_v39 = vld [vmem:[%s11753_s6 + $0x2270] sm:$0xff]  ;;  %2472 = vst [vmem:[%s11761_s7 + $0x1128] sm:$0xff] %v2471_v37 }
 0x12b   : > { %2474 = vst [vmem:[%s11761_s7 + $0x1130] sm:$0xff] %v2473_v38  ;;  %2476 = vst [vmem:[%s11761_s7 + $0x1138] sm:$0xff] %v2475_v39  ;;  %v2477_v40 = vld [vmem:[%s11753_s6 + $0x2280] sm:$0xff]  ;;  %v2479_v41 = vld [vmem:[%s11753_s6 + $0x2290] sm:$0xff] }
 0x12c   : > { %v2481_v42 = vld [vmem:[%s11753_s6 + $0x22a0] sm:$0xff]  ;;  %2478 = vst [vmem:[%s11761_s7 + $0x1140] sm:$0xff] %v2477_v40  ;;  %2480 = vst [vmem:[%s11761_s7 + $0x1148] sm:$0xff] %v2479_v41  ;;  %v2483_v43 = vld [vmem:[%s11753_s6 + $0x22b0] sm:$0xff] }
 0x12d   : > { %2482 = vst [vmem:[%s11761_s7 + $0x1150] sm:$0xff] %v2481_v42  ;;  %v2485_v44 = vld [vmem:[%s11753_s6 + $0x22c0] sm:$0xff]  ;;  %v2487_v45 = vld [vmem:[%s11753_s6 + $0x22d0] sm:$0xff]  ;;  %2484 = vst [vmem:[%s11761_s7 + $0x1158] sm:$0xff] %v2483_v43 }
 0x12e   : > { %2486 = vst [vmem:[%s11761_s7 + $0x1160] sm:$0xff] %v2485_v44  ;;  %2488 = vst [vmem:[%s11761_s7 + $0x1168] sm:$0xff] %v2487_v45  ;;  %v2489_v46 = vld [vmem:[%s11753_s6 + $0x22e0] sm:$0xff]  ;;  %v2491_v47 = vld [vmem:[%s11753_s6 + $0x22f0] sm:$0xff] }
 0x12f   : > { %v2493_v48 = vld [vmem:[%s11753_s6 + $0x2300] sm:$0xff]  ;;  %2490 = vst [vmem:[%s11761_s7 + $0x1170] sm:$0xff] %v2489_v46  ;;  %2492 = vst [vmem:[%s11761_s7 + $0x1178] sm:$0xff] %v2491_v47  ;;  %v2495_v49 = vld [vmem:[%s11753_s6 + $0x2310] sm:$0xff] }
 0x130   : > { %2494 = vst [vmem:[%s11761_s7 + $0x1180] sm:$0xff] %v2493_v48  ;;  %v2497_v50 = vld [vmem:[%s11753_s6 + $0x2320] sm:$0xff]  ;;  %v2499_v51 = vld [vmem:[%s11753_s6 + $0x2330] sm:$0xff]  ;;  %2496 = vst [vmem:[%s11761_s7 + $0x1188] sm:$0xff] %v2495_v49 }
 0x131   : > { %2498 = vst [vmem:[%s11761_s7 + $0x1190] sm:$0xff] %v2497_v50  ;;  %2500 = vst [vmem:[%s11761_s7 + $0x1198] sm:$0xff] %v2499_v51  ;;  %v2501_v52 = vld [vmem:[%s11753_s6 + $0x2340] sm:$0xff]  ;;  %v2503_v53 = vld [vmem:[%s11753_s6 + $0x2350] sm:$0xff] }
 0x132   : > { %v2505_v54 = vld [vmem:[%s11753_s6 + $0x2360] sm:$0xff]  ;;  %2502 = vst [vmem:[%s11761_s7 + $0x11a0] sm:$0xff] %v2501_v52  ;;  %2504 = vst [vmem:[%s11761_s7 + $0x11a8] sm:$0xff] %v2503_v53  ;;  %v2507_v55 = vld [vmem:[%s11753_s6 + $0x2370] sm:$0xff] }
 0x133   : > { %2506 = vst [vmem:[%s11761_s7 + $0x11b0] sm:$0xff] %v2505_v54  ;;  %v2509_v56 = vld [vmem:[%s11753_s6 + $0x2380] sm:$0xff]  ;;  %v2511_v57 = vld [vmem:[%s11753_s6 + $0x2390] sm:$0xff]  ;;  %2508 = vst [vmem:[%s11761_s7 + $0x11b8] sm:$0xff] %v2507_v55 }
 0x134   : > { %2510 = vst [vmem:[%s11761_s7 + $0x11c0] sm:$0xff] %v2509_v56  ;;  %2512 = vst [vmem:[%s11761_s7 + $0x11c8] sm:$0xff] %v2511_v57  ;;  %v2513_v58 = vld [vmem:[%s11753_s6 + $0x23a0] sm:$0xff]  ;;  %v2515_v59 = vld [vmem:[%s11753_s6 + $0x23b0] sm:$0xff] }
 0x135   : > { %v2517_v60 = vld [vmem:[%s11753_s6 + $0x23c0] sm:$0xff]  ;;  %2514 = vst [vmem:[%s11761_s7 + $0x11d0] sm:$0xff] %v2513_v58  ;;  %2516 = vst [vmem:[%s11761_s7 + $0x11d8] sm:$0xff] %v2515_v59  ;;  %v2519_v61 = vld [vmem:[%s11753_s6 + $0x23d0] sm:$0xff] }
 0x136   : > { %2518 = vst [vmem:[%s11761_s7 + $0x11e0] sm:$0xff] %v2517_v60  ;;  %v2521_v62 = vld [vmem:[%s11753_s6 + $0x23e0] sm:$0xff]  ;;  %v2523_v63 = vld [vmem:[%s11753_s6 + $0x23f0] sm:$0xff]  ;;  %2520 = vst [vmem:[%s11761_s7 + $0x11e8] sm:$0xff] %v2519_v61 }
 0x137   : > { %2522 = vst [vmem:[%s11761_s7 + $0x11f0] sm:$0xff] %v2521_v62  ;;  %2524 = vst [vmem:[%s11761_s7 + $0x11f8] sm:$0xff] %v2523_v63 }
 0x138 PF: > { %p9550_p7 = scmp.ge.s32.totalorder %s11668_s21, 1  ;;  %p4889_p8 = scmp.lt.s32.totalorder %s11668_s21, 5 }
 0x13a   : > { %p4890_p9 = pnand %p9550_p7, %p4889_p8 }
 0x13b   : > { %s4896_s8 = sand.u32 (!%p4890_p9), 1, %s11644_s15   ;;  %p4941_p10 = scmp.lt.s32.totalorder (!%p4890_p9), %s11656_s18, 1  ;;  %vm9405_vm0 = vcmask (!%p4890_p9), 1040384   ;;  %vm9406_vm1 = vsmask.f32 (!%p4890_p9), 256  ;;  %vm9408_vm2 = vcmask (!%p4890_p9), 1041409  }
 0x13c   : > { %4893 = sbr.rel (%p4890_p9) target bundleno = 1129 (0x469), region = 84  ;;  %s9553_s15 = sshll.u32 (!%p4890_p9), %s11652_s17, 1  ;;  %vm9409_vm3 = vsmask.f32 (!%p4890_p9), 1280  ;;  %vm9407_vm4 = vmand (!%p4890_p9), %vm9405_vm0, %vm9406_vm1 }
 0x13d   : > { %s10672_s9 = smul.u32 (!%p4890_p9), 4608, %s4896_s8  ;;  %p4948_p11 = scmp.lt.s32.totalorder (!%p4890_p9), %s9553_s15, 3  ;;  %vm9410_vm5 = vmand (!%p4890_p9), %vm9408_vm2, %vm9409_vm3 }
 0x13e   : > { %vm9411_vm6 = vmor (!%p4890_p9), %vm9410_vm5, %vm9407_vm4 }
 0x13f   : > { %s12912_s10 = scalar_lea.vmem (!%p4890_p9), [#allocation2], %s10672_s9 }
 0x140   : > { %v10730_v0 = vld [vmem:[%s12912_s10 + $0x204] ss:$8 sps:$4 sm:$0xff] (!%p4890_p9)   ;;  %v10734_v2 = vld [vmem:[%s12912_s10 + $0x200] ss:$8 sps:$4 sm:$0xff] (!%p4890_p9)   ;;  %v10736_v4 = vld [vmem:[%s12912_s10 + $0x214] ss:$8 sps:$4 sm:$0xff] (!%p4890_p9)  }
 0x141   : > { %v10732_v1 = vld [vmem:[%s12912_s10 + $0x304] ss:$8 sps:$4 sm:$0xff] (!%p4890_p9)   ;;  %5447 = vmatprep.subr.bf16.mxu0 (!%p4890_p9), %v10730_v0  ;;  %v10735_v3 = vld [vmem:[%s12912_s10 + $0x300] ss:$8 sps:$4 sm:$0xff] (!%p4890_p9)   ;;  %v10738_v5 = vld [vmem:[%s12912_s10 + $0x314] ss:$8 sps:$4 sm:$0xff] (!%p4890_p9)  }
 0x142   : > { %5488 = vmatprep.subr.bf16.mxu1 (!%p4890_p9), %v10732_v1  ;;  %5448 = vmatpush1.bf16.msra.mxu0 (!%p4890_p9), %v10734_v2  ;;  %v10740_v6 = vld [vmem:[%s12912_s10 + $0x210] ss:$8 sps:$4 sm:$0xff] (!%p4890_p9)   ;;  %v10742_v8 = vld [vmem:[%s12912_s10 + $0x224] ss:$8 sps:$4 sm:$0xff] (!%p4890_p9)   ;;  %v10746_v10 = vld [vmem:[%s12912_s10 + $0x220] ss:$8 sps:$4 sm:$0xff] (!%p4890_p9)  }
 0x143   : > { %5489 = vmatpush1.bf16.msra.mxu1 %v10735_v3  ;;  %5449 = vmatprep.subr.bf16.mxu0 %v10736_v4  ;;  %v10741_v7 = vld [vmem:[%s12912_s10 + $0x310] ss:$8 sps:$4 sm:$0xff]   ;;  %v10744_v9 = vld [vmem:[%s12912_s10 + $0x324] ss:$8 sps:$4 sm:$0xff]   ;;  %v10747_v11 = vld [vmem:[%s12912_s10 + $0x320] ss:$8 sps:$4 sm:$0xff]  }
 0x144   : > { %5490 = vmatprep.subr.bf16.mxu1 %v10738_v5  ;;  %v10748_v12 = vld [vmem:[%s12912_s10 + $0x234] ss:$8 sps:$4 sm:$0xff]   ;;  %v10752_v14 = vld [vmem:[%s12912_s10 + $0x230] ss:$8 sps:$4 sm:$0xff]   ;;  %v10754_v16 = vld [vmem:[%s12912_s10 + $0x244] ss:$8 sps:$4 sm:$0xff]  }
 0x145   : > { %v10750_v13 = vld [vmem:[%s12912_s10 + $0x334] ss:$8 sps:$4 sm:$0xff]   ;;  %v10753_v15 = vld [vmem:[%s12912_s10 + $0x330] ss:$8 sps:$4 sm:$0xff]   ;;  %v10756_v17 = vld [vmem:[%s12912_s10 + $0x344] ss:$8 sps:$4 sm:$0xff]  }
 0x146   : > { %5450 = vmatpush1.bf16.msra.mxu0 %v10740_v6  ;;  %v10758_v18 = vld [vmem:[%s12912_s10 + $0x240] ss:$8 sps:$4 sm:$0xff]   ;;  %v10760_v20 = vld [vmem:[%s12912_s10 + $0x254] ss:$8 sps:$4 sm:$0xff]   ;;  %v10764_v22 = vld [vmem:[%s12912_s10 + $0x250] ss:$8 sps:$4 sm:$0xff]  }
 0x147   : > { %5491 = vmatpush1.bf16.msra.mxu1 %v10741_v7  ;;  %5451 = vmatprep.subr.bf16.mxu0 %v10742_v8  ;;  %v10759_v19 = vld [vmem:[%s12912_s10 + $0x340] ss:$8 sps:$4 sm:$0xff]   ;;  %v10762_v21 = vld [vmem:[%s12912_s10 + $0x354] ss:$8 sps:$4 sm:$0xff]   ;;  %v10765_v23 = vld [vmem:[%s12912_s10 + $0x350] ss:$8 sps:$4 sm:$0xff]  }
 0x148   : > { %5492 = vmatprep.subr.bf16.mxu1 %v10744_v9  ;;  %v10766_v24 = vld [vmem:[%s12912_s10 + $0x264] ss:$8 sps:$4 sm:$0xff]   ;;  %v10770_v26 = vld [vmem:[%s12912_s10 + $0x260] ss:$8 sps:$4 sm:$0xff]   ;;  %v10772_v28 = vld [vmem:[%s12912_s10 + $0x274] ss:$8 sps:$4 sm:$0xff]  }
 0x149   : > { %v10768_v25 = vld [vmem:[%s12912_s10 + $0x364] ss:$8 sps:$4 sm:$0xff]   ;;  %v10771_v27 = vld [vmem:[%s12912_s10 + $0x360] ss:$8 sps:$4 sm:$0xff]   ;;  %v10774_v29 = vld [vmem:[%s12912_s10 + $0x374] ss:$8 sps:$4 sm:$0xff]  }
 0x14a   : > { %5452 = vmatpush1.bf16.msra.mxu0 %v10746_v10  ;;  %v10776_v30 = vld [vmem:[%s12912_s10 + $0x270] ss:$8 sps:$4 sm:$0xff]   ;;  %v10778_v32 = vld [vmem:[%s12912_s10 + $0x284] ss:$8 sps:$4 sm:$0xff]   ;;  %v10782_v34 = vld [vmem:[%s12912_s10 + $0x280] ss:$8 sps:$4 sm:$0xff]  }
 0x14b   : > { %5493 = vmatpush1.bf16.msra.mxu1 %v10747_v11  ;;  %5453 = vmatprep.subr.bf16.mxu0 %v10748_v12  ;;  %v10777_v31 = vld [vmem:[%s12912_s10 + $0x370] ss:$8 sps:$4 sm:$0xff]   ;;  %v10780_v33 = vld [vmem:[%s12912_s10 + $0x384] ss:$8 sps:$4 sm:$0xff]   ;;  %v10783_v35 = vld [vmem:[%s12912_s10 + $0x380] ss:$8 sps:$4 sm:$0xff]  }
 0x14c   : > { %5494 = vmatprep.subr.bf16.mxu1 %v10750_v13  ;;  %v10784_v36 = vld [vmem:[%s12912_s10 + $0x294] ss:$8 sps:$4 sm:$0xff]   ;;  %s13702_s18 = smov (!%p4941_p10, %s11656_s18), 1  ;;  %v10788_v38 = vld [vmem:[%s12912_s10 + $0x290] ss:$8 sps:$4 sm:$0xff]   ;;  %s13704_s15 = smov (!%p4948_p11, %s9553_s15), 3 }
 0x14d   : > { %v10786_v37 = vld [vmem:[%s12912_s10 + $0x394] ss:$8 sps:$4 sm:$0xff]   ;;  %v10789_v39 = vld [vmem:[%s12912_s10 + $0x390] ss:$8 sps:$4 sm:$0xff]   ;;  %v10790_v40 = vld [vmem:[%s12912_s10 + $0x2a4] ss:$8 sps:$4 sm:$0xff]   ;;  %s4950_s6 = scalar_lea.vmem %s13686_s2, %s13704_s15 }
 0x14e   : > { %5454 = vmatpush1.bf16.msra.mxu0 %v10752_v14  ;;  %s10670_s11 = sshll.u32 %s13702_s18, 5  ;;  %v10792_v41 = vld [vmem:[%s12912_s10 + $0x3a4] ss:$8 sps:$4 sm:$0xff]   ;;  %v10794_v42 = vld [vmem:[%s12912_s10 + $0x2a0] ss:$8 sps:$4 sm:$0xff]   ;;  %s9555_s24 = sshll.u32 %s13702_s18, 2 }
 0x14f   : > { %5495 = vmatpush1.bf16.msra.mxu1 %v10753_v15  ;;  %5455 = vmatprep.subr.bf16.mxu0 %v10754_v16  ;;  %v10795_v43 = vld [vmem:[%s12912_s10 + $0x3a0] ss:$8 sps:$4 sm:$0xff]   ;;  %s12966_s14 = scalar_lea.vmem %s13684_s0, %s10670_s11  ;;  %v10796_v44 = vld [vmem:[%s12912_s10 + $0x2b4] ss:$8 sps:$4 sm:$0xff]   ;;  %v10800_v46 = vld [vmem:[%s12912_s10 + $0x2b0] ss:$8 sps:$4 sm:$0xff]   ;;  %s13650_s25 = sadd.s32 %s9555_s24, %s13704_s15 }
 0x150   : > { %5496 = vmatprep.subr.bf16.mxu1 %v10756_v17  ;;  %v10798_v45 = vld [vmem:[%s12912_s10 + $0x3b4] ss:$8 sps:$4 sm:$0xff]   ;;  %v4970_v47 = vld [vmem:[%s12966_s14] sm:$0x11]  ;;  %v4971_v49 = vld [vmem:[%s12966_s14 + $0x8] sm:$0x11]  ;;  %s4959_s29 = scalar_lea.vmem %s13687_s3, %s13650_s25  ;;  %s4968_s7 = scalar_lea.vmem %s13688_s4, %s13650_s25 }
 0x151   : > { %v12972_v48 = vcombine.high %v4970_v47, %v4970_v47  ;;  %v10801_v50 = vld [vmem:[%s12912_s10 + $0x3b0] ss:$8 sps:$4 sm:$0xff]   ;;  %v10802_v51 = vld [vmem:[%s12912_s10 + $0x2c4] ss:$8 sps:$4 sm:$0xff]   ;;  %v9625_v52 = vcombine.high %v4971_v49, %v4971_v49  ;;  %v10806_v56 = vld [vmem:[%s12912_s10 + $0x2c0] ss:$8 sps:$4 sm:$0xff]   ;;  %v12991_v4 = vcombine.low %v4970_v47, %v4970_v47  ;;  %v12993_v5 = vcombine.low %v4971_v49, %v4971_v49 }
 0x152   : > { %5456 = vmatpush1.bf16.msra.mxu0 %v10758_v18  ;;  %v10804_v53 = vld [vmem:[%s12912_s10 + $0x3c4] ss:$8 sps:$4 sm:$0xff]   ;;  %v10807_v57 = vld [vmem:[%s12912_s10 + $0x3c0] ss:$8 sps:$4 sm:$0xff]   ;;  %v10808_v58 = vld [vmem:[%s12912_s10 + $0x2d4] ss:$8 sps:$4 sm:$0xff]  }
 0x153   : > { %5497 = vmatpush1.bf16.msra.mxu1 %v10759_v19  ;;  %5457 = vmatprep.subr.bf16.mxu0 %v10760_v20  ;;  %v5115_v54 = vshrl.u32 %v12972_v48, 16  ;;  %v5121_v55 = vshrl.u32 %v9625_v52, 16  ;;  %v10810_v59 = vld [vmem:[%s12912_s10 + $0x3d4] ss:$8 sps:$4 sm:$0xff]   ;;  %v10812_v60 = vld [vmem:[%s12912_s10 + $0x2d0] ss:$8 sps:$4 sm:$0xff]  }
 0x154   : > { %5498 = vmatprep.subr.bf16.mxu1 %v10762_v21  ;;  %v10813_v61 = vld [vmem:[%s12912_s10 + $0x3d0] ss:$8 sps:$4 sm:$0xff]   ;;  %v10814_v62 = vld [vmem:[%s12912_s10 + $0x2e4] ss:$8 sps:$4 sm:$0xff]   ;;  %v10818_v0 = vld [vmem:[%s12912_s10 + $0x2e0] ss:$8 sps:$4 sm:$0xff]  }
 0x155   : > { %5479 = vmatprep.mubr.bf16.mxu0 %v5115_v54  ;;  %5520 = vmatprep.mubr.bf16.mxu1 %v5121_v55  ;;  %v10816_v63 = vld [vmem:[%s12912_s10 + $0x3e4] ss:$8 sps:$4 sm:$0xff]   ;;  %v10819_v1 = vld [vmem:[%s12912_s10 + $0x3e0] ss:$8 sps:$4 sm:$0xff]   ;;  %v10820_v2 = vld [vmem:[%s12912_s10 + $0x2f4] ss:$8 sps:$4 sm:$0xff]  }
 0x156   : > { %5458 = vmatpush1.bf16.msra.mxu0 %v10764_v22  ;;  %v10822_v3 = vld [vmem:[%s12912_s10 + $0x3f4] ss:$8 sps:$4 sm:$0xff]   ;;  %v10824_v6 = vld [vmem:[%s12912_s10 + $0x2f0] ss:$8 sps:$4 sm:$0xff]   ;;  %v10832_v8 = vld [vmem:[%s12912_s10 + $0x4] ss:$8 sps:$4 sm:$0xff]  }
 0x157   : > { %5499 = vmatpush1.bf16.msra.mxu1 %v10765_v23  ;;  %5459 = vmatprep.subr.bf16.mxu0 %v10766_v24  ;;  %v10825_v7 = vld [vmem:[%s12912_s10 + $0x3f0] ss:$8 sps:$4 sm:$0xff]   ;;  %v10835_v9 = vld [vmem:[%s12912_s10 + $0x104] ss:$8 sps:$4 sm:$0xff]   ;;  %v5112_v10 = vshrl.u32 %v12991_v4, 16  ;;  %v5118_v11 = vshrl.u32 %v12993_v5, 16 }
 0x158   : > { %5500 = vmatprep.subr.bf16.mxu1 %v10768_v25  ;;  %v10830_v12 = vld [vmem:[%s12912_s10] ss:$8 sps:$4 sm:$0xff]   ;;  %v10838_v14 = vld [vmem:[%s12912_s10 + $0x14] ss:$8 sps:$4 sm:$0xff]   ;;  %v10836_v16 = vld [vmem:[%s12912_s10 + $0x10] ss:$8 sps:$4 sm:$0xff]  }
 0x159   : > { %v10833_v13 = vld [vmem:[%s12912_s10 + $0x100] ss:$8 sps:$4 sm:$0xff]   ;;  %v10841_v15 = vld [vmem:[%s12912_s10 + $0x114] ss:$8 sps:$4 sm:$0xff]   ;;  %v10839_v17 = vld [vmem:[%s12912_s10 + $0x110] ss:$8 sps:$4 sm:$0xff]  }
 0x15a   : > { %5460 = vmatpush1.bf16.msra.mxu0 %v10770_v26  ;;  %v10844_v18 = vld [vmem:[%s12912_s10 + $0x24] ss:$8 sps:$4 sm:$0xff]   ;;  %v10842_v20 = vld [vmem:[%s12912_s10 + $0x20] ss:$8 sps:$4 sm:$0xff]   ;;  %v10850_v22 = vld [vmem:[%s12912_s10 + $0x34] ss:$8 sps:$4 sm:$0xff]  }
 0x15b   : > { %5501 = vmatpush1.bf16.msra.mxu1 %v10771_v27  ;;  %5461 = vmatprep.subr.bf16.mxu0 %v10772_v28  ;;  %v10847_v19 = vld [vmem:[%s12912_s10 + $0x124] ss:$8 sps:$4 sm:$0xff]   ;;  %v10845_v21 = vld [vmem:[%s12912_s10 + $0x120] ss:$8 sps:$4 sm:$0xff]   ;;  %v10853_v23 = vld [vmem:[%s12912_s10 + $0x134] ss:$8 sps:$4 sm:$0xff]  }
 0x15c   : > { %5502 = vmatprep.subr.bf16.mxu1 %v10774_v29  ;;  %v10848_v24 = vld [vmem:[%s12912_s10 + $0x30] ss:$8 sps:$4 sm:$0xff]   ;;  %v10856_v26 = vld [vmem:[%s12912_s10 + $0x44] ss:$8 sps:$4 sm:$0xff]   ;;  %v10854_v28 = vld [vmem:[%s12912_s10 + $0x40] ss:$8 sps:$4 sm:$0xff]  }
 0x15d   : > { %v10851_v25 = vld [vmem:[%s12912_s10 + $0x130] ss:$8 sps:$4 sm:$0xff]   ;;  %v10859_v27 = vld [vmem:[%s12912_s10 + $0x144] ss:$8 sps:$4 sm:$0xff]   ;;  %v10857_v29 = vld [vmem:[%s12912_s10 + $0x140] ss:$8 sps:$4 sm:$0xff]  }
 0x15e   : > { %5462 = vmatpush1.bf16.msra.mxu0 %v10776_v30  ;;  %v10862_v30 = vld [vmem:[%s12912_s10 + $0x54] ss:$8 sps:$4 sm:$0xff]   ;;  %v10887_v49 = vld [vmem:[%s12912_s10 + $0x190] ss:$8 sps:$4 sm:$0xff]  }
 0x15f   : > { %5503 = vmatpush1.bf16.msra.mxu1 %v10777_v31  ;;  %5463 = vmatprep.subr.bf16.mxu0 %v10778_v32  ;;  %v10865_v31 = vld [vmem:[%s12912_s10 + $0x154] ss:$8 sps:$4 sm:$0xff]   ;;  %v10860_v32 = vld [vmem:[%s12912_s10 + $0x50] ss:$8 sps:$4 sm:$0xff]  }
 0x160   : > { %5504 = vmatprep.subr.bf16.mxu1 %v10780_v33  ;;  %v10863_v33 = vld [vmem:[%s12912_s10 + $0x150] ss:$8 sps:$4 sm:$0xff]   ;;  %v10889_v47 = vld [vmem:[%s12912_s10 + $0x194] ss:$8 sps:$4 sm:$0xff]  }
 0x161   : > { %v10898_v54 = vld [vmem:[%s12912_s10 + $0xb4] ss:$8 sps:$4 sm:$0xff]  }
 0x162   : > { %5464 = vmatpush1.bf16.msra.mxu0 %v10782_v34  ;;  %v10868_v34 = vld [vmem:[%s12912_s10 + $0x64] ss:$8 sps:$4 sm:$0xff]   ;;  %v10901_v55 = vld [vmem:[%s12912_s10 + $0x1b4] ss:$8 sps:$4 sm:$0xff]  }
 0x163   : > { %5505 = vmatpush1.bf16.msra.mxu1 %v10783_v35  ;;  %5465 = vmatprep.subr.bf16.mxu0 %v10784_v36  ;;  %v10871_v35 = vld [vmem:[%s12912_s10 + $0x164] ss:$8 sps:$4 sm:$0xff]   ;;  %v10866_v36 = vld [vmem:[%s12912_s10 + $0x60] ss:$8 sps:$4 sm:$0xff]  }
 0x164   : > { %5506 = vmatprep.subr.bf16.mxu1 %v10786_v37  ;;  %v10869_v37 = vld [vmem:[%s12912_s10 + $0x160] ss:$8 sps:$4 sm:$0xff]  }
 0x166   : > { %5466 = vmatpush1.bf16.msra.mxu0 %v10788_v38  ;;  %v10874_v38 = vld [vmem:[%s12912_s10 + $0x74] ss:$8 sps:$4 sm:$0xff]  }
 0x167   : > { %5507 = vmatpush1.bf16.msra.mxu1 %v10789_v39  ;;  %5467 = vmatprep.subr.bf16.mxu0 %v10790_v40  ;;  %v10877_v39 = vld [vmem:[%s12912_s10 + $0x174] ss:$8 sps:$4 sm:$0xff]   ;;  %v10872_v40 = vld [vmem:[%s12912_s10 + $0x70] ss:$8 sps:$4 sm:$0xff]  }
 0x168   : > { %5508 = vmatprep.subr.bf16.mxu1 %v10792_v41  ;;  %v10875_v41 = vld [vmem:[%s12912_s10 + $0x170] ss:$8 sps:$4 sm:$0xff]  }
 0x16a   : > { %5468 = vmatpush1.bf16.msra.mxu0 %v10794_v42  ;;  %v10880_v42 = vld [vmem:[%s12912_s10 + $0x84] ss:$8 sps:$4 sm:$0xff]  }
 0x16b   : > { %5509 = vmatpush1.bf16.msra.mxu1 %v10795_v43  ;;  %5469 = vmatprep.subr.bf16.mxu0 %v10796_v44  ;;  %v10883_v43 = vld [vmem:[%s12912_s10 + $0x184] ss:$8 sps:$4 sm:$0xff]   ;;  %v10878_v44 = vld [vmem:[%s12912_s10 + $0x80] ss:$8 sps:$4 sm:$0xff]  }
 0x16c   : > { %5510 = vmatprep.subr.bf16.mxu1 %v10798_v45  ;;  %v10881_v45 = vld [vmem:[%s12912_s10 + $0x180] ss:$8 sps:$4 sm:$0xff]  }
 0x16e   : > { %5470 = vmatpush1.bf16.msra.mxu0 %v10800_v46  ;;  %v10886_v46 = vld [vmem:[%s12912_s10 + $0x94] ss:$8 sps:$4 sm:$0xff]  }
 0x16f   : > { %5511 = vmatpush1.bf16.msra.mxu1 %v10801_v50  ;;  %5471 = vmatprep.subr.bf16.mxu0 %v10802_v51  ;;  %v10892_v50 = vld [vmem:[%s12912_s10 + $0xa4] ss:$8 sps:$4 sm:$0xff]  }
 0x170   : > { %5512 = vmatprep.subr.bf16.mxu1 %v10804_v53  ;;  %v10895_v51 = vld [vmem:[%s12912_s10 + $0x1a4] ss:$8 sps:$4 sm:$0xff]   ;;  %v10893_v53 = vld [vmem:[%s12912_s10 + $0x1a0] ss:$8 sps:$4 sm:$0xff]  }
 0x172   : > { %5472 = vmatpush1.bf16.msra.mxu0 %v10806_v56  ;;  %v10896_v56 = vld [vmem:[%s12912_s10 + $0xb0] ss:$8 sps:$4 sm:$0xff]  }
 0x173   : > { %5513 = vmatpush1.bf16.msra.mxu1 %v10807_v57  ;;  %5473 = vmatprep.subr.bf16.mxu0 %v10808_v58  ;;  %v10899_v57 = vld [vmem:[%s12912_s10 + $0x1b0] ss:$8 sps:$4 sm:$0xff]   ;;  %v10904_v58 = vld [vmem:[%s12912_s10 + $0xc4] ss:$8 sps:$4 sm:$0xff]  }
 0x174   : > { %5514 = vmatprep.subr.bf16.mxu1 %v10810_v59  ;;  %v10907_v59 = vld [vmem:[%s12912_s10 + $0x1c4] ss:$8 sps:$4 sm:$0xff]  }
 0x176   : > { %5474 = vmatpush1.bf16.msra.mxu0 %v10812_v60  ;;  %v10902_v60 = vld [vmem:[%s12912_s10 + $0xc0] ss:$8 sps:$4 sm:$0xff]  }
 0x177   : > { %5515 = vmatpush1.bf16.msra.mxu1 %v10813_v61  ;;  %5475 = vmatprep.subr.bf16.mxu0 %v10814_v62  ;;  %v10905_v61 = vld [vmem:[%s12912_s10 + $0x1c0] ss:$8 sps:$4 sm:$0xff]   ;;  %v10910_v62 = vld [vmem:[%s12912_s10 + $0xd4] ss:$8 sps:$4 sm:$0xff]  }
 0x178   : > { %5516 = vmatprep.subr.bf16.mxu1 %v10816_v63  ;;  %v10913_v63 = vld [vmem:[%s12912_s10 + $0x1d4] ss:$8 sps:$4 sm:$0xff]  }
 0x17a   : > { %5476 = vmatpush1.bf16.msra.mxu0 %v10818_v0  ;;  %v10908_v0 = vld [vmem:[%s12912_s10 + $0xd0] ss:$8 sps:$4 sm:$0xff]  }
 0x17b   : > { %5517 = vmatpush1.bf16.msra.mxu1 %v10819_v1  ;;  %5477 = vmatprep.subr.bf16.mxu0 %v10820_v2  ;;  %v10911_v1 = vld [vmem:[%s12912_s10 + $0x1d0] ss:$8 sps:$4 sm:$0xff]   ;;  %v10916_v2 = vld [vmem:[%s12912_s10 + $0xe4] ss:$8 sps:$4 sm:$0xff]  }
 0x17c   : > { %5518 = vmatprep.subr.bf16.mxu1 %v10822_v3  ;;  %v10919_v3 = vld [vmem:[%s12912_s10 + $0x1e4] ss:$8 sps:$4 sm:$0xff]  }
 0x17e   : > { %5478 = vmatpush1.bf16.msra.mxu0 %v10824_v6  ;;  %v10914_v6 = vld [vmem:[%s12912_s10 + $0xe0] ss:$8 sps:$4 sm:$0xff]  }
 0x17f   : > { %5519 = vmatpush1.bf16.msra.mxu1 %v10825_v7  ;;  %5853 = vmatprep.subr.bf16.mxu0 %v10832_v8  ;;  %v10917_v7 = vld [vmem:[%s12912_s10 + $0x1e0] ss:$8 sps:$4 sm:$0xff]   ;;  %v10922_v8 = vld [vmem:[%s12912_s10 + $0xf4] ss:$8 sps:$4 sm:$0xff]  }
 0x180   : > { %5894 = vmatprep.subr.bf16.mxu1 %v10835_v9  ;;  %v10925_v9 = vld [vmem:[%s12912_s10 + $0x1f4] ss:$8 sps:$4 sm:$0xff]  }
 0x181   : > { %5480 = vmatmul.mubr.bf16.vlgmr.msra.gmra.mrb[0].mxu0 %v5112_v10  ;;  %v10920_v10 = vld [vmem:[%s12912_s10 + $0xf0] ss:$8 sps:$4 sm:$0xff]  }
 0x182   : > { %5521 = vmatmul.mubr.bf16.vlgmr.msra.gmra.mrb[0].mxu1 %v5118_v11  ;;  %5854 = vmatpush1.bf16.msra.mxu0 %v10830_v12  ;;  %v10923_v11 = vld [vmem:[%s12912_s10 + $0x1f0] ss:$8 sps:$4 sm:$0xff]   ;;  %v10928_v12 = vld [vmem:[%s12912_s10 + $0x404] ss:$8 sps:$4 sm:$0xff]  }
 0x183   : > { %5895 = vmatpush1.bf16.msra.mxu1 %v10833_v13  ;;  %5855 = vmatprep.subr.bf16.mxu0 %v10838_v14  ;;  %v10931_v13 = vld [vmem:[%s12912_s10 + $0x504] ss:$8 sps:$4 sm:$0xff]   ;;  %v10926_v14 = vld [vmem:[%s12912_s10 + $0x400] ss:$8 sps:$4 sm:$0xff]  }
 0x184   : > { %5896 = vmatprep.subr.bf16.mxu1 %v10841_v15  ;;  %5885 = vmatprep.mubr.bf16.mxu0 %v12972_v48  ;;  %v10884_v48 = vld [vmem:[%s12912_s10 + $0x90] ss:$8 sps:$4 sm:$0xff]   ;;  %v10929_v15 = vld [vmem:[%s12912_s10 + $0x500] ss:$8 sps:$4 sm:$0xff]  }
 0x185   : > { %5926 = vmatprep.mubr.bf16.mxu1 %v9625_v52  ;;  %v10890_v52 = vld [vmem:[%s12912_s10 + $0xa0] ss:$8 sps:$4 sm:$0xff]  }
 0x186   : > { %5856 = vmatpush1.bf16.msra.mxu0 %v10836_v16  ;;  %v10934_v16 = vld [vmem:[%s12912_s10 + $0x414] ss:$8 sps:$4 sm:$0xff]  }
 0x187   : > { %5897 = vmatpush1.bf16.msra.mxu1 %v10839_v17  ;;  %5857 = vmatprep.subr.bf16.mxu0 %v10844_v18  ;;  %v10937_v17 = vld [vmem:[%s12912_s10 + $0x514] ss:$8 sps:$4 sm:$0xff]   ;;  %v13071_v18 = vld [vmem:[%s12966_s14] sm:$0x22] }
 0x188   : > { %5898 = vmatprep.subr.bf16.mxu1 %v10847_v19  ;;  %v13075_v19 = vcombine.high %v13071_v18, %v13071_v18 }
 0x18a   : > { %5858 = vmatpush1.bf16.msra.mxu0 %v10842_v20  ;;  %v13078_v20 = vld [vmem:[%s12966_s14 + $0x8] sm:$0x22] }
 0x18b   : > { %5899 = vmatpush1.bf16.msra.mxu1 %v10845_v21  ;;  %5859 = vmatprep.subr.bf16.mxu0 %v10850_v22  ;;  %v13082_v21 = vcombine.high %v13078_v20, %v13078_v20  ;;  %v10932_v22 = vld [vmem:[%s12912_s10 + $0x410] ss:$8 sps:$4 sm:$0xff]  }
 0x18c   : > { %5900 = vmatprep.subr.bf16.mxu1 %v10853_v23  ;;  %v6013_v23 = vrot.slane %v13075_v19, 1 }
 0x18e   : > { %5860 = vmatpush1.bf16.msra.mxu0 %v10848_v24  ;;  %v10935_v24 = vld [vmem:[%s12912_s10 + $0x510] ss:$8 sps:$4 sm:$0xff]  }
 0x18f   : > { %5901 = vmatpush1.bf16.msra.mxu1 %v10851_v25  ;;  %5861 = vmatprep.subr.bf16.mxu0 %v10856_v26  ;;  %v6015_v25 = vrot.slane %v13082_v21, 1  ;;  %v10940_v26 = vld [vmem:[%s12912_s10 + $0x424] ss:$8 sps:$4 sm:$0xff]  }
 0x190   : > { %5902 = vmatprep.subr.bf16.mxu1 %v10859_v27  ;;  %v10943_v27 = vld [vmem:[%s12912_s10 + $0x524] ss:$8 sps:$4 sm:$0xff]  }
 0x192   : > { %5862 = vmatpush1.bf16.msra.mxu0 %v10854_v28  ;;  %v10946_v28 = vld [vmem:[%s12912_s10 + $0x434] ss:$8 sps:$4 sm:$0xff]  }
 0x193   : > { %5903 = vmatpush1.bf16.msra.mxu1 %v10857_v29  ;;  %5863 = vmatprep.subr.bf16.mxu0 %v10862_v30  ;;  %v10949_v29 = vld [vmem:[%s12912_s10 + $0x534] ss:$8 sps:$4 sm:$0xff]   ;;  %v10944_v30 = vld [vmem:[%s12912_s10 + $0x430] ss:$8 sps:$4 sm:$0xff]  }
 0x194   : > { %5904 = vmatprep.subr.bf16.mxu1 %v10865_v31  ;;  %v10947_v31 = vld [vmem:[%s12912_s10 + $0x530] ss:$8 sps:$4 sm:$0xff]  }
 0x196   : > { %5864 = vmatpush1.bf16.msra.mxu0 %v10860_v32  ;;  %v10952_v32 = vld [vmem:[%s12912_s10 + $0x444] ss:$8 sps:$4 sm:$0xff]  }
 0x197   : > { %5905 = vmatpush1.bf16.msra.mxu1 %v10863_v33  ;;  %5865 = vmatprep.subr.bf16.mxu0 %v10868_v34  ;;  %v10955_v33 = vld [vmem:[%s12912_s10 + $0x544] ss:$8 sps:$4 sm:$0xff]   ;;  %v10950_v34 = vld [vmem:[%s12912_s10 + $0x440] ss:$8 sps:$4 sm:$0xff]  }
 0x198   : > { %5906 = vmatprep.subr.bf16.mxu1 %v10871_v35  ;;  %v10953_v35 = vld [vmem:[%s12912_s10 + $0x540] ss:$8 sps:$4 sm:$0xff]  }
 0x19a   : > { %5866 = vmatpush1.bf16.msra.mxu0 %v10866_v36  ;;  %v10958_v36 = vld [vmem:[%s12912_s10 + $0x454] ss:$8 sps:$4 sm:$0xff]  }
 0x19b   : > { %5907 = vmatpush1.bf16.msra.mxu1 %v10869_v37  ;;  %5867 = vmatprep.subr.bf16.mxu0 %v10874_v38  ;;  %v10961_v37 = vld [vmem:[%s12912_s10 + $0x554] ss:$8 sps:$4 sm:$0xff]   ;;  %v10956_v38 = vld [vmem:[%s12912_s10 + $0x450] ss:$8 sps:$4 sm:$0xff]  }
 0x19c   : > { %5908 = vmatprep.subr.bf16.mxu1 %v10877_v39  ;;  %v10959_v39 = vld [vmem:[%s12912_s10 + $0x550] ss:$8 sps:$4 sm:$0xff]  }
 0x19e   : > { %5868 = vmatpush1.bf16.msra.mxu0 %v10872_v40  ;;  %v10964_v40 = vld [vmem:[%s12912_s10 + $0x464] ss:$8 sps:$4 sm:$0xff]  }
 0x19f   : > { %5909 = vmatpush1.bf16.msra.mxu1 %v10875_v41  ;;  %5869 = vmatprep.subr.bf16.mxu0 %v10880_v42  ;;  %v10967_v41 = vld [vmem:[%s12912_s10 + $0x564] ss:$8 sps:$4 sm:$0xff]   ;;  %v10962_v42 = vld [vmem:[%s12912_s10 + $0x460] ss:$8 sps:$4 sm:$0xff]  }
 0x1a0   : > { %5910 = vmatprep.subr.bf16.mxu1 %v10883_v43  ;;  %v10965_v43 = vld [vmem:[%s12912_s10 + $0x560] ss:$8 sps:$4 sm:$0xff]  }
 0x1a2   : > { %5870 = vmatpush1.bf16.msra.mxu0 %v10878_v44  ;;  %v10970_v44 = vld [vmem:[%s12912_s10 + $0x474] ss:$8 sps:$4 sm:$0xff]  }
 0x1a3   : > { %5911 = vmatpush1.bf16.msra.mxu1 %v10881_v45  ;;  %5871 = vmatprep.subr.bf16.mxu0 %v10886_v46  ;;  %v10973_v45 = vld [vmem:[%s12912_s10 + $0x574] ss:$8 sps:$4 sm:$0xff]   ;;  %v10968_v46 = vld [vmem:[%s12912_s10 + $0x470] ss:$8 sps:$4 sm:$0xff]  }
 0x1a4   : > { %5912 = vmatprep.subr.bf16.mxu1 %v10889_v47  ;;  %v10971_v47 = vld [vmem:[%s12912_s10 + $0x570] ss:$8 sps:$4 sm:$0xff]  }
 0x1a6   : > { %5872 = vmatpush1.bf16.msra.mxu0 %v10884_v48  ;;  %v10976_v48 = vld [vmem:[%s12912_s10 + $0x484] ss:$8 sps:$4 sm:$0xff]  }
 0x1a7   : > { %5913 = vmatpush1.bf16.msra.mxu1 %v10887_v49  ;;  %5873 = vmatprep.subr.bf16.mxu0 %v10892_v50  ;;  %v10979_v49 = vld [vmem:[%s12912_s10 + $0x584] ss:$8 sps:$4 sm:$0xff]   ;;  %v10974_v50 = vld [vmem:[%s12912_s10 + $0x480] ss:$8 sps:$4 sm:$0xff]  }
 0x1a8   : > { %5914 = vmatprep.subr.bf16.mxu1 %v10895_v51  ;;  %v10977_v51 = vld [vmem:[%s12912_s10 + $0x580] ss:$8 sps:$4 sm:$0xff]  }
 0x1aa   : > { %5874 = vmatpush1.bf16.msra.mxu0 %v10890_v52  ;;  %v10982_v52 = vld [vmem:[%s12912_s10 + $0x494] ss:$8 sps:$4 sm:$0xff]  }
 0x1ab   : > { %5915 = vmatpush1.bf16.msra.mxu1 %v10893_v53  ;;  %5875 = vmatprep.subr.bf16.mxu0 %v10898_v54  ;;  %v10985_v53 = vld [vmem:[%s12912_s10 + $0x594] ss:$8 sps:$4 sm:$0xff]   ;;  %v10980_v54 = vld [vmem:[%s12912_s10 + $0x490] ss:$8 sps:$4 sm:$0xff]  }
 0x1ac   : > { %5916 = vmatprep.subr.bf16.mxu1 %v10901_v55  ;;  %v10983_v55 = vld [vmem:[%s12912_s10 + $0x590] ss:$8 sps:$4 sm:$0xff]  }
 0x1ae   : > { %5876 = vmatpush1.bf16.msra.mxu0 %v10896_v56  ;;  %v10988_v56 = vld [vmem:[%s12912_s10 + $0x4a4] ss:$8 sps:$4 sm:$0xff]  }
 0x1af   : > { %5917 = vmatpush1.bf16.msra.mxu1 %v10899_v57  ;;  %5877 = vmatprep.subr.bf16.mxu0 %v10904_v58  ;;  %v10991_v57 = vld [vmem:[%s12912_s10 + $0x5a4] ss:$8 sps:$4 sm:$0xff]   ;;  %v10986_v58 = vld [vmem:[%s12912_s10 + $0x4a0] ss:$8 sps:$4 sm:$0xff]  }
 0x1b0   : > { %5918 = vmatprep.subr.bf16.mxu1 %v10907_v59  ;;  %v10989_v59 = vld [vmem:[%s12912_s10 + $0x5a0] ss:$8 sps:$4 sm:$0xff]  }
 0x1b2   : > { %5878 = vmatpush1.bf16.msra.mxu0 %v10902_v60  ;;  %v10994_v60 = vld [vmem:[%s12912_s10 + $0x4b4] ss:$8 sps:$4 sm:$0xff]  }
 0x1b3   : > { %5919 = vmatpush1.bf16.msra.mxu1 %v10905_v61  ;;  %5879 = vmatprep.subr.bf16.mxu0 %v10910_v62  ;;  %v10997_v61 = vld [vmem:[%s12912_s10 + $0x5b4] ss:$8 sps:$4 sm:$0xff]   ;;  %v10992_v62 = vld [vmem:[%s12912_s10 + $0x4b0] ss:$8 sps:$4 sm:$0xff]  }
 0x1b4   : > { %5920 = vmatprep.subr.bf16.mxu1 %v10913_v63  ;;  %v10995_v63 = vld [vmem:[%s12912_s10 + $0x5b0] ss:$8 sps:$4 sm:$0xff]  }
 0x1b6   : > { %5880 = vmatpush1.bf16.msra.mxu0 %v10908_v0  ;;  %v11000_v0 = vld [vmem:[%s12912_s10 + $0x4c4] ss:$8 sps:$4 sm:$0xff]  }
 0x1b7   : > { %5921 = vmatpush1.bf16.msra.mxu1 %v10911_v1  ;;  %5881 = vmatprep.subr.bf16.mxu0 %v10916_v2  ;;  %v11003_v1 = vld [vmem:[%s12912_s10 + $0x5c4] ss:$8 sps:$4 sm:$0xff]   ;;  %v10998_v2 = vld [vmem:[%s12912_s10 + $0x4c0] ss:$8 sps:$4 sm:$0xff]  }
 0x1b8   : > { %5922 = vmatprep.subr.bf16.mxu1 %v10919_v3  ;;  %v11001_v3 = vld [vmem:[%s12912_s10 + $0x5c0] ss:$8 sps:$4 sm:$0xff]  }
 0x1ba   : > { %5882 = vmatpush1.bf16.msra.mxu0 %v10914_v6  ;;  %v11006_v6 = vld [vmem:[%s12912_s10 + $0x4d4] ss:$8 sps:$4 sm:$0xff]  }
 0x1bb   : > { %5923 = vmatpush1.bf16.msra.mxu1 %v10917_v7  ;;  %5883 = vmatprep.subr.bf16.mxu0 %v10922_v8  ;;  %v11009_v7 = vld [vmem:[%s12912_s10 + $0x5d4] ss:$8 sps:$4 sm:$0xff]   ;;  %v11004_v8 = vld [vmem:[%s12912_s10 + $0x4d0] ss:$8 sps:$4 sm:$0xff]  }
 0x1bc   : > { %5924 = vmatprep.subr.bf16.mxu1 %v10925_v9  ;;  %v11007_v9 = vld [vmem:[%s12912_s10 + $0x5d0] ss:$8 sps:$4 sm:$0xff]  }
 0x1be   : > { %5884 = vmatpush1.bf16.msra.mxu0 %v10920_v10  ;;  %v11012_v10 = vld [vmem:[%s12912_s10 + $0x4e4] ss:$8 sps:$4 sm:$0xff]  }
 0x1bf   : > { %5925 = vmatpush1.bf16.msra.mxu1 %v10923_v11  ;;  %6340 = vmatprep.subr.bf16.mxu0 %v10928_v12  ;;  %v11015_v11 = vld [vmem:[%s12912_s10 + $0x5e4] ss:$8 sps:$4 sm:$0xff]   ;;  %v11010_v12 = vld [vmem:[%s12912_s10 + $0x4e0] ss:$8 sps:$4 sm:$0xff]  }
 0x1c0   : > { %6381 = vmatprep.subr.bf16.mxu1 %v10931_v13  ;;  %v11013_v13 = vld [vmem:[%s12912_s10 + $0x5e0] ss:$8 sps:$4 sm:$0xff]  }
 0x1c1   : > { %5886 = vmatmul.mubr.bf16.vlgmr.msra.gmra.mrb[4].mxu0 %v12991_v4  ;;  %v10938_v4 = vld [vmem:[%s12912_s10 + $0x420] ss:$8 sps:$4 sm:$0xff]  }
 0x1c2   : > { %5927 = vmatmul.mubr.bf16.vlgmr.msra.gmra.mrb[4].mxu1 %v12993_v5  ;;  %6341 = vmatpush1.bf16.msra.mxu0 %v10926_v14  ;;  %v10941_v5 = vld [vmem:[%s12912_s10 + $0x520] ss:$8 sps:$4 sm:$0xff]   ;;  %v11018_v14 = vld [vmem:[%s12912_s10 + $0x4f4] ss:$8 sps:$4 sm:$0xff]  }
 0x1c3   : > { %6382 = vmatpush1.bf16.msra.mxu1 %v10929_v15  ;;  %6342 = vmatprep.subr.bf16.mxu0 %v10934_v16  ;;  %v11021_v15 = vld [vmem:[%s12912_s10 + $0x5f4] ss:$8 sps:$4 sm:$0xff]   ;;  %v11016_v16 = vld [vmem:[%s12912_s10 + $0x4f0] ss:$8 sps:$4 sm:$0xff]  }
 0x1c4   : > { %6383 = vmatprep.subr.bf16.mxu1 %v10937_v17  ;;  %6372 = vmatprep.mubr.bf16.mxu0 %v6013_v23  ;;  %v11019_v17 = vld [vmem:[%s12912_s10 + $0x5f0] ss:$8 sps:$4 sm:$0xff]   ;;  %v13152_v23 = vcombine.low %v13078_v20, %v13078_v20  ;;  %v11029_v20 = vld [vmem:[%s12912_s10 + $0x700] ss:$8 sps:$4 sm:$0xff]  }
 0x1c5   : > { %6413 = vmatprep.mubr.bf16.mxu1 %v6015_v25  ;;  %v11031_v25 = vld [vmem:[%s12912_s10 + $0x704] ss:$8 sps:$4 sm:$0xff]  }
 0x1c6   : > { %6343 = vmatpush1.bf16.msra.mxu0 %v10932_v22  ;;  %v13148_v22 = vcombine.low %v13071_v18, %v13071_v18  ;;  %v6502_v18 = vshrl.u32 %v13082_v21, 16  ;;  %v11032_v21 = vld [vmem:[%s12912_s10 + $0x610] ss:$8 sps:$4 sm:$0xff]  }
 0x1c7   : > { %6384 = vmatpush1.bf16.msra.mxu1 %v10935_v24  ;;  %6344 = vmatprep.subr.bf16.mxu0 %v10940_v26  ;;  %v11028_v24 = vld [vmem:[%s12912_s10 + $0x604] ss:$8 sps:$4 sm:$0xff]   ;;  %v11026_v26 = vld [vmem:[%s12912_s10 + $0x600] ss:$8 sps:$4 sm:$0xff]  }
 0x1c8   : > { %6385 = vmatprep.subr.bf16.mxu1 %v10943_v27  ;;  %v6494_v27 = vshrl.u32 %v13075_v19, 16  ;;  %v6504_v19 = vrot.slane %v6502_v18, 1  ;;  %v11118_v18 = vld [vmem:[%s12912_s10 + $0x6f4] ss:$8 sps:$4 sm:$0xff]  }
 0x1ca   : > { %6345 = vmatpush1.bf16.msra.mxu0 %v10938_v4  ;;  %v6012_v4 = vrot.slane %v13148_v22, 1 }
 0x1cb   : > { %6386 = vmatpush1.bf16.msra.mxu1 %v10941_v5  ;;  %6346 = vmatprep.subr.bf16.mxu0 %v10946_v28  ;;  %v6014_v5 = vrot.slane %v13152_v23, 1  ;;  %v11034_v28 = vld [vmem:[%s12912_s10 + $0x614] ss:$8 sps:$4 sm:$0xff]  }
 0x1cc   : > { %6387 = vmatprep.subr.bf16.mxu1 %v10949_v29  ;;  %v11037_v29 = vld [vmem:[%s12912_s10 + $0x714] ss:$8 sps:$4 sm:$0xff]  }
 0x1ce   : > { %6347 = vmatpush1.bf16.msra.mxu0 %v10944_v30  ;;  %v6496_v30 = vrot.slane %v6494_v27, 1  ;;  %v11113_v27 = vld [vmem:[%s12912_s10 + $0x7e0] ss:$8 sps:$4 sm:$0xff]  }
 0x1cf   : > { %6388 = vmatpush1.bf16.msra.mxu1 %v10947_v31  ;;  %6348 = vmatprep.subr.bf16.mxu0 %v10952_v32  ;;  %v11035_v31 = vld [vmem:[%s12912_s10 + $0x710] ss:$8 sps:$4 sm:$0xff]   ;;  %v11040_v32 = vld [vmem:[%s12912_s10 + $0x624] ss:$8 sps:$4 sm:$0xff]  }
 0x1d0   : > { %6389 = vmatprep.subr.bf16.mxu1 %v10955_v33  ;;  %v11043_v33 = vld [vmem:[%s12912_s10 + $0x724] ss:$8 sps:$4 sm:$0xff]  }
 0x1d2   : > { %6349 = vmatpush1.bf16.msra.mxu0 %v10950_v34  ;;  %v11038_v34 = vld [vmem:[%s12912_s10 + $0x620] ss:$8 sps:$4 sm:$0xff]  }
 0x1d3   : > { %6390 = vmatpush1.bf16.msra.mxu1 %v10953_v35  ;;  %6350 = vmatprep.subr.bf16.mxu0 %v10958_v36  ;;  %v11041_v35 = vld [vmem:[%s12912_s10 + $0x720] ss:$8 sps:$4 sm:$0xff]   ;;  %v11046_v36 = vld [vmem:[%s12912_s10 + $0x634] ss:$8 sps:$4 sm:$0xff]  }
 0x1d4   : > { %6391 = vmatprep.subr.bf16.mxu1 %v10961_v37  ;;  %v11049_v37 = vld [vmem:[%s12912_s10 + $0x734] ss:$8 sps:$4 sm:$0xff]  }
 0x1d6   : > { %6351 = vmatpush1.bf16.msra.mxu0 %v10956_v38  ;;  %v11044_v38 = vld [vmem:[%s12912_s10 + $0x630] ss:$8 sps:$4 sm:$0xff]  }
 0x1d7   : > { %6392 = vmatpush1.bf16.msra.mxu1 %v10959_v39  ;;  %6352 = vmatprep.subr.bf16.mxu0 %v10964_v40  ;;  %v11047_v39 = vld [vmem:[%s12912_s10 + $0x730] ss:$8 sps:$4 sm:$0xff]   ;;  %v11052_v40 = vld [vmem:[%s12912_s10 + $0x644] ss:$8 sps:$4 sm:$0xff]  }
 0x1d8   : > { %6393 = vmatprep.subr.bf16.mxu1 %v10967_v41  ;;  %v11055_v41 = vld [vmem:[%s12912_s10 + $0x744] ss:$8 sps:$4 sm:$0xff]  }
 0x1da   : > { %6353 = vmatpush1.bf16.msra.mxu0 %v10962_v42  ;;  %v11050_v42 = vld [vmem:[%s12912_s10 + $0x640] ss:$8 sps:$4 sm:$0xff]  }
 0x1db   : > { %6394 = vmatpush1.bf16.msra.mxu1 %v10965_v43  ;;  %6354 = vmatprep.subr.bf16.mxu0 %v10970_v44  ;;  %v11053_v43 = vld [vmem:[%s12912_s10 + $0x740] ss:$8 sps:$4 sm:$0xff]   ;;  %v11058_v44 = vld [vmem:[%s12912_s10 + $0x654] ss:$8 sps:$4 sm:$0xff]  }
 0x1dc   : > { %6395 = vmatprep.subr.bf16.mxu1 %v10973_v45  ;;  %v11061_v45 = vld [vmem:[%s12912_s10 + $0x754] ss:$8 sps:$4 sm:$0xff]  }
 0x1de   : > { %6355 = vmatpush1.bf16.msra.mxu0 %v10968_v46  ;;  %v11056_v46 = vld [vmem:[%s12912_s10 + $0x650] ss:$8 sps:$4 sm:$0xff]  }
 0x1df   : > { %6396 = vmatpush1.bf16.msra.mxu1 %v10971_v47  ;;  %6356 = vmatprep.subr.bf16.mxu0 %v10976_v48  ;;  %v11059_v47 = vld [vmem:[%s12912_s10 + $0x750] ss:$8 sps:$4 sm:$0xff]   ;;  %v11064_v48 = vld [vmem:[%s12912_s10 + $0x664] ss:$8 sps:$4 sm:$0xff]  }
 0x1e0   : > { %6397 = vmatprep.subr.bf16.mxu1 %v10979_v49  ;;  %v11067_v49 = vld [vmem:[%s12912_s10 + $0x764] ss:$8 sps:$4 sm:$0xff]  }
 0x1e2   : > { %6357 = vmatpush1.bf16.msra.mxu0 %v10974_v50  ;;  %v11062_v50 = vld [vmem:[%s12912_s10 + $0x660] ss:$8 sps:$4 sm:$0xff]  }
 0x1e3   : > { %6398 = vmatpush1.bf16.msra.mxu1 %v10977_v51  ;;  %6358 = vmatprep.subr.bf16.mxu0 %v10982_v52  ;;  %v11065_v51 = vld [vmem:[%s12912_s10 + $0x760] ss:$8 sps:$4 sm:$0xff]   ;;  %v11070_v52 = vld [vmem:[%s12912_s10 + $0x674] ss:$8 sps:$4 sm:$0xff]  }
 0x1e4   : > { %6399 = vmatprep.subr.bf16.mxu1 %v10985_v53  ;;  %v11073_v53 = vld [vmem:[%s12912_s10 + $0x774] ss:$8 sps:$4 sm:$0xff]  }
 0x1e6   : > { %6359 = vmatpush1.bf16.msra.mxu0 %v10980_v54  ;;  %v11068_v54 = vld [vmem:[%s12912_s10 + $0x670] ss:$8 sps:$4 sm:$0xff]  }
 0x1e7   : > { %6400 = vmatpush1.bf16.msra.mxu1 %v10983_v55  ;;  %6360 = vmatprep.subr.bf16.mxu0 %v10988_v56  ;;  %v11071_v55 = vld [vmem:[%s12912_s10 + $0x770] ss:$8 sps:$4 sm:$0xff]   ;;  %v11076_v56 = vld [vmem:[%s12912_s10 + $0x684] ss:$8 sps:$4 sm:$0xff]  }
 0x1e8   : > { %6401 = vmatprep.subr.bf16.mxu1 %v10991_v57  ;;  %v11079_v57 = vld [vmem:[%s12912_s10 + $0x784] ss:$8 sps:$4 sm:$0xff]  }
 0x1ea   : > { %6361 = vmatpush1.bf16.msra.mxu0 %v10986_v58  ;;  %v11074_v58 = vld [vmem:[%s12912_s10 + $0x680] ss:$8 sps:$4 sm:$0xff]  }
 0x1eb   : > { %6402 = vmatpush1.bf16.msra.mxu1 %v10989_v59  ;;  %6362 = vmatprep.subr.bf16.mxu0 %v10994_v60  ;;  %v11077_v59 = vld [vmem:[%s12912_s10 + $0x780] ss:$8 sps:$4 sm:$0xff]   ;;  %v11082_v60 = vld [vmem:[%s12912_s10 + $0x694] ss:$8 sps:$4 sm:$0xff]  }
 0x1ec   : > { %6403 = vmatprep.subr.bf16.mxu1 %v10997_v61  ;;  %v11085_v61 = vld [vmem:[%s12912_s10 + $0x794] ss:$8 sps:$4 sm:$0xff]  }
 0x1ee   : > { %6363 = vmatpush1.bf16.msra.mxu0 %v10992_v62  ;;  %v11080_v62 = vld [vmem:[%s12912_s10 + $0x690] ss:$8 sps:$4 sm:$0xff]  }
 0x1ef   : > { %6404 = vmatpush1.bf16.msra.mxu1 %v10995_v63  ;;  %6364 = vmatprep.subr.bf16.mxu0 %v11000_v0  ;;  %v11083_v63 = vld [vmem:[%s12912_s10 + $0x790] ss:$8 sps:$4 sm:$0xff]   ;;  %v11088_v0 = vld [vmem:[%s12912_s10 + $0x6a4] ss:$8 sps:$4 sm:$0xff]  }
 0x1f0   : > { %6405 = vmatprep.subr.bf16.mxu1 %v11003_v1  ;;  %v11091_v1 = vld [vmem:[%s12912_s10 + $0x7a4] ss:$8 sps:$4 sm:$0xff]  }
 0x1f2   : > { %6365 = vmatpush1.bf16.msra.mxu0 %v10998_v2  ;;  %v11086_v2 = vld [vmem:[%s12912_s10 + $0x6a0] ss:$8 sps:$4 sm:$0xff]  }
 0x1f3   : > { %6406 = vmatpush1.bf16.msra.mxu1 %v11001_v3  ;;  %6366 = vmatprep.subr.bf16.mxu0 %v11006_v6  ;;  %v11089_v3 = vld [vmem:[%s12912_s10 + $0x7a0] ss:$8 sps:$4 sm:$0xff]   ;;  %v11094_v6 = vld [vmem:[%s12912_s10 + $0x6b4] ss:$8 sps:$4 sm:$0xff]  }
 0x1f4   : > { %6407 = vmatprep.subr.bf16.mxu1 %v11009_v7  ;;  %v11097_v7 = vld [vmem:[%s12912_s10 + $0x7b4] ss:$8 sps:$4 sm:$0xff]  }
 0x1f6   : > { %6367 = vmatpush1.bf16.msra.mxu0 %v11004_v8  ;;  %v11092_v8 = vld [vmem:[%s12912_s10 + $0x6b0] ss:$8 sps:$4 sm:$0xff]  }
 0x1f7   : > { %6408 = vmatpush1.bf16.msra.mxu1 %v11007_v9  ;;  %6368 = vmatprep.subr.bf16.mxu0 %v11012_v10  ;;  %v11095_v9 = vld [vmem:[%s12912_s10 + $0x7b0] ss:$8 sps:$4 sm:$0xff]   ;;  %v11100_v10 = vld [vmem:[%s12912_s10 + $0x6c4] ss:$8 sps:$4 sm:$0xff]  }
 0x1f8   : > { %6409 = vmatprep.subr.bf16.mxu1 %v11015_v11  ;;  %v11103_v11 = vld [vmem:[%s12912_s10 + $0x7c4] ss:$8 sps:$4 sm:$0xff]  }
 0x1fa   : > { %6369 = vmatpush1.bf16.msra.mxu0 %v11010_v12  ;;  %v11098_v12 = vld [vmem:[%s12912_s10 + $0x6c0] ss:$8 sps:$4 sm:$0xff]  }
 0x1fb   : > { %6410 = vmatpush1.bf16.msra.mxu1 %v11013_v13  ;;  %6370 = vmatprep.subr.bf16.mxu0 %v11018_v14  ;;  %v11101_v13 = vld [vmem:[%s12912_s10 + $0x7c0] ss:$8 sps:$4 sm:$0xff]   ;;  %v11106_v14 = vld [vmem:[%s12912_s10 + $0x6d4] ss:$8 sps:$4 sm:$0xff]  }
 0x1fc   : > { %6411 = vmatprep.subr.bf16.mxu1 %v11021_v15  ;;  %v11109_v15 = vld [vmem:[%s12912_s10 + $0x7d4] ss:$8 sps:$4 sm:$0xff]  }
 0x1fe   : > { %6371 = vmatpush1.bf16.msra.mxu0 %v11016_v16  ;;  %v11104_v16 = vld [vmem:[%s12912_s10 + $0x6d0] ss:$8 sps:$4 sm:$0xff]  }
 0x1ff   : > { %6412 = vmatpush1.bf16.msra.mxu1 %v11019_v17  ;;  %6829 = vmatprep.subr.bf16.mxu0 %v11028_v24  ;;  %v11107_v17 = vld [vmem:[%s12912_s10 + $0x7d0] ss:$8 sps:$4 sm:$0xff]   ;;  %v11112_v24 = vld [vmem:[%s12912_s10 + $0x6e4] ss:$8 sps:$4 sm:$0xff]  }
 0x200   : > { %6870 = vmatprep.subr.bf16.mxu1 %v11031_v25  ;;  %v11115_v25 = vld [vmem:[%s12912_s10 + $0x7e4] ss:$8 sps:$4 sm:$0xff]  }
 0x201   : > { %6373 = vmatmul.mubr.bf16.vlgmr.msra.gmra.mrb[8].mxu0 %v6012_v4  ;;  %v11121_v4 = vld [vmem:[%s12912_s10 + $0x7f4] ss:$8 sps:$4 sm:$0xff]  }
 0x202   : > { %6414 = vmatmul.mubr.bf16.vlgmr.msra.gmra.mrb[8].mxu1 %v6014_v5  ;;  %6830 = vmatpush1.bf16.msra.mxu0 %v11026_v26  ;;  %v11110_v26 = vld [vmem:[%s12912_s10 + $0x6e0] ss:$8 sps:$4 sm:$0xff]  }
 0x203   : > { %6871 = vmatpush1.bf16.msra.mxu1 %v11029_v20  ;;  %6831 = vmatprep.subr.bf16.mxu0 %v11034_v28  ;;  %v13221_v5 = vld [vmem:[%s12966_s14] sm:$0x44]  ;;  %v6490_v20 = vshrl.u32 %v13148_v22, 16  ;;  %v6498_v28 = vshrl.u32 %v13152_v23, 16 }
 0x204   : > { %6872 = vmatprep.subr.bf16.mxu1 %v11037_v29  ;;  %6861 = vmatprep.mubr.bf16.mxu0 %v6496_v30  ;;  %v13226_v29 = vld [vmem:[%s12966_s14 + $0x8] sm:$0x44]  ;;  %v11116_v30 = vld [vmem:[%s12912_s10 + $0x6f0] ss:$8 sps:$4 sm:$0xff]  }
 0x205   : > { %6902 = vmatprep.mubr.bf16.mxu1 %v6504_v19  ;;  %v11119_v19 = vld [vmem:[%s12912_s10 + $0x7f0] ss:$8 sps:$4 sm:$0xff]   ;;  %v13238_v22 = vcombine.high %v13226_v29, %v13226_v29  ;;  %v6492_v23 = vrot.slane %v6490_v20, 1  ;;  %v11182_v20 = vld [vmem:[%s12912_s10 + $0x8a0] ss:$8 sps:$4 sm:$0xff]  }
 0x206   : > { %6832 = vmatpush1.bf16.msra.mxu0 %v11032_v21  ;;  %v11124_v21 = vld [vmem:[%s12912_s10 + $0x804] ss:$8 sps:$4 sm:$0xff]  }
 0x207   : > { %6873 = vmatpush1.bf16.msra.mxu1 %v11035_v31  ;;  %6833 = vmatprep.subr.bf16.mxu0 %v11040_v32  ;;  %v11127_v31 = vld [vmem:[%s12912_s10 + $0x904] ss:$8 sps:$4 sm:$0xff]   ;;  %v13234_v32 = vcombine.high %v13221_v5, %v13221_v5 }
 0x208   : > { %6874 = vmatprep.subr.bf16.mxu1 %v11043_v33  ;;  %v6500_v33 = vrot.slane %v6498_v28, 1  ;;  %v11185_v28 = vld [vmem:[%s12912_s10 + $0x9a0] ss:$8 sps:$4 sm:$0xff]  }
 0x20a   : > { %6834 = vmatpush1.bf16.msra.mxu0 %v11038_v34  ;;  %v11122_v34 = vld [vmem:[%s12912_s10 + $0x800] ss:$8 sps:$4 sm:$0xff]  }
 0x20b   : > { %6875 = vmatpush1.bf16.msra.mxu1 %v11041_v35  ;;  %6835 = vmatprep.subr.bf16.mxu0 %v11046_v36  ;;  %v11125_v35 = vld [vmem:[%s12912_s10 + $0x900] ss:$8 sps:$4 sm:$0xff]   ;;  %v11130_v36 = vld [vmem:[%s12912_s10 + $0x814] ss:$8 sps:$4 sm:$0xff]  }
 0x20c   : > { %6876 = vmatprep.subr.bf16.mxu1 %v11049_v37  ;;  %v11133_v37 = vld [vmem:[%s12912_s10 + $0x914] ss:$8 sps:$4 sm:$0xff]  }
 0x20e   : > { %6836 = vmatpush1.bf16.msra.mxu0 %v11044_v38  ;;  %v6991_v38 = vrot.slane %v13234_v32, 2 }
 0x20f   : > { %6877 = vmatpush1.bf16.msra.mxu1 %v11047_v39  ;;  %6837 = vmatprep.subr.bf16.mxu0 %v11052_v40  ;;  %v6993_v39 = vrot.slane %v13238_v22, 2  ;;  %v11128_v40 = vld [vmem:[%s12912_s10 + $0x810] ss:$8 sps:$4 sm:$0xff]  }
 0x210   : > { %6878 = vmatprep.subr.bf16.mxu1 %v11055_v41  ;;  %v11131_v41 = vld [vmem:[%s12912_s10 + $0x910] ss:$8 sps:$4 sm:$0xff]  }
 0x212   : > { %6838 = vmatpush1.bf16.msra.mxu0 %v11050_v42  ;;  %v11136_v42 = vld [vmem:[%s12912_s10 + $0x824] ss:$8 sps:$4 sm:$0xff]  }
 0x213   : > { %6879 = vmatpush1.bf16.msra.mxu1 %v11053_v43  ;;  %6839 = vmatprep.subr.bf16.mxu0 %v11058_v44  ;;  %v11139_v43 = vld [vmem:[%s12912_s10 + $0x924] ss:$8 sps:$4 sm:$0xff]   ;;  %v11134_v44 = vld [vmem:[%s12912_s10 + $0x820] ss:$8 sps:$4 sm:$0xff]  }
 0x214   : > { %6880 = vmatprep.subr.bf16.mxu1 %v11061_v45  ;;  %v11137_v45 = vld [vmem:[%s12912_s10 + $0x920] ss:$8 sps:$4 sm:$0xff]  }
 0x216   : > { %6840 = vmatpush1.bf16.msra.mxu0 %v11056_v46  ;;  %v11142_v46 = vld [vmem:[%s12912_s10 + $0x834] ss:$8 sps:$4 sm:$0xff]  }
 0x217   : > { %6881 = vmatpush1.bf16.msra.mxu1 %v11059_v47  ;;  %6841 = vmatprep.subr.bf16.mxu0 %v11064_v48  ;;  %v11145_v47 = vld [vmem:[%s12912_s10 + $0x934] ss:$8 sps:$4 sm:$0xff]   ;;  %v11140_v48 = vld [vmem:[%s12912_s10 + $0x830] ss:$8 sps:$4 sm:$0xff]  }
 0x218   : > { %6882 = vmatprep.subr.bf16.mxu1 %v11067_v49  ;;  %v11143_v49 = vld [vmem:[%s12912_s10 + $0x930] ss:$8 sps:$4 sm:$0xff]  }
 0x21a   : > { %6842 = vmatpush1.bf16.msra.mxu0 %v11062_v50  ;;  %v11148_v50 = vld [vmem:[%s12912_s10 + $0x844] ss:$8 sps:$4 sm:$0xff]  }
 0x21b   : > { %6883 = vmatpush1.bf16.msra.mxu1 %v11065_v51  ;;  %6843 = vmatprep.subr.bf16.mxu0 %v11070_v52  ;;  %v11151_v51 = vld [vmem:[%s12912_s10 + $0x944] ss:$8 sps:$4 sm:$0xff]   ;;  %v11146_v52 = vld [vmem:[%s12912_s10 + $0x840] ss:$8 sps:$4 sm:$0xff]  }
 0x21c   : > { %6884 = vmatprep.subr.bf16.mxu1 %v11073_v53  ;;  %v11149_v53 = vld [vmem:[%s12912_s10 + $0x940] ss:$8 sps:$4 sm:$0xff]  }
 0x21e   : > { %6844 = vmatpush1.bf16.msra.mxu0 %v11068_v54  ;;  %v11154_v54 = vld [vmem:[%s12912_s10 + $0x854] ss:$8 sps:$4 sm:$0xff]  }
 0x21f   : > { %6885 = vmatpush1.bf16.msra.mxu1 %v11071_v55  ;;  %6845 = vmatprep.subr.bf16.mxu0 %v11076_v56  ;;  %v11157_v55 = vld [vmem:[%s12912_s10 + $0x954] ss:$8 sps:$4 sm:$0xff]   ;;  %v11152_v56 = vld [vmem:[%s12912_s10 + $0x850] ss:$8 sps:$4 sm:$0xff]  }
 0x220   : > { %6886 = vmatprep.subr.bf16.mxu1 %v11079_v57  ;;  %v11155_v57 = vld [vmem:[%s12912_s10 + $0x950] ss:$8 sps:$4 sm:$0xff]  }
 0x222   : > { %6846 = vmatpush1.bf16.msra.mxu0 %v11074_v58  ;;  %v11160_v58 = vld [vmem:[%s12912_s10 + $0x864] ss:$8 sps:$4 sm:$0xff]  }
 0x223   : > { %6887 = vmatpush1.bf16.msra.mxu1 %v11077_v59  ;;  %6847 = vmatprep.subr.bf16.mxu0 %v11082_v60  ;;  %v11163_v59 = vld [vmem:[%s12912_s10 + $0x964] ss:$8 sps:$4 sm:$0xff]  }
 0x224   : > { %6888 = vmatprep.subr.bf16.mxu1 %v11085_v61 }
 0x226   : > { %6848 = vmatpush1.bf16.msra.mxu0 %v11080_v62  ;;  %v11158_v62 = vld [vmem:[%s12912_s10 + $0x860] ss:$8 sps:$4 sm:$0xff]  }
 0x227   : > { %6889 = vmatpush1.bf16.msra.mxu1 %v11083_v63  ;;  %6849 = vmatprep.subr.bf16.mxu0 %v11088_v0  ;;  %v11161_v63 = vld [vmem:[%s12912_s10 + $0x960] ss:$8 sps:$4 sm:$0xff]  }
 0x228   : > { %6890 = vmatprep.subr.bf16.mxu1 %v11091_v1 }
 0x22a   : > { %6850 = vmatpush1.bf16.msra.mxu0 %v11086_v2 }
 0x22b   : > { %6891 = vmatpush1.bf16.msra.mxu1 %v11089_v3  ;;  %6851 = vmatprep.subr.bf16.mxu0 %v11094_v6 }
 0x22c   : > { %6892 = vmatprep.subr.bf16.mxu1 %v11097_v7 }
 0x22e   : > { %6852 = vmatpush1.bf16.msra.mxu0 %v11092_v8 }
 0x22f   : > { %6893 = vmatpush1.bf16.msra.mxu1 %v11095_v9  ;;  %6853 = vmatprep.subr.bf16.mxu0 %v11100_v10  ;;  %v11166_v10 = vld [vmem:[%s12912_s10 + $0x874] ss:$8 sps:$4 sm:$0xff]  }
 0x230   : > { %6894 = vmatprep.subr.bf16.mxu1 %v11103_v11  ;;  %v11169_v11 = vld [vmem:[%s12912_s10 + $0x974] ss:$8 sps:$4 sm:$0xff]  }
 0x232   : > { %6854 = vmatpush1.bf16.msra.mxu0 %v11098_v12  ;;  %v11164_v12 = vld [vmem:[%s12912_s10 + $0x870] ss:$8 sps:$4 sm:$0xff]  }
 0x233   : > { %6895 = vmatpush1.bf16.msra.mxu1 %v11101_v13  ;;  %6855 = vmatprep.subr.bf16.mxu0 %v11106_v14  ;;  %v11167_v13 = vld [vmem:[%s12912_s10 + $0x970] ss:$8 sps:$4 sm:$0xff]   ;;  %v11172_v14 = vld [vmem:[%s12912_s10 + $0x884] ss:$8 sps:$4 sm:$0xff]  }
 0x234   : > { %6896 = vmatprep.subr.bf16.mxu1 %v11109_v15  ;;  %v11175_v15 = vld [vmem:[%s12912_s10 + $0x984] ss:$8 sps:$4 sm:$0xff]  }
 0x236   : > { %6856 = vmatpush1.bf16.msra.mxu0 %v11104_v16  ;;  %v11170_v16 = vld [vmem:[%s12912_s10 + $0x880] ss:$8 sps:$4 sm:$0xff]  }
 0x237   : > { %6897 = vmatpush1.bf16.msra.mxu1 %v11107_v17  ;;  %6857 = vmatprep.subr.bf16.mxu0 %v11112_v24  ;;  %v11173_v17 = vld [vmem:[%s12912_s10 + $0x980] ss:$8 sps:$4 sm:$0xff]   ;;  %v11178_v24 = vld [vmem:[%s12912_s10 + $0x894] ss:$8 sps:$4 sm:$0xff]  }
 0x238   : > { %6898 = vmatprep.subr.bf16.mxu1 %v11115_v25  ;;  %v11181_v25 = vld [vmem:[%s12912_s10 + $0x994] ss:$8 sps:$4 sm:$0xff]  }
 0x23a   : > { %6858 = vmatpush1.bf16.msra.mxu0 %v11110_v26  ;;  %v11176_v26 = vld [vmem:[%s12912_s10 + $0x890] ss:$8 sps:$4 sm:$0xff]  }
 0x23b   : > { %6899 = vmatpush1.bf16.msra.mxu1 %v11113_v27  ;;  %6859 = vmatprep.subr.bf16.mxu0 %v11118_v18  ;;  %v11179_v27 = vld [vmem:[%s12912_s10 + $0x990] ss:$8 sps:$4 sm:$0xff]   ;;  %v11184_v18 = vld [vmem:[%s12912_s10 + $0x8a4] ss:$8 sps:$4 sm:$0xff]  }
 0x23c   : > { %6900 = vmatprep.subr.bf16.mxu1 %v11121_v4  ;;  %v11187_v4 = vld [vmem:[%s12912_s10 + $0x9a4] ss:$8 sps:$4 sm:$0xff]  }
 0x23e   : > { %6860 = vmatpush1.bf16.msra.mxu0 %v11116_v30  ;;  %v11190_v30 = vld [vmem:[%s12912_s10 + $0x8b4] ss:$8 sps:$4 sm:$0xff]  }
 0x23f   : > { %6901 = vmatpush1.bf16.msra.mxu1 %v11119_v19  ;;  %7318 = vmatprep.subr.bf16.mxu0 %v11124_v21  ;;  %v11193_v19 = vld [vmem:[%s12912_s10 + $0x9b4] ss:$8 sps:$4 sm:$0xff]   ;;  %v11188_v21 = vld [vmem:[%s12912_s10 + $0x8b0] ss:$8 sps:$4 sm:$0xff]  }
 0x240   : > { %7359 = vmatprep.subr.bf16.mxu1 %v11127_v31  ;;  %v11191_v31 = vld [vmem:[%s12912_s10 + $0x9b0] ss:$8 sps:$4 sm:$0xff]  }
 0x241   : > { %6862 = vmatmul.mubr.bf16.vlgmr.msra.gmra.mrb[12].mxu0 %v6492_v23  ;;  %v11196_v23 = vld [vmem:[%s12912_s10 + $0x8c4] ss:$8 sps:$4 sm:$0xff]  }
 0x242   : > { %6903 = vmatmul.mubr.bf16.vlgmr.msra.gmra.mrb[12].mxu1 %v6500_v33  ;;  %7319 = vmatpush1.bf16.msra.mxu0 %v11122_v34  ;;  %v11199_v33 = vld [vmem:[%s12912_s10 + $0x9c4] ss:$8 sps:$4 sm:$0xff]   ;;  %v11194_v34 = vld [vmem:[%s12912_s10 + $0x8c0] ss:$8 sps:$4 sm:$0xff]  }
 0x243   : > { %7360 = vmatpush1.bf16.msra.mxu1 %v11125_v35  ;;  %7320 = vmatprep.subr.bf16.mxu0 %v11130_v36  ;;  %v11197_v35 = vld [vmem:[%s12912_s10 + $0x9c0] ss:$8 sps:$4 sm:$0xff]   ;;  %v11202_v36 = vld [vmem:[%s12912_s10 + $0x8d4] ss:$8 sps:$4 sm:$0xff]  }
 0x244   : > { %7361 = vmatprep.subr.bf16.mxu1 %v11133_v37  ;;  %7350 = vmatprep.mubr.bf16.mxu0 %v6991_v38  ;;  %v11205_v37 = vld [vmem:[%s12912_s10 + $0x9d4] ss:$8 sps:$4 sm:$0xff]   ;;  %v11200_v38 = vld [vmem:[%s12912_s10 + $0x8d0] ss:$8 sps:$4 sm:$0xff]  }
 0x245   : > { %7391 = vmatprep.mubr.bf16.mxu1 %v6993_v39  ;;  %v11203_v39 = vld [vmem:[%s12912_s10 + $0x9d0] ss:$8 sps:$4 sm:$0xff]  }
 0x246   : > { %7321 = vmatpush1.bf16.msra.mxu0 %v11128_v40  ;;  %v11208_v40 = vld [vmem:[%s12912_s10 + $0x8e4] ss:$8 sps:$4 sm:$0xff]  }
 0x247   : > { %7362 = vmatpush1.bf16.msra.mxu1 %v11131_v41  ;;  %7322 = vmatprep.subr.bf16.mxu0 %v11136_v42  ;;  %v11211_v41 = vld [vmem:[%s12912_s10 + $0x9e4] ss:$8 sps:$4 sm:$0xff]   ;;  %v11206_v42 = vld [vmem:[%s12912_s10 + $0x8e0] ss:$8 sps:$4 sm:$0xff]  }
 0x248   : > { %7363 = vmatprep.subr.bf16.mxu1 %v11139_v43  ;;  %v11209_v43 = vld [vmem:[%s12912_s10 + $0x9e0] ss:$8 sps:$4 sm:$0xff]  }
 0x24a   : > { %7323 = vmatpush1.bf16.msra.mxu0 %v11134_v44  ;;  %v11214_v44 = vld [vmem:[%s12912_s10 + $0x8f4] ss:$8 sps:$4 sm:$0xff]  }
 0x24b   : > { %7364 = vmatpush1.bf16.msra.mxu1 %v11137_v45  ;;  %7324 = vmatprep.subr.bf16.mxu0 %v11142_v46  ;;  %v11217_v45 = vld [vmem:[%s12912_s10 + $0x9f4] ss:$8 sps:$4 sm:$0xff]   ;;  %v13308_v46 = vcombine.low %v13221_v5, %v13221_v5  ;;  %v7480_v5 = vshrl.u32 %v13238_v22, 16  ;;  %v11231_v22 = vld [vmem:[%s12912_s10 + $0xb10] ss:$8 sps:$4 sm:$0xff]  }
 0x24c   : > { %7365 = vmatprep.subr.bf16.mxu1 %v11145_v47  ;;  %v13312_v47 = vcombine.low %v13226_v29, %v13226_v29 }
 0x24d   : > { %v6990_v29 = vrot.slane %v13308_v46, 2 }
 0x24e   : > { %7325 = vmatpush1.bf16.msra.mxu0 %v11140_v48  ;;  %v11212_v48 = vld [vmem:[%s12912_s10 + $0x8f0] ss:$8 sps:$4 sm:$0xff]  }
 0x24f   : > { %7366 = vmatpush1.bf16.msra.mxu1 %v11143_v49  ;;  %7326 = vmatprep.subr.bf16.mxu0 %v11148_v50  ;;  %v11215_v49 = vld [vmem:[%s12912_s10 + $0x9f0] ss:$8 sps:$4 sm:$0xff]   ;;  %v11224_v50 = vld [vmem:[%s12912_s10 + $0xa04] ss:$8 sps:$4 sm:$0xff]  }
 0x250   : > { %7367 = vmatprep.subr.bf16.mxu1 %v11151_v51  ;;  %v11227_v51 = vld [vmem:[%s12912_s10 + $0xb04] ss:$8 sps:$4 sm:$0xff]  }
 0x252   : > { %7327 = vmatpush1.bf16.msra.mxu0 %v11146_v52  ;;  %v11222_v52 = vld [vmem:[%s12912_s10 + $0xa00] ss:$8 sps:$4 sm:$0xff]  }
 0x253   : > { %7368 = vmatpush1.bf16.msra.mxu1 %v11149_v53  ;;  %7328 = vmatprep.subr.bf16.mxu0 %v11154_v54  ;;  %v11225_v53 = vld [vmem:[%s12912_s10 + $0xb00] ss:$8 sps:$4 sm:$0xff]   ;;  %v7472_v54 = vshrl.u32 %v13234_v32, 16  ;;  %v11228_v32 = vld [vmem:[%s12912_s10 + $0xa10] ss:$8 sps:$4 sm:$0xff]  }
 0x254   : > { %7369 = vmatprep.subr.bf16.mxu1 %v11157_v55  ;;  %v5481_v60 = vpop.f32.mrb[0].mxu0  ;;  %v6992_v55 = vrot.slane %v13312_v47, 2 }
 0x255   : > { %v5522_v61 = vpop.f32.mrb[0].mxu1  ;;  %v5483_v1 = vpop.f32.mrb[1].mxu0 }
 0x256   : > { %v13268_v0 = vadd.f32 %v5522_v61, %v5481_v60  ;;  %v5524_v2 = vpop.f32.mrb[1].mxu1  ;;  %v5485_v6 = vpop.f32.mrb[2].mxu0  ;;  %7329 = vmatpush1.bf16.msra.mxu0 %v11152_v56  ;;  %v11230_v56 = vld [vmem:[%s12912_s10 + $0xa14] ss:$8 sps:$4 sm:$0xff]   ;;  %v11236_v60 = vld [vmem:[%s12912_s10 + $0xa24] ss:$8 sps:$4 sm:$0xff]  }
 0x257   : > { %v13270_v3 = vadd.f32 %v5524_v2, %v5483_v1  ;;  %v5526_v7 = vpop.f32.mrb[2].mxu1  ;;  %7370 = vmatpush1.bf16.msra.mxu1 %v11155_v57  ;;  %v5486_v8 = vpop.f32.mrb[3].mxu0  ;;  %7330 = vmatprep.subr.bf16.mxu0 %v11160_v58  ;;  %v11233_v57 = vld [vmem:[%s12912_s10 + $0xb14] ss:$8 sps:$4 sm:$0xff]   ;;  %v7474_v58 = vrot.slane %v7472_v54, 2 }
 0x258   : > { %v5527_v9 = vpop.f32.mrb[3].mxu1  ;;  %7371 = vmatprep.subr.bf16.mxu1 %v11163_v59  ;;  %v7482_v59 = vrot.slane %v7480_v5, 2  ;;  %v11239_v61 = vld [vmem:[%s12912_s10 + $0xb24] ss:$8 sps:$4 sm:$0xff]   ;;  %v11242_v1 = vld [vmem:[%s12912_s10 + $0xa34] ss:$8 sps:$4 sm:$0xff]  }
 0x259   : > { %v11245_v2 = vld [vmem:[%s12912_s10 + $0xb34] ss:$8 sps:$4 sm:$0xff]   ;;  %v11240_v6 = vld [vmem:[%s12912_s10 + $0xa30] ss:$8 sps:$4 sm:$0xff]   ;;  %v11248_v8 = vld [vmem:[%s12912_s10 + $0xa44] ss:$8 sps:$4 sm:$0xff]  }
 0x25a   : > { %7331 = vmatpush1.bf16.msra.mxu0 %v11158_v62  ;;  %v11234_v62 = vld [vmem:[%s12912_s10 + $0xa20] ss:$8 sps:$4 sm:$0xff]   ;;  %v11243_v7 = vld [vmem:[%s12912_s10 + $0xb30] ss:$8 sps:$4 sm:$0xff]   ;;  %v11251_v9 = vld [vmem:[%s12912_s10 + $0xb44] ss:$8 sps:$4 sm:$0xff]  }
 0x25b   : > { %7372 = vmatpush1.bf16.msra.mxu1 %v11161_v63  ;;  %7332 = vmatprep.subr.bf16.mxu0 %v11166_v10  ;;  %v11237_v63 = vld [vmem:[%s12912_s10 + $0xb20] ss:$8 sps:$4 sm:$0xff]   ;;  %v11296_v54 = vld [vmem:[%s12912_s10 + $0xac4] ss:$8 sps:$4 sm:$0xff]  }
 0x25c   : > { %7373 = vmatprep.subr.bf16.mxu1 %v11169_v11  ;;  %v11246_v10 = vld [vmem:[%s12912_s10 + $0xa40] ss:$8 sps:$4 sm:$0xff]   ;;  %v11299_v5 = vld [vmem:[%s12912_s10 + $0xbc4] ss:$8 sps:$4 sm:$0xff]  }
 0x25d   : > { %v11249_v11 = vld [vmem:[%s12912_s10 + $0xb40] ss:$8 sps:$4 sm:$0xff]  }
 0x25e   : > { %7333 = vmatpush1.bf16.msra.mxu0 %v11164_v12  ;;  %v11254_v12 = vld [vmem:[%s12912_s10 + $0xa54] ss:$8 sps:$4 sm:$0xff]  }
 0x25f   : > { %7374 = vmatpush1.bf16.msra.mxu1 %v11167_v13  ;;  %7334 = vmatprep.subr.bf16.mxu0 %v11172_v14  ;;  %v11257_v13 = vld [vmem:[%s12912_s10 + $0xb54] ss:$8 sps:$4 sm:$0xff]   ;;  %v11252_v14 = vld [vmem:[%s12912_s10 + $0xa50] ss:$8 sps:$4 sm:$0xff]  }
 0x260   : > { %7375 = vmatprep.subr.bf16.mxu1 %v11175_v15  ;;  %v11255_v15 = vld [vmem:[%s12912_s10 + $0xb50] ss:$8 sps:$4 sm:$0xff]  }
 0x262   : > { %7335 = vmatpush1.bf16.msra.mxu0 %v11170_v16  ;;  %v11260_v16 = vld [vmem:[%s12912_s10 + $0xa64] ss:$8 sps:$4 sm:$0xff]  }
 0x263   : > { %7376 = vmatpush1.bf16.msra.mxu1 %v11173_v17  ;;  %7336 = vmatprep.subr.bf16.mxu0 %v11178_v24  ;;  %v11263_v17 = vld [vmem:[%s12912_s10 + $0xb64] ss:$8 sps:$4 sm:$0xff]  }
 0x264   : > { %7377 = vmatprep.subr.bf16.mxu1 %v11181_v25 }
 0x266   : > { %7337 = vmatpush1.bf16.msra.mxu0 %v11176_v26  ;;  %v11258_v26 = vld [vmem:[%s12912_s10 + $0xa60] ss:$8 sps:$4 sm:$0xff]  }
 0x267   : > { %7378 = vmatpush1.bf16.msra.mxu1 %v11179_v27  ;;  %7338 = vmatprep.subr.bf16.mxu0 %v11184_v18  ;;  %v11261_v27 = vld [vmem:[%s12912_s10 + $0xb60] ss:$8 sps:$4 sm:$0xff]  }
 0x268   : > { %7379 = vmatprep.subr.bf16.mxu1 %v11187_v4 }
 0x26a   : > { %7339 = vmatpush1.bf16.msra.mxu0 %v11182_v20 }
 0x26b   : > { %7380 = vmatpush1.bf16.msra.mxu1 %v11185_v28  ;;  %7340 = vmatprep.subr.bf16.mxu0 %v11190_v30 }
 0x26c   : > { %7381 = vmatprep.subr.bf16.mxu1 %v11193_v19 }
 0x26e   : > { %7341 = vmatpush1.bf16.msra.mxu0 %v11188_v21 }
 0x26f   : > { %7382 = vmatpush1.bf16.msra.mxu1 %v11191_v31  ;;  %7342 = vmatprep.subr.bf16.mxu0 %v11196_v23 }
 0x270   : > { %7383 = vmatprep.subr.bf16.mxu1 %v11199_v33  ;;  %v11269_v33 = vld [vmem:[%s12912_s10 + $0xb74] ss:$8 sps:$4 sm:$0xff]  }
 0x272   : > { %7343 = vmatpush1.bf16.msra.mxu0 %v11194_v34 }
 0x273   : > { %7384 = vmatpush1.bf16.msra.mxu1 %v11197_v35  ;;  %7344 = vmatprep.subr.bf16.mxu0 %v11202_v36  ;;  %v11267_v35 = vld [vmem:[%s12912_s10 + $0xb70] ss:$8 sps:$4 sm:$0xff]   ;;  %v11272_v36 = vld [vmem:[%s12912_s10 + $0xa84] ss:$8 sps:$4 sm:$0xff]  }
 0x274   : > { %7385 = vmatprep.subr.bf16.mxu1 %v11205_v37  ;;  %v11275_v37 = vld [vmem:[%s12912_s10 + $0xb84] ss:$8 sps:$4 sm:$0xff]  }
 0x276   : > { %7345 = vmatpush1.bf16.msra.mxu0 %v11200_v38  ;;  %v11270_v38 = vld [vmem:[%s12912_s10 + $0xa80] ss:$8 sps:$4 sm:$0xff]  }
 0x277   : > { %7386 = vmatpush1.bf16.msra.mxu1 %v11203_v39  ;;  %7346 = vmatprep.subr.bf16.mxu0 %v11208_v40  ;;  %v11273_v39 = vld [vmem:[%s12912_s10 + $0xb80] ss:$8 sps:$4 sm:$0xff]   ;;  %v11278_v40 = vld [vmem:[%s12912_s10 + $0xa94] ss:$8 sps:$4 sm:$0xff]  }
 0x278   : > { %7387 = vmatprep.subr.bf16.mxu1 %v11211_v41  ;;  %v11281_v41 = vld [vmem:[%s12912_s10 + $0xb94] ss:$8 sps:$4 sm:$0xff]  }
 0x27a   : > { %7347 = vmatpush1.bf16.msra.mxu0 %v11206_v42  ;;  %v11276_v42 = vld [vmem:[%s12912_s10 + $0xa90] ss:$8 sps:$4 sm:$0xff]  }
 0x27b   : > { %7388 = vmatpush1.bf16.msra.mxu1 %v11209_v43  ;;  %7348 = vmatprep.subr.bf16.mxu0 %v11214_v44  ;;  %v11279_v43 = vld [vmem:[%s12912_s10 + $0xb90] ss:$8 sps:$4 sm:$0xff]   ;;  %v11284_v44 = vld [vmem:[%s12912_s10 + $0xaa4] ss:$8 sps:$4 sm:$0xff]  }
 0x27c   : > { %7389 = vmatprep.subr.bf16.mxu1 %v11217_v45  ;;  %v11287_v45 = vld [vmem:[%s12912_s10 + $0xba4] ss:$8 sps:$4 sm:$0xff]  }
 0x27e   : > { %7349 = vmatpush1.bf16.msra.mxu0 %v11212_v48  ;;  %v11282_v48 = vld [vmem:[%s12912_s10 + $0xaa0] ss:$8 sps:$4 sm:$0xff]  }
 0x27f   : > { %7390 = vmatpush1.bf16.msra.mxu1 %v11215_v49  ;;  %7807 = vmatprep.subr.bf16.mxu0 %v11224_v50  ;;  %v11285_v49 = vld [vmem:[%s12912_s10 + $0xba0] ss:$8 sps:$4 sm:$0xff]   ;;  %v11290_v50 = vld [vmem:[%s12912_s10 + $0xab4] ss:$8 sps:$4 sm:$0xff]  }
 0x280   : > { %7848 = vmatprep.subr.bf16.mxu1 %v11227_v51  ;;  %v11293_v51 = vld [vmem:[%s12912_s10 + $0xbb4] ss:$8 sps:$4 sm:$0xff]  }
 0x281   : > { %7351 = vmatmul.mubr.bf16.vlgmr.msra.gmra.mrb[16].mxu0 %v6990_v29  ;;  %v11294_v29 = vld [vmem:[%s12912_s10 + $0xac0] ss:$8 sps:$4 sm:$0xff]  }
 0x282   : > { %7392 = vmatmul.mubr.bf16.vlgmr.msra.gmra.mrb[16].mxu1 %v6992_v55  ;;  %7808 = vmatpush1.bf16.msra.mxu0 %v11222_v52  ;;  %v11288_v52 = vld [vmem:[%s12912_s10 + $0xab0] ss:$8 sps:$4 sm:$0xff]   ;;  %v11297_v55 = vld [vmem:[%s12912_s10 + $0xbc0] ss:$8 sps:$4 sm:$0xff]  }
 0x283   : > { %7849 = vmatpush1.bf16.msra.mxu1 %v11225_v53  ;;  %7809 = vmatprep.subr.bf16.mxu0 %v11230_v56  ;;  %v11291_v53 = vld [vmem:[%s12912_s10 + $0xbb0] ss:$8 sps:$4 sm:$0xff]   ;;  %v11302_v56 = vld [vmem:[%s12912_s10 + $0xad4] ss:$8 sps:$4 sm:$0xff]  }
 0x284   : > { %7850 = vmatprep.subr.bf16.mxu1 %v11233_v57  ;;  %7839 = vmatprep.mubr.bf16.mxu0 %v7474_v58  ;;  %v11305_v57 = vld [vmem:[%s12912_s10 + $0xbd4] ss:$8 sps:$4 sm:$0xff]   ;;  %v11300_v58 = vld [vmem:[%s12912_s10 + $0xad0] ss:$8 sps:$4 sm:$0xff]  }
 0x285   : > { %7880 = vmatprep.mubr.bf16.mxu1 %v7482_v59  ;;  %v11303_v59 = vld [vmem:[%s12912_s10 + $0xbd0] ss:$8 sps:$4 sm:$0xff]  }
 0x286   : > { %7810 = vmatpush1.bf16.msra.mxu0 %v11228_v32  ;;  %v11308_v32 = vld [vmem:[%s12912_s10 + $0xae4] ss:$8 sps:$4 sm:$0xff]  }
 0x287   : > { %7851 = vmatpush1.bf16.msra.mxu1 %v11231_v22  ;;  %7811 = vmatprep.subr.bf16.mxu0 %v11236_v60  ;;  %v11311_v22 = vld [vmem:[%s12912_s10 + $0xbe4] ss:$8 sps:$4 sm:$0xff]   ;;  %v11306_v60 = vld [vmem:[%s12912_s10 + $0xae0] ss:$8 sps:$4 sm:$0xff]  }
 0x288   : > { %7852 = vmatprep.subr.bf16.mxu1 %v11239_v61  ;;  %v11309_v61 = vld [vmem:[%s12912_s10 + $0xbe0] ss:$8 sps:$4 sm:$0xff]  }
 0x28a   : > { %7812 = vmatpush1.bf16.msra.mxu0 %v11234_v62  ;;  %v11314_v62 = vld [vmem:[%s12912_s10 + $0xaf4] ss:$8 sps:$4 sm:$0xff]  }
 0x28b   : > { %7853 = vmatpush1.bf16.msra.mxu1 %v11237_v63  ;;  %7813 = vmatprep.subr.bf16.mxu0 %v11242_v1  ;;  %v11317_v63 = vld [vmem:[%s12912_s10 + $0xbf4] ss:$8 sps:$4 sm:$0xff]   ;;  %v7468_v1 = vshrl.u32 %v13308_v46, 16 }
 0x28c   : > { %7854 = vmatprep.subr.bf16.mxu1 %v11245_v2  ;;  %v7476_v2 = vshrl.u32 %v13312_v47, 16 }
 0x28e   : > { %7814 = vmatpush1.bf16.msra.mxu0 %v11240_v6  ;;  %v13391_v6 = vld [vmem:[%s12966_s14] sm:$0x88] }
 0x28f   : > { %7855 = vmatpush1.bf16.msra.mxu1 %v11243_v7  ;;  %7815 = vmatprep.subr.bf16.mxu0 %v11248_v8  ;;  %v13394_v7 = vld [vmem:[%s12966_s14 + $0x8] sm:$0x88]  ;;  %v11312_v8 = vld [vmem:[%s12912_s10 + $0xaf0] ss:$8 sps:$4 sm:$0xff]   ;;  %v13402_v46 = vcombine.high %v13391_v6, %v13391_v6 }
 0x290   : > { %7856 = vmatprep.subr.bf16.mxu1 %v11251_v9  ;;  %v11315_v9 = vld [vmem:[%s12912_s10 + $0xbf0] ss:$8 sps:$4 sm:$0xff]   ;;  %v13406_v47 = vcombine.high %v13394_v7, %v13394_v7 }
 0x292   : > { %7816 = vmatpush1.bf16.msra.mxu0 %v11246_v10  ;;  %v11320_v10 = vld [vmem:[%s12912_s10 + $0xc04] ss:$8 sps:$4 sm:$0xff]  }
 0x293   : > { %7857 = vmatpush1.bf16.msra.mxu1 %v11249_v11  ;;  %7817 = vmatprep.subr.bf16.mxu0 %v11254_v12  ;;  %v11323_v11 = vld [vmem:[%s12912_s10 + $0xd04] ss:$8 sps:$4 sm:$0xff]   ;;  %v7470_v12 = vrot.slane %v7468_v1, 2 }
 0x294   : > { %7858 = vmatprep.subr.bf16.mxu1 %v11257_v13  ;;  %v5887_v24 = vpop.f32.mrb[4].mxu0  ;;  %v7478_v13 = vrot.slane %v7476_v2, 2  ;;  %v11380_v1 = vld [vmem:[%s12912_s10 + $0xca4] ss:$8 sps:$4 sm:$0xff]  }
 0x295   : > { %v5928_v25 = vpop.f32.mrb[4].mxu1  ;;  %v5888_v18 = vadd.f32 %v5887_v24, %v13268_v0  ;;  %v5889_v4 = vpop.f32.mrb[5].mxu0  ;;  %v11266_v0 = vld [vmem:[%s12912_s10 + $0xa74] ss:$8 sps:$4 sm:$0xff]   ;;  %v7969_v24 = vrot.slane %v13402_v46, 3 }
 0x296   : > { %v5930_v20 = vpop.f32.mrb[5].mxu1  ;;  %v5890_v28 = vadd.f32 %v5889_v4, %v13270_v3  ;;  %v5891_v30 = vpop.f32.mrb[6].mxu0  ;;  %7818 = vmatpush1.bf16.msra.mxu0 %v11252_v14  ;;  %v11264_v3 = vld [vmem:[%s12912_s10 + $0xa70] ss:$8 sps:$4 sm:$0xff]   ;;  %v11318_v14 = vld [vmem:[%s12912_s10 + $0xc00] ss:$8 sps:$4 sm:$0xff]  }
 0x297   : > { %v5932_v19 = vpop.f32.mrb[6].mxu1  ;;  %7859 = vmatpush1.bf16.msra.mxu1 %v11255_v15  ;;  %v13350_v21 = vadd.f32 %v5928_v25, %v5888_v18  ;;  %v5892_v31 = vpop.f32.mrb[7].mxu0  ;;  %7819 = vmatprep.subr.bf16.mxu0 %v11260_v16  ;;  %v11321_v15 = vld [vmem:[%s12912_s10 + $0xd00] ss:$8 sps:$4 sm:$0xff]   ;;  %v11326_v16 = vld [vmem:[%s12912_s10 + $0xc14] ss:$8 sps:$4 sm:$0xff]  }
 0x298   : > { %v5933_v23 = vpop.f32.mrb[7].mxu1  ;;  %7860 = vmatprep.subr.bf16.mxu1 %v11263_v17  ;;  %v13354_v34 = vadd.f32 %v5930_v20, %v5890_v28  ;;  %v11329_v17 = vld [vmem:[%s12912_s10 + $0xd14] ss:$8 sps:$4 sm:$0xff]   ;;  %v7971_v25 = vrot.slane %v13406_v47, 3  ;;  %v11332_v18 = vld [vmem:[%s12912_s10 + $0xc24] ss:$8 sps:$4 sm:$0xff]  }
 0x299   : > { %v11335_v4 = vld [vmem:[%s12912_s10 + $0xd24] ss:$8 sps:$4 sm:$0xff]   ;;  %v11330_v20 = vld [vmem:[%s12912_s10 + $0xc20] ss:$8 sps:$4 sm:$0xff]   ;;  %v11338_v30 = vld [vmem:[%s12912_s10 + $0xc34] ss:$8 sps:$4 sm:$0xff]  }
 0x29a   : > { %7820 = vmatpush1.bf16.msra.mxu0 %v11258_v26  ;;  %v11324_v26 = vld [vmem:[%s12912_s10 + $0xc10] ss:$8 sps:$4 sm:$0xff]   ;;  %v11333_v28 = vld [vmem:[%s12912_s10 + $0xd20] ss:$8 sps:$4 sm:$0xff]   ;;  %v11341_v19 = vld [vmem:[%s12912_s10 + $0xd34] ss:$8 sps:$4 sm:$0xff]  }
 0x29b   : > { %7861 = vmatpush1.bf16.msra.mxu1 %v11261_v27  ;;  %7821 = vmatprep.subr.bf16.mxu0 %v11266_v0  ;;  %v11327_v27 = vld [vmem:[%s12912_s10 + $0xd10] ss:$8 sps:$4 sm:$0xff]   ;;  %v11344_v0 = vld [vmem:[%s12912_s10 + $0xc44] ss:$8 sps:$4 sm:$0xff]  }
 0x29c   : > { %7862 = vmatprep.subr.bf16.mxu1 %v11269_v33  ;;  %v11336_v31 = vld [vmem:[%s12912_s10 + $0xc30] ss:$8 sps:$4 sm:$0xff]   ;;  %v11347_v33 = vld [vmem:[%s12912_s10 + $0xd44] ss:$8 sps:$4 sm:$0xff]  }
 0x29d   : > { %v11339_v23 = vld [vmem:[%s12912_s10 + $0xd30] ss:$8 sps:$4 sm:$0xff]   ;;  %v11383_v2 = vld [vmem:[%s12912_s10 + $0xda4] ss:$8 sps:$4 sm:$0xff]  }
 0x29e   : > { %7822 = vmatpush1.bf16.msra.mxu0 %v11264_v3  ;;  %v11342_v3 = vld [vmem:[%s12912_s10 + $0xc40] ss:$8 sps:$4 sm:$0xff]  }
 0x29f   : > { %7863 = vmatpush1.bf16.msra.mxu1 %v11267_v35  ;;  %7823 = vmatprep.subr.bf16.mxu0 %v11272_v36  ;;  %v11345_v35 = vld [vmem:[%s12912_s10 + $0xd40] ss:$8 sps:$4 sm:$0xff]   ;;  %v11350_v36 = vld [vmem:[%s12912_s10 + $0xc54] ss:$8 sps:$4 sm:$0xff]  }
 0x2a0   : > { %7864 = vmatprep.subr.bf16.mxu1 %v11275_v37  ;;  %v11353_v37 = vld [vmem:[%s12912_s10 + $0xd54] ss:$8 sps:$4 sm:$0xff]  }
 0x2a2   : > { %7824 = vmatpush1.bf16.msra.mxu0 %v11270_v38  ;;  %v11348_v38 = vld [vmem:[%s12912_s10 + $0xc50] ss:$8 sps:$4 sm:$0xff]  }
 0x2a3   : > { %7865 = vmatpush1.bf16.msra.mxu1 %v11273_v39  ;;  %7825 = vmatprep.subr.bf16.mxu0 %v11278_v40  ;;  %v11351_v39 = vld [vmem:[%s12912_s10 + $0xd50] ss:$8 sps:$4 sm:$0xff]   ;;  %v11356_v40 = vld [vmem:[%s12912_s10 + $0xc64] ss:$8 sps:$4 sm:$0xff]  }
 0x2a4   : > { %7866 = vmatprep.subr.bf16.mxu1 %v11281_v41  ;;  %v11359_v41 = vld [vmem:[%s12912_s10 + $0xd64] ss:$8 sps:$4 sm:$0xff]  }
 0x2a6   : > { %7826 = vmatpush1.bf16.msra.mxu0 %v11276_v42 }
 0x2a7   : > { %7867 = vmatpush1.bf16.msra.mxu1 %v11279_v43  ;;  %7827 = vmatprep.subr.bf16.mxu0 %v11284_v44 }
 0x2a8   : > { %7868 = vmatprep.subr.bf16.mxu1 %v11287_v45 }
 0x2aa   : > { %7828 = vmatpush1.bf16.msra.mxu0 %v11282_v48 }
 0x2ab   : > { %7869 = vmatpush1.bf16.msra.mxu1 %v11285_v49  ;;  %7829 = vmatprep.subr.bf16.mxu0 %v11290_v50 }
 0x2ac   : > { %7870 = vmatprep.subr.bf16.mxu1 %v11293_v51 }
 0x2ae   : > { %7830 = vmatpush1.bf16.msra.mxu0 %v11288_v52  ;;  %v11354_v52 = vld [vmem:[%s12912_s10 + $0xc60] ss:$8 sps:$4 sm:$0xff]  }
 0x2af   : > { %7871 = vmatpush1.bf16.msra.mxu1 %v11291_v53  ;;  %7831 = vmatprep.subr.bf16.mxu0 %v11296_v54  ;;  %v11357_v53 = vld [vmem:[%s12912_s10 + $0xd60] ss:$8 sps:$4 sm:$0xff]  }
 0x2b0   : > { %7872 = vmatprep.subr.bf16.mxu1 %v11299_v5 }
 0x2b2   : > { %7832 = vmatpush1.bf16.msra.mxu0 %v11294_v29 }
 0x2b3   : > { %7873 = vmatpush1.bf16.msra.mxu1 %v11297_v55  ;;  %7833 = vmatprep.subr.bf16.mxu0 %v11302_v56  ;;  %v11362_v55 = vld [vmem:[%s12912_s10 + $0xc74] ss:$8 sps:$4 sm:$0xff]  }
 0x2b4   : > { %7874 = vmatprep.subr.bf16.mxu1 %v11305_v57  ;;  %v11365_v56 = vld [vmem:[%s12912_s10 + $0xd74] ss:$8 sps:$4 sm:$0xff]  }
 0x2b6   : > { %7834 = vmatpush1.bf16.msra.mxu0 %v11300_v58  ;;  %v11360_v58 = vld [vmem:[%s12912_s10 + $0xc70] ss:$8 sps:$4 sm:$0xff]  }
 0x2b7   : > { %7875 = vmatpush1.bf16.msra.mxu1 %v11303_v59  ;;  %7835 = vmatprep.subr.bf16.mxu0 %v11308_v32  ;;  %v11363_v59 = vld [vmem:[%s12912_s10 + $0xd70] ss:$8 sps:$4 sm:$0xff]   ;;  %v11371_v32 = vld [vmem:[%s12912_s10 + $0xd84] ss:$8 sps:$4 sm:$0xff]  }
 0x2b8   : > { %7876 = vmatprep.subr.bf16.mxu1 %v11311_v22  ;;  %v11366_v22 = vld [vmem:[%s12912_s10 + $0xc80] ss:$8 sps:$4 sm:$0xff]  }
 0x2ba   : > { %7836 = vmatpush1.bf16.msra.mxu0 %v11306_v60  ;;  %v11369_v60 = vld [vmem:[%s12912_s10 + $0xd80] ss:$8 sps:$4 sm:$0xff]  }
 0x2bb   : > { %7877 = vmatpush1.bf16.msra.mxu1 %v11309_v61  ;;  %7837 = vmatprep.subr.bf16.mxu0 %v11314_v62  ;;  %v11377_v61 = vld [vmem:[%s12912_s10 + $0xd94] ss:$8 sps:$4 sm:$0xff]   ;;  %v11372_v62 = vld [vmem:[%s12912_s10 + $0xc90] ss:$8 sps:$4 sm:$0xff]  }
 0x2bc   : > { %7878 = vmatprep.subr.bf16.mxu1 %v11317_v63  ;;  %v11375_v63 = vld [vmem:[%s12912_s10 + $0xd90] ss:$8 sps:$4 sm:$0xff]  }
 0x2be   : > { %7838 = vmatpush1.bf16.msra.mxu0 %v11312_v8  ;;  %v11378_v8 = vld [vmem:[%s12912_s10 + $0xca0] ss:$8 sps:$4 sm:$0xff]  }
 0x2bf   : > { %7879 = vmatpush1.bf16.msra.mxu1 %v11315_v9  ;;  %8296 = vmatprep.subr.bf16.mxu0 %v11320_v10  ;;  %v11381_v9 = vld [vmem:[%s12912_s10 + $0xda0] ss:$8 sps:$4 sm:$0xff]   ;;  %v11386_v10 = vld [vmem:[%s12912_s10 + $0xcb4] ss:$8 sps:$4 sm:$0xff]  }
 0x2c0   : > { %8337 = vmatprep.subr.bf16.mxu1 %v11323_v11  ;;  %v11389_v11 = vld [vmem:[%s12912_s10 + $0xdb4] ss:$8 sps:$4 sm:$0xff]  }
 0x2c1   : > { %7840 = vmatmul.mubr.bf16.vlgmr.msra.gmra.mrb[20].mxu0 %v7470_v12  ;;  %v11384_v12 = vld [vmem:[%s12912_s10 + $0xcb0] ss:$8 sps:$4 sm:$0xff]  }
 0x2c2   : > { %7881 = vmatmul.mubr.bf16.vlgmr.msra.gmra.mrb[20].mxu1 %v7478_v13  ;;  %8297 = vmatpush1.bf16.msra.mxu0 %v11318_v14  ;;  %v11387_v13 = vld [vmem:[%s12912_s10 + $0xdb0] ss:$8 sps:$4 sm:$0xff]   ;;  %v11392_v14 = vld [vmem:[%s12912_s10 + $0xcc4] ss:$8 sps:$4 sm:$0xff]  }
 0x2c3   : > { %8338 = vmatpush1.bf16.msra.mxu1 %v11321_v15  ;;  %8298 = vmatprep.subr.bf16.mxu0 %v11326_v16  ;;  %v11395_v15 = vld [vmem:[%s12912_s10 + $0xdc4] ss:$8 sps:$4 sm:$0xff]   ;;  %v11390_v16 = vld [vmem:[%s12912_s10 + $0xcc0] ss:$8 sps:$4 sm:$0xff]  }
 0x2c4   : > { %8339 = vmatprep.subr.bf16.mxu1 %v11329_v17  ;;  %8328 = vmatprep.mubr.bf16.mxu0 %v7969_v24  ;;  %v11393_v17 = vld [vmem:[%s12912_s10 + $0xdc0] ss:$8 sps:$4 sm:$0xff]   ;;  %v11398_v24 = vld [vmem:[%s12912_s10 + $0xcd4] ss:$8 sps:$4 sm:$0xff]  }
 0x2c5   : > { %8369 = vmatprep.mubr.bf16.mxu1 %v7971_v25  ;;  %v11401_v25 = vld [vmem:[%s12912_s10 + $0xdd4] ss:$8 sps:$4 sm:$0xff]  }
 0x2c6   : > { %8299 = vmatpush1.bf16.msra.mxu0 %v11324_v26  ;;  %v11396_v26 = vld [vmem:[%s12912_s10 + $0xcd0] ss:$8 sps:$4 sm:$0xff]  }
 0x2c7   : > { %8340 = vmatpush1.bf16.msra.mxu1 %v11327_v27  ;;  %8300 = vmatprep.subr.bf16.mxu0 %v11332_v18  ;;  %v11399_v27 = vld [vmem:[%s12912_s10 + $0xdd0] ss:$8 sps:$4 sm:$0xff]   ;;  %v11404_v18 = vld [vmem:[%s12912_s10 + $0xce4] ss:$8 sps:$4 sm:$0xff]  }
 0x2c8   : > { %8341 = vmatprep.subr.bf16.mxu1 %v11335_v4  ;;  %v11407_v4 = vld [vmem:[%s12912_s10 + $0xde4] ss:$8 sps:$4 sm:$0xff]  }
 0x2ca   : > { %8301 = vmatpush1.bf16.msra.mxu0 %v11330_v20  ;;  %v11402_v20 = vld [vmem:[%s12912_s10 + $0xce0] ss:$8 sps:$4 sm:$0xff]  }
 0x2cb   : > { %8342 = vmatpush1.bf16.msra.mxu1 %v11333_v28  ;;  %8302 = vmatprep.subr.bf16.mxu0 %v11338_v30  ;;  %v11405_v28 = vld [vmem:[%s12912_s10 + $0xde0] ss:$8 sps:$4 sm:$0xff]   ;;  %v11410_v30 = vld [vmem:[%s12912_s10 + $0xcf4] ss:$8 sps:$4 sm:$0xff]  }
 0x2cc   : > { %8343 = vmatprep.subr.bf16.mxu1 %v11341_v19  ;;  %v11413_v19 = vld [vmem:[%s12912_s10 + $0xdf4] ss:$8 sps:$4 sm:$0xff]  }
 0x2ce   : > { %8303 = vmatpush1.bf16.msra.mxu0 %v11336_v31  ;;  %v13478_v31 = vcombine.low %v13391_v6, %v13391_v6  ;;  %v8458_v6 = vshrl.u32 %v13406_v47, 16  ;;  %v11424_v47 = vld [vmem:[%s12912_s10 + $0xe10] ss:$8 sps:$4 sm:$0xff]  }
 0x2cf   : > { %8344 = vmatpush1.bf16.msra.mxu1 %v11339_v23  ;;  %8304 = vmatprep.subr.bf16.mxu0 %v11344_v0  ;;  %v13482_v23 = vcombine.low %v13394_v7, %v13394_v7  ;;  %v11408_v0 = vld [vmem:[%s12912_s10 + $0xcf0] ss:$8 sps:$4 sm:$0xff]  }
 0x2d0   : > { %8345 = vmatprep.subr.bf16.mxu1 %v11347_v33  ;;  %v11411_v33 = vld [vmem:[%s12912_s10 + $0xdf0] ss:$8 sps:$4 sm:$0xff]  }
 0x2d1   : > { %v7970_v7 = vrot.slane %v13482_v23, 3 }
 0x2d2   : > { %8305 = vmatpush1.bf16.msra.mxu0 %v11342_v3  ;;  %v11420_v3 = vld [vmem:[%s12912_s10 + $0xe04] ss:$8 sps:$4 sm:$0xff]  }
 0x2d3   : > { %8346 = vmatpush1.bf16.msra.mxu1 %v11345_v35  ;;  %8306 = vmatprep.subr.bf16.mxu0 %v11350_v36  ;;  %v11423_v35 = vld [vmem:[%s12912_s10 + $0xf04] ss:$8 sps:$4 sm:$0xff]   ;;  %v8450_v36 = vshrl.u32 %v13402_v46, 16  ;;  %v8460_v46 = vrot.slane %v8458_v6, 3  ;;  %v11487_v6 = vld [vmem:[%s12912_s10 + $0xfb0] ss:$8 sps:$4 sm:$0xff]  }
 0x2d4   : > { %8347 = vmatprep.subr.bf16.mxu1 %v11353_v37  ;;  %v6374_v42 = vpop.f32.mrb[8].mxu0  ;;  %v7968_v37 = vrot.slane %v13478_v31, 3 }
 0x2d5   : > { %v6415_v43 = vpop.f32.mrb[8].mxu1  ;;  %v6376_v45 = vpop.f32.mrb[9].mxu0 }
 0x2d6   : > { %v6416_v44 = vadd.f32 %v6415_v43, %v6374_v42  ;;  %v6417_v48 = vpop.f32.mrb[9].mxu1  ;;  %v6378_v50 = vpop.f32.mrb[10].mxu0  ;;  %8307 = vmatpush1.bf16.msra.mxu0 %v11348_v38  ;;  %v11418_v38 = vld [vmem:[%s12912_s10 + $0xe00] ss:$8 sps:$4 sm:$0xff]   ;;  %v8452_v42 = vrot.slane %v8450_v36, 3 }
 0x2d7   : > { %v6418_v49 = vadd.f32 %v6417_v48, %v6376_v45  ;;  %v6419_v51 = vpop.f32.mrb[10].mxu1  ;;  %8348 = vmatpush1.bf16.msra.mxu1 %v11351_v39  ;;  %v6379_v5 = vpop.f32.mrb[11].mxu0  ;;  %8308 = vmatprep.subr.bf16.mxu0 %v11356_v40  ;;  %v11421_v39 = vld [vmem:[%s12912_s10 + $0xf00] ss:$8 sps:$4 sm:$0xff]   ;;  %v11426_v40 = vld [vmem:[%s12912_s10 + $0xe14] ss:$8 sps:$4 sm:$0xff]  }
 0x2d8   : > { %v13437_v54 = vadd.f32 %v6416_v44, %v13350_v21  ;;  %v6420_v29 = vpop.f32.mrb[11].mxu1  ;;  %8349 = vmatprep.subr.bf16.mxu1 %v11359_v41  ;;  %v11368_v21 = vld [vmem:[%s12912_s10 + $0xc84] ss:$8 sps:$4 sm:$0xff]   ;;  %v11429_v41 = vld [vmem:[%s12912_s10 + $0xf14] ss:$8 sps:$4 sm:$0xff]  }
 0x2d9   : > { %v13442_v57 = vadd.f32 %v6418_v49, %v13354_v34  ;;  %v11374_v34 = vld [vmem:[%s12912_s10 + $0xc94] ss:$8 sps:$4 sm:$0xff]   ;;  %v11427_v43 = vld [vmem:[%s12912_s10 + $0xf10] ss:$8 sps:$4 sm:$0xff]   ;;  %v11432_v44 = vld [vmem:[%s12912_s10 + $0xe24] ss:$8 sps:$4 sm:$0xff]  }
 0x2da   : > { %8309 = vmatpush1.bf16.msra.mxu0 %v11354_v52  ;;  %v11435_v45 = vld [vmem:[%s12912_s10 + $0xf24] ss:$8 sps:$4 sm:$0xff]   ;;  %v11430_v48 = vld [vmem:[%s12912_s10 + $0xe20] ss:$8 sps:$4 sm:$0xff]   ;;  %v11438_v50 = vld [vmem:[%s12912_s10 + $0xe34] ss:$8 sps:$4 sm:$0xff]  }
 0x2db   : > { %8350 = vmatpush1.bf16.msra.mxu1 %v11357_v53  ;;  %8310 = vmatprep.subr.bf16.mxu0 %v11362_v55  ;;  %v11433_v49 = vld [vmem:[%s12912_s10 + $0xf20] ss:$8 sps:$4 sm:$0xff]   ;;  %v11441_v51 = vld [vmem:[%s12912_s10 + $0xf34] ss:$8 sps:$4 sm:$0xff]   ;;  %v11436_v52 = vld [vmem:[%s12912_s10 + $0xe30] ss:$8 sps:$4 sm:$0xff]  }
 0x2dc   : > { %8351 = vmatprep.subr.bf16.mxu1 %v11365_v56  ;;  %v11439_v53 = vld [vmem:[%s12912_s10 + $0xf30] ss:$8 sps:$4 sm:$0xff]   ;;  %v11444_v5 = vld [vmem:[%s12912_s10 + $0xe44] ss:$8 sps:$4 sm:$0xff]   ;;  %v11442_v55 = vld [vmem:[%s12912_s10 + $0xe40] ss:$8 sps:$4 sm:$0xff]  }
 0x2dd   : > { %v11447_v29 = vld [vmem:[%s12912_s10 + $0xf44] ss:$8 sps:$4 sm:$0xff]   ;;  %v11445_v56 = vld [vmem:[%s12912_s10 + $0xf40] ss:$8 sps:$4 sm:$0xff]   ;;  %v11484_v36 = vld [vmem:[%s12912_s10 + $0xeb0] ss:$8 sps:$4 sm:$0xff]  }
 0x2de   : > { %8311 = vmatpush1.bf16.msra.mxu0 %v11360_v58  ;;  %v11450_v58 = vld [vmem:[%s12912_s10 + $0xe54] ss:$8 sps:$4 sm:$0xff]  }
 0x2df   : > { %8352 = vmatpush1.bf16.msra.mxu1 %v11363_v59  ;;  %8312 = vmatprep.subr.bf16.mxu0 %v11368_v21  ;;  %v11453_v59 = vld [vmem:[%s12912_s10 + $0xf54] ss:$8 sps:$4 sm:$0xff]   ;;  %v11448_v21 = vld [vmem:[%s12912_s10 + $0xe50] ss:$8 sps:$4 sm:$0xff]  }
 0x2e0   : > { %8353 = vmatprep.subr.bf16.mxu1 %v11371_v32  ;;  %v11451_v32 = vld [vmem:[%s12912_s10 + $0xf50] ss:$8 sps:$4 sm:$0xff]  }
 0x2e2   : > { %8313 = vmatpush1.bf16.msra.mxu0 %v11366_v22  ;;  %v11456_v22 = vld [vmem:[%s12912_s10 + $0xe64] ss:$8 sps:$4 sm:$0xff]  }
 0x2e3   : > { %8354 = vmatpush1.bf16.msra.mxu1 %v11369_v60  ;;  %8314 = vmatprep.subr.bf16.mxu0 %v11374_v34  ;;  %v11459_v60 = vld [vmem:[%s12912_s10 + $0xf64] ss:$8 sps:$4 sm:$0xff]  }
 0x2e4   : > { %8355 = vmatprep.subr.bf16.mxu1 %v11377_v61 }
 0x2e6   : > { %8315 = vmatpush1.bf16.msra.mxu0 %v11372_v62 }
 0x2e7   : > { %8356 = vmatpush1.bf16.msra.mxu1 %v11375_v63  ;;  %8316 = vmatprep.subr.bf16.mxu0 %v11380_v1 }
 0x2e8   : > { %8357 = vmatprep.subr.bf16.mxu1 %v11383_v2 }
 0x2ea   : > { %8317 = vmatpush1.bf16.msra.mxu0 %v11378_v8 }
 0x2eb   : > { %8358 = vmatpush1.bf16.msra.mxu1 %v11381_v9  ;;  %8318 = vmatprep.subr.bf16.mxu0 %v11386_v10  ;;  %v11454_v10 = vld [vmem:[%s12912_s10 + $0xe60] ss:$8 sps:$4 sm:$0xff]  }
 0x2ec   : > { %8359 = vmatprep.subr.bf16.mxu1 %v11389_v11  ;;  %v11457_v11 = vld [vmem:[%s12912_s10 + $0xf60] ss:$8 sps:$4 sm:$0xff]  }
 0x2ee   : > { %8319 = vmatpush1.bf16.msra.mxu0 %v11384_v12 }
 0x2ef   : > { %8360 = vmatpush1.bf16.msra.mxu1 %v11387_v13  ;;  %8320 = vmatprep.subr.bf16.mxu0 %v11392_v14 }
 0x2f0   : > { %8361 = vmatprep.subr.bf16.mxu1 %v11395_v15  ;;  %v11462_v15 = vld [vmem:[%s12912_s10 + $0xe74] ss:$8 sps:$4 sm:$0xff]  }
 0x2f2   : > { %8321 = vmatpush1.bf16.msra.mxu0 %v11390_v16  ;;  %v11465_v16 = vld [vmem:[%s12912_s10 + $0xf74] ss:$8 sps:$4 sm:$0xff]  }
 0x2f3   : > { %8362 = vmatpush1.bf16.msra.mxu1 %v11393_v17  ;;  %8322 = vmatprep.subr.bf16.mxu0 %v11398_v24  ;;  %v11460_v24 = vld [vmem:[%s12912_s10 + $0xe70] ss:$8 sps:$4 sm:$0xff]  }
 0x2f4   : > { %8363 = vmatprep.subr.bf16.mxu1 %v11401_v25  ;;  %v11463_v25 = vld [vmem:[%s12912_s10 + $0xf70] ss:$8 sps:$4 sm:$0xff]  }
 0x2f6   : > { %8323 = vmatpush1.bf16.msra.mxu0 %v11396_v26  ;;  %v11471_v26 = vld [vmem:[%s12912_s10 + $0xf84] ss:$8 sps:$4 sm:$0xff]  }
 0x2f7   : > { %8364 = vmatpush1.bf16.msra.mxu1 %v11399_v27  ;;  %8324 = vmatprep.subr.bf16.mxu0 %v11404_v18  ;;  %v11466_v27 = vld [vmem:[%s12912_s10 + $0xe80] ss:$8 sps:$4 sm:$0xff]  }
 0x2f8   : > { %8365 = vmatprep.subr.bf16.mxu1 %v11407_v4  ;;  %v11469_v18 = vld [vmem:[%s12912_s10 + $0xf80] ss:$8 sps:$4 sm:$0xff]   ;;  %v11477_v4 = vld [vmem:[%s12912_s10 + $0xf94] ss:$8 sps:$4 sm:$0xff]  }
 0x2fa   : > { %8325 = vmatpush1.bf16.msra.mxu0 %v11402_v20  ;;  %v11472_v20 = vld [vmem:[%s12912_s10 + $0xe90] ss:$8 sps:$4 sm:$0xff]  }
 0x2fb   : > { %8366 = vmatpush1.bf16.msra.mxu1 %v11405_v28  ;;  %8326 = vmatprep.subr.bf16.mxu0 %v11410_v30  ;;  %v11475_v28 = vld [vmem:[%s12912_s10 + $0xf90] ss:$8 sps:$4 sm:$0xff]   ;;  %v11480_v30 = vld [vmem:[%s12912_s10 + $0xea4] ss:$8 sps:$4 sm:$0xff]  }
 0x2fc   : > { %8367 = vmatprep.subr.bf16.mxu1 %v11413_v19  ;;  %v11483_v19 = vld [vmem:[%s12912_s10 + $0xfa4] ss:$8 sps:$4 sm:$0xff]  }
 0x2fe   : > { %8327 = vmatpush1.bf16.msra.mxu0 %v11408_v0  ;;  %v11478_v0 = vld [vmem:[%s12912_s10 + $0xea0] ss:$8 sps:$4 sm:$0xff]  }
 0x2ff   : > { %8368 = vmatpush1.bf16.msra.mxu1 %v11411_v33  ;;  %8785 = vmatprep.subr.bf16.mxu0 %v11420_v3  ;;  %v11481_v33 = vld [vmem:[%s12912_s10 + $0xfa0] ss:$8 sps:$4 sm:$0xff]   ;;  %v11486_v3 = vld [vmem:[%s12912_s10 + $0xeb4] ss:$8 sps:$4 sm:$0xff]  }
 0x300   : > { %8826 = vmatprep.subr.bf16.mxu1 %v11423_v35  ;;  %v11489_v35 = vld [vmem:[%s12912_s10 + $0xfb4] ss:$8 sps:$4 sm:$0xff]  }
 0x301   : > { %8329 = vmatmul.mubr.bf16.vlgmr.msra.gmra.mrb[24].mxu0 %v7968_v37  ;;  %v11492_v37 = vld [vmem:[%s12912_s10 + $0xec4] ss:$8 sps:$4 sm:$0xff]  }
 0x302   : > { %8370 = vmatmul.mubr.bf16.vlgmr.msra.gmra.mrb[24].mxu1 %v7970_v7  ;;  %8786 = vmatpush1.bf16.msra.mxu0 %v11418_v38  ;;  %v11495_v7 = vld [vmem:[%s12912_s10 + $0xfc4] ss:$8 sps:$4 sm:$0xff]   ;;  %v11490_v38 = vld [vmem:[%s12912_s10 + $0xec0] ss:$8 sps:$4 sm:$0xff]  }
 0x303   : > { %8827 = vmatpush1.bf16.msra.mxu1 %v11421_v39  ;;  %8787 = vmatprep.subr.bf16.mxu0 %v11426_v40  ;;  %v11493_v39 = vld [vmem:[%s12912_s10 + $0xfc0] ss:$8 sps:$4 sm:$0xff]   ;;  %v11498_v40 = vld [vmem:[%s12912_s10 + $0xed4] ss:$8 sps:$4 sm:$0xff]  }
 0x304   : > { %8828 = vmatprep.subr.bf16.mxu1 %v11429_v41  ;;  %8817 = vmatprep.mubr.bf16.mxu0 %v8452_v42  ;;  %v11501_v41 = vld [vmem:[%s12912_s10 + $0xfd4] ss:$8 sps:$4 sm:$0xff]   ;;  %v11496_v42 = vld [vmem:[%s12912_s10 + $0xed0] ss:$8 sps:$4 sm:$0xff]  }
 0x305   : > { %8858 = vmatprep.mubr.bf16.mxu1 %v8460_v46  ;;  %v11499_v46 = vld [vmem:[%s12912_s10 + $0xfd0] ss:$8 sps:$4 sm:$0xff]  }
 0x306   : > { %8788 = vmatpush1.bf16.msra.mxu0 %v11424_v47  ;;  %v11504_v47 = vld [vmem:[%s12912_s10 + $0xee4] ss:$8 sps:$4 sm:$0xff]  }
 0x307   : > { %8829 = vmatpush1.bf16.msra.mxu1 %v11427_v43  ;;  %8789 = vmatprep.subr.bf16.mxu0 %v11432_v44  ;;  %v11507_v43 = vld [vmem:[%s12912_s10 + $0xfe4] ss:$8 sps:$4 sm:$0xff]   ;;  %v11502_v44 = vld [vmem:[%s12912_s10 + $0xee0] ss:$8 sps:$4 sm:$0xff]  }
 0x308   : > { %8830 = vmatprep.subr.bf16.mxu1 %v11435_v45  ;;  %v11505_v45 = vld [vmem:[%s12912_s10 + $0xfe0] ss:$8 sps:$4 sm:$0xff]  }
 0x30a   : > { %8790 = vmatpush1.bf16.msra.mxu0 %v11430_v48  ;;  %v11510_v48 = vld [vmem:[%s12912_s10 + $0xef4] ss:$8 sps:$4 sm:$0xff]  }
 0x30b   : > { %8831 = vmatpush1.bf16.msra.mxu1 %v11433_v49  ;;  %8791 = vmatprep.subr.bf16.mxu0 %v11438_v50  ;;  %v11513_v49 = vld [vmem:[%s12912_s10 + $0xff4] ss:$8 sps:$4 sm:$0xff]   ;;  %v8446_v50 = vshrl.u32 %v13478_v31, 16 }
 0x30c   : > { %8832 = vmatprep.subr.bf16.mxu1 %v11441_v51  ;;  %v8454_v51 = vshrl.u32 %v13482_v23, 16  ;;  %v13568_v31 = vld [vmem:[%s12966_s14 + $0x18] sm:$0x11]  ;;  %v11514_v23 = vld [vmem:[%s12912_s10 + $0x1000] ss:$8 sps:$4 sm:$0xff]  }
 0x30e   : > { %8792 = vmatpush1.bf16.msra.mxu0 %v11436_v52  ;;  %v11508_v52 = vld [vmem:[%s12912_s10 + $0xef0] ss:$8 sps:$4 sm:$0xff]  }
 0x30f   : > { %8833 = vmatpush1.bf16.msra.mxu1 %v11439_v53  ;;  %8793 = vmatprep.subr.bf16.mxu0 %v11444_v5  ;;  %v11511_v53 = vld [vmem:[%s12912_s10 + $0xff0] ss:$8 sps:$4 sm:$0xff]   ;;  %v11516_v5 = vld [vmem:[%s12912_s10 + $0x1004] ss:$8 sps:$4 sm:$0xff]  }
 0x310   : > { %8834 = vmatprep.subr.bf16.mxu1 %v11447_v29  ;;  %v11519_v29 = vld [vmem:[%s12912_s10 + $0x1104] ss:$8 sps:$4 sm:$0xff]  }
 0x312   : > { %8794 = vmatpush1.bf16.msra.mxu0 %v11442_v55  ;;  %v8448_v55 = vrot.slane %v8446_v50, 3  ;;  %v11574_v50 = vld [vmem:[%s12912_s10 + $0x10a0] ss:$8 sps:$4 sm:$0xff]  }
 0x313   : > { %8835 = vmatpush1.bf16.msra.mxu1 %v11445_v56  ;;  %8795 = vmatprep.subr.bf16.mxu0 %v11450_v58  ;;  %v8456_v56 = vrot.slane %v8454_v51, 3  ;;  %v13565_v58 = vld [vmem:[%s12966_s14 + $0x10] sm:$0x11]  ;;  %v11577_v51 = vld [vmem:[%s12912_s10 + $0x11a0] ss:$8 sps:$4 sm:$0xff]  }
 0x314   : > { %8836 = vmatprep.subr.bf16.mxu1 %v11453_v59  ;;  %v6863_v34 = vpop.f32.mrb[12].mxu0  ;;  %v11517_v59 = vld [vmem:[%s12912_s10 + $0x1100] ss:$8 sps:$4 sm:$0xff]  }
 0x315   : > { %v6904_v61 = vpop.f32.mrb[12].mxu1  ;;  %v6865_v63 = vpop.f32.mrb[13].mxu0 }
 0x316   : > { %v6905_v62 = vadd.f32 %v6904_v61, %v6863_v34  ;;  %v6906_v1 = vpop.f32.mrb[13].mxu1  ;;  %v6867_v8 = vpop.f32.mrb[14].mxu0  ;;  %8796 = vmatpush1.bf16.msra.mxu0 %v11448_v21  ;;  %v11522_v21 = vld [vmem:[%s12912_s10 + $0x1014] ss:$8 sps:$4 sm:$0xff]   ;;  %v11520_v34 = vld [vmem:[%s12912_s10 + $0x1010] ss:$8 sps:$4 sm:$0xff]  }
 0x317   : > { %v6907_v2 = vadd.f32 %v6906_v1, %v6865_v63  ;;  %v6908_v9 = vpop.f32.mrb[14].mxu1  ;;  %8837 = vmatpush1.bf16.msra.mxu1 %v11451_v32  ;;  %v6868_v13 = vpop.f32.mrb[15].mxu0  ;;  %8797 = vmatprep.subr.bf16.mxu0 %v11456_v22  ;;  %v11525_v32 = vld [vmem:[%s12912_s10 + $0x1114] ss:$8 sps:$4 sm:$0xff]   ;;  %v10599_v22 = vcombine.high %v13565_v58, %v13565_v58  ;;  %v11523_v61 = vld [vmem:[%s12912_s10 + $0x1110] ss:$8 sps:$4 sm:$0xff]  }
 0x318   : > { %v13519_v12 = vadd.f32 %v6905_v62, %v13437_v54  ;;  %v6909_v14 = vpop.f32.mrb[15].mxu1  ;;  %8838 = vmatprep.subr.bf16.mxu1 %v11459_v60  ;;  %v11468_v54 = vld [vmem:[%s12912_s10 + $0xe84] ss:$8 sps:$4 sm:$0xff]   ;;  %v10601_v60 = vcombine.high %v13568_v31, %v13568_v31  ;;  %v11526_v1 = vld [vmem:[%s12912_s10 + $0x1020] ss:$8 sps:$4 sm:$0xff]  }
 0x319   : > { %v13524_v17 = vadd.f32 %v6907_v2, %v13442_v57  ;;  %v11474_v57 = vld [vmem:[%s12912_s10 + $0xe94] ss:$8 sps:$4 sm:$0xff]   ;;  %v11528_v62 = vld [vmem:[%s12912_s10 + $0x1024] ss:$8 sps:$4 sm:$0xff]   ;;  %v11529_v2 = vld [vmem:[%s12912_s10 + $0x1120] ss:$8 sps:$4 sm:$0xff]  }
 0x31a   : > { %8798 = vmatpush1.bf16.msra.mxu0 %v11454_v10  ;;  %v11531_v63 = vld [vmem:[%s12912_s10 + $0x1124] ss:$8 sps:$4 sm:$0xff]   ;;  %v11534_v8 = vld [vmem:[%s12912_s10 + $0x1034] ss:$8 sps:$4 sm:$0xff]   ;;  %v11532_v10 = vld [vmem:[%s12912_s10 + $0x1030] ss:$8 sps:$4 sm:$0xff]  }
 0x31b   : > { %8839 = vmatpush1.bf16.msra.mxu1 %v11457_v11  ;;  %8799 = vmatprep.subr.bf16.mxu0 %v11462_v15  ;;  %v11537_v9 = vld [vmem:[%s12912_s10 + $0x1134] ss:$8 sps:$4 sm:$0xff]   ;;  %v11535_v11 = vld [vmem:[%s12912_s10 + $0x1130] ss:$8 sps:$4 sm:$0xff]   ;;  %v11540_v13 = vld [vmem:[%s12912_s10 + $0x1044] ss:$8 sps:$4 sm:$0xff]  }
 0x31c   : > { %8840 = vmatprep.subr.bf16.mxu1 %v11465_v16  ;;  %v11543_v14 = vld [vmem:[%s12912_s10 + $0x1144] ss:$8 sps:$4 sm:$0xff]   ;;  %v11538_v15 = vld [vmem:[%s12912_s10 + $0x1040] ss:$8 sps:$4 sm:$0xff]  }
 0x31d   : > { %v11541_v16 = vld [vmem:[%s12912_s10 + $0x1140] ss:$8 sps:$4 sm:$0xff]  }
 0x31e   : > { %8800 = vmatpush1.bf16.msra.mxu0 %v11460_v24  ;;  %v11546_v24 = vld [vmem:[%s12912_s10 + $0x1054] ss:$8 sps:$4 sm:$0xff]  }
 0x31f   : > { %8841 = vmatpush1.bf16.msra.mxu1 %v11463_v25  ;;  %8801 = vmatprep.subr.bf16.mxu0 %v11468_v54  ;;  %v11549_v25 = vld [vmem:[%s12912_s10 + $0x1154] ss:$8 sps:$4 sm:$0xff]   ;;  %v11544_v54 = vld [vmem:[%s12912_s10 + $0x1050] ss:$8 sps:$4 sm:$0xff]  }
 0x320   : > { %8842 = vmatprep.subr.bf16.mxu1 %v11471_v26  ;;  %v11547_v26 = vld [vmem:[%s12912_s10 + $0x1150] ss:$8 sps:$4 sm:$0xff]  }
 0x322   : > { %8802 = vmatpush1.bf16.msra.mxu0 %v11466_v27  ;;  %v11552_v27 = vld [vmem:[%s12912_s10 + $0x1064] ss:$8 sps:$4 sm:$0xff]  }
 0x323   : > { %8843 = vmatpush1.bf16.msra.mxu1 %v11469_v18  ;;  %8803 = vmatprep.subr.bf16.mxu0 %v11474_v57  ;;  %v11555_v18 = vld [vmem:[%s12912_s10 + $0x1164] ss:$8 sps:$4 sm:$0xff]  }
 0x324   : > { %8844 = vmatprep.subr.bf16.mxu1 %v11477_v4 }
 0x326   : > { %8804 = vmatpush1.bf16.msra.mxu0 %v11472_v20 }
 0x327   : > { %8845 = vmatpush1.bf16.msra.mxu1 %v11475_v28  ;;  %8805 = vmatprep.subr.bf16.mxu0 %v11480_v30 }
 0x328   : > { %8846 = vmatprep.subr.bf16.mxu1 %v11483_v19 }
 0x32a   : > { %8806 = vmatpush1.bf16.msra.mxu0 %v11478_v0 }
 0x32b   : > { %8847 = vmatpush1.bf16.msra.mxu1 %v11481_v33  ;;  %8807 = vmatprep.subr.bf16.mxu0 %v11486_v3  ;;  %v11550_v3 = vld [vmem:[%s12912_s10 + $0x1060] ss:$8 sps:$4 sm:$0xff]  }
 0x32c   : > { %8848 = vmatprep.subr.bf16.mxu1 %v11489_v35  ;;  %v11553_v35 = vld [vmem:[%s12912_s10 + $0x1160] ss:$8 sps:$4 sm:$0xff]  }
 0x32e   : > { %8808 = vmatpush1.bf16.msra.mxu0 %v11484_v36 }
 0x32f   : > { %8849 = vmatpush1.bf16.msra.mxu1 %v11487_v6  ;;  %8809 = vmatprep.subr.bf16.mxu0 %v11492_v37 }
 0x330   : > { %8850 = vmatprep.subr.bf16.mxu1 %v11495_v7  ;;  %v11558_v7 = vld [vmem:[%s12912_s10 + $0x1074] ss:$8 sps:$4 sm:$0xff]  }
 0x332   : > { %8810 = vmatpush1.bf16.msra.mxu0 %v11490_v38  ;;  %v11561_v38 = vld [vmem:[%s12912_s10 + $0x1174] ss:$8 sps:$4 sm:$0xff]  }
 0x333   : > { %8851 = vmatpush1.bf16.msra.mxu1 %v11493_v39  ;;  %8811 = vmatprep.subr.bf16.mxu0 %v11498_v40  ;;  %v11556_v40 = vld [vmem:[%s12912_s10 + $0x1070] ss:$8 sps:$4 sm:$0xff]  }
 0x334   : > { %8852 = vmatprep.subr.bf16.mxu1 %v11501_v41  ;;  %v11559_v41 = vld [vmem:[%s12912_s10 + $0x1170] ss:$8 sps:$4 sm:$0xff]  }
 0x336   : > { %8812 = vmatpush1.bf16.msra.mxu0 %v11496_v42  ;;  %v11567_v42 = vld [vmem:[%s12912_s10 + $0x1184] ss:$8 sps:$4 sm:$0xff]  }
 0x337   : > { %8853 = vmatpush1.bf16.msra.mxu1 %v11499_v46  ;;  %8813 = vmatprep.subr.bf16.mxu0 %v11504_v47  ;;  %v11562_v46 = vld [vmem:[%s12912_s10 + $0x1080] ss:$8 sps:$4 sm:$0xff]  }
 0x338   : > { %8854 = vmatprep.subr.bf16.mxu1 %v11507_v43  ;;  %v11565_v47 = vld [vmem:[%s12912_s10 + $0x1180] ss:$8 sps:$4 sm:$0xff]   ;;  %v11573_v43 = vld [vmem:[%s12912_s10 + $0x1194] ss:$8 sps:$4 sm:$0xff]  }
 0x33a   : > { %8814 = vmatpush1.bf16.msra.mxu0 %v11502_v44  ;;  %v11568_v44 = vld [vmem:[%s12912_s10 + $0x1090] ss:$8 sps:$4 sm:$0xff]  }
 0x33b   : > { %8855 = vmatpush1.bf16.msra.mxu1 %v11505_v45  ;;  %8815 = vmatprep.subr.bf16.mxu0 %v11510_v48  ;;  %v11571_v45 = vld [vmem:[%s12912_s10 + $0x1190] ss:$8 sps:$4 sm:$0xff]   ;;  %v11576_v48 = vld [vmem:[%s12912_s10 + $0x10a4] ss:$8 sps:$4 sm:$0xff]  }
 0x33c   : > { %8856 = vmatprep.subr.bf16.mxu1 %v11513_v49  ;;  %v11579_v49 = vld [vmem:[%s12912_s10 + $0x11a4] ss:$8 sps:$4 sm:$0xff]  }
 0x33e   : > { %8816 = vmatpush1.bf16.msra.mxu0 %v11508_v52  ;;  %v11582_v52 = vld [vmem:[%s12912_s10 + $0x10b4] ss:$8 sps:$4 sm:$0xff]  }
 0x33f   : > { %8857 = vmatpush1.bf16.msra.mxu1 %v11511_v53  ;;  %9270 = vmatprep.subr.bf16.mxu0 %v11516_v5  ;;  %v11585_v53 = vld [vmem:[%s12912_s10 + $0x11b4] ss:$8 sps:$4 sm:$0xff]   ;;  %v11580_v5 = vld [vmem:[%s12912_s10 + $0x10b0] ss:$8 sps:$4 sm:$0xff]  }
 0x340   : > { %9311 = vmatprep.subr.bf16.mxu1 %v11519_v29  ;;  %v11583_v29 = vld [vmem:[%s12912_s10 + $0x11b0] ss:$8 sps:$4 sm:$0xff]  }
 0x341   : > { %8818 = vmatmul.mubr.bf16.vlgmr.msra.gmra.mrb[28].mxu0 %v8448_v55  ;;  %v11588_v55 = vld [vmem:[%s12912_s10 + $0x10c4] ss:$8 sps:$4 sm:$0xff]  }
 0x342   : > { %8859 = vmatmul.mubr.bf16.vlgmr.msra.gmra.mrb[28].mxu1 %v8456_v56  ;;  %9271 = vmatpush1.bf16.msra.mxu0 %v11514_v23  ;;  %v11591_v56 = vld [vmem:[%s12912_s10 + $0x11c4] ss:$8 sps:$4 sm:$0xff]   ;;  %v11586_v23 = vld [vmem:[%s12912_s10 + $0x10c0] ss:$8 sps:$4 sm:$0xff]  }
 0x343   : > { %9312 = vmatpush1.bf16.msra.mxu1 %v11517_v59  ;;  %9272 = vmatprep.subr.bf16.mxu0 %v11522_v21  ;;  %v11589_v59 = vld [vmem:[%s12912_s10 + $0x11c0] ss:$8 sps:$4 sm:$0xff]   ;;  %v11594_v21 = vld [vmem:[%s12912_s10 + $0x10d4] ss:$8 sps:$4 sm:$0xff]  }
 0x344   : > { %9313 = vmatprep.subr.bf16.mxu1 %v11525_v32  ;;  %9302 = vmatprep.mubr.bf16.mxu0 %v10599_v22  ;;  %v11597_v32 = vld [vmem:[%s12912_s10 + $0x11d4] ss:$8 sps:$4 sm:$0xff]   ;;  %v11592_v22 = vld [vmem:[%s12912_s10 + $0x10d0] ss:$8 sps:$4 sm:$0xff]  }
 0x345   : > { %9343 = vmatprep.mubr.bf16.mxu1 %v10601_v60  ;;  %v11595_v60 = vld [vmem:[%s12912_s10 + $0x11d0] ss:$8 sps:$4 sm:$0xff]  }
 0x346   : > { %9273 = vmatpush1.bf16.msra.mxu0 %v11520_v34  ;;  %v11600_v34 = vld [vmem:[%s12912_s10 + $0x10e4] ss:$8 sps:$4 sm:$0xff]  }
 0x347   : > { %9314 = vmatpush1.bf16.msra.mxu1 %v11523_v61  ;;  %9274 = vmatprep.subr.bf16.mxu0 %v11528_v62  ;;  %v11603_v61 = vld [vmem:[%s12912_s10 + $0x11e4] ss:$8 sps:$4 sm:$0xff]   ;;  %v11598_v62 = vld [vmem:[%s12912_s10 + $0x10e0] ss:$8 sps:$4 sm:$0xff]  }
 0x348   : > { %9315 = vmatprep.subr.bf16.mxu1 %v11531_v63  ;;  %v11601_v63 = vld [vmem:[%s12912_s10 + $0x11e0] ss:$8 sps:$4 sm:$0xff]  }
 0x34a   : > { %9275 = vmatpush1.bf16.msra.mxu0 %v11526_v1  ;;  %v11606_v1 = vld [vmem:[%s12912_s10 + $0x10f4] ss:$8 sps:$4 sm:$0xff]  }
 0x34b   : > { %9316 = vmatpush1.bf16.msra.mxu1 %v11529_v2  ;;  %9276 = vmatprep.subr.bf16.mxu0 %v11534_v8  ;;  %v11609_v2 = vld [vmem:[%s12912_s10 + $0x11f4] ss:$8 sps:$4 sm:$0xff]   ;;  %v11604_v8 = vld [vmem:[%s12912_s10 + $0x10f0] ss:$8 sps:$4 sm:$0xff]  }
 0x34c   : > { %9317 = vmatprep.subr.bf16.mxu1 %v11537_v9  ;;  %v11607_v9 = vld [vmem:[%s12912_s10 + $0x11f0] ss:$8 sps:$4 sm:$0xff]  }
 0x34e   : > { %9277 = vmatpush1.bf16.msra.mxu0 %v11532_v10  ;;  %v10598_v10 = vcombine.low %v13565_v58, %v13565_v58 }
 0x34f   : > { %9318 = vmatpush1.bf16.msra.mxu1 %v11535_v11  ;;  %9278 = vmatprep.subr.bf16.mxu0 %v11540_v13  ;;  %v10600_v11 = vcombine.low %v13568_v31, %v13568_v31 }
 0x350   : > { %9319 = vmatprep.subr.bf16.mxu1 %v11543_v14 }
 0x352   : > { %9279 = vmatpush1.bf16.msra.mxu0 %v11538_v15 }
 0x353   : > { %9320 = vmatpush1.bf16.msra.mxu1 %v11541_v16  ;;  %9280 = vmatprep.subr.bf16.mxu0 %v11546_v24 }
 0x354   : > { %9321 = vmatprep.subr.bf16.mxu1 %v11549_v25  ;;  %v7352_v57 = vpop.f32.mrb[16].mxu0 }
 0x355   : > { %v7393_v4 = vpop.f32.mrb[16].mxu1  ;;  %v7354_v28 = vpop.f32.mrb[17].mxu0 }
 0x356   : > { %v7394_v20 = vadd.f32 %v7393_v4, %v7352_v57  ;;  %v7395_v30 = vpop.f32.mrb[17].mxu1  ;;  %v7356_v0 = vpop.f32.mrb[18].mxu0  ;;  %9281 = vmatpush1.bf16.msra.mxu0 %v11544_v54 }
 0x357   : > { %v7396_v19 = vadd.f32 %v7395_v30, %v7354_v28  ;;  %v7397_v33 = vpop.f32.mrb[18].mxu1  ;;  %9322 = vmatpush1.bf16.msra.mxu1 %v11547_v26  ;;  %v7357_v6 = vpop.f32.mrb[19].mxu0  ;;  %9282 = vmatprep.subr.bf16.mxu0 %v11552_v27 }
 0x358   : > { %v13601_v36 = vadd.f32 %v7394_v20, %v13519_v12  ;;  %v7398_v37 = vpop.f32.mrb[19].mxu1  ;;  %9323 = vmatprep.subr.bf16.mxu1 %v11555_v18  ;;  %v11564_v12 = vld [vmem:[%s12912_s10 + $0x1084] ss:$8 sps:$4 sm:$0xff]  }
 0x359   : > { %v13606_v39 = vadd.f32 %v7396_v19, %v13524_v17  ;;  %v11570_v17 = vld [vmem:[%s12912_s10 + $0x1094] ss:$8 sps:$4 sm:$0xff]  }
 0x35a   : > { %9283 = vmatpush1.bf16.msra.mxu0 %v11550_v3 }
 0x35b   : > { %9324 = vmatpush1.bf16.msra.mxu1 %v11553_v35  ;;  %9284 = vmatprep.subr.bf16.mxu0 %v11558_v7 }
 0x35c   : > { %9325 = vmatprep.subr.bf16.mxu1 %v11561_v38 }
 0x35e   : > { %9285 = vmatpush1.bf16.msra.mxu0 %v11556_v40 }
 0x35f   : > { %9326 = vmatpush1.bf16.msra.mxu1 %v11559_v41  ;;  %9286 = vmatprep.subr.bf16.mxu0 %v11564_v12 }
 0x360   : > { %9327 = vmatprep.subr.bf16.mxu1 %v11567_v42 }
 0x362   : > { %9287 = vmatpush1.bf16.msra.mxu0 %v11562_v46 }
 0x363   : > { %9328 = vmatpush1.bf16.msra.mxu1 %v11565_v47  ;;  %9288 = vmatprep.subr.bf16.mxu0 %v11570_v17 }
 0x364   : > { %9329 = vmatprep.subr.bf16.mxu1 %v11573_v43 }
 0x366   : > { %9289 = vmatpush1.bf16.msra.mxu0 %v11568_v44  ;;  %v9356_v44 = vlaneseq }
 0x367   : > { %9330 = vmatpush1.bf16.msra.mxu1 %v11571_v45  ;;  %9290 = vmatprep.subr.bf16.mxu0 %v11576_v48  ;;  %v9368_v48 = vld [vmem:[%s4959_s29] sm:$0x3] }
 0x368   : > { %9331 = vmatprep.subr.bf16.mxu1 %v11579_v49  ;;  %v9357_v45 = vshrl.u32 %v9356_v44, 7 }
 0x36a   : > { %9291 = vmatpush1.bf16.msra.mxu0 %v11574_v50  ;;  %v9358_v49 = vsub.s32 0, %v9357_v45  ;;  %v9354_v50 = vld [vmem:[%s4950_s6] sm:$0x3] }
 0x36b   : > { %9332 = vmatpush1.bf16.msra.mxu1 %v11577_v51  ;;  %9292 = vmatprep.subr.bf16.mxu0 %v11582_v52  ;;  %v9362_v51 = vsub.s32 1, %v9357_v45  ;;  %v9369_v52 = vunpack.c.l.bf16 %v9368_v48 }
 0x36c   : > { %9333 = vmatprep.subr.bf16.mxu1 %v11585_v53 }
 0x36e   : > { %9293 = vmatpush1.bf16.msra.mxu0 %v11580_v5 }
 0x36f   : > { %9334 = vmatpush1.bf16.msra.mxu1 %v11583_v29  ;;  %9294 = vmatprep.subr.bf16.mxu0 %v11588_v55  ;;  %v9377_v29 = vsub.s32 2, %v9357_v45 }
 0x370   : > { %9335 = vmatprep.subr.bf16.mxu1 %v11591_v56  ;;  %v9359_v56 = vrot.slane %v9354_v50, %v9358_v49 }
 0x372   : > { %9295 = vmatpush1.bf16.msra.mxu0 %v11586_v23 }
 0x373   : > { %9336 = vmatpush1.bf16.msra.mxu1 %v11589_v59  ;;  %9296 = vmatprep.subr.bf16.mxu0 %v11594_v21 }
 0x374   : > { %9337 = vmatprep.subr.bf16.mxu1 %v11597_v32  ;;  %v9363_v32 = vrot.slane %v9354_v50, %v9362_v51 }
 0x376   : > { %9297 = vmatpush1.bf16.msra.mxu0 %v11592_v22  ;;  %v11670_v22 = vmov 1966171168  }
 0x377   : > { %9338 = vmatpush1.bf16.msra.mxu1 %v11595_v60  ;;  %9298 = vmatprep.subr.bf16.mxu0 %v11600_v34  ;;  %v9391_v60 = vunpack.c.l.s4 %v11670_v22 }
 0x378   : > { %9339 = vmatprep.subr.bf16.mxu1 %v11603_v61 }
 0x37a   : > { %9299 = vmatpush1.bf16.msra.mxu0 %v11598_v62 }
 0x37b   : > { %9340 = vmatpush1.bf16.msra.mxu1 %v11601_v63  ;;  %9300 = vmatprep.subr.bf16.mxu0 %v11606_v1  ;;  %v9374_v63 = vrot.slane %v9369_v52, %v9358_v49 }
 0x37c   : > { %9341 = vmatprep.subr.bf16.mxu1 %v11609_v2 }
 0x37e   : > { %9301 = vmatpush1.bf16.msra.mxu0 %v11604_v8 }
 0x37f   : > { %9342 = vmatpush1.bf16.msra.mxu1 %v11607_v9  ;;  %v9378_v9 = vrot.slane %v9369_v52, %v9377_v29 }
 0x381   : > { %9303 = vmatmul.mubr.bf16.vlgmr.msra.gmra.mrb[32].mxu0 %v10598_v10 }
 0x382   : > { %9344 = vmatmul.mubr.bf16.vlgmr.msra.gmra.mrb[32].mxu1 %v10600_v11 }
 0x394   : > { %v7841_v13 = vpop.f32.mrb[20].mxu0 }
 0x395   : > { %v7882_v14 = vpop.f32.mrb[20].mxu1  ;;  %v7843_v16 = vpop.f32.mrb[21].mxu0 }
 0x396   : > { %v7883_v15 = vadd.f32 %v7882_v14, %v7841_v13  ;;  %v7884_v24 = vpop.f32.mrb[21].mxu1  ;;  %v7845_v54 = vpop.f32.mrb[22].mxu0  ;;  %v9392_v13 = vunpack.c.0.s8 %v9391_v60 }
 0x397   : > { %v7885_v25 = vadd.f32 %v7884_v24, %v7843_v16  ;;  %v7886_v26 = vpop.f32.mrb[22].mxu1  ;;  %v7846_v18 = vpop.f32.mrb[23].mxu0 }
 0x398   : > { %v7889_v27 = vadd.f32 %v7883_v15, %v13601_v36  ;;  %v7887_v57 = vpop.f32.mrb[23].mxu1 }
 0x399   : > { %v7890_v58 = vadd.f32 %v7885_v25, %v13606_v39  ;;  %v9395_v25 = vsub.s32 %v9392_v13, %v9357_v45 }
 0x3d4   : > { %v8330_v4 = vpop.f32.mrb[24].mxu0 }
 0x3d5   : > { %v8371_v31 = vpop.f32.mrb[24].mxu1  ;;  %v8332_v28 = vpop.f32.mrb[25].mxu0 }
 0x3d6   : > { %v8372_v20 = vadd.f32 %v8371_v31, %v8330_v4  ;;  %v8373_v30 = vpop.f32.mrb[25].mxu1  ;;  %v8334_v0 = vpop.f32.mrb[26].mxu0 }
 0x3d7   : > { %v8374_v19 = vadd.f32 %v8373_v30, %v8332_v28  ;;  %v8375_v33 = vpop.f32.mrb[26].mxu1  ;;  %v8335_v35 = vpop.f32.mrb[27].mxu0 }
 0x3d8   : > { %v8378_v3 = vadd.f32 %v8372_v20, %v7889_v27  ;;  %v8376_v6 = vpop.f32.mrb[27].mxu1  ;;  %v9412_v27 = vld [vmem:[%s4968_s7] sm:$0x3] }
 0x3d9   : > { %v8379_v37 = vadd.f32 %v8374_v19, %v7890_v58 }
 0x414   : > { %v8819_v7 = vpop.f32.mrb[28].mxu0 }
 0x415   : > { %v8860_v36 = vpop.f32.mrb[28].mxu1  ;;  %v8821_v40 = vpop.f32.mrb[29].mxu0 }
 0x416   : > { %v8861_v38 = vadd.f32 %v8860_v36, %v8819_v7  ;;  %v8862_v41 = vpop.f32.mrb[29].mxu1  ;;  %v8823_v12 = vpop.f32.mrb[30].mxu0 }
 0x417   : > { %v8863_v39 = vadd.f32 %v8862_v41, %v8821_v40  ;;  %v8864_v42 = vpop.f32.mrb[30].mxu1  ;;  %v8824_v47 = vpop.f32.mrb[31].mxu0 }
 0x418   : > { %v8867_v46 = vadd.f32 %v8861_v38, %v8378_v3  ;;  %v8865_v17 = vpop.f32.mrb[31].mxu1 }
 0x419   : > { %v8868_v43 = vadd.f32 %v8863_v39, %v8379_v37 }
 0x454   : > { %v9304_v53 = vpop.f32.mrb[32].mxu0 }
 0x455   : > { %v9345_v5 = vpop.f32.mrb[32].mxu1  ;;  %v9306_v23 = vpop.f32.mrb[33].mxu0 }
 0x456   : > { %v9346_v55 = vadd.f32 %v9345_v5, %v9304_v53  ;;  %v9347_v59 = vpop.f32.mrb[33].mxu1  ;;  %v9308_v34 = vpop.f32.mrb[34].mxu0 }
 0x457   : > { %v9348_v21 = vadd.f32 %v9347_v59, %v9306_v23  ;;  %v9349_v61 = vpop.f32.mrb[34].mxu1  ;;  %v9309_v1 = vpop.f32.mrb[35].mxu0 }
 0x458   : > { %v9352_v62 = vadd.f32 %v9346_v55, %v8867_v46  ;;  %v9350_v2 = vpop.f32.mrb[35].mxu1 }
 0x459   : > { %v9353_v8 = vadd.f32 %v9348_v21, %v8868_v43 }
 0x45a   : > { %v9366_v10 = vadd.f32 %v9359_v56, %v9352_v62 }
 0x45b   : > { %v9367_v11 = vadd.f32 %v9363_v32, %v9353_v8 }
 0x45c   : > { %v9381_v14 = vadd.f32 %v9374_v63, %v9366_v10 }
 0x45d   : > { %v9382_v15 = vadd.f32 %v9378_v9, %v9367_v11 }
 0x45e   : > { %v9383_v16 = vmax.f32 %v9381_v14, 0.0 }
 0x45f   : > { %v9384_v24 = vmax.f32 %v9382_v15, 0.0 }
 0x461   : > { %v10666_v54 = vpack.c.bf16 %v9384_v24, %v9383_v16 }
 0x463   : > { %v9396_v26 = vrot.slane %v10666_v54, %v9395_v25 }
 0x465   : > { %v9403_v18 = vrot.slane %v9396_v26, %v9395_v25 }
 0x467   : > { %v9413_v57 = vsel %vm9411_vm6, %v9403_v18, %v9412_v27 }
 0x468   : > { %9414 = vst [vmem:[%s4968_s7] sm:$0x3] %v9413_v57 }
 0x469 PF: > { %s14_s21 = sadd.s32 1, %s11668_s21   ;;  %s13689_s15 = smov %s11648_s16 }
 0x46a   : > { %p11_p12 = scmp.ge.s32.totalorder %s14_s21, 6   ;;  %s13690_s16 = smov %s11745_s26 }
 0x46b   : > { %s13691_s17 = smov %s11660_s19  ;;  %s13692_s18 = smov %s11664_s20 }
 0x46c   : > { %s13693_s19 = smov %s13696_s22  ;;  %s13694_s20 = smov %s13700_s23 }
 0x46d   :  { %13 = sbr.rel (!%p11_p12) target bundleno = 4 (0x4), region = 146 }

</bundles_post_ra>
